<compile_context>
chip_gen: v7x
topology: tpu7x:2x2x1
jax: 0.10.0
libtpu: 0.0.40
codegen_flags: <defaults>
</compile_context>

<pallas_src>
import jax
import jax.numpy as jnp
import numpy as np
from jax import lax
from jax.experimental import pallas as pl
from jax.experimental.pallas import tpu as pltpu

MXU_DTYPE = jnp.bfloat16       # matmul operand dtype (accumulation is always f32)
ACT_DTYPE = jnp.float32        # element-wise / activation dtype

_STAGE_REPEATS = (4, 8, 4)
_STAGE_CH = (24, 48, 96, 192, 1024)


def _down(d):
    """Output size of a kernel-3 / stride-2 / pad-1 conv or pool."""
    return (d - 1) // 2 + 1


# ---------------------------------------------------------------------------
# Structural 0/1 matrices (built once at init; they turn spatial ops into matmuls)
# ---------------------------------------------------------------------------

def _shift_mats(H, W, stride, mode):
    """(9, Ho*Wo, H*W) selection matrices implementing a 3x3 window (pad=1) as matmuls.

    mode='conv': out-of-bounds taps select nothing (all-zero row)  -> zero padding
    mode='max' : out-of-bounds taps re-select the window centre    -> ignored by max()
    """
    Ho = (H - 1) // stride + 1
    Wo = (W - 1) // stride + 1
    T = np.zeros((9, Ho * Wo, H * W), np.float32)
    taps = [(dy, dx) for dy in (-1, 0, 1) for dx in (-1, 0, 1)]
    for k, (dy, dx) in enumerate(taps):
        for ho in range(Ho):
            for wo in range(Wo):
                hi, wi = stride * ho + dy, stride * wo + dx
                if 0 <= hi < H and 0 <= wi < W:
                    T[k, ho * Wo + wo, hi * W + wi] = 1.0
                elif mode == "max":
                    T[k, ho * Wo + wo, (stride * ho) * W + (stride * wo)] = 1.0
    return jnp.asarray(T, MXU_DTYPE)


def _shuffle_embed(bf):
    """concat([b1, b2], channel) + channel_shuffle(groups=2) folded into embeddings."""
    C = 2 * bf
    P = np.zeros((C, C), np.float32)
    for g in range(2):
        for c in range(bf):
            P[g * bf + c, 2 * c + g] = 1.0       # shuffled position of concat channel g*bf+c
    e1 = jnp.asarray(P[:bf], MXU_DTYPE)
    e2 = jnp.asarray(P[bf:], MXU_DTYPE)
    e1_full = jnp.asarray(
        np.concatenate([P[:bf], np.zeros((bf, C), np.float32)], axis=0), MXU_DTYPE)
    return e1, e2, e1_full


# ---------------------------------------------------------------------------
# Synthetic parameters (BatchNorm folded, shuffle/split folded into weights)
# ---------------------------------------------------------------------------

def _pw_params(key, cin, cout):
    k1, k2, k3 = jax.random.split(key, 3)
    w = jax.random.normal(k1, (cin, cout), jnp.float32) / np.sqrt(cin)
    scale = 1.0 + 0.1 * jax.random.normal(k2, (1, cout), jnp.float32)
    bias = 0.05 * jax.random.normal(k3, (1, cout), jnp.float32)
    return {"w": (w * scale).astype(MXU_DTYPE), "b": bias.astype(ACT_DTYPE)}


def _dw_params(key, c):
    k1, k2, k3 = jax.random.split(key, 3)
    w = jax.random.normal(k1, (9, c), jnp.float32) / 3.0
    scale = 1.0 + 0.1 * jax.random.normal(k2, (1, c), jnp.float32)
    bias = 0.05 * jax.random.normal(k3, (1, c), jnp.float32)
    return {"w": (w * scale).astype(ACT_DTYPE), "b": bias.astype(ACT_DTYPE)}


def init_params(key, input_hw=(32, 32)):
    H0, W0 = input_hw
    H1, W1 = _down(H0), _down(W0)          # after conv1 (s2)
    H2, W2 = _down(H1), _down(W1)          # after maxpool (s2)
    keys = iter(jax.random.split(key, 256))

    params = {
        "conv1": _pw_params(next(keys), 9 * 3, _STAGE_CH[0]),   # 3x3 conv via im2col rows
        "pool_t": _shift_mats(H1, W1, 2, "max"),
        "conv5": _pw_params(next(keys), _STAGE_CH[3], _STAGE_CH[4]),
    }

    inp = _STAGE_CH[0]
    Hc, Wc = H2, W2                        # spatial size entering the current stage
    for si, (reps, oup) in enumerate(zip(_STAGE_REPEATS, _STAGE_CH[1:4]), start=2):
        bf = oup // 2
        Ho, Wo = _down(Hc), _down(Wc)      # spatial size inside / after this stage
        e1, e2, e1_full = _shuffle_embed(bf)
        down = {
            "t": _shift_mats(Hc, Wc, 2, "conv"),
            "b1_dw": _dw_params(next(keys), inp),
            "b1_pw": _pw_params(next(keys), inp, bf),
            "b2_pw1": _pw_params(next(keys), inp, bf),
            "b2_dw": _dw_params(next(keys), bf),
            "b2_pw2": _pw_params(next(keys), bf, bf),
        }
        # Stride-1 units: stack per-block weights along a leading axis -> fori_loop in-kernel.
        pw1_w, pw1_b, dw_w, dw_b, pw2_w, pw2_b = [], [], [], [], [], []
        for _ in range(reps - 1):
            pw1 = _pw_params(next(keys), bf, bf)
            # fold the channel split (x2 = x[:, bf:]) into zero rows of pw1's weight
            w1_aug = jnp.concatenate([jnp.zeros((bf, bf), MXU_DTYPE), pw1["w"]], axis=0)
            dw = _dw_params(next(keys), bf)
            pw2 = _pw_params(next(keys), bf, bf)
            pw1_w.append(w1_aug); pw1_b.append(pw1["b"])
            dw_w.append(dw["w"]); dw_b.append(dw["b"])
            pw2_w.append(pw2["w"]); pw2_b.append(pw2["b"])
        blocks = {
            "pw1_w": jnp.stack(pw1_w), "pw1_b": jnp.stack(pw1_b),
            "dw_w": jnp.stack(dw_w), "dw_b": jnp.stack(dw_b),
            "pw2_w": jnp.stack(pw2_w), "pw2_b": jnp.stack(pw2_b),
        }
        t_s1 = None if Ho * Wo == 1 else _shift_mats(Ho, Wo, 1, "conv")
        params[f"stage{si}"] = {
            "e1": e1, "e2": e2, "e1_full": e1_full,
            "t_s1": t_s1, "down": down, "blocks": blocks,
        }
        inp, (Hc, Wc) = oup, (Ho, Wo)

    hw5 = Hc * Wc
    params["gap"] = None if hw5 == 1 else jnp.full((1, hw5), 1.0 / hw5, ACT_DTYPE)
    return params


# ---------------------------------------------------------------------------
# In-kernel building blocks (operate on (rows, channels) f32 values)
# ---------------------------------------------------------------------------

def _pw(y, w, b, relu):
    """1x1 conv + folded BN (+ReLU): bf16 matmul on the MXU, f32 accumulate/affine."""
    z = jnp.dot(y.astype(MXU_DTYPE), w, preferred_element_type=jnp.float32) + b
    return jnp.maximum(z, 0.0) if relu else z


def _dw(y, t_ref, w, b):
    """Depthwise 3x3 (pad=1, stride folded into t_ref) + folded BN, no ReLU.

    t_ref: VMEM ref of (9, HWo, HW) selection mats, or None for a 1x1 / stride-1 map.
    w: (9, C) f32 per-channel tap weights (BN folded); b: (1, C) f32.
    """
    if t_ref is None:                       # 1x1 spatial, stride 1: only the centre tap
        return y * w[4] + b
    yb = y.astype(MXU_DTYPE)
    acc = None
    for k in range(9):
        sel = jnp.dot(t_ref[k], yb, preferred_element_type=jnp.float32)
        term = sel * w[k]
        acc = term if acc is None else acc + term
    return acc + b


def _maxpool(y, t_ref):
    """3x3 / stride-2 / pad-1 max pool (invalid taps duplicate the window centre)."""
    yb = y.astype(MXU_DTYPE)
    out = None
    for k in range(9):
        sel = jnp.dot(t_ref[k], yb, preferred_element_type=jnp.float32)
        out = sel if out is None else jnp.maximum(out, sel)
    return out


def _combine(b1, e1, b2, e2):
    """concat along channels + channel_shuffle(2), folded into two embedding matmuls."""
    return (jnp.dot(b1.astype(MXU_DTYPE), e1, preferred_element_type=jnp.float32)
            + jnp.dot(b2.astype(MXU_DTYPE), e2, preferred_element_type=jnp.float32))


def _block_down(y, st):
    blk = st["down"]
    t = blk["t"]
    b1 = _dw(y, t, blk["b1_dw"]["w"][...], blk["b1_dw"]["b"][...])
    b1 = _pw(b1, blk["b1_pw"]["w"][...], blk["b1_pw"]["b"][...], relu=True)
    b2 = _pw(y, blk["b2_pw1"]["w"][...], blk["b2_pw1"]["b"][...], relu=True)
    b2 = _dw(b2, t, blk["b2_dw"]["w"][...], blk["b2_dw"]["b"][...])
    b2 = _pw(b2, blk["b2_pw2"]["w"][...], blk["b2_pw2"]["b"][...], relu=True)
    return _combine(b1, st["e1"][...], b2, st["e2"][...])


def _stage_units(y, st):
    """All stride-1 units of a stage as one fori_loop over block-stacked weights."""
    blocks = st["blocks"]
    nblk = blocks["pw1_w"].shape[0]         # static
    t_s1 = st["t_s1"]
    e1_full = st["e1_full"][...]            # hoisted loads (tiny, reused every iteration)
    e2 = st["e2"][...]

    def body(i, y):
        b2 = _pw(y, blocks["pw1_w"][i], blocks["pw1_b"][i], relu=True)
        b2 = _dw(b2, t_s1, blocks["dw_w"][i], blocks["dw_b"][i])
        b2 = _pw(b2, blocks["pw2_w"][i], blocks["pw2_b"][i], relu=True)
        return _combine(y, e1_full, b2, e2)

    return lax.fori_loop(0, nblk, body, y)


def _make_kernel(treedef, n_leaves):
    def kernel(*refs):
        x_ref = refs[0]
        o_ref = refs[-1]
        p = jax.tree_util.tree_unflatten(treedef, refs[1:1 + n_leaves])

        y = x_ref[0].astype(ACT_DTYPE)                           # (H1*W1, 27) conv1 patches
        y = _pw(y, p["conv1"]["w"][...], p["conv1"]["b"][...], relu=True)   # (H1*W1, 24)
        y = _maxpool(y, p["pool_t"])                             # (H2*W2, 24)
        for sname in ("stage2", "stage3", "stage4"):
            st = p[sname]
            y = _block_down(y, st)
            y = _stage_units(y, st)
        y = _pw(y, p["conv5"]["w"][...], p["conv5"]["b"][...], relu=True)   # (H5*W5, 1024)
        if p["gap"] is not None:                                 # mean over spatial rows
            y = jnp.dot(p["gap"][...], y, preferred_element_type=jnp.float32)
        o_ref[0] = y.astype(o_ref.dtype)                         # (1, 1024)
    return kernel


# ---------------------------------------------------------------------------
# Host-side wrapper: one small XLA prologue (conv1 im2col) + ONE pallas_call
# ---------------------------------------------------------------------------

def _const_index_map(ndim):
    def index_map(i):
        return (0,) * ndim
    return index_map


def _conv1_im2col(x_nchw):
    """3x3/stride-2/pad-1 patches of the input, rows ordered (h', w'), cols (dy, dx, cin)."""
    x = jnp.transpose(x_nchw, (0, 2, 3, 1)).astype(ACT_DTYPE)
    N, H, W, C = x.shape
    Ho, Wo = _down(H), _down(W)
    xp = jnp.pad(x, ((0, 0), (1, 1), (1, 1), (0, 0)))
    cols = [xp[:, dy:dy + 2 * Ho - 1:2, dx:dx + 2 * Wo - 1:2, :]
            for dy in range(3) for dx in range(3)]
    patches = jnp.concatenate(cols, axis=-1)           # (N, Ho, Wo, 9*C)
    return patches.reshape(N, Ho * Wo, 9 * C)


def shufflenet_v2_x0_5_features(x_nchw, params):
    """Forward pass of shufflenet_v2_x0_5M (the replaced fc is never called)."""
    leaves, treedef = jax.tree_util.tree_flatten(params)
    x_cols = _conv1_im2col(x_nchw)                     # (N, H1*W1, 27)
    N = x_cols.shape[0]

    in_specs = [pl.BlockSpec((1,) + x_cols.shape[1:], lambda i: (i, 0, 0))]
    for leaf in leaves:
        in_specs.append(pl.BlockSpec(leaf.shape, _const_index_map(leaf.ndim)))
    out_specs = pl.BlockSpec((1, 1, _STAGE_CH[4]), lambda i: (i, 0, 0))

    out = pl.pallas_call(
        _make_kernel(treedef, len(leaves)),
        out_shape=jax.ShapeDtypeStruct((N, 1, _STAGE_CH[4]), ACT_DTYPE),
        grid=(N,),
        in_specs=in_specs,
        out_specs=out_specs,
        compiler_params=pltpu.CompilerParams(dimension_semantics=("parallel",)),
    )(x_cols, *leaves)
    return out.reshape(N, _STAGE_CH[4])


# ---------------------------------------------------------------------------
# Pure-JAX (XLA) reference with the "natural" formulation, for a correctness check
# ---------------------------------------------------------------------------

def _round_bf16(x):
    return x.astype(jnp.bfloat16).astype(jnp.float32)


def _ref_pw(x, p, relu):
    N, H, W, _ = x.shape
    w = p["w"]
    z = jnp.dot(x.reshape(N * H * W, -1).astype(jnp.bfloat16), w,
                preferred_element_type=jnp.float32) + p["b"]
    if relu:
        z = jnp.maximum(z, 0.0)
    return z.reshape(N, H, W, w.shape[1])


def _ref_dw(x, p, stride):
    N, H, W, C = x.shape
    Ho, Wo = (H - 1) // stride + 1, (W - 1) // stride + 1
    xp = jnp.pad(_round_bf16(x), ((0, 0), (1, 1), (1, 1), (0, 0)))
    acc = jnp.zeros((N, Ho, Wo, C), jnp.float32)
    for k, (dy, dx) in enumerate([(a, b) for a in range(3) for b in range(3)]):
        sl = xp[:, dy:dy + stride * (Ho - 1) + 1:stride,
                dx:dx + stride * (Wo - 1) + 1:stride, :]
        acc = acc + sl * p["w"][k]
    return acc + p["b"]


def _ref_maxpool(x):
    N, H, W, C = x.shape
    Ho, Wo = _down(H), _down(W)
    xp = jnp.pad(_round_bf16(x), ((0, 0), (1, 1), (1, 1), (0, 0)),
                 constant_values=-jnp.inf)
    out = jnp.full((N, Ho, Wo, C), -jnp.inf, jnp.float32)
    for dy in range(3):
        for dx in range(3):
            out = jnp.maximum(out, xp[:, dy:dy + 2 * (Ho - 1) + 1:2,
                                      dx:dx + 2 * (Wo - 1) + 1:2, :])
    return out


def _ref_shuffle(x):
    N, H, W, C = x.shape
    x = x.reshape(N, H, W, 2, C // 2)
    x = jnp.swapaxes(x, 3, 4)
    return x.reshape(N, H, W, C)


def _ref_block_down(x, st):
    blk = st["down"]
    b1 = _ref_pw(_ref_dw(x, blk["b1_dw"], 2), blk["b1_pw"], True)
    b2 = _ref_pw(x, blk["b2_pw1"], True)
    b2 = _ref_pw(_ref_dw(b2, blk["b2_dw"], 2), blk["b2_pw2"], True)
    return _ref_shuffle(jnp.concatenate([_round_bf16(b1), _round_bf16(b2)], axis=-1))


def _ref_block_unit(x, st, i):
    bf = x.shape[-1] // 2
    blocks = st["blocks"]
    x1, x2 = x[..., :bf], x[..., bf:]
    b2 = _ref_pw(x2, {"w": blocks["pw1_w"][i][bf:, :], "b": blocks["pw1_b"][i]}, True)
    b2 = _ref_dw(b2, {"w": blocks["dw_w"][i], "b": blocks["dw_b"][i]}, 1)
    b2 = _ref_pw(b2, {"w": blocks["pw2_w"][i], "b": blocks["pw2_b"][i]}, True)
    return _ref_shuffle(jnp.concatenate([_round_bf16(x1), _round_bf16(b2)], axis=-1))


def shufflenet_reference(x_nchw, params):
    x = jnp.transpose(x_nchw, (0, 2, 3, 1)).astype(jnp.float32)
    N, H, W, _ = x.shape
    Ho, Wo = _down(H), _down(W)
    xp = jnp.pad(x, ((0, 0), (1, 1), (1, 1), (0, 0))).astype(jnp.bfloat16)
    w1 = params["conv1"]["w"]
    acc = jnp.zeros((N, Ho, Wo, _STAGE_CH[0]), jnp.float32)
    for k, (dy, dx) in enumerate([(a, b) for a in range(3) for b in range(3)]):
        sl = xp[:, dy:dy + 2 * (Ho - 1) + 1:2, dx:dx + 2 * (Wo - 1) + 1:2, :]
        acc = acc + jnp.einsum("nhwc,cd->nhwd", sl, w1[3 * k:3 * k + 3],
                               preferred_element_type=jnp.float32)
    y = jnp.maximum(acc + params["conv1"]["b"], 0.0)
    y = _ref_maxpool(y)
    for sname in ("stage2", "stage3", "stage4"):
        st = params[sname]
        y = _ref_block_down(y, st)
        for i in range(st["blocks"]["pw1_w"].shape[0]):
            y = _ref_block_unit(y, st, i)
    y = _ref_pw(y, params["conv5"], True)
    return jnp.mean(y, axis=(1, 2))


# ---------------------------------------------------------------------------

if __name__ == "__main__":
    key = jax.random.PRNGKey(0)
    kx, kp = jax.random.split(key)
    x = jax.random.normal(kx, (2, 3, 32, 32), jnp.float32)   # NCHW, like the PyTorch module
    params = init_params(kp, input_hw=(32, 32))

    fwd = jax.jit(shufflenet_v2_x0_5_features)
    out = fwd(x, params)
    jax.block_until_ready(out)
    assert out.shape == (2, 1024) and out.dtype == jnp.float32

    ref = jax.jit(shufflenet_reference)(x, params)
    jax.block_until_ready(ref)
    np.testing.assert_allclose(np.asarray(out), np.asarray(ref), rtol=2e-2, atol=2e-2)

    # TODO(synk): the replaced fc layer exists in __init__ but is never used in forward, so it is omitted.
    print("KERNEL_OK")
</pallas_src>

<mosaic_0001>
module attributes {stable_mosaic.version = 11 : i64} {
  func.func @kernel(%arg0: i32, %arg1: memref<1x256x27xf32, #tpu.memory_space<vmem>>, %arg2: memref<1x24xf32, #tpu.memory_space<vmem>>, %arg3: memref<27x24xbf16, #tpu.memory_space<vmem>>, %arg4: memref<1x1024xf32, #tpu.memory_space<vmem>>, %arg5: memref<192x1024xbf16, #tpu.memory_space<vmem>>, %arg6: memref<9x64x256xbf16, #tpu.memory_space<vmem>>, %arg7: memref<3x1x24xf32, #tpu.memory_space<vmem>>, %arg8: memref<3x9x24xf32, #tpu.memory_space<vmem>>, %arg9: memref<3x1x24xf32, #tpu.memory_space<vmem>>, %arg10: memref<3x48x24xbf16, #tpu.memory_space<vmem>>, %arg11: memref<3x1x24xf32, #tpu.memory_space<vmem>>, %arg12: memref<3x24x24xbf16, #tpu.memory_space<vmem>>, %arg13: memref<1x24xf32, #tpu.memory_space<vmem>>, %arg14: memref<9x24xf32, #tpu.memory_space<vmem>>, %arg15: memref<1x24xf32, #tpu.memory_space<vmem>>, %arg16: memref<24x24xbf16, #tpu.memory_space<vmem>>, %arg17: memref<1x24xf32, #tpu.memory_space<vmem>>, %arg18: memref<9x24xf32, #tpu.memory_space<vmem>>, %arg19: memref<1x24xf32, #tpu.memory_space<vmem>>, %arg20: memref<24x24xbf16, #tpu.memory_space<vmem>>, %arg21: memref<1x24xf32, #tpu.memory_space<vmem>>, %arg22: memref<24x24xbf16, #tpu.memory_space<vmem>>, %arg23: memref<9x16x64xbf16, #tpu.memory_space<vmem>>, %arg24: memref<24x48xbf16, #tpu.memory_space<vmem>>, %arg25: memref<48x48xbf16, #tpu.memory_space<vmem>>, %arg26: memref<24x48xbf16, #tpu.memory_space<vmem>>, %arg27: memref<9x16x16xbf16, #tpu.memory_space<vmem>>, %arg28: memref<7x1x48xf32, #tpu.memory_space<vmem>>, %arg29: memref<7x9x48xf32, #tpu.memory_space<vmem>>, %arg30: memref<7x1x48xf32, #tpu.memory_space<vmem>>, %arg31: memref<7x96x48xbf16, #tpu.memory_space<vmem>>, %arg32: memref<7x1x48xf32, #tpu.memory_space<vmem>>, %arg33: memref<7x48x48xbf16, #tpu.memory_space<vmem>>, %arg34: memref<1x48xf32, #tpu.memory_space<vmem>>, %arg35: memref<9x48xf32, #tpu.memory_space<vmem>>, %arg36: memref<1x48xf32, #tpu.memory_space<vmem>>, %arg37: memref<48x48xbf16, #tpu.memory_space<vmem>>, %arg38: memref<1x48xf32, #tpu.memory_space<vmem>>, %arg39: memref<9x48xf32, #tpu.memory_space<vmem>>, %arg40: memref<1x48xf32, #tpu.memory_space<vmem>>, %arg41: memref<48x48xbf16, #tpu.memory_space<vmem>>, %arg42: memref<1x48xf32, #tpu.memory_space<vmem>>, %arg43: memref<48x48xbf16, #tpu.memory_space<vmem>>, %arg44: memref<9x4x16xbf16, #tpu.memory_space<vmem>>, %arg45: memref<48x96xbf16, #tpu.memory_space<vmem>>, %arg46: memref<96x96xbf16, #tpu.memory_space<vmem>>, %arg47: memref<48x96xbf16, #tpu.memory_space<vmem>>, %arg48: memref<9x4x4xbf16, #tpu.memory_space<vmem>>, %arg49: memref<3x1x96xf32, #tpu.memory_space<vmem>>, %arg50: memref<3x9x96xf32, #tpu.memory_space<vmem>>, %arg51: memref<3x1x96xf32, #tpu.memory_space<vmem>>, %arg52: memref<3x192x96xbf16, #tpu.memory_space<vmem>>, %arg53: memref<3x1x96xf32, #tpu.memory_space<vmem>>, %arg54: memref<3x96x96xbf16, #tpu.memory_space<vmem>>, %arg55: memref<1x96xf32, #tpu.memory_space<vmem>>, %arg56: memref<9x96xf32, #tpu.memory_space<vmem>>, %arg57: memref<1x96xf32, #tpu.memory_space<vmem>>, %arg58: memref<96x96xbf16, #tpu.memory_space<vmem>>, %arg59: memref<1x96xf32, #tpu.memory_space<vmem>>, %arg60: memref<9x96xf32, #tpu.memory_space<vmem>>, %arg61: memref<1x96xf32, #tpu.memory_space<vmem>>, %arg62: memref<96x96xbf16, #tpu.memory_space<vmem>>, %arg63: memref<1x96xf32, #tpu.memory_space<vmem>>, %arg64: memref<96x96xbf16, #tpu.memory_space<vmem>>, %arg65: memref<9x1x4xbf16, #tpu.memory_space<vmem>>, %arg66: memref<96x192xbf16, #tpu.memory_space<vmem>>, %arg67: memref<192x192xbf16, #tpu.memory_space<vmem>>, %arg68: memref<96x192xbf16, #tpu.memory_space<vmem>>, %arg69: memref<1x1x1024xf32, #tpu.memory_space<vmem>>) attributes {dimension_semantics = [#tpu.dimension_semantics<parallel>], iteration_bounds = array<i64: 2>, scalar_prefetch = 0 : i64, scratch_operands = 0 : i64, tpu.core_type = #tpu.core_type<tc>, window_params = [{transform_indices = @transform_0, window_bounds = array<i64: 1, 256, 27>}, {pipeline_mode = #tpu.pipeline_mode<synchronous>, transform_indices = @transform_1, window_bounds = array<i64: 1, 24>}, {pipeline_mode = #tpu.pipeline_mode<synchronous>, transform_indices = @transform_2, window_bounds = array<i64: 27, 24>}, {pipeline_mode = #tpu.pipeline_mode<synchronous>, transform_indices = @transform_3, window_bounds = array<i64: 1, 1024>}, {pipeline_mode = #tpu.pipeline_mode<synchronous>, transform_indices = @transform_4, window_bounds = array<i64: 192, 1024>}, {pipeline_mode = #tpu.pipeline_mode<synchronous>, transform_indices = @transform_5, window_bounds = array<i64: 9, 64, 256>}, {pipeline_mode = #tpu.pipeline_mode<synchronous>, transform_indices = @transform_6, window_bounds = array<i64: 3, 1, 24>}, {pipeline_mode = #tpu.pipeline_mode<synchronous>, transform_indices = @transform_7, window_bounds = array<i64: 3, 9, 24>}, {pipeline_mode = #tpu.pipeline_mode<synchronous>, transform_indices = @transform_8, window_bounds = array<i64: 3, 1, 24>}, {pipeline_mode = #tpu.pipeline_mode<synchronous>, transform_indices = @transform_9, window_bounds = array<i64: 3, 48, 24>}, {pipeline_mode = #tpu.pipeline_mode<synchronous>, transform_indices = @transform_10, window_bounds = array<i64: 3, 1, 24>}, {pipeline_mode = #tpu.pipeline_mode<synchronous>, transform_indices = @transform_11, window_bounds = array<i64: 3, 24, 24>}, {pipeline_mode = #tpu.pipeline_mode<synchronous>, transform_indices = @transform_12, window_bounds = array<i64: 1, 24>}, {pipeline_mode = #tpu.pipeline_mode<synchronous>, transform_indices = @transform_13, window_bounds = array<i64: 9, 24>}, {pipeline_mode = #tpu.pipeline_mode<synchronous>, transform_indices = @transform_14, window_bounds = array<i64: 1, 24>}, {pipeline_mode = #tpu.pipeline_mode<synchronous>, transform_indices = @transform_15, window_bounds = array<i64: 24, 24>}, {pipeline_mode = #tpu.pipeline_mode<synchronous>, transform_indices = @transform_16, window_bounds = array<i64: 1, 24>}, {pipeline_mode = #tpu.pipeline_mode<synchronous>, transform_indices = @transform_17, window_bounds = array<i64: 9, 24>}, {pipeline_mode = #tpu.pipeline_mode<synchronous>, transform_indices = @transform_18, window_bounds = array<i64: 1, 24>}, {pipeline_mode = #tpu.pipeline_mode<synchronous>, transform_indices = @transform_19, window_bounds = array<i64: 24, 24>}, {pipeline_mode = #tpu.pipeline_mode<synchronous>, transform_indices = @transform_20, window_bounds = array<i64: 1, 24>}, {pipeline_mode = #tpu.pipeline_mode<synchronous>, transform_indices = @transform_21, window_bounds = array<i64: 24, 24>}, {pipeline_mode = #tpu.pipeline_mode<synchronous>, transform_indices = @transform_22, window_bounds = array<i64: 9, 16, 64>}, {pipeline_mode = #tpu.pipeline_mode<synchronous>, transform_indices = @transform_23, window_bounds = array<i64: 24, 48>}, {pipeline_mode = #tpu.pipeline_mode<synchronous>, transform_indices = @transform_24, window_bounds = array<i64: 48, 48>}, {pipeline_mode = #tpu.pipeline_mode<synchronous>, transform_indices = @transform_25, window_bounds = array<i64: 24, 48>}, {pipeline_mode = #tpu.pipeline_mode<synchronous>, transform_indices = @transform_26, window_bounds = array<i64: 9, 16, 16>}, {pipeline_mode = #tpu.pipeline_mode<synchronous>, transform_indices = @transform_27, window_bounds = array<i64: 7, 1, 48>}, {pipeline_mode = #tpu.pipeline_mode<synchronous>, transform_indices = @transform_28, window_bounds = array<i64: 7, 9, 48>}, {pipeline_mode = #tpu.pipeline_mode<synchronous>, transform_indices = @transform_29, window_bounds = array<i64: 7, 1, 48>}, {pipeline_mode = #tpu.pipeline_mode<synchronous>, transform_indices = @transform_30, window_bounds = array<i64: 7, 96, 48>}, {pipeline_mode = #tpu.pipeline_mode<synchronous>, transform_indices = @transform_31, window_bounds = array<i64: 7, 1, 48>}, {pipeline_mode = #tpu.pipeline_mode<synchronous>, transform_indices = @transform_32, window_bounds = array<i64: 7, 48, 48>}, {pipeline_mode = #tpu.pipeline_mode<synchronous>, transform_indices = @transform_33, window_bounds = array<i64: 1, 48>}, {pipeline_mode = #tpu.pipeline_mode<synchronous>, transform_indices = @transform_34, window_bounds = array<i64: 9, 48>}, {pipeline_mode = #tpu.pipeline_mode<synchronous>, transform_indices = @transform_35, window_bounds = array<i64: 1, 48>}, {pipeline_mode = #tpu.pipeline_mode<synchronous>, transform_indices = @transform_36, window_bounds = array<i64: 48, 48>}, {pipeline_mode = #tpu.pipeline_mode<synchronous>, transform_indices = @transform_37, window_bounds = array<i64: 1, 48>}, {pipeline_mode = #tpu.pipeline_mode<synchronous>, transform_indices = @transform_38, window_bounds = array<i64: 9, 48>}, {pipeline_mode = #tpu.pipeline_mode<synchronous>, transform_indices = @transform_39, window_bounds = array<i64: 1, 48>}, {pipeline_mode = #tpu.pipeline_mode<synchronous>, transform_indices = @transform_40, window_bounds = array<i64: 48, 48>}, {pipeline_mode = #tpu.pipeline_mode<synchronous>, transform_indices = @transform_41, window_bounds = array<i64: 1, 48>}, {pipeline_mode = #tpu.pipeline_mode<synchronous>, transform_indices = @transform_42, window_bounds = array<i64: 48, 48>}, {pipeline_mode = #tpu.pipeline_mode<synchronous>, transform_indices = @transform_43, window_bounds = array<i64: 9, 4, 16>}, {pipeline_mode = #tpu.pipeline_mode<synchronous>, transform_indices = @transform_44, window_bounds = array<i64: 48, 96>}, {pipeline_mode = #tpu.pipeline_mode<synchronous>, transform_indices = @transform_45, window_bounds = array<i64: 96, 96>}, {pipeline_mode = #tpu.pipeline_mode<synchronous>, transform_indices = @transform_46, window_bounds = array<i64: 48, 96>}, {pipeline_mode = #tpu.pipeline_mode<synchronous>, transform_indices = @transform_47, window_bounds = array<i64: 9, 4, 4>}, {pipeline_mode = #tpu.pipeline_mode<synchronous>, transform_indices = @transform_48, window_bounds = array<i64: 3, 1, 96>}, {pipeline_mode = #tpu.pipeline_mode<synchronous>, transform_indices = @transform_49, window_bounds = array<i64: 3, 9, 96>}, {pipeline_mode = #tpu.pipeline_mode<synchronous>, transform_indices = @transform_50, window_bounds = array<i64: 3, 1, 96>}, {pipeline_mode = #tpu.pipeline_mode<synchronous>, transform_indices = @transform_51, window_bounds = array<i64: 3, 192, 96>}, {pipeline_mode = #tpu.pipeline_mode<synchronous>, transform_indices = @transform_52, window_bounds = array<i64: 3, 1, 96>}, {pipeline_mode = #tpu.pipeline_mode<synchronous>, transform_indices = @transform_53, window_bounds = array<i64: 3, 96, 96>}, {pipeline_mode = #tpu.pipeline_mode<synchronous>, transform_indices = @transform_54, window_bounds = array<i64: 1, 96>}, {pipeline_mode = #tpu.pipeline_mode<synchronous>, transform_indices = @transform_55, window_bounds = array<i64: 9, 96>}, {pipeline_mode = #tpu.pipeline_mode<synchronous>, transform_indices = @transform_56, window_bounds = array<i64: 1, 96>}, {pipeline_mode = #tpu.pipeline_mode<synchronous>, transform_indices = @transform_57, window_bounds = array<i64: 96, 96>}, {pipeline_mode = #tpu.pipeline_mode<synchronous>, transform_indices = @transform_58, window_bounds = array<i64: 1, 96>}, {pipeline_mode = #tpu.pipeline_mode<synchronous>, transform_indices = @transform_59, window_bounds = array<i64: 9, 96>}, {pipeline_mode = #tpu.pipeline_mode<synchronous>, transform_indices = @transform_60, window_bounds = array<i64: 1, 96>}, {pipeline_mode = #tpu.pipeline_mode<synchronous>, transform_indices = @transform_61, window_bounds = array<i64: 96, 96>}, {pipeline_mode = #tpu.pipeline_mode<synchronous>, transform_indices = @transform_62, window_bounds = array<i64: 1, 96>}, {pipeline_mode = #tpu.pipeline_mode<synchronous>, transform_indices = @transform_63, window_bounds = array<i64: 96, 96>}, {pipeline_mode = #tpu.pipeline_mode<synchronous>, transform_indices = @transform_64, window_bounds = array<i64: 9, 1, 4>}, {pipeline_mode = #tpu.pipeline_mode<synchronous>, transform_indices = @transform_65, window_bounds = array<i64: 96, 192>}, {pipeline_mode = #tpu.pipeline_mode<synchronous>, transform_indices = @transform_66, window_bounds = array<i64: 192, 192>}, {pipeline_mode = #tpu.pipeline_mode<synchronous>, transform_indices = @transform_67, window_bounds = array<i64: 96, 192>}, {transform_indices = @transform_68, window_bounds = array<i64: 1, 1, 1024>}]} {
    %c0 = arith.constant 0 : index
    %c0_0 = arith.constant 0 : index
    %c0_1 = arith.constant 0 : index
    %0 = vector.load %arg1[%c0, %c0_0, %c0_1] : memref<1x256x27xf32, #tpu.memory_space<vmem>>, vector<1x256x27xf32>
    %1 = vector.shape_cast %0 : vector<1x256x27xf32> to vector<256x27xf32>
    %c0_2 = arith.constant 0 : index
    %c0_3 = arith.constant 0 : index
    %2 = vector.load %arg3[%c0_2, %c0_3] : memref<27x24xbf16, #tpu.memory_space<vmem>>, vector<27x24xbf16>
    %c0_4 = arith.constant 0 : index
    %c0_5 = arith.constant 0 : index
    %3 = vector.load %arg2[%c0_4, %c0_5] : memref<1x24xf32, #tpu.memory_space<vmem>>, vector<1x24xf32>
    %4 = arith.truncf %1 : vector<256x27xf32> to vector<256x27xbf16>
    %cst = arith.constant dense<0.000000e+00> : vector<256x24xf32>
    %5 = tpu.matmul %4, %2, %cst {dimension_numbers = #tpu.dot_dimension_numbers<[1], [0], [0], [1], [0, 0, 1, 1], [], []>} : vector<256x27xbf16>, vector<27x24xbf16>, vector<256x24xf32> -> vector<256x24xf32>
    %6 = vector.broadcast %3 : vector<1x24xf32> to vector<256x24xf32>
    %7 = arith.addf %5, %6 : vector<256x24xf32>
    %cst_6 = arith.constant 0.000000e+00 : f32
    %8 = vector.broadcast %cst_6 : f32 to vector<256x24xf32>
    %9 = arith.maximumf %7, %8 : vector<256x24xf32>
    %10 = arith.truncf %9 : vector<256x24xf32> to vector<256x24xbf16>
    %c0_7 = arith.constant 0 : index
    %c0_8 = arith.constant 0 : index
    %c0_9 = arith.constant 0 : index
    %11 = vector.load %arg6[%c0_7, %c0_8, %c0_9] : memref<9x64x256xbf16, #tpu.memory_space<vmem>>, vector<1x64x256xbf16>
    %12 = vector.shape_cast %11 : vector<1x64x256xbf16> to vector<64x256xbf16>
    %cst_10 = arith.constant dense<0.000000e+00> : vector<64x24xf32>
    %13 = tpu.matmul %12, %10, %cst_10 {dimension_numbers = #tpu.dot_dimension_numbers<[1], [0], [0], [1], [0, 0, 1, 1], [], []>} : vector<64x256xbf16>, vector<256x24xbf16>, vector<64x24xf32> -> vector<64x24xf32>
    %c1 = arith.constant 1 : index
    %c0_11 = arith.constant 0 : index
    %c0_12 = arith.constant 0 : index
    %14 = vector.load %arg6[%c1, %c0_11, %c0_12] : memref<9x64x256xbf16, #tpu.memory_space<vmem>>, vector<1x64x256xbf16>
    %15 = vector.shape_cast %14 : vector<1x64x256xbf16> to vector<64x256xbf16>
    %cst_13 = arith.constant dense<0.000000e+00> : vector<64x24xf32>
    %16 = tpu.matmul %15, %10, %cst_13 {dimension_numbers = #tpu.dot_dimension_numbers<[1], [0], [0], [1], [0, 0, 1, 1], [], []>} : vector<64x256xbf16>, vector<256x24xbf16>, vector<64x24xf32> -> vector<64x24xf32>
    %17 = arith.maximumf %13, %16 : vector<64x24xf32>
    %c2 = arith.constant 2 : index
    %c0_14 = arith.constant 0 : index
    %c0_15 = arith.constant 0 : index
    %18 = vector.load %arg6[%c2, %c0_14, %c0_15] : memref<9x64x256xbf16, #tpu.memory_space<vmem>>, vector<1x64x256xbf16>
    %19 = vector.shape_cast %18 : vector<1x64x256xbf16> to vector<64x256xbf16>
    %cst_16 = arith.constant dense<0.000000e+00> : vector<64x24xf32>
    %20 = tpu.matmul %19, %10, %cst_16 {dimension_numbers = #tpu.dot_dimension_numbers<[1], [0], [0], [1], [0, 0, 1, 1], [], []>} : vector<64x256xbf16>, vector<256x24xbf16>, vector<64x24xf32> -> vector<64x24xf32>
    %21 = arith.maximumf %17, %20 : vector<64x24xf32>
    %c3 = arith.constant 3 : index
    %c0_17 = arith.constant 0 : index
    %c0_18 = arith.constant 0 : index
    %22 = vector.load %arg6[%c3, %c0_17, %c0_18] : memref<9x64x256xbf16, #tpu.memory_space<vmem>>, vector<1x64x256xbf16>
    %23 = vector.shape_cast %22 : vector<1x64x256xbf16> to vector<64x256xbf16>
    %cst_19 = arith.constant dense<0.000000e+00> : vector<64x24xf32>
    %24 = tpu.matmul %23, %10, %cst_19 {dimension_numbers = #tpu.dot_dimension_numbers<[1], [0], [0], [1], [0, 0, 1, 1], [], []>} : vector<64x256xbf16>, vector<256x24xbf16>, vector<64x24xf32> -> vector<64x24xf32>
    %25 = arith.maximumf %21, %24 : vector<64x24xf32>
    %c4 = arith.constant 4 : index
    %c0_20 = arith.constant 0 : index
    %c0_21 = arith.constant 0 : index
    %26 = vector.load %arg6[%c4, %c0_20, %c0_21] : memref<9x64x256xbf16, #tpu.memory_space<vmem>>, vector<1x64x256xbf16>
    %27 = vector.shape_cast %26 : vector<1x64x256xbf16> to vector<64x256xbf16>
    %cst_22 = arith.constant dense<0.000000e+00> : vector<64x24xf32>
    %28 = tpu.matmul %27, %10, %cst_22 {dimension_numbers = #tpu.dot_dimension_numbers<[1], [0], [0], [1], [0, 0, 1, 1], [], []>} : vector<64x256xbf16>, vector<256x24xbf16>, vector<64x24xf32> -> vector<64x24xf32>
    %29 = arith.maximumf %25, %28 : vector<64x24xf32>
    %c5 = arith.constant 5 : index
    %c0_23 = arith.constant 0 : index
    %c0_24 = arith.constant 0 : index
    %30 = vector.load %arg6[%c5, %c0_23, %c0_24] : memref<9x64x256xbf16, #tpu.memory_space<vmem>>, vector<1x64x256xbf16>
    %31 = vector.shape_cast %30 : vector<1x64x256xbf16> to vector<64x256xbf16>
    %cst_25 = arith.constant dense<0.000000e+00> : vector<64x24xf32>
    %32 = tpu.matmul %31, %10, %cst_25 {dimension_numbers = #tpu.dot_dimension_numbers<[1], [0], [0], [1], [0, 0, 1, 1], [], []>} : vector<64x256xbf16>, vector<256x24xbf16>, vector<64x24xf32> -> vector<64x24xf32>
    %33 = arith.maximumf %29, %32 : vector<64x24xf32>
    %c6 = arith.constant 6 : index
    %c0_26 = arith.constant 0 : index
    %c0_27 = arith.constant 0 : index
    %34 = vector.load %arg6[%c6, %c0_26, %c0_27] : memref<9x64x256xbf16, #tpu.memory_space<vmem>>, vector<1x64x256xbf16>
    %35 = vector.shape_cast %34 : vector<1x64x256xbf16> to vector<64x256xbf16>
    %cst_28 = arith.constant dense<0.000000e+00> : vector<64x24xf32>
    %36 = tpu.matmul %35, %10, %cst_28 {dimension_numbers = #tpu.dot_dimension_numbers<[1], [0], [0], [1], [0, 0, 1, 1], [], []>} : vector<64x256xbf16>, vector<256x24xbf16>, vector<64x24xf32> -> vector<64x24xf32>
    %37 = arith.maximumf %33, %36 : vector<64x24xf32>
    %c7 = arith.constant 7 : index
    %c0_29 = arith.constant 0 : index
    %c0_30 = arith.constant 0 : index
    %38 = vector.load %arg6[%c7, %c0_29, %c0_30] : memref<9x64x256xbf16, #tpu.memory_space<vmem>>, vector<1x64x256xbf16>
    %39 = vector.shape_cast %38 : vector<1x64x256xbf16> to vector<64x256xbf16>
    %cst_31 = arith.constant dense<0.000000e+00> : vector<64x24xf32>
    %40 = tpu.matmul %39, %10, %cst_31 {dimension_numbers = #tpu.dot_dimension_numbers<[1], [0], [0], [1], [0, 0, 1, 1], [], []>} : vector<64x256xbf16>, vector<256x24xbf16>, vector<64x24xf32> -> vector<64x24xf32>
    %41 = arith.maximumf %37, %40 : vector<64x24xf32>
    %c8 = arith.constant 8 : index
    %c0_32 = arith.constant 0 : index
    %c0_33 = arith.constant 0 : index
    %42 = vector.load %arg6[%c8, %c0_32, %c0_33] : memref<9x64x256xbf16, #tpu.memory_space<vmem>>, vector<1x64x256xbf16>
    %43 = vector.shape_cast %42 : vector<1x64x256xbf16> to vector<64x256xbf16>
    %cst_34 = arith.constant dense<0.000000e+00> : vector<64x24xf32>
    %44 = tpu.matmul %43, %10, %cst_34 {dimension_numbers = #tpu.dot_dimension_numbers<[1], [0], [0], [1], [0, 0, 1, 1], [], []>} : vector<64x256xbf16>, vector<256x24xbf16>, vector<64x24xf32> -> vector<64x24xf32>
    %45 = arith.maximumf %41, %44 : vector<64x24xf32>
    %c0_35 = arith.constant 0 : index
    %c0_36 = arith.constant 0 : index
    %46 = vector.load %arg14[%c0_35, %c0_36] : memref<9x24xf32, #tpu.memory_space<vmem>>, vector<9x24xf32>
    %c0_37 = arith.constant 0 : index
    %c0_38 = arith.constant 0 : index
    %47 = vector.load %arg13[%c0_37, %c0_38] : memref<1x24xf32, #tpu.memory_space<vmem>>, vector<1x24xf32>
    %48 = arith.truncf %45 : vector<64x24xf32> to vector<64x24xbf16>
    %c0_39 = arith.constant 0 : index
    %c0_40 = arith.constant 0 : index
    %c0_41 = arith.constant 0 : index
    %49 = vector.load %arg23[%c0_39, %c0_40, %c0_41] : memref<9x16x64xbf16, #tpu.memory_space<vmem>>, vector<1x16x64xbf16>
    %50 = vector.shape_cast %49 : vector<1x16x64xbf16> to vector<16x64xbf16>
    %cst_42 = arith.constant dense<0.000000e+00> : vector<16x24xf32>
    %51 = tpu.matmul %50, %48, %cst_42 {dimension_numbers = #tpu.dot_dimension_numbers<[1], [0], [0], [1], [0, 0, 1, 1], [], []>} : vector<16x64xbf16>, vector<64x24xbf16>, vector<16x24xf32> -> vector<16x24xf32>
    %52 = vector.extract_strided_slice %46 {offsets = [0, 0], sizes = [1, 24], strides = [1, 1]} : vector<9x24xf32> to vector<1x24xf32>
    %53 = vector.shape_cast %52 : vector<1x24xf32> to vector<24xf32>
    %54 = vector.shape_cast %53 : vector<24xf32> to vector<1x24xf32>
    %55 = vector.broadcast %54 : vector<1x24xf32> to vector<16x24xf32>
    %56 = arith.mulf %51, %55 : vector<16x24xf32>
    %c1_43 = arith.constant 1 : index
    %c0_44 = arith.constant 0 : index
    %c0_45 = arith.constant 0 : index
    %57 = vector.load %arg23[%c1_43, %c0_44, %c0_45] : memref<9x16x64xbf16, #tpu.memory_space<vmem>>, vector<1x16x64xbf16>
    %58 = vector.shape_cast %57 : vector<1x16x64xbf16> to vector<16x64xbf16>
    %cst_46 = arith.constant dense<0.000000e+00> : vector<16x24xf32>
    %59 = tpu.matmul %58, %48, %cst_46 {dimension_numbers = #tpu.dot_dimension_numbers<[1], [0], [0], [1], [0, 0, 1, 1], [], []>} : vector<16x64xbf16>, vector<64x24xbf16>, vector<16x24xf32> -> vector<16x24xf32>
    %60 = vector.extract_strided_slice %46 {offsets = [1, 0], sizes = [1, 24], strides = [1, 1]} : vector<9x24xf32> to vector<1x24xf32>
    %61 = vector.shape_cast %60 : vector<1x24xf32> to vector<24xf32>
    %62 = vector.shape_cast %61 : vector<24xf32> to vector<1x24xf32>
    %63 = vector.broadcast %62 : vector<1x24xf32> to vector<16x24xf32>
    %64 = arith.mulf %59, %63 : vector<16x24xf32>
    %65 = arith.addf %56, %64 : vector<16x24xf32>
    %c2_47 = arith.constant 2 : index
    %c0_48 = arith.constant 0 : index
    %c0_49 = arith.constant 0 : index
    %66 = vector.load %arg23[%c2_47, %c0_48, %c0_49] : memref<9x16x64xbf16, #tpu.memory_space<vmem>>, vector<1x16x64xbf16>
    %67 = vector.shape_cast %66 : vector<1x16x64xbf16> to vector<16x64xbf16>
    %cst_50 = arith.constant dense<0.000000e+00> : vector<16x24xf32>
    %68 = tpu.matmul %67, %48, %cst_50 {dimension_numbers = #tpu.dot_dimension_numbers<[1], [0], [0], [1], [0, 0, 1, 1], [], []>} : vector<16x64xbf16>, vector<64x24xbf16>, vector<16x24xf32> -> vector<16x24xf32>
    %69 = vector.extract_strided_slice %46 {offsets = [2, 0], sizes = [1, 24], strides = [1, 1]} : vector<9x24xf32> to vector<1x24xf32>
    %70 = vector.shape_cast %69 : vector<1x24xf32> to vector<24xf32>
    %71 = vector.shape_cast %70 : vector<24xf32> to vector<1x24xf32>
    %72 = vector.broadcast %71 : vector<1x24xf32> to vector<16x24xf32>
    %73 = arith.mulf %68, %72 : vector<16x24xf32>
    %74 = arith.addf %65, %73 : vector<16x24xf32>
    %c3_51 = arith.constant 3 : index
    %c0_52 = arith.constant 0 : index
    %c0_53 = arith.constant 0 : index
    %75 = vector.load %arg23[%c3_51, %c0_52, %c0_53] : memref<9x16x64xbf16, #tpu.memory_space<vmem>>, vector<1x16x64xbf16>
    %76 = vector.shape_cast %75 : vector<1x16x64xbf16> to vector<16x64xbf16>
    %cst_54 = arith.constant dense<0.000000e+00> : vector<16x24xf32>
    %77 = tpu.matmul %76, %48, %cst_54 {dimension_numbers = #tpu.dot_dimension_numbers<[1], [0], [0], [1], [0, 0, 1, 1], [], []>} : vector<16x64xbf16>, vector<64x24xbf16>, vector<16x24xf32> -> vector<16x24xf32>
    %78 = vector.extract_strided_slice %46 {offsets = [3, 0], sizes = [1, 24], strides = [1, 1]} : vector<9x24xf32> to vector<1x24xf32>
    %79 = vector.shape_cast %78 : vector<1x24xf32> to vector<24xf32>
    %80 = vector.shape_cast %79 : vector<24xf32> to vector<1x24xf32>
    %81 = vector.broadcast %80 : vector<1x24xf32> to vector<16x24xf32>
    %82 = arith.mulf %77, %81 : vector<16x24xf32>
    %83 = arith.addf %74, %82 : vector<16x24xf32>
    %c4_55 = arith.constant 4 : index
    %c0_56 = arith.constant 0 : index
    %c0_57 = arith.constant 0 : index
    %84 = vector.load %arg23[%c4_55, %c0_56, %c0_57] : memref<9x16x64xbf16, #tpu.memory_space<vmem>>, vector<1x16x64xbf16>
    %85 = vector.shape_cast %84 : vector<1x16x64xbf16> to vector<16x64xbf16>
    %cst_58 = arith.constant dense<0.000000e+00> : vector<16x24xf32>
    %86 = tpu.matmul %85, %48, %cst_58 {dimension_numbers = #tpu.dot_dimension_numbers<[1], [0], [0], [1], [0, 0, 1, 1], [], []>} : vector<16x64xbf16>, vector<64x24xbf16>, vector<16x24xf32> -> vector<16x24xf32>
    %87 = vector.extract_strided_slice %46 {offsets = [4, 0], sizes = [1, 24], strides = [1, 1]} : vector<9x24xf32> to vector<1x24xf32>
    %88 = vector.shape_cast %87 : vector<1x24xf32> to vector<24xf32>
    %89 = vector.shape_cast %88 : vector<24xf32> to vector<1x24xf32>
    %90 = vector.broadcast %89 : vector<1x24xf32> to vector<16x24xf32>
    %91 = arith.mulf %86, %90 : vector<16x24xf32>
    %92 = arith.addf %83, %91 : vector<16x24xf32>
    %c5_59 = arith.constant 5 : index
    %c0_60 = arith.constant 0 : index
    %c0_61 = arith.constant 0 : index
    %93 = vector.load %arg23[%c5_59, %c0_60, %c0_61] : memref<9x16x64xbf16, #tpu.memory_space<vmem>>, vector<1x16x64xbf16>
    %94 = vector.shape_cast %93 : vector<1x16x64xbf16> to vector<16x64xbf16>
    %cst_62 = arith.constant dense<0.000000e+00> : vector<16x24xf32>
    %95 = tpu.matmul %94, %48, %cst_62 {dimension_numbers = #tpu.dot_dimension_numbers<[1], [0], [0], [1], [0, 0, 1, 1], [], []>} : vector<16x64xbf16>, vector<64x24xbf16>, vector<16x24xf32> -> vector<16x24xf32>
    %96 = vector.extract_strided_slice %46 {offsets = [5, 0], sizes = [1, 24], strides = [1, 1]} : vector<9x24xf32> to vector<1x24xf32>
    %97 = vector.shape_cast %96 : vector<1x24xf32> to vector<24xf32>
    %98 = vector.shape_cast %97 : vector<24xf32> to vector<1x24xf32>
    %99 = vector.broadcast %98 : vector<1x24xf32> to vector<16x24xf32>
    %100 = arith.mulf %95, %99 : vector<16x24xf32>
    %101 = arith.addf %92, %100 : vector<16x24xf32>
    %c6_63 = arith.constant 6 : index
    %c0_64 = arith.constant 0 : index
    %c0_65 = arith.constant 0 : index
    %102 = vector.load %arg23[%c6_63, %c0_64, %c0_65] : memref<9x16x64xbf16, #tpu.memory_space<vmem>>, vector<1x16x64xbf16>
    %103 = vector.shape_cast %102 : vector<1x16x64xbf16> to vector<16x64xbf16>
    %cst_66 = arith.constant dense<0.000000e+00> : vector<16x24xf32>
    %104 = tpu.matmul %103, %48, %cst_66 {dimension_numbers = #tpu.dot_dimension_numbers<[1], [0], [0], [1], [0, 0, 1, 1], [], []>} : vector<16x64xbf16>, vector<64x24xbf16>, vector<16x24xf32> -> vector<16x24xf32>
    %105 = vector.extract_strided_slice %46 {offsets = [6, 0], sizes = [1, 24], strides = [1, 1]} : vector<9x24xf32> to vector<1x24xf32>
    %106 = vector.shape_cast %105 : vector<1x24xf32> to vector<24xf32>
    %107 = vector.shape_cast %106 : vector<24xf32> to vector<1x24xf32>
    %108 = vector.broadcast %107 : vector<1x24xf32> to vector<16x24xf32>
    %109 = arith.mulf %104, %108 : vector<16x24xf32>
    %110 = arith.addf %101, %109 : vector<16x24xf32>
    %c7_67 = arith.constant 7 : index
    %c0_68 = arith.constant 0 : index
    %c0_69 = arith.constant 0 : index
    %111 = vector.load %arg23[%c7_67, %c0_68, %c0_69] : memref<9x16x64xbf16, #tpu.memory_space<vmem>>, vector<1x16x64xbf16>
    %112 = vector.shape_cast %111 : vector<1x16x64xbf16> to vector<16x64xbf16>
    %cst_70 = arith.constant dense<0.000000e+00> : vector<16x24xf32>
    %113 = tpu.matmul %112, %48, %cst_70 {dimension_numbers = #tpu.dot_dimension_numbers<[1], [0], [0], [1], [0, 0, 1, 1], [], []>} : vector<16x64xbf16>, vector<64x24xbf16>, vector<16x24xf32> -> vector<16x24xf32>
    %114 = vector.extract_strided_slice %46 {offsets = [7, 0], sizes = [1, 24], strides = [1, 1]} : vector<9x24xf32> to vector<1x24xf32>
    %115 = vector.shape_cast %114 : vector<1x24xf32> to vector<24xf32>
    %116 = vector.shape_cast %115 : vector<24xf32> to vector<1x24xf32>
    %117 = vector.broadcast %116 : vector<1x24xf32> to vector<16x24xf32>
    %118 = arith.mulf %113, %117 : vector<16x24xf32>
    %119 = arith.addf %110, %118 : vector<16x24xf32>
    %c8_71 = arith.constant 8 : index
    %c0_72 = arith.constant 0 : index
    %c0_73 = arith.constant 0 : index
    %120 = vector.load %arg23[%c8_71, %c0_72, %c0_73] : memref<9x16x64xbf16, #tpu.memory_space<vmem>>, vector<1x16x64xbf16>
    %121 = vector.shape_cast %120 : vector<1x16x64xbf16> to vector<16x64xbf16>
    %cst_74 = arith.constant dense<0.000000e+00> : vector<16x24xf32>
    %122 = tpu.matmul %121, %48, %cst_74 {dimension_numbers = #tpu.dot_dimension_numbers<[1], [0], [0], [1], [0, 0, 1, 1], [], []>} : vector<16x64xbf16>, vector<64x24xbf16>, vector<16x24xf32> -> vector<16x24xf32>
    %123 = vector.extract_strided_slice %46 {offsets = [8, 0], sizes = [1, 24], strides = [1, 1]} : vector<9x24xf32> to vector<1x24xf32>
    %124 = vector.shape_cast %123 : vector<1x24xf32> to vector<24xf32>
    %125 = vector.shape_cast %124 : vector<24xf32> to vector<1x24xf32>
    %126 = vector.broadcast %125 : vector<1x24xf32> to vector<16x24xf32>
    %127 = arith.mulf %122, %126 : vector<16x24xf32>
    %128 = arith.addf %119, %127 : vector<16x24xf32>
    %129 = vector.broadcast %47 : vector<1x24xf32> to vector<16x24xf32>
    %130 = arith.addf %128, %129 : vector<16x24xf32>
    %c0_75 = arith.constant 0 : index
    %c0_76 = arith.constant 0 : index
    %131 = vector.load %arg16[%c0_75, %c0_76] : memref<24x24xbf16, #tpu.memory_space<vmem>>, vector<24x24xbf16>
    %c0_77 = arith.constant 0 : index
    %c0_78 = arith.constant 0 : index
    %132 = vector.load %arg15[%c0_77, %c0_78] : memref<1x24xf32, #tpu.memory_space<vmem>>, vector<1x24xf32>
    %133 = arith.truncf %130 : vector<16x24xf32> to vector<16x24xbf16>
    %cst_79 = arith.constant dense<0.000000e+00> : vector<16x24xf32>
    %134 = tpu.matmul %133, %131, %cst_79 {dimension_numbers = #tpu.dot_dimension_numbers<[1], [0], [0], [1], [0, 0, 1, 1], [], []>} : vector<16x24xbf16>, vector<24x24xbf16>, vector<16x24xf32> -> vector<16x24xf32>
    %135 = vector.broadcast %132 : vector<1x24xf32> to vector<16x24xf32>
    %136 = arith.addf %134, %135 : vector<16x24xf32>
    %cst_80 = arith.constant 0.000000e+00 : f32
    %137 = vector.broadcast %cst_80 : f32 to vector<16x24xf32>
    %138 = arith.maximumf %136, %137 : vector<16x24xf32>
    %c0_81 = arith.constant 0 : index
    %c0_82 = arith.constant 0 : index
    %139 = vector.load %arg20[%c0_81, %c0_82] : memref<24x24xbf16, #tpu.memory_space<vmem>>, vector<24x24xbf16>
    %c0_83 = arith.constant 0 : index
    %c0_84 = arith.constant 0 : index
    %140 = vector.load %arg19[%c0_83, %c0_84] : memref<1x24xf32, #tpu.memory_space<vmem>>, vector<1x24xf32>
    %141 = arith.truncf %45 : vector<64x24xf32> to vector<64x24xbf16>
    %cst_85 = arith.constant dense<0.000000e+00> : vector<64x24xf32>
    %142 = tpu.matmul %141, %139, %cst_85 {dimension_numbers = #tpu.dot_dimension_numbers<[1], [0], [0], [1], [0, 0, 1, 1], [], []>} : vector<64x24xbf16>, vector<24x24xbf16>, vector<64x24xf32> -> vector<64x24xf32>
    %143 = vector.broadcast %140 : vector<1x24xf32> to vector<64x24xf32>
    %144 = arith.addf %142, %143 : vector<64x24xf32>
    %cst_86 = arith.constant 0.000000e+00 : f32
    %145 = vector.broadcast %cst_86 : f32 to vector<64x24xf32>
    %146 = arith.maximumf %144, %145 : vector<64x24xf32>
    %c0_87 = arith.constant 0 : index
    %c0_88 = arith.constant 0 : index
    %147 = vector.load %arg18[%c0_87, %c0_88] : memref<9x24xf32, #tpu.memory_space<vmem>>, vector<9x24xf32>
    %c0_89 = arith.constant 0 : index
    %c0_90 = arith.constant 0 : index
    %148 = vector.load %arg17[%c0_89, %c0_90] : memref<1x24xf32, #tpu.memory_space<vmem>>, vector<1x24xf32>
    %149 = arith.truncf %146 : vector<64x24xf32> to vector<64x24xbf16>
    %c0_91 = arith.constant 0 : index
    %c0_92 = arith.constant 0 : index
    %c0_93 = arith.constant 0 : index
    %150 = vector.load %arg23[%c0_91, %c0_92, %c0_93] : memref<9x16x64xbf16, #tpu.memory_space<vmem>>, vector<1x16x64xbf16>
    %151 = vector.shape_cast %150 : vector<1x16x64xbf16> to vector<16x64xbf16>
    %cst_94 = arith.constant dense<0.000000e+00> : vector<16x24xf32>
    %152 = tpu.matmul %151, %149, %cst_94 {dimension_numbers = #tpu.dot_dimension_numbers<[1], [0], [0], [1], [0, 0, 1, 1], [], []>} : vector<16x64xbf16>, vector<64x24xbf16>, vector<16x24xf32> -> vector<16x24xf32>
    %153 = vector.extract_strided_slice %147 {offsets = [0, 0], sizes = [1, 24], strides = [1, 1]} : vector<9x24xf32> to vector<1x24xf32>
    %154 = vector.shape_cast %153 : vector<1x24xf32> to vector<24xf32>
    %155 = vector.shape_cast %154 : vector<24xf32> to vector<1x24xf32>
    %156 = vector.broadcast %155 : vector<1x24xf32> to vector<16x24xf32>
    %157 = arith.mulf %152, %156 : vector<16x24xf32>
    %c1_95 = arith.constant 1 : index
    %c0_96 = arith.constant 0 : index
    %c0_97 = arith.constant 0 : index
    %158 = vector.load %arg23[%c1_95, %c0_96, %c0_97] : memref<9x16x64xbf16, #tpu.memory_space<vmem>>, vector<1x16x64xbf16>
    %159 = vector.shape_cast %158 : vector<1x16x64xbf16> to vector<16x64xbf16>
    %cst_98 = arith.constant dense<0.000000e+00> : vector<16x24xf32>
    %160 = tpu.matmul %159, %149, %cst_98 {dimension_numbers = #tpu.dot_dimension_numbers<[1], [0], [0], [1], [0, 0, 1, 1], [], []>} : vector<16x64xbf16>, vector<64x24xbf16>, vector<16x24xf32> -> vector<16x24xf32>
    %161 = vector.extract_strided_slice %147 {offsets = [1, 0], sizes = [1, 24], strides = [1, 1]} : vector<9x24xf32> to vector<1x24xf32>
    %162 = vector.shape_cast %161 : vector<1x24xf32> to vector<24xf32>
    %163 = vector.shape_cast %162 : vector<24xf32> to vector<1x24xf32>
    %164 = vector.broadcast %163 : vector<1x24xf32> to vector<16x24xf32>
    %165 = arith.mulf %160, %164 : vector<16x24xf32>
    %166 = arith.addf %157, %165 : vector<16x24xf32>
    %c2_99 = arith.constant 2 : index
    %c0_100 = arith.constant 0 : index
    %c0_101 = arith.constant 0 : index
    %167 = vector.load %arg23[%c2_99, %c0_100, %c0_101] : memref<9x16x64xbf16, #tpu.memory_space<vmem>>, vector<1x16x64xbf16>
    %168 = vector.shape_cast %167 : vector<1x16x64xbf16> to vector<16x64xbf16>
    %cst_102 = arith.constant dense<0.000000e+00> : vector<16x24xf32>
    %169 = tpu.matmul %168, %149, %cst_102 {dimension_numbers = #tpu.dot_dimension_numbers<[1], [0], [0], [1], [0, 0, 1, 1], [], []>} : vector<16x64xbf16>, vector<64x24xbf16>, vector<16x24xf32> -> vector<16x24xf32>
    %170 = vector.extract_strided_slice %147 {offsets = [2, 0], sizes = [1, 24], strides = [1, 1]} : vector<9x24xf32> to vector<1x24xf32>
    %171 = vector.shape_cast %170 : vector<1x24xf32> to vector<24xf32>
    %172 = vector.shape_cast %171 : vector<24xf32> to vector<1x24xf32>
    %173 = vector.broadcast %172 : vector<1x24xf32> to vector<16x24xf32>
    %174 = arith.mulf %169, %173 : vector<16x24xf32>
    %175 = arith.addf %166, %174 : vector<16x24xf32>
    %c3_103 = arith.constant 3 : index
    %c0_104 = arith.constant 0 : index
    %c0_105 = arith.constant 0 : index
    %176 = vector.load %arg23[%c3_103, %c0_104, %c0_105] : memref<9x16x64xbf16, #tpu.memory_space<vmem>>, vector<1x16x64xbf16>
    %177 = vector.shape_cast %176 : vector<1x16x64xbf16> to vector<16x64xbf16>
    %cst_106 = arith.constant dense<0.000000e+00> : vector<16x24xf32>
    %178 = tpu.matmul %177, %149, %cst_106 {dimension_numbers = #tpu.dot_dimension_numbers<[1], [0], [0], [1], [0, 0, 1, 1], [], []>} : vector<16x64xbf16>, vector<64x24xbf16>, vector<16x24xf32> -> vector<16x24xf32>
    %179 = vector.extract_strided_slice %147 {offsets = [3, 0], sizes = [1, 24], strides = [1, 1]} : vector<9x24xf32> to vector<1x24xf32>
    %180 = vector.shape_cast %179 : vector<1x24xf32> to vector<24xf32>
    %181 = vector.shape_cast %180 : vector<24xf32> to vector<1x24xf32>
    %182 = vector.broadcast %181 : vector<1x24xf32> to vector<16x24xf32>
    %183 = arith.mulf %178, %182 : vector<16x24xf32>
    %184 = arith.addf %175, %183 : vector<16x24xf32>
    %c4_107 = arith.constant 4 : index
    %c0_108 = arith.constant 0 : index
    %c0_109 = arith.constant 0 : index
    %185 = vector.load %arg23[%c4_107, %c0_108, %c0_109] : memref<9x16x64xbf16, #tpu.memory_space<vmem>>, vector<1x16x64xbf16>
    %186 = vector.shape_cast %185 : vector<1x16x64xbf16> to vector<16x64xbf16>
    %cst_110 = arith.constant dense<0.000000e+00> : vector<16x24xf32>
    %187 = tpu.matmul %186, %149, %cst_110 {dimension_numbers = #tpu.dot_dimension_numbers<[1], [0], [0], [1], [0, 0, 1, 1], [], []>} : vector<16x64xbf16>, vector<64x24xbf16>, vector<16x24xf32> -> vector<16x24xf32>
    %188 = vector.extract_strided_slice %147 {offsets = [4, 0], sizes = [1, 24], strides = [1, 1]} : vector<9x24xf32> to vector<1x24xf32>
    %189 = vector.shape_cast %188 : vector<1x24xf32> to vector<24xf32>
    %190 = vector.shape_cast %189 : vector<24xf32> to vector<1x24xf32>
    %191 = vector.broadcast %190 : vector<1x24xf32> to vector<16x24xf32>
    %192 = arith.mulf %187, %191 : vector<16x24xf32>
    %193 = arith.addf %184, %192 : vector<16x24xf32>
    %c5_111 = arith.constant 5 : index
    %c0_112 = arith.constant 0 : index
    %c0_113 = arith.constant 0 : index
    %194 = vector.load %arg23[%c5_111, %c0_112, %c0_113] : memref<9x16x64xbf16, #tpu.memory_space<vmem>>, vector<1x16x64xbf16>
    %195 = vector.shape_cast %194 : vector<1x16x64xbf16> to vector<16x64xbf16>
    %cst_114 = arith.constant dense<0.000000e+00> : vector<16x24xf32>
    %196 = tpu.matmul %195, %149, %cst_114 {dimension_numbers = #tpu.dot_dimension_numbers<[1], [0], [0], [1], [0, 0, 1, 1], [], []>} : vector<16x64xbf16>, vector<64x24xbf16>, vector<16x24xf32> -> vector<16x24xf32>
    %197 = vector.extract_strided_slice %147 {offsets = [5, 0], sizes = [1, 24], strides = [1, 1]} : vector<9x24xf32> to vector<1x24xf32>
    %198 = vector.shape_cast %197 : vector<1x24xf32> to vector<24xf32>
    %199 = vector.shape_cast %198 : vector<24xf32> to vector<1x24xf32>
    %200 = vector.broadcast %199 : vector<1x24xf32> to vector<16x24xf32>
    %201 = arith.mulf %196, %200 : vector<16x24xf32>
    %202 = arith.addf %193, %201 : vector<16x24xf32>
    %c6_115 = arith.constant 6 : index
    %c0_116 = arith.constant 0 : index
    %c0_117 = arith.constant 0 : index
    %203 = vector.load %arg23[%c6_115, %c0_116, %c0_117] : memref<9x16x64xbf16, #tpu.memory_space<vmem>>, vector<1x16x64xbf16>
    %204 = vector.shape_cast %203 : vector<1x16x64xbf16> to vector<16x64xbf16>
    %cst_118 = arith.constant dense<0.000000e+00> : vector<16x24xf32>
    %205 = tpu.matmul %204, %149, %cst_118 {dimension_numbers = #tpu.dot_dimension_numbers<[1], [0], [0], [1], [0, 0, 1, 1], [], []>} : vector<16x64xbf16>, vector<64x24xbf16>, vector<16x24xf32> -> vector<16x24xf32>
    %206 = vector.extract_strided_slice %147 {offsets = [6, 0], sizes = [1, 24], strides = [1, 1]} : vector<9x24xf32> to vector<1x24xf32>
    %207 = vector.shape_cast %206 : vector<1x24xf32> to vector<24xf32>
    %208 = vector.shape_cast %207 : vector<24xf32> to vector<1x24xf32>
    %209 = vector.broadcast %208 : vector<1x24xf32> to vector<16x24xf32>
    %210 = arith.mulf %205, %209 : vector<16x24xf32>
    %211 = arith.addf %202, %210 : vector<16x24xf32>
    %c7_119 = arith.constant 7 : index
    %c0_120 = arith.constant 0 : index
    %c0_121 = arith.constant 0 : index
    %212 = vector.load %arg23[%c7_119, %c0_120, %c0_121] : memref<9x16x64xbf16, #tpu.memory_space<vmem>>, vector<1x16x64xbf16>
    %213 = vector.shape_cast %212 : vector<1x16x64xbf16> to vector<16x64xbf16>
    %cst_122 = arith.constant dense<0.000000e+00> : vector<16x24xf32>
    %214 = tpu.matmul %213, %149, %cst_122 {dimension_numbers = #tpu.dot_dimension_numbers<[1], [0], [0], [1], [0, 0, 1, 1], [], []>} : vector<16x64xbf16>, vector<64x24xbf16>, vector<16x24xf32> -> vector<16x24xf32>
    %215 = vector.extract_strided_slice %147 {offsets = [7, 0], sizes = [1, 24], strides = [1, 1]} : vector<9x24xf32> to vector<1x24xf32>
    %216 = vector.shape_cast %215 : vector<1x24xf32> to vector<24xf32>
    %217 = vector.shape_cast %216 : vector<24xf32> to vector<1x24xf32>
    %218 = vector.broadcast %217 : vector<1x24xf32> to vector<16x24xf32>
    %219 = arith.mulf %214, %218 : vector<16x24xf32>
    %220 = arith.addf %211, %219 : vector<16x24xf32>
    %c8_123 = arith.constant 8 : index
    %c0_124 = arith.constant 0 : index
    %c0_125 = arith.constant 0 : index
    %221 = vector.load %arg23[%c8_123, %c0_124, %c0_125] : memref<9x16x64xbf16, #tpu.memory_space<vmem>>, vector<1x16x64xbf16>
    %222 = vector.shape_cast %221 : vector<1x16x64xbf16> to vector<16x64xbf16>
    %cst_126 = arith.constant dense<0.000000e+00> : vector<16x24xf32>
    %223 = tpu.matmul %222, %149, %cst_126 {dimension_numbers = #tpu.dot_dimension_numbers<[1], [0], [0], [1], [0, 0, 1, 1], [], []>} : vector<16x64xbf16>, vector<64x24xbf16>, vector<16x24xf32> -> vector<16x24xf32>
    %224 = vector.extract_strided_slice %147 {offsets = [8, 0], sizes = [1, 24], strides = [1, 1]} : vector<9x24xf32> to vector<1x24xf32>
    %225 = vector.shape_cast %224 : vector<1x24xf32> to vector<24xf32>
    %226 = vector.shape_cast %225 : vector<24xf32> to vector<1x24xf32>
    %227 = vector.broadcast %226 : vector<1x24xf32> to vector<16x24xf32>
    %228 = arith.mulf %223, %227 : vector<16x24xf32>
    %229 = arith.addf %220, %228 : vector<16x24xf32>
    %230 = vector.broadcast %148 : vector<1x24xf32> to vector<16x24xf32>
    %231 = arith.addf %229, %230 : vector<16x24xf32>
    %c0_127 = arith.constant 0 : index
    %c0_128 = arith.constant 0 : index
    %232 = vector.load %arg22[%c0_127, %c0_128] : memref<24x24xbf16, #tpu.memory_space<vmem>>, vector<24x24xbf16>
    %c0_129 = arith.constant 0 : index
    %c0_130 = arith.constant 0 : index
    %233 = vector.load %arg21[%c0_129, %c0_130] : memref<1x24xf32, #tpu.memory_space<vmem>>, vector<1x24xf32>
    %234 = arith.truncf %231 : vector<16x24xf32> to vector<16x24xbf16>
    %cst_131 = arith.constant dense<0.000000e+00> : vector<16x24xf32>
    %235 = tpu.matmul %234, %232, %cst_131 {dimension_numbers = #tpu.dot_dimension_numbers<[1], [0], [0], [1], [0, 0, 1, 1], [], []>} : vector<16x24xbf16>, vector<24x24xbf16>, vector<16x24xf32> -> vector<16x24xf32>
    %236 = vector.broadcast %233 : vector<1x24xf32> to vector<16x24xf32>
    %237 = arith.addf %235, %236 : vector<16x24xf32>
    %cst_132 = arith.constant 0.000000e+00 : f32
    %238 = vector.broadcast %cst_132 : f32 to vector<16x24xf32>
    %239 = arith.maximumf %237, %238 : vector<16x24xf32>
    %c0_133 = arith.constant 0 : index
    %c0_134 = arith.constant 0 : index
    %240 = vector.load %arg24[%c0_133, %c0_134] : memref<24x48xbf16, #tpu.memory_space<vmem>>, vector<24x48xbf16>
    %c0_135 = arith.constant 0 : index
    %c0_136 = arith.constant 0 : index
    %241 = vector.load %arg26[%c0_135, %c0_136] : memref<24x48xbf16, #tpu.memory_space<vmem>>, vector<24x48xbf16>
    %242 = arith.truncf %138 : vector<16x24xf32> to vector<16x24xbf16>
    %cst_137 = arith.constant dense<0.000000e+00> : vector<16x48xf32>
    %243 = tpu.matmul %242, %240, %cst_137 {dimension_numbers = #tpu.dot_dimension_numbers<[1], [0], [0], [1], [0, 0, 1, 1], [], []>} : vector<16x24xbf16>, vector<24x48xbf16>, vector<16x48xf32> -> vector<16x48xf32>
    %244 = arith.truncf %239 : vector<16x24xf32> to vector<16x24xbf16>
    %cst_138 = arith.constant dense<0.000000e+00> : vector<16x48xf32>
    %245 = tpu.matmul %244, %241, %cst_138 {dimension_numbers = #tpu.dot_dimension_numbers<[1], [0], [0], [1], [0, 0, 1, 1], [], []>} : vector<16x24xbf16>, vector<24x48xbf16>, vector<16x48xf32> -> vector<16x48xf32>
    %246 = arith.addf %243, %245 : vector<16x48xf32>
    %c0_139 = arith.constant 0 : index
    %c0_140 = arith.constant 0 : index
    %247 = vector.load %arg25[%c0_139, %c0_140] : memref<48x48xbf16, #tpu.memory_space<vmem>>, vector<48x48xbf16>
    %c0_141 = arith.constant 0 : index
    %c0_142 = arith.constant 0 : index
    %248 = vector.load %arg26[%c0_141, %c0_142] : memref<24x48xbf16, #tpu.memory_space<vmem>>, vector<24x48xbf16>
    %c0_i32 = arith.constant 0 : i32
    %c3_i32 = arith.constant 3 : i32
    %249 = arith.addi %c0_i32, %c3_i32 : i32
    %c1_i32 = arith.constant 1 : i32
    %250 = scf.for %arg70 = %c0_i32 to %249 step %c1_i32 iter_args(%arg71 = %246) -> (vector<16x48xf32>)  : i32 {
      %649 = arith.index_cast %arg70 : i32 to index
      %c0_376 = arith.constant 0 : index
      %c0_377 = arith.constant 0 : index
      %650 = vector.load %arg10[%649, %c0_376, %c0_377] : memref<3x48x24xbf16, #tpu.memory_space<vmem>>, vector<1x48x24xbf16>
      %651 = vector.shape_cast %650 : vector<1x48x24xbf16> to vector<48x24xbf16>
      %652 = arith.index_cast %arg70 : i32 to index
      %c0_378 = arith.constant 0 : index
      %c0_379 = arith.constant 0 : index
      %653 = vector.load %arg9[%652, %c0_378, %c0_379] : memref<3x1x24xf32, #tpu.memory_space<vmem>>, vector<1x1x24xf32>
      %654 = vector.shape_cast %653 : vector<1x1x24xf32> to vector<1x24xf32>
      %655 = arith.truncf %arg71 : vector<16x48xf32> to vector<16x48xbf16>
      %cst_380 = arith.constant dense<0.000000e+00> : vector<16x24xf32>
      %656 = tpu.matmul %655, %651, %cst_380 {dimension_numbers = #tpu.dot_dimension_numbers<[1], [0], [0], [1], [0, 0, 1, 1], [], []>} : vector<16x48xbf16>, vector<48x24xbf16>, vector<16x24xf32> -> vector<16x24xf32>
      %657 = vector.broadcast %654 : vector<1x24xf32> to vector<16x24xf32>
      %658 = arith.addf %656, %657 : vector<16x24xf32>
      %cst_381 = arith.constant 0.000000e+00 : f32
      %659 = vector.broadcast %cst_381 : f32 to vector<16x24xf32>
      %660 = arith.maximumf %658, %659 : vector<16x24xf32>
      %661 = arith.index_cast %arg70 : i32 to index
      %c0_382 = arith.constant 0 : index
      %c0_383 = arith.constant 0 : index
      %662 = vector.load %arg8[%661, %c0_382, %c0_383] : memref<3x9x24xf32, #tpu.memory_space<vmem>>, vector<1x9x24xf32>
      %663 = vector.shape_cast %662 : vector<1x9x24xf32> to vector<9x24xf32>
      %664 = arith.index_cast %arg70 : i32 to index
      %c0_384 = arith.constant 0 : index
      %c0_385 = arith.constant 0 : index
      %665 = vector.load %arg7[%664, %c0_384, %c0_385] : memref<3x1x24xf32, #tpu.memory_space<vmem>>, vector<1x1x24xf32>
      %666 = vector.shape_cast %665 : vector<1x1x24xf32> to vector<1x24xf32>
      %667 = arith.truncf %660 : vector<16x24xf32> to vector<16x24xbf16>
      %c0_386 = arith.constant 0 : index
      %c0_387 = arith.constant 0 : index
      %c0_388 = arith.constant 0 : index
      %668 = vector.load %arg27[%c0_386, %c0_387, %c0_388] : memref<9x16x16xbf16, #tpu.memory_space<vmem>>, vector<1x16x16xbf16>
      %669 = vector.shape_cast %668 : vector<1x16x16xbf16> to vector<16x16xbf16>
      %cst_389 = arith.constant dense<0.000000e+00> : vector<16x24xf32>
      %670 = tpu.matmul %669, %667, %cst_389 {dimension_numbers = #tpu.dot_dimension_numbers<[1], [0], [0], [1], [0, 0, 1, 1], [], []>} : vector<16x16xbf16>, vector<16x24xbf16>, vector<16x24xf32> -> vector<16x24xf32>
      %671 = vector.extract_strided_slice %663 {offsets = [0, 0], sizes = [1, 24], strides = [1, 1]} : vector<9x24xf32> to vector<1x24xf32>
      %672 = vector.shape_cast %671 : vector<1x24xf32> to vector<24xf32>
      %673 = vector.shape_cast %672 : vector<24xf32> to vector<1x24xf32>
      %674 = vector.broadcast %673 : vector<1x24xf32> to vector<16x24xf32>
      %675 = arith.mulf %670, %674 : vector<16x24xf32>
      %c1_390 = arith.constant 1 : index
      %c0_391 = arith.constant 0 : index
      %c0_392 = arith.constant 0 : index
      %676 = vector.load %arg27[%c1_390, %c0_391, %c0_392] : memref<9x16x16xbf16, #tpu.memory_space<vmem>>, vector<1x16x16xbf16>
      %677 = vector.shape_cast %676 : vector<1x16x16xbf16> to vector<16x16xbf16>
      %cst_393 = arith.constant dense<0.000000e+00> : vector<16x24xf32>
      %678 = tpu.matmul %677, %667, %cst_393 {dimension_numbers = #tpu.dot_dimension_numbers<[1], [0], [0], [1], [0, 0, 1, 1], [], []>} : vector<16x16xbf16>, vector<16x24xbf16>, vector<16x24xf32> -> vector<16x24xf32>
      %679 = vector.extract_strided_slice %663 {offsets = [1, 0], sizes = [1, 24], strides = [1, 1]} : vector<9x24xf32> to vector<1x24xf32>
      %680 = vector.shape_cast %679 : vector<1x24xf32> to vector<24xf32>
      %681 = vector.shape_cast %680 : vector<24xf32> to vector<1x24xf32>
      %682 = vector.broadcast %681 : vector<1x24xf32> to vector<16x24xf32>
      %683 = arith.mulf %678, %682 : vector<16x24xf32>
      %684 = arith.addf %675, %683 : vector<16x24xf32>
      %c2_394 = arith.constant 2 : index
      %c0_395 = arith.constant 0 : index
      %c0_396 = arith.constant 0 : index
      %685 = vector.load %arg27[%c2_394, %c0_395, %c0_396] : memref<9x16x16xbf16, #tpu.memory_space<vmem>>, vector<1x16x16xbf16>
      %686 = vector.shape_cast %685 : vector<1x16x16xbf16> to vector<16x16xbf16>
      %cst_397 = arith.constant dense<0.000000e+00> : vector<16x24xf32>
      %687 = tpu.matmul %686, %667, %cst_397 {dimension_numbers = #tpu.dot_dimension_numbers<[1], [0], [0], [1], [0, 0, 1, 1], [], []>} : vector<16x16xbf16>, vector<16x24xbf16>, vector<16x24xf32> -> vector<16x24xf32>
      %688 = vector.extract_strided_slice %663 {offsets = [2, 0], sizes = [1, 24], strides = [1, 1]} : vector<9x24xf32> to vector<1x24xf32>
      %689 = vector.shape_cast %688 : vector<1x24xf32> to vector<24xf32>
      %690 = vector.shape_cast %689 : vector<24xf32> to vector<1x24xf32>
      %691 = vector.broadcast %690 : vector<1x24xf32> to vector<16x24xf32>
      %692 = arith.mulf %687, %691 : vector<16x24xf32>
      %693 = arith.addf %684, %692 : vector<16x24xf32>
      %c3_398 = arith.constant 3 : index
      %c0_399 = arith.constant 0 : index
      %c0_400 = arith.constant 0 : index
      %694 = vector.load %arg27[%c3_398, %c0_399, %c0_400] : memref<9x16x16xbf16, #tpu.memory_space<vmem>>, vector<1x16x16xbf16>
      %695 = vector.shape_cast %694 : vector<1x16x16xbf16> to vector<16x16xbf16>
      %cst_401 = arith.constant dense<0.000000e+00> : vector<16x24xf32>
      %696 = tpu.matmul %695, %667, %cst_401 {dimension_numbers = #tpu.dot_dimension_numbers<[1], [0], [0], [1], [0, 0, 1, 1], [], []>} : vector<16x16xbf16>, vector<16x24xbf16>, vector<16x24xf32> -> vector<16x24xf32>
      %697 = vector.extract_strided_slice %663 {offsets = [3, 0], sizes = [1, 24], strides = [1, 1]} : vector<9x24xf32> to vector<1x24xf32>
      %698 = vector.shape_cast %697 : vector<1x24xf32> to vector<24xf32>
      %699 = vector.shape_cast %698 : vector<24xf32> to vector<1x24xf32>
      %700 = vector.broadcast %699 : vector<1x24xf32> to vector<16x24xf32>
      %701 = arith.mulf %696, %700 : vector<16x24xf32>
      %702 = arith.addf %693, %701 : vector<16x24xf32>
      %c4_402 = arith.constant 4 : index
      %c0_403 = arith.constant 0 : index
      %c0_404 = arith.constant 0 : index
      %703 = vector.load %arg27[%c4_402, %c0_403, %c0_404] : memref<9x16x16xbf16, #tpu.memory_space<vmem>>, vector<1x16x16xbf16>
      %704 = vector.shape_cast %703 : vector<1x16x16xbf16> to vector<16x16xbf16>
      %cst_405 = arith.constant dense<0.000000e+00> : vector<16x24xf32>
      %705 = tpu.matmul %704, %667, %cst_405 {dimension_numbers = #tpu.dot_dimension_numbers<[1], [0], [0], [1], [0, 0, 1, 1], [], []>} : vector<16x16xbf16>, vector<16x24xbf16>, vector<16x24xf32> -> vector<16x24xf32>
      %706 = vector.extract_strided_slice %663 {offsets = [4, 0], sizes = [1, 24], strides = [1, 1]} : vector<9x24xf32> to vector<1x24xf32>
      %707 = vector.shape_cast %706 : vector<1x24xf32> to vector<24xf32>
      %708 = vector.shape_cast %707 : vector<24xf32> to vector<1x24xf32>
      %709 = vector.broadcast %708 : vector<1x24xf32> to vector<16x24xf32>
      %710 = arith.mulf %705, %709 : vector<16x24xf32>
      %711 = arith.addf %702, %710 : vector<16x24xf32>
      %c5_406 = arith.constant 5 : index
      %c0_407 = arith.constant 0 : index
      %c0_408 = arith.constant 0 : index
      %712 = vector.load %arg27[%c5_406, %c0_407, %c0_408] : memref<9x16x16xbf16, #tpu.memory_space<vmem>>, vector<1x16x16xbf16>
      %713 = vector.shape_cast %712 : vector<1x16x16xbf16> to vector<16x16xbf16>
      %cst_409 = arith.constant dense<0.000000e+00> : vector<16x24xf32>
      %714 = tpu.matmul %713, %667, %cst_409 {dimension_numbers = #tpu.dot_dimension_numbers<[1], [0], [0], [1], [0, 0, 1, 1], [], []>} : vector<16x16xbf16>, vector<16x24xbf16>, vector<16x24xf32> -> vector<16x24xf32>
      %715 = vector.extract_strided_slice %663 {offsets = [5, 0], sizes = [1, 24], strides = [1, 1]} : vector<9x24xf32> to vector<1x24xf32>
      %716 = vector.shape_cast %715 : vector<1x24xf32> to vector<24xf32>
      %717 = vector.shape_cast %716 : vector<24xf32> to vector<1x24xf32>
      %718 = vector.broadcast %717 : vector<1x24xf32> to vector<16x24xf32>
      %719 = arith.mulf %714, %718 : vector<16x24xf32>
      %720 = arith.addf %711, %719 : vector<16x24xf32>
      %c6_410 = arith.constant 6 : index
      %c0_411 = arith.constant 0 : index
      %c0_412 = arith.constant 0 : index
      %721 = vector.load %arg27[%c6_410, %c0_411, %c0_412] : memref<9x16x16xbf16, #tpu.memory_space<vmem>>, vector<1x16x16xbf16>
      %722 = vector.shape_cast %721 : vector<1x16x16xbf16> to vector<16x16xbf16>
      %cst_413 = arith.constant dense<0.000000e+00> : vector<16x24xf32>
      %723 = tpu.matmul %722, %667, %cst_413 {dimension_numbers = #tpu.dot_dimension_numbers<[1], [0], [0], [1], [0, 0, 1, 1], [], []>} : vector<16x16xbf16>, vector<16x24xbf16>, vector<16x24xf32> -> vector<16x24xf32>
      %724 = vector.extract_strided_slice %663 {offsets = [6, 0], sizes = [1, 24], strides = [1, 1]} : vector<9x24xf32> to vector<1x24xf32>
      %725 = vector.shape_cast %724 : vector<1x24xf32> to vector<24xf32>
      %726 = vector.shape_cast %725 : vector<24xf32> to vector<1x24xf32>
      %727 = vector.broadcast %726 : vector<1x24xf32> to vector<16x24xf32>
      %728 = arith.mulf %723, %727 : vector<16x24xf32>
      %729 = arith.addf %720, %728 : vector<16x24xf32>
      %c7_414 = arith.constant 7 : index
      %c0_415 = arith.constant 0 : index
      %c0_416 = arith.constant 0 : index
      %730 = vector.load %arg27[%c7_414, %c0_415, %c0_416] : memref<9x16x16xbf16, #tpu.memory_space<vmem>>, vector<1x16x16xbf16>
      %731 = vector.shape_cast %730 : vector<1x16x16xbf16> to vector<16x16xbf16>
      %cst_417 = arith.constant dense<0.000000e+00> : vector<16x24xf32>
      %732 = tpu.matmul %731, %667, %cst_417 {dimension_numbers = #tpu.dot_dimension_numbers<[1], [0], [0], [1], [0, 0, 1, 1], [], []>} : vector<16x16xbf16>, vector<16x24xbf16>, vector<16x24xf32> -> vector<16x24xf32>
      %733 = vector.extract_strided_slice %663 {offsets = [7, 0], sizes = [1, 24], strides = [1, 1]} : vector<9x24xf32> to vector<1x24xf32>
      %734 = vector.shape_cast %733 : vector<1x24xf32> to vector<24xf32>
      %735 = vector.shape_cast %734 : vector<24xf32> to vector<1x24xf32>
      %736 = vector.broadcast %735 : vector<1x24xf32> to vector<16x24xf32>
      %737 = arith.mulf %732, %736 : vector<16x24xf32>
      %738 = arith.addf %729, %737 : vector<16x24xf32>
      %c8_418 = arith.constant 8 : index
      %c0_419 = arith.constant 0 : index
      %c0_420 = arith.constant 0 : index
      %739 = vector.load %arg27[%c8_418, %c0_419, %c0_420] : memref<9x16x16xbf16, #tpu.memory_space<vmem>>, vector<1x16x16xbf16>
      %740 = vector.shape_cast %739 : vector<1x16x16xbf16> to vector<16x16xbf16>
      %cst_421 = arith.constant dense<0.000000e+00> : vector<16x24xf32>
      %741 = tpu.matmul %740, %667, %cst_421 {dimension_numbers = #tpu.dot_dimension_numbers<[1], [0], [0], [1], [0, 0, 1, 1], [], []>} : vector<16x16xbf16>, vector<16x24xbf16>, vector<16x24xf32> -> vector<16x24xf32>
      %742 = vector.extract_strided_slice %663 {offsets = [8, 0], sizes = [1, 24], strides = [1, 1]} : vector<9x24xf32> to vector<1x24xf32>
      %743 = vector.shape_cast %742 : vector<1x24xf32> to vector<24xf32>
      %744 = vector.shape_cast %743 : vector<24xf32> to vector<1x24xf32>
      %745 = vector.broadcast %744 : vector<1x24xf32> to vector<16x24xf32>
      %746 = arith.mulf %741, %745 : vector<16x24xf32>
      %747 = arith.addf %738, %746 : vector<16x24xf32>
      %748 = vector.broadcast %666 : vector<1x24xf32> to vector<16x24xf32>
      %749 = arith.addf %747, %748 : vector<16x24xf32>
      %750 = arith.index_cast %arg70 : i32 to index
      %c0_422 = arith.constant 0 : index
      %c0_423 = arith.constant 0 : index
      %751 = vector.load %arg12[%750, %c0_422, %c0_423] : memref<3x24x24xbf16, #tpu.memory_space<vmem>>, vector<1x24x24xbf16>
      %752 = vector.shape_cast %751 : vector<1x24x24xbf16> to vector<24x24xbf16>
      %753 = arith.index_cast %arg70 : i32 to index
      %c0_424 = arith.constant 0 : index
      %c0_425 = arith.constant 0 : index
      %754 = vector.load %arg11[%753, %c0_424, %c0_425] : memref<3x1x24xf32, #tpu.memory_space<vmem>>, vector<1x1x24xf32>
      %755 = vector.shape_cast %754 : vector<1x1x24xf32> to vector<1x24xf32>
      %756 = arith.truncf %749 : vector<16x24xf32> to vector<16x24xbf16>
      %cst_426 = arith.constant dense<0.000000e+00> : vector<16x24xf32>
      %757 = tpu.matmul %756, %752, %cst_426 {dimension_numbers = #tpu.dot_dimension_numbers<[1], [0], [0], [1], [0, 0, 1, 1], [], []>} : vector<16x24xbf16>, vector<24x24xbf16>, vector<16x24xf32> -> vector<16x24xf32>
      %758 = vector.broadcast %755 : vector<1x24xf32> to vector<16x24xf32>
      %759 = arith.addf %757, %758 : vector<16x24xf32>
      %cst_427 = arith.constant 0.000000e+00 : f32
      %760 = vector.broadcast %cst_427 : f32 to vector<16x24xf32>
      %761 = arith.maximumf %759, %760 : vector<16x24xf32>
      %762 = arith.truncf %arg71 : vector<16x48xf32> to vector<16x48xbf16>
      %cst_428 = arith.constant dense<0.000000e+00> : vector<16x48xf32>
      %763 = tpu.matmul %762, %247, %cst_428 {dimension_numbers = #tpu.dot_dimension_numbers<[1], [0], [0], [1], [0, 0, 1, 1], [], []>} : vector<16x48xbf16>, vector<48x48xbf16>, vector<16x48xf32> -> vector<16x48xf32>
      %764 = arith.truncf %761 : vector<16x24xf32> to vector<16x24xbf16>
      %cst_429 = arith.constant dense<0.000000e+00> : vector<16x48xf32>
      %765 = tpu.matmul %764, %248, %cst_429 {dimension_numbers = #tpu.dot_dimension_numbers<[1], [0], [0], [1], [0, 0, 1, 1], [], []>} : vector<16x24xbf16>, vector<24x48xbf16>, vector<16x48xf32> -> vector<16x48xf32>
      %766 = arith.addf %763, %765 : vector<16x48xf32>
      scf.yield %766 : vector<16x48xf32>
    }
    %c3_i32_143 = arith.constant 3 : i32
    %c0_144 = arith.constant 0 : index
    %c0_145 = arith.constant 0 : index
    %251 = vector.load %arg35[%c0_144, %c0_145] : memref<9x48xf32, #tpu.memory_space<vmem>>, vector<9x48xf32>
    %c0_146 = arith.constant 0 : index
    %c0_147 = arith.constant 0 : index
    %252 = vector.load %arg34[%c0_146, %c0_147] : memref<1x48xf32, #tpu.memory_space<vmem>>, vector<1x48xf32>
    %253 = arith.truncf %250 : vector<16x48xf32> to vector<16x48xbf16>
    %c0_148 = arith.constant 0 : index
    %c0_149 = arith.constant 0 : index
    %c0_150 = arith.constant 0 : index
    %254 = vector.load %arg44[%c0_148, %c0_149, %c0_150] : memref<9x4x16xbf16, #tpu.memory_space<vmem>>, vector<1x4x16xbf16>
    %255 = vector.shape_cast %254 : vector<1x4x16xbf16> to vector<4x16xbf16>
    %cst_151 = arith.constant dense<0.000000e+00> : vector<4x48xf32>
    %256 = tpu.matmul %255, %253, %cst_151 {dimension_numbers = #tpu.dot_dimension_numbers<[1], [0], [0], [1], [0, 0, 1, 1], [], []>} : vector<4x16xbf16>, vector<16x48xbf16>, vector<4x48xf32> -> vector<4x48xf32>
    %257 = vector.extract_strided_slice %251 {offsets = [0, 0], sizes = [1, 48], strides = [1, 1]} : vector<9x48xf32> to vector<1x48xf32>
    %258 = vector.shape_cast %257 : vector<1x48xf32> to vector<48xf32>
    %259 = vector.shape_cast %258 : vector<48xf32> to vector<1x48xf32>
    %260 = vector.broadcast %259 : vector<1x48xf32> to vector<4x48xf32>
    %261 = arith.mulf %256, %260 : vector<4x48xf32>
    %c1_152 = arith.constant 1 : index
    %c0_153 = arith.constant 0 : index
    %c0_154 = arith.constant 0 : index
    %262 = vector.load %arg44[%c1_152, %c0_153, %c0_154] : memref<9x4x16xbf16, #tpu.memory_space<vmem>>, vector<1x4x16xbf16>
    %263 = vector.shape_cast %262 : vector<1x4x16xbf16> to vector<4x16xbf16>
    %cst_155 = arith.constant dense<0.000000e+00> : vector<4x48xf32>
    %264 = tpu.matmul %263, %253, %cst_155 {dimension_numbers = #tpu.dot_dimension_numbers<[1], [0], [0], [1], [0, 0, 1, 1], [], []>} : vector<4x16xbf16>, vector<16x48xbf16>, vector<4x48xf32> -> vector<4x48xf32>
    %265 = vector.extract_strided_slice %251 {offsets = [1, 0], sizes = [1, 48], strides = [1, 1]} : vector<9x48xf32> to vector<1x48xf32>
    %266 = vector.shape_cast %265 : vector<1x48xf32> to vector<48xf32>
    %267 = vector.shape_cast %266 : vector<48xf32> to vector<1x48xf32>
    %268 = vector.broadcast %267 : vector<1x48xf32> to vector<4x48xf32>
    %269 = arith.mulf %264, %268 : vector<4x48xf32>
    %270 = arith.addf %261, %269 : vector<4x48xf32>
    %c2_156 = arith.constant 2 : index
    %c0_157 = arith.constant 0 : index
    %c0_158 = arith.constant 0 : index
    %271 = vector.load %arg44[%c2_156, %c0_157, %c0_158] : memref<9x4x16xbf16, #tpu.memory_space<vmem>>, vector<1x4x16xbf16>
    %272 = vector.shape_cast %271 : vector<1x4x16xbf16> to vector<4x16xbf16>
    %cst_159 = arith.constant dense<0.000000e+00> : vector<4x48xf32>
    %273 = tpu.matmul %272, %253, %cst_159 {dimension_numbers = #tpu.dot_dimension_numbers<[1], [0], [0], [1], [0, 0, 1, 1], [], []>} : vector<4x16xbf16>, vector<16x48xbf16>, vector<4x48xf32> -> vector<4x48xf32>
    %274 = vector.extract_strided_slice %251 {offsets = [2, 0], sizes = [1, 48], strides = [1, 1]} : vector<9x48xf32> to vector<1x48xf32>
    %275 = vector.shape_cast %274 : vector<1x48xf32> to vector<48xf32>
    %276 = vector.shape_cast %275 : vector<48xf32> to vector<1x48xf32>
    %277 = vector.broadcast %276 : vector<1x48xf32> to vector<4x48xf32>
    %278 = arith.mulf %273, %277 : vector<4x48xf32>
    %279 = arith.addf %270, %278 : vector<4x48xf32>
    %c3_160 = arith.constant 3 : index
    %c0_161 = arith.constant 0 : index
    %c0_162 = arith.constant 0 : index
    %280 = vector.load %arg44[%c3_160, %c0_161, %c0_162] : memref<9x4x16xbf16, #tpu.memory_space<vmem>>, vector<1x4x16xbf16>
    %281 = vector.shape_cast %280 : vector<1x4x16xbf16> to vector<4x16xbf16>
    %cst_163 = arith.constant dense<0.000000e+00> : vector<4x48xf32>
    %282 = tpu.matmul %281, %253, %cst_163 {dimension_numbers = #tpu.dot_dimension_numbers<[1], [0], [0], [1], [0, 0, 1, 1], [], []>} : vector<4x16xbf16>, vector<16x48xbf16>, vector<4x48xf32> -> vector<4x48xf32>
    %283 = vector.extract_strided_slice %251 {offsets = [3, 0], sizes = [1, 48], strides = [1, 1]} : vector<9x48xf32> to vector<1x48xf32>
    %284 = vector.shape_cast %283 : vector<1x48xf32> to vector<48xf32>
    %285 = vector.shape_cast %284 : vector<48xf32> to vector<1x48xf32>
    %286 = vector.broadcast %285 : vector<1x48xf32> to vector<4x48xf32>
    %287 = arith.mulf %282, %286 : vector<4x48xf32>
    %288 = arith.addf %279, %287 : vector<4x48xf32>
    %c4_164 = arith.constant 4 : index
    %c0_165 = arith.constant 0 : index
    %c0_166 = arith.constant 0 : index
    %289 = vector.load %arg44[%c4_164, %c0_165, %c0_166] : memref<9x4x16xbf16, #tpu.memory_space<vmem>>, vector<1x4x16xbf16>
    %290 = vector.shape_cast %289 : vector<1x4x16xbf16> to vector<4x16xbf16>
    %cst_167 = arith.constant dense<0.000000e+00> : vector<4x48xf32>
    %291 = tpu.matmul %290, %253, %cst_167 {dimension_numbers = #tpu.dot_dimension_numbers<[1], [0], [0], [1], [0, 0, 1, 1], [], []>} : vector<4x16xbf16>, vector<16x48xbf16>, vector<4x48xf32> -> vector<4x48xf32>
    %292 = vector.extract_strided_slice %251 {offsets = [4, 0], sizes = [1, 48], strides = [1, 1]} : vector<9x48xf32> to vector<1x48xf32>
    %293 = vector.shape_cast %292 : vector<1x48xf32> to vector<48xf32>
    %294 = vector.shape_cast %293 : vector<48xf32> to vector<1x48xf32>
    %295 = vector.broadcast %294 : vector<1x48xf32> to vector<4x48xf32>
    %296 = arith.mulf %291, %295 : vector<4x48xf32>
    %297 = arith.addf %288, %296 : vector<4x48xf32>
    %c5_168 = arith.constant 5 : index
    %c0_169 = arith.constant 0 : index
    %c0_170 = arith.constant 0 : index
    %298 = vector.load %arg44[%c5_168, %c0_169, %c0_170] : memref<9x4x16xbf16, #tpu.memory_space<vmem>>, vector<1x4x16xbf16>
    %299 = vector.shape_cast %298 : vector<1x4x16xbf16> to vector<4x16xbf16>
    %cst_171 = arith.constant dense<0.000000e+00> : vector<4x48xf32>
    %300 = tpu.matmul %299, %253, %cst_171 {dimension_numbers = #tpu.dot_dimension_numbers<[1], [0], [0], [1], [0, 0, 1, 1], [], []>} : vector<4x16xbf16>, vector<16x48xbf16>, vector<4x48xf32> -> vector<4x48xf32>
    %301 = vector.extract_strided_slice %251 {offsets = [5, 0], sizes = [1, 48], strides = [1, 1]} : vector<9x48xf32> to vector<1x48xf32>
    %302 = vector.shape_cast %301 : vector<1x48xf32> to vector<48xf32>
    %303 = vector.shape_cast %302 : vector<48xf32> to vector<1x48xf32>
    %304 = vector.broadcast %303 : vector<1x48xf32> to vector<4x48xf32>
    %305 = arith.mulf %300, %304 : vector<4x48xf32>
    %306 = arith.addf %297, %305 : vector<4x48xf32>
    %c6_172 = arith.constant 6 : index
    %c0_173 = arith.constant 0 : index
    %c0_174 = arith.constant 0 : index
    %307 = vector.load %arg44[%c6_172, %c0_173, %c0_174] : memref<9x4x16xbf16, #tpu.memory_space<vmem>>, vector<1x4x16xbf16>
    %308 = vector.shape_cast %307 : vector<1x4x16xbf16> to vector<4x16xbf16>
    %cst_175 = arith.constant dense<0.000000e+00> : vector<4x48xf32>
    %309 = tpu.matmul %308, %253, %cst_175 {dimension_numbers = #tpu.dot_dimension_numbers<[1], [0], [0], [1], [0, 0, 1, 1], [], []>} : vector<4x16xbf16>, vector<16x48xbf16>, vector<4x48xf32> -> vector<4x48xf32>
    %310 = vector.extract_strided_slice %251 {offsets = [6, 0], sizes = [1, 48], strides = [1, 1]} : vector<9x48xf32> to vector<1x48xf32>
    %311 = vector.shape_cast %310 : vector<1x48xf32> to vector<48xf32>
    %312 = vector.shape_cast %311 : vector<48xf32> to vector<1x48xf32>
    %313 = vector.broadcast %312 : vector<1x48xf32> to vector<4x48xf32>
    %314 = arith.mulf %309, %313 : vector<4x48xf32>
    %315 = arith.addf %306, %314 : vector<4x48xf32>
    %c7_176 = arith.constant 7 : index
    %c0_177 = arith.constant 0 : index
    %c0_178 = arith.constant 0 : index
    %316 = vector.load %arg44[%c7_176, %c0_177, %c0_178] : memref<9x4x16xbf16, #tpu.memory_space<vmem>>, vector<1x4x16xbf16>
    %317 = vector.shape_cast %316 : vector<1x4x16xbf16> to vector<4x16xbf16>
    %cst_179 = arith.constant dense<0.000000e+00> : vector<4x48xf32>
    %318 = tpu.matmul %317, %253, %cst_179 {dimension_numbers = #tpu.dot_dimension_numbers<[1], [0], [0], [1], [0, 0, 1, 1], [], []>} : vector<4x16xbf16>, vector<16x48xbf16>, vector<4x48xf32> -> vector<4x48xf32>
    %319 = vector.extract_strided_slice %251 {offsets = [7, 0], sizes = [1, 48], strides = [1, 1]} : vector<9x48xf32> to vector<1x48xf32>
    %320 = vector.shape_cast %319 : vector<1x48xf32> to vector<48xf32>
    %321 = vector.shape_cast %320 : vector<48xf32> to vector<1x48xf32>
    %322 = vector.broadcast %321 : vector<1x48xf32> to vector<4x48xf32>
    %323 = arith.mulf %318, %322 : vector<4x48xf32>
    %324 = arith.addf %315, %323 : vector<4x48xf32>
    %c8_180 = arith.constant 8 : index
    %c0_181 = arith.constant 0 : index
    %c0_182 = arith.constant 0 : index
    %325 = vector.load %arg44[%c8_180, %c0_181, %c0_182] : memref<9x4x16xbf16, #tpu.memory_space<vmem>>, vector<1x4x16xbf16>
    %326 = vector.shape_cast %325 : vector<1x4x16xbf16> to vector<4x16xbf16>
    %cst_183 = arith.constant dense<0.000000e+00> : vector<4x48xf32>
    %327 = tpu.matmul %326, %253, %cst_183 {dimension_numbers = #tpu.dot_dimension_numbers<[1], [0], [0], [1], [0, 0, 1, 1], [], []>} : vector<4x16xbf16>, vector<16x48xbf16>, vector<4x48xf32> -> vector<4x48xf32>
    %328 = vector.extract_strided_slice %251 {offsets = [8, 0], sizes = [1, 48], strides = [1, 1]} : vector<9x48xf32> to vector<1x48xf32>
    %329 = vector.shape_cast %328 : vector<1x48xf32> to vector<48xf32>
    %330 = vector.shape_cast %329 : vector<48xf32> to vector<1x48xf32>
    %331 = vector.broadcast %330 : vector<1x48xf32> to vector<4x48xf32>
    %332 = arith.mulf %327, %331 : vector<4x48xf32>
    %333 = arith.addf %324, %332 : vector<4x48xf32>
    %334 = vector.broadcast %252 : vector<1x48xf32> to vector<4x48xf32>
    %335 = arith.addf %333, %334 : vector<4x48xf32>
    %c0_184 = arith.constant 0 : index
    %c0_185 = arith.constant 0 : index
    %336 = vector.load %arg37[%c0_184, %c0_185] : memref<48x48xbf16, #tpu.memory_space<vmem>>, vector<48x48xbf16>
    %c0_186 = arith.constant 0 : index
    %c0_187 = arith.constant 0 : index
    %337 = vector.load %arg36[%c0_186, %c0_187] : memref<1x48xf32, #tpu.memory_space<vmem>>, vector<1x48xf32>
    %338 = arith.truncf %335 : vector<4x48xf32> to vector<4x48xbf16>
    %cst_188 = arith.constant dense<0.000000e+00> : vector<4x48xf32>
    %339 = tpu.matmul %338, %336, %cst_188 {dimension_numbers = #tpu.dot_dimension_numbers<[1], [0], [0], [1], [0, 0, 1, 1], [], []>} : vector<4x48xbf16>, vector<48x48xbf16>, vector<4x48xf32> -> vector<4x48xf32>
    %340 = vector.broadcast %337 : vector<1x48xf32> to vector<4x48xf32>
    %341 = arith.addf %339, %340 : vector<4x48xf32>
    %cst_189 = arith.constant 0.000000e+00 : f32
    %342 = vector.broadcast %cst_189 : f32 to vector<4x48xf32>
    %343 = arith.maximumf %341, %342 : vector<4x48xf32>
    %c0_190 = arith.constant 0 : index
    %c0_191 = arith.constant 0 : index
    %344 = vector.load %arg41[%c0_190, %c0_191] : memref<48x48xbf16, #tpu.memory_space<vmem>>, vector<48x48xbf16>
    %c0_192 = arith.constant 0 : index
    %c0_193 = arith.constant 0 : index
    %345 = vector.load %arg40[%c0_192, %c0_193] : memref<1x48xf32, #tpu.memory_space<vmem>>, vector<1x48xf32>
    %346 = arith.truncf %250 : vector<16x48xf32> to vector<16x48xbf16>
    %cst_194 = arith.constant dense<0.000000e+00> : vector<16x48xf32>
    %347 = tpu.matmul %346, %344, %cst_194 {dimension_numbers = #tpu.dot_dimension_numbers<[1], [0], [0], [1], [0, 0, 1, 1], [], []>} : vector<16x48xbf16>, vector<48x48xbf16>, vector<16x48xf32> -> vector<16x48xf32>
    %348 = vector.broadcast %345 : vector<1x48xf32> to vector<16x48xf32>
    %349 = arith.addf %347, %348 : vector<16x48xf32>
    %cst_195 = arith.constant 0.000000e+00 : f32
    %350 = vector.broadcast %cst_195 : f32 to vector<16x48xf32>
    %351 = arith.maximumf %349, %350 : vector<16x48xf32>
    %c0_196 = arith.constant 0 : index
    %c0_197 = arith.constant 0 : index
    %352 = vector.load %arg39[%c0_196, %c0_197] : memref<9x48xf32, #tpu.memory_space<vmem>>, vector<9x48xf32>
    %c0_198 = arith.constant 0 : index
    %c0_199 = arith.constant 0 : index
    %353 = vector.load %arg38[%c0_198, %c0_199] : memref<1x48xf32, #tpu.memory_space<vmem>>, vector<1x48xf32>
    %354 = arith.truncf %351 : vector<16x48xf32> to vector<16x48xbf16>
    %c0_200 = arith.constant 0 : index
    %c0_201 = arith.constant 0 : index
    %c0_202 = arith.constant 0 : index
    %355 = vector.load %arg44[%c0_200, %c0_201, %c0_202] : memref<9x4x16xbf16, #tpu.memory_space<vmem>>, vector<1x4x16xbf16>
    %356 = vector.shape_cast %355 : vector<1x4x16xbf16> to vector<4x16xbf16>
    %cst_203 = arith.constant dense<0.000000e+00> : vector<4x48xf32>
    %357 = tpu.matmul %356, %354, %cst_203 {dimension_numbers = #tpu.dot_dimension_numbers<[1], [0], [0], [1], [0, 0, 1, 1], [], []>} : vector<4x16xbf16>, vector<16x48xbf16>, vector<4x48xf32> -> vector<4x48xf32>
    %358 = vector.extract_strided_slice %352 {offsets = [0, 0], sizes = [1, 48], strides = [1, 1]} : vector<9x48xf32> to vector<1x48xf32>
    %359 = vector.shape_cast %358 : vector<1x48xf32> to vector<48xf32>
    %360 = vector.shape_cast %359 : vector<48xf32> to vector<1x48xf32>
    %361 = vector.broadcast %360 : vector<1x48xf32> to vector<4x48xf32>
    %362 = arith.mulf %357, %361 : vector<4x48xf32>
    %c1_204 = arith.constant 1 : index
    %c0_205 = arith.constant 0 : index
    %c0_206 = arith.constant 0 : index
    %363 = vector.load %arg44[%c1_204, %c0_205, %c0_206] : memref<9x4x16xbf16, #tpu.memory_space<vmem>>, vector<1x4x16xbf16>
    %364 = vector.shape_cast %363 : vector<1x4x16xbf16> to vector<4x16xbf16>
    %cst_207 = arith.constant dense<0.000000e+00> : vector<4x48xf32>
    %365 = tpu.matmul %364, %354, %cst_207 {dimension_numbers = #tpu.dot_dimension_numbers<[1], [0], [0], [1], [0, 0, 1, 1], [], []>} : vector<4x16xbf16>, vector<16x48xbf16>, vector<4x48xf32> -> vector<4x48xf32>
    %366 = vector.extract_strided_slice %352 {offsets = [1, 0], sizes = [1, 48], strides = [1, 1]} : vector<9x48xf32> to vector<1x48xf32>
    %367 = vector.shape_cast %366 : vector<1x48xf32> to vector<48xf32>
    %368 = vector.shape_cast %367 : vector<48xf32> to vector<1x48xf32>
    %369 = vector.broadcast %368 : vector<1x48xf32> to vector<4x48xf32>
    %370 = arith.mulf %365, %369 : vector<4x48xf32>
    %371 = arith.addf %362, %370 : vector<4x48xf32>
    %c2_208 = arith.constant 2 : index
    %c0_209 = arith.constant 0 : index
    %c0_210 = arith.constant 0 : index
    %372 = vector.load %arg44[%c2_208, %c0_209, %c0_210] : memref<9x4x16xbf16, #tpu.memory_space<vmem>>, vector<1x4x16xbf16>
    %373 = vector.shape_cast %372 : vector<1x4x16xbf16> to vector<4x16xbf16>
    %cst_211 = arith.constant dense<0.000000e+00> : vector<4x48xf32>
    %374 = tpu.matmul %373, %354, %cst_211 {dimension_numbers = #tpu.dot_dimension_numbers<[1], [0], [0], [1], [0, 0, 1, 1], [], []>} : vector<4x16xbf16>, vector<16x48xbf16>, vector<4x48xf32> -> vector<4x48xf32>
    %375 = vector.extract_strided_slice %352 {offsets = [2, 0], sizes = [1, 48], strides = [1, 1]} : vector<9x48xf32> to vector<1x48xf32>
    %376 = vector.shape_cast %375 : vector<1x48xf32> to vector<48xf32>
    %377 = vector.shape_cast %376 : vector<48xf32> to vector<1x48xf32>
    %378 = vector.broadcast %377 : vector<1x48xf32> to vector<4x48xf32>
    %379 = arith.mulf %374, %378 : vector<4x48xf32>
    %380 = arith.addf %371, %379 : vector<4x48xf32>
    %c3_212 = arith.constant 3 : index
    %c0_213 = arith.constant 0 : index
    %c0_214 = arith.constant 0 : index
    %381 = vector.load %arg44[%c3_212, %c0_213, %c0_214] : memref<9x4x16xbf16, #tpu.memory_space<vmem>>, vector<1x4x16xbf16>
    %382 = vector.shape_cast %381 : vector<1x4x16xbf16> to vector<4x16xbf16>
    %cst_215 = arith.constant dense<0.000000e+00> : vector<4x48xf32>
    %383 = tpu.matmul %382, %354, %cst_215 {dimension_numbers = #tpu.dot_dimension_numbers<[1], [0], [0], [1], [0, 0, 1, 1], [], []>} : vector<4x16xbf16>, vector<16x48xbf16>, vector<4x48xf32> -> vector<4x48xf32>
    %384 = vector.extract_strided_slice %352 {offsets = [3, 0], sizes = [1, 48], strides = [1, 1]} : vector<9x48xf32> to vector<1x48xf32>
    %385 = vector.shape_cast %384 : vector<1x48xf32> to vector<48xf32>
    %386 = vector.shape_cast %385 : vector<48xf32> to vector<1x48xf32>
    %387 = vector.broadcast %386 : vector<1x48xf32> to vector<4x48xf32>
    %388 = arith.mulf %383, %387 : vector<4x48xf32>
    %389 = arith.addf %380, %388 : vector<4x48xf32>
    %c4_216 = arith.constant 4 : index
    %c0_217 = arith.constant 0 : index
    %c0_218 = arith.constant 0 : index
    %390 = vector.load %arg44[%c4_216, %c0_217, %c0_218] : memref<9x4x16xbf16, #tpu.memory_space<vmem>>, vector<1x4x16xbf16>
    %391 = vector.shape_cast %390 : vector<1x4x16xbf16> to vector<4x16xbf16>
    %cst_219 = arith.constant dense<0.000000e+00> : vector<4x48xf32>
    %392 = tpu.matmul %391, %354, %cst_219 {dimension_numbers = #tpu.dot_dimension_numbers<[1], [0], [0], [1], [0, 0, 1, 1], [], []>} : vector<4x16xbf16>, vector<16x48xbf16>, vector<4x48xf32> -> vector<4x48xf32>
    %393 = vector.extract_strided_slice %352 {offsets = [4, 0], sizes = [1, 48], strides = [1, 1]} : vector<9x48xf32> to vector<1x48xf32>
    %394 = vector.shape_cast %393 : vector<1x48xf32> to vector<48xf32>
    %395 = vector.shape_cast %394 : vector<48xf32> to vector<1x48xf32>
    %396 = vector.broadcast %395 : vector<1x48xf32> to vector<4x48xf32>
    %397 = arith.mulf %392, %396 : vector<4x48xf32>
    %398 = arith.addf %389, %397 : vector<4x48xf32>
    %c5_220 = arith.constant 5 : index
    %c0_221 = arith.constant 0 : index
    %c0_222 = arith.constant 0 : index
    %399 = vector.load %arg44[%c5_220, %c0_221, %c0_222] : memref<9x4x16xbf16, #tpu.memory_space<vmem>>, vector<1x4x16xbf16>
    %400 = vector.shape_cast %399 : vector<1x4x16xbf16> to vector<4x16xbf16>
    %cst_223 = arith.constant dense<0.000000e+00> : vector<4x48xf32>
    %401 = tpu.matmul %400, %354, %cst_223 {dimension_numbers = #tpu.dot_dimension_numbers<[1], [0], [0], [1], [0, 0, 1, 1], [], []>} : vector<4x16xbf16>, vector<16x48xbf16>, vector<4x48xf32> -> vector<4x48xf32>
    %402 = vector.extract_strided_slice %352 {offsets = [5, 0], sizes = [1, 48], strides = [1, 1]} : vector<9x48xf32> to vector<1x48xf32>
    %403 = vector.shape_cast %402 : vector<1x48xf32> to vector<48xf32>
    %404 = vector.shape_cast %403 : vector<48xf32> to vector<1x48xf32>
    %405 = vector.broadcast %404 : vector<1x48xf32> to vector<4x48xf32>
    %406 = arith.mulf %401, %405 : vector<4x48xf32>
    %407 = arith.addf %398, %406 : vector<4x48xf32>
    %c6_224 = arith.constant 6 : index
    %c0_225 = arith.constant 0 : index
    %c0_226 = arith.constant 0 : index
    %408 = vector.load %arg44[%c6_224, %c0_225, %c0_226] : memref<9x4x16xbf16, #tpu.memory_space<vmem>>, vector<1x4x16xbf16>
    %409 = vector.shape_cast %408 : vector<1x4x16xbf16> to vector<4x16xbf16>
    %cst_227 = arith.constant dense<0.000000e+00> : vector<4x48xf32>
    %410 = tpu.matmul %409, %354, %cst_227 {dimension_numbers = #tpu.dot_dimension_numbers<[1], [0], [0], [1], [0, 0, 1, 1], [], []>} : vector<4x16xbf16>, vector<16x48xbf16>, vector<4x48xf32> -> vector<4x48xf32>
    %411 = vector.extract_strided_slice %352 {offsets = [6, 0], sizes = [1, 48], strides = [1, 1]} : vector<9x48xf32> to vector<1x48xf32>
    %412 = vector.shape_cast %411 : vector<1x48xf32> to vector<48xf32>
    %413 = vector.shape_cast %412 : vector<48xf32> to vector<1x48xf32>
    %414 = vector.broadcast %413 : vector<1x48xf32> to vector<4x48xf32>
    %415 = arith.mulf %410, %414 : vector<4x48xf32>
    %416 = arith.addf %407, %415 : vector<4x48xf32>
    %c7_228 = arith.constant 7 : index
    %c0_229 = arith.constant 0 : index
    %c0_230 = arith.constant 0 : index
    %417 = vector.load %arg44[%c7_228, %c0_229, %c0_230] : memref<9x4x16xbf16, #tpu.memory_space<vmem>>, vector<1x4x16xbf16>
    %418 = vector.shape_cast %417 : vector<1x4x16xbf16> to vector<4x16xbf16>
    %cst_231 = arith.constant dense<0.000000e+00> : vector<4x48xf32>
    %419 = tpu.matmul %418, %354, %cst_231 {dimension_numbers = #tpu.dot_dimension_numbers<[1], [0], [0], [1], [0, 0, 1, 1], [], []>} : vector<4x16xbf16>, vector<16x48xbf16>, vector<4x48xf32> -> vector<4x48xf32>
    %420 = vector.extract_strided_slice %352 {offsets = [7, 0], sizes = [1, 48], strides = [1, 1]} : vector<9x48xf32> to vector<1x48xf32>
    %421 = vector.shape_cast %420 : vector<1x48xf32> to vector<48xf32>
    %422 = vector.shape_cast %421 : vector<48xf32> to vector<1x48xf32>
    %423 = vector.broadcast %422 : vector<1x48xf32> to vector<4x48xf32>
    %424 = arith.mulf %419, %423 : vector<4x48xf32>
    %425 = arith.addf %416, %424 : vector<4x48xf32>
    %c8_232 = arith.constant 8 : index
    %c0_233 = arith.constant 0 : index
    %c0_234 = arith.constant 0 : index
    %426 = vector.load %arg44[%c8_232, %c0_233, %c0_234] : memref<9x4x16xbf16, #tpu.memory_space<vmem>>, vector<1x4x16xbf16>
    %427 = vector.shape_cast %426 : vector<1x4x16xbf16> to vector<4x16xbf16>
    %cst_235 = arith.constant dense<0.000000e+00> : vector<4x48xf32>
    %428 = tpu.matmul %427, %354, %cst_235 {dimension_numbers = #tpu.dot_dimension_numbers<[1], [0], [0], [1], [0, 0, 1, 1], [], []>} : vector<4x16xbf16>, vector<16x48xbf16>, vector<4x48xf32> -> vector<4x48xf32>
    %429 = vector.extract_strided_slice %352 {offsets = [8, 0], sizes = [1, 48], strides = [1, 1]} : vector<9x48xf32> to vector<1x48xf32>
    %430 = vector.shape_cast %429 : vector<1x48xf32> to vector<48xf32>
    %431 = vector.shape_cast %430 : vector<48xf32> to vector<1x48xf32>
    %432 = vector.broadcast %431 : vector<1x48xf32> to vector<4x48xf32>
    %433 = arith.mulf %428, %432 : vector<4x48xf32>
    %434 = arith.addf %425, %433 : vector<4x48xf32>
    %435 = vector.broadcast %353 : vector<1x48xf32> to vector<4x48xf32>
    %436 = arith.addf %434, %435 : vector<4x48xf32>
    %c0_236 = arith.constant 0 : index
    %c0_237 = arith.constant 0 : index
    %437 = vector.load %arg43[%c0_236, %c0_237] : memref<48x48xbf16, #tpu.memory_space<vmem>>, vector<48x48xbf16>
    %c0_238 = arith.constant 0 : index
    %c0_239 = arith.constant 0 : index
    %438 = vector.load %arg42[%c0_238, %c0_239] : memref<1x48xf32, #tpu.memory_space<vmem>>, vector<1x48xf32>
    %439 = arith.truncf %436 : vector<4x48xf32> to vector<4x48xbf16>
    %cst_240 = arith.constant dense<0.000000e+00> : vector<4x48xf32>
    %440 = tpu.matmul %439, %437, %cst_240 {dimension_numbers = #tpu.dot_dimension_numbers<[1], [0], [0], [1], [0, 0, 1, 1], [], []>} : vector<4x48xbf16>, vector<48x48xbf16>, vector<4x48xf32> -> vector<4x48xf32>
    %441 = vector.broadcast %438 : vector<1x48xf32> to vector<4x48xf32>
    %442 = arith.addf %440, %441 : vector<4x48xf32>
    %cst_241 = arith.constant 0.000000e+00 : f32
    %443 = vector.broadcast %cst_241 : f32 to vector<4x48xf32>
    %444 = arith.maximumf %442, %443 : vector<4x48xf32>
    %c0_242 = arith.constant 0 : index
    %c0_243 = arith.constant 0 : index
    %445 = vector.load %arg45[%c0_242, %c0_243] : memref<48x96xbf16, #tpu.memory_space<vmem>>, vector<48x96xbf16>
    %c0_244 = arith.constant 0 : index
    %c0_245 = arith.constant 0 : index
    %446 = vector.load %arg47[%c0_244, %c0_245] : memref<48x96xbf16, #tpu.memory_space<vmem>>, vector<48x96xbf16>
    %447 = arith.truncf %343 : vector<4x48xf32> to vector<4x48xbf16>
    %cst_246 = arith.constant dense<0.000000e+00> : vector<4x96xf32>
    %448 = tpu.matmul %447, %445, %cst_246 {dimension_numbers = #tpu.dot_dimension_numbers<[1], [0], [0], [1], [0, 0, 1, 1], [], []>} : vector<4x48xbf16>, vector<48x96xbf16>, vector<4x96xf32> -> vector<4x96xf32>
    %449 = arith.truncf %444 : vector<4x48xf32> to vector<4x48xbf16>
    %cst_247 = arith.constant dense<0.000000e+00> : vector<4x96xf32>
    %450 = tpu.matmul %449, %446, %cst_247 {dimension_numbers = #tpu.dot_dimension_numbers<[1], [0], [0], [1], [0, 0, 1, 1], [], []>} : vector<4x48xbf16>, vector<48x96xbf16>, vector<4x96xf32> -> vector<4x96xf32>
    %451 = arith.addf %448, %450 : vector<4x96xf32>
    %c0_248 = arith.constant 0 : index
    %c0_249 = arith.constant 0 : index
    %452 = vector.load %arg46[%c0_248, %c0_249] : memref<96x96xbf16, #tpu.memory_space<vmem>>, vector<96x96xbf16>
    %c0_250 = arith.constant 0 : index
    %c0_251 = arith.constant 0 : index
    %453 = vector.load %arg47[%c0_250, %c0_251] : memref<48x96xbf16, #tpu.memory_space<vmem>>, vector<48x96xbf16>
    %c0_i32_252 = arith.constant 0 : i32
    %c7_i32 = arith.constant 7 : i32
    %454 = arith.addi %c0_i32_252, %c7_i32 : i32
    %c1_i32_253 = arith.constant 1 : i32
    %455 = scf.for %arg70 = %c0_i32_252 to %454 step %c1_i32_253 iter_args(%arg71 = %451) -> (vector<4x96xf32>)  : i32 {
      %649 = arith.index_cast %arg70 : i32 to index
      %c0_376 = arith.constant 0 : index
      %c0_377 = arith.constant 0 : index
      %650 = vector.load %arg31[%649, %c0_376, %c0_377] : memref<7x96x48xbf16, #tpu.memory_space<vmem>>, vector<1x96x48xbf16>
      %651 = vector.shape_cast %650 : vector<1x96x48xbf16> to vector<96x48xbf16>
      %652 = arith.index_cast %arg70 : i32 to index
      %c0_378 = arith.constant 0 : index
      %c0_379 = arith.constant 0 : index
      %653 = vector.load %arg30[%652, %c0_378, %c0_379] : memref<7x1x48xf32, #tpu.memory_space<vmem>>, vector<1x1x48xf32>
      %654 = vector.shape_cast %653 : vector<1x1x48xf32> to vector<1x48xf32>
      %655 = arith.truncf %arg71 : vector<4x96xf32> to vector<4x96xbf16>
      %cst_380 = arith.constant dense<0.000000e+00> : vector<4x48xf32>
      %656 = tpu.matmul %655, %651, %cst_380 {dimension_numbers = #tpu.dot_dimension_numbers<[1], [0], [0], [1], [0, 0, 1, 1], [], []>} : vector<4x96xbf16>, vector<96x48xbf16>, vector<4x48xf32> -> vector<4x48xf32>
      %657 = vector.broadcast %654 : vector<1x48xf32> to vector<4x48xf32>
      %658 = arith.addf %656, %657 : vector<4x48xf32>
      %cst_381 = arith.constant 0.000000e+00 : f32
      %659 = vector.broadcast %cst_381 : f32 to vector<4x48xf32>
      %660 = arith.maximumf %658, %659 : vector<4x48xf32>
      %661 = arith.index_cast %arg70 : i32 to index
      %c0_382 = arith.constant 0 : index
      %c0_383 = arith.constant 0 : index
      %662 = vector.load %arg29[%661, %c0_382, %c0_383] : memref<7x9x48xf32, #tpu.memory_space<vmem>>, vector<1x9x48xf32>
      %663 = vector.shape_cast %662 : vector<1x9x48xf32> to vector<9x48xf32>
      %664 = arith.index_cast %arg70 : i32 to index
      %c0_384 = arith.constant 0 : index
      %c0_385 = arith.constant 0 : index
      %665 = vector.load %arg28[%664, %c0_384, %c0_385] : memref<7x1x48xf32, #tpu.memory_space<vmem>>, vector<1x1x48xf32>
      %666 = vector.shape_cast %665 : vector<1x1x48xf32> to vector<1x48xf32>
      %667 = arith.truncf %660 : vector<4x48xf32> to vector<4x48xbf16>
      %c0_386 = arith.constant 0 : index
      %c0_387 = arith.constant 0 : index
      %c0_388 = arith.constant 0 : index
      %668 = vector.load %arg48[%c0_386, %c0_387, %c0_388] : memref<9x4x4xbf16, #tpu.memory_space<vmem>>, vector<1x4x4xbf16>
      %669 = vector.shape_cast %668 : vector<1x4x4xbf16> to vector<4x4xbf16>
      %cst_389 = arith.constant dense<0.000000e+00> : vector<4x48xf32>
      %670 = tpu.matmul %669, %667, %cst_389 {dimension_numbers = #tpu.dot_dimension_numbers<[1], [0], [0], [1], [0, 0, 1, 1], [], []>} : vector<4x4xbf16>, vector<4x48xbf16>, vector<4x48xf32> -> vector<4x48xf32>
      %671 = vector.extract_strided_slice %663 {offsets = [0, 0], sizes = [1, 48], strides = [1, 1]} : vector<9x48xf32> to vector<1x48xf32>
      %672 = vector.shape_cast %671 : vector<1x48xf32> to vector<48xf32>
      %673 = vector.shape_cast %672 : vector<48xf32> to vector<1x48xf32>
      %674 = vector.broadcast %673 : vector<1x48xf32> to vector<4x48xf32>
      %675 = arith.mulf %670, %674 : vector<4x48xf32>
      %c1_390 = arith.constant 1 : index
      %c0_391 = arith.constant 0 : index
      %c0_392 = arith.constant 0 : index
      %676 = vector.load %arg48[%c1_390, %c0_391, %c0_392] : memref<9x4x4xbf16, #tpu.memory_space<vmem>>, vector<1x4x4xbf16>
      %677 = vector.shape_cast %676 : vector<1x4x4xbf16> to vector<4x4xbf16>
      %cst_393 = arith.constant dense<0.000000e+00> : vector<4x48xf32>
      %678 = tpu.matmul %677, %667, %cst_393 {dimension_numbers = #tpu.dot_dimension_numbers<[1], [0], [0], [1], [0, 0, 1, 1], [], []>} : vector<4x4xbf16>, vector<4x48xbf16>, vector<4x48xf32> -> vector<4x48xf32>
      %679 = vector.extract_strided_slice %663 {offsets = [1, 0], sizes = [1, 48], strides = [1, 1]} : vector<9x48xf32> to vector<1x48xf32>
      %680 = vector.shape_cast %679 : vector<1x48xf32> to vector<48xf32>
      %681 = vector.shape_cast %680 : vector<48xf32> to vector<1x48xf32>
      %682 = vector.broadcast %681 : vector<1x48xf32> to vector<4x48xf32>
      %683 = arith.mulf %678, %682 : vector<4x48xf32>
      %684 = arith.addf %675, %683 : vector<4x48xf32>
      %c2_394 = arith.constant 2 : index
      %c0_395 = arith.constant 0 : index
      %c0_396 = arith.constant 0 : index
      %685 = vector.load %arg48[%c2_394, %c0_395, %c0_396] : memref<9x4x4xbf16, #tpu.memory_space<vmem>>, vector<1x4x4xbf16>
      %686 = vector.shape_cast %685 : vector<1x4x4xbf16> to vector<4x4xbf16>
      %cst_397 = arith.constant dense<0.000000e+00> : vector<4x48xf32>
      %687 = tpu.matmul %686, %667, %cst_397 {dimension_numbers = #tpu.dot_dimension_numbers<[1], [0], [0], [1], [0, 0, 1, 1], [], []>} : vector<4x4xbf16>, vector<4x48xbf16>, vector<4x48xf32> -> vector<4x48xf32>
      %688 = vector.extract_strided_slice %663 {offsets = [2, 0], sizes = [1, 48], strides = [1, 1]} : vector<9x48xf32> to vector<1x48xf32>
      %689 = vector.shape_cast %688 : vector<1x48xf32> to vector<48xf32>
      %690 = vector.shape_cast %689 : vector<48xf32> to vector<1x48xf32>
      %691 = vector.broadcast %690 : vector<1x48xf32> to vector<4x48xf32>
      %692 = arith.mulf %687, %691 : vector<4x48xf32>
      %693 = arith.addf %684, %692 : vector<4x48xf32>
      %c3_398 = arith.constant 3 : index
      %c0_399 = arith.constant 0 : index
      %c0_400 = arith.constant 0 : index
      %694 = vector.load %arg48[%c3_398, %c0_399, %c0_400] : memref<9x4x4xbf16, #tpu.memory_space<vmem>>, vector<1x4x4xbf16>
      %695 = vector.shape_cast %694 : vector<1x4x4xbf16> to vector<4x4xbf16>
      %cst_401 = arith.constant dense<0.000000e+00> : vector<4x48xf32>
      %696 = tpu.matmul %695, %667, %cst_401 {dimension_numbers = #tpu.dot_dimension_numbers<[1], [0], [0], [1], [0, 0, 1, 1], [], []>} : vector<4x4xbf16>, vector<4x48xbf16>, vector<4x48xf32> -> vector<4x48xf32>
      %697 = vector.extract_strided_slice %663 {offsets = [3, 0], sizes = [1, 48], strides = [1, 1]} : vector<9x48xf32> to vector<1x48xf32>
      %698 = vector.shape_cast %697 : vector<1x48xf32> to vector<48xf32>
      %699 = vector.shape_cast %698 : vector<48xf32> to vector<1x48xf32>
      %700 = vector.broadcast %699 : vector<1x48xf32> to vector<4x48xf32>
      %701 = arith.mulf %696, %700 : vector<4x48xf32>
      %702 = arith.addf %693, %701 : vector<4x48xf32>
      %c4_402 = arith.constant 4 : index
      %c0_403 = arith.constant 0 : index
      %c0_404 = arith.constant 0 : index
      %703 = vector.load %arg48[%c4_402, %c0_403, %c0_404] : memref<9x4x4xbf16, #tpu.memory_space<vmem>>, vector<1x4x4xbf16>
      %704 = vector.shape_cast %703 : vector<1x4x4xbf16> to vector<4x4xbf16>
      %cst_405 = arith.constant dense<0.000000e+00> : vector<4x48xf32>
      %705 = tpu.matmul %704, %667, %cst_405 {dimension_numbers = #tpu.dot_dimension_numbers<[1], [0], [0], [1], [0, 0, 1, 1], [], []>} : vector<4x4xbf16>, vector<4x48xbf16>, vector<4x48xf32> -> vector<4x48xf32>
      %706 = vector.extract_strided_slice %663 {offsets = [4, 0], sizes = [1, 48], strides = [1, 1]} : vector<9x48xf32> to vector<1x48xf32>
      %707 = vector.shape_cast %706 : vector<1x48xf32> to vector<48xf32>
      %708 = vector.shape_cast %707 : vector<48xf32> to vector<1x48xf32>
      %709 = vector.broadcast %708 : vector<1x48xf32> to vector<4x48xf32>
      %710 = arith.mulf %705, %709 : vector<4x48xf32>
      %711 = arith.addf %702, %710 : vector<4x48xf32>
      %c5_406 = arith.constant 5 : index
      %c0_407 = arith.constant 0 : index
      %c0_408 = arith.constant 0 : index
      %712 = vector.load %arg48[%c5_406, %c0_407, %c0_408] : memref<9x4x4xbf16, #tpu.memory_space<vmem>>, vector<1x4x4xbf16>
      %713 = vector.shape_cast %712 : vector<1x4x4xbf16> to vector<4x4xbf16>
      %cst_409 = arith.constant dense<0.000000e+00> : vector<4x48xf32>
      %714 = tpu.matmul %713, %667, %cst_409 {dimension_numbers = #tpu.dot_dimension_numbers<[1], [0], [0], [1], [0, 0, 1, 1], [], []>} : vector<4x4xbf16>, vector<4x48xbf16>, vector<4x48xf32> -> vector<4x48xf32>
      %715 = vector.extract_strided_slice %663 {offsets = [5, 0], sizes = [1, 48], strides = [1, 1]} : vector<9x48xf32> to vector<1x48xf32>
      %716 = vector.shape_cast %715 : vector<1x48xf32> to vector<48xf32>
      %717 = vector.shape_cast %716 : vector<48xf32> to vector<1x48xf32>
      %718 = vector.broadcast %717 : vector<1x48xf32> to vector<4x48xf32>
      %719 = arith.mulf %714, %718 : vector<4x48xf32>
      %720 = arith.addf %711, %719 : vector<4x48xf32>
      %c6_410 = arith.constant 6 : index
      %c0_411 = arith.constant 0 : index
      %c0_412 = arith.constant 0 : index
      %721 = vector.load %arg48[%c6_410, %c0_411, %c0_412] : memref<9x4x4xbf16, #tpu.memory_space<vmem>>, vector<1x4x4xbf16>
      %722 = vector.shape_cast %721 : vector<1x4x4xbf16> to vector<4x4xbf16>
      %cst_413 = arith.constant dense<0.000000e+00> : vector<4x48xf32>
      %723 = tpu.matmul %722, %667, %cst_413 {dimension_numbers = #tpu.dot_dimension_numbers<[1], [0], [0], [1], [0, 0, 1, 1], [], []>} : vector<4x4xbf16>, vector<4x48xbf16>, vector<4x48xf32> -> vector<4x48xf32>
      %724 = vector.extract_strided_slice %663 {offsets = [6, 0], sizes = [1, 48], strides = [1, 1]} : vector<9x48xf32> to vector<1x48xf32>
      %725 = vector.shape_cast %724 : vector<1x48xf32> to vector<48xf32>
      %726 = vector.shape_cast %725 : vector<48xf32> to vector<1x48xf32>
      %727 = vector.broadcast %726 : vector<1x48xf32> to vector<4x48xf32>
      %728 = arith.mulf %723, %727 : vector<4x48xf32>
      %729 = arith.addf %720, %728 : vector<4x48xf32>
      %c7_414 = arith.constant 7 : index
      %c0_415 = arith.constant 0 : index
      %c0_416 = arith.constant 0 : index
      %730 = vector.load %arg48[%c7_414, %c0_415, %c0_416] : memref<9x4x4xbf16, #tpu.memory_space<vmem>>, vector<1x4x4xbf16>
      %731 = vector.shape_cast %730 : vector<1x4x4xbf16> to vector<4x4xbf16>
      %cst_417 = arith.constant dense<0.000000e+00> : vector<4x48xf32>
      %732 = tpu.matmul %731, %667, %cst_417 {dimension_numbers = #tpu.dot_dimension_numbers<[1], [0], [0], [1], [0, 0, 1, 1], [], []>} : vector<4x4xbf16>, vector<4x48xbf16>, vector<4x48xf32> -> vector<4x48xf32>
      %733 = vector.extract_strided_slice %663 {offsets = [7, 0], sizes = [1, 48], strides = [1, 1]} : vector<9x48xf32> to vector<1x48xf32>
      %734 = vector.shape_cast %733 : vector<1x48xf32> to vector<48xf32>
      %735 = vector.shape_cast %734 : vector<48xf32> to vector<1x48xf32>
      %736 = vector.broadcast %735 : vector<1x48xf32> to vector<4x48xf32>
      %737 = arith.mulf %732, %736 : vector<4x48xf32>
      %738 = arith.addf %729, %737 : vector<4x48xf32>
      %c8_418 = arith.constant 8 : index
      %c0_419 = arith.constant 0 : index
      %c0_420 = arith.constant 0 : index
      %739 = vector.load %arg48[%c8_418, %c0_419, %c0_420] : memref<9x4x4xbf16, #tpu.memory_space<vmem>>, vector<1x4x4xbf16>
      %740 = vector.shape_cast %739 : vector<1x4x4xbf16> to vector<4x4xbf16>
      %cst_421 = arith.constant dense<0.000000e+00> : vector<4x48xf32>
      %741 = tpu.matmul %740, %667, %cst_421 {dimension_numbers = #tpu.dot_dimension_numbers<[1], [0], [0], [1], [0, 0, 1, 1], [], []>} : vector<4x4xbf16>, vector<4x48xbf16>, vector<4x48xf32> -> vector<4x48xf32>
      %742 = vector.extract_strided_slice %663 {offsets = [8, 0], sizes = [1, 48], strides = [1, 1]} : vector<9x48xf32> to vector<1x48xf32>
      %743 = vector.shape_cast %742 : vector<1x48xf32> to vector<48xf32>
      %744 = vector.shape_cast %743 : vector<48xf32> to vector<1x48xf32>
      %745 = vector.broadcast %744 : vector<1x48xf32> to vector<4x48xf32>
      %746 = arith.mulf %741, %745 : vector<4x48xf32>
      %747 = arith.addf %738, %746 : vector<4x48xf32>
      %748 = vector.broadcast %666 : vector<1x48xf32> to vector<4x48xf32>
      %749 = arith.addf %747, %748 : vector<4x48xf32>
      %750 = arith.index_cast %arg70 : i32 to index
      %c0_422 = arith.constant 0 : index
      %c0_423 = arith.constant 0 : index
      %751 = vector.load %arg33[%750, %c0_422, %c0_423] : memref<7x48x48xbf16, #tpu.memory_space<vmem>>, vector<1x48x48xbf16>
      %752 = vector.shape_cast %751 : vector<1x48x48xbf16> to vector<48x48xbf16>
      %753 = arith.index_cast %arg70 : i32 to index
      %c0_424 = arith.constant 0 : index
      %c0_425 = arith.constant 0 : index
      %754 = vector.load %arg32[%753, %c0_424, %c0_425] : memref<7x1x48xf32, #tpu.memory_space<vmem>>, vector<1x1x48xf32>
      %755 = vector.shape_cast %754 : vector<1x1x48xf32> to vector<1x48xf32>
      %756 = arith.truncf %749 : vector<4x48xf32> to vector<4x48xbf16>
      %cst_426 = arith.constant dense<0.000000e+00> : vector<4x48xf32>
      %757 = tpu.matmul %756, %752, %cst_426 {dimension_numbers = #tpu.dot_dimension_numbers<[1], [0], [0], [1], [0, 0, 1, 1], [], []>} : vector<4x48xbf16>, vector<48x48xbf16>, vector<4x48xf32> -> vector<4x48xf32>
      %758 = vector.broadcast %755 : vector<1x48xf32> to vector<4x48xf32>
      %759 = arith.addf %757, %758 : vector<4x48xf32>
      %cst_427 = arith.constant 0.000000e+00 : f32
      %760 = vector.broadcast %cst_427 : f32 to vector<4x48xf32>
      %761 = arith.maximumf %759, %760 : vector<4x48xf32>
      %762 = arith.truncf %arg71 : vector<4x96xf32> to vector<4x96xbf16>
      %cst_428 = arith.constant dense<0.000000e+00> : vector<4x96xf32>
      %763 = tpu.matmul %762, %452, %cst_428 {dimension_numbers = #tpu.dot_dimension_numbers<[1], [0], [0], [1], [0, 0, 1, 1], [], []>} : vector<4x96xbf16>, vector<96x96xbf16>, vector<4x96xf32> -> vector<4x96xf32>
      %764 = arith.truncf %761 : vector<4x48xf32> to vector<4x48xbf16>
      %cst_429 = arith.constant dense<0.000000e+00> : vector<4x96xf32>
      %765 = tpu.matmul %764, %453, %cst_429 {dimension_numbers = #tpu.dot_dimension_numbers<[1], [0], [0], [1], [0, 0, 1, 1], [], []>} : vector<4x48xbf16>, vector<48x96xbf16>, vector<4x96xf32> -> vector<4x96xf32>
      %766 = arith.addf %763, %765 : vector<4x96xf32>
      scf.yield %766 : vector<4x96xf32>
    }
    %c7_i32_254 = arith.constant 7 : i32
    %c0_255 = arith.constant 0 : index
    %c0_256 = arith.constant 0 : index
    %456 = vector.load %arg56[%c0_255, %c0_256] : memref<9x96xf32, #tpu.memory_space<vmem>>, vector<9x96xf32>
    %c0_257 = arith.constant 0 : index
    %c0_258 = arith.constant 0 : index
    %457 = vector.load %arg55[%c0_257, %c0_258] : memref<1x96xf32, #tpu.memory_space<vmem>>, vector<1x96xf32>
    %458 = arith.truncf %455 : vector<4x96xf32> to vector<4x96xbf16>
    %c0_259 = arith.constant 0 : index
    %c0_260 = arith.constant 0 : index
    %c0_261 = arith.constant 0 : index
    %459 = vector.load %arg65[%c0_259, %c0_260, %c0_261] : memref<9x1x4xbf16, #tpu.memory_space<vmem>>, vector<1x1x4xbf16>
    %460 = vector.shape_cast %459 : vector<1x1x4xbf16> to vector<1x4xbf16>
    %cst_262 = arith.constant dense<0.000000e+00> : vector<1x96xf32>
    %461 = tpu.matmul %460, %458, %cst_262 {dimension_numbers = #tpu.dot_dimension_numbers<[1], [0], [0], [1], [0, 0, 1, 1], [], []>} : vector<1x4xbf16>, vector<4x96xbf16>, vector<1x96xf32> -> vector<1x96xf32>
    %462 = vector.extract_strided_slice %456 {offsets = [0, 0], sizes = [1, 96], strides = [1, 1]} : vector<9x96xf32> to vector<1x96xf32>
    %463 = vector.shape_cast %462 : vector<1x96xf32> to vector<96xf32>
    %464 = vector.shape_cast %463 : vector<96xf32> to vector<1x96xf32>
    %465 = arith.mulf %461, %464 : vector<1x96xf32>
    %c1_263 = arith.constant 1 : index
    %c0_264 = arith.constant 0 : index
    %c0_265 = arith.constant 0 : index
    %466 = vector.load %arg65[%c1_263, %c0_264, %c0_265] : memref<9x1x4xbf16, #tpu.memory_space<vmem>>, vector<1x1x4xbf16>
    %467 = vector.shape_cast %466 : vector<1x1x4xbf16> to vector<1x4xbf16>
    %cst_266 = arith.constant dense<0.000000e+00> : vector<1x96xf32>
    %468 = tpu.matmul %467, %458, %cst_266 {dimension_numbers = #tpu.dot_dimension_numbers<[1], [0], [0], [1], [0, 0, 1, 1], [], []>} : vector<1x4xbf16>, vector<4x96xbf16>, vector<1x96xf32> -> vector<1x96xf32>
    %469 = vector.extract_strided_slice %456 {offsets = [1, 0], sizes = [1, 96], strides = [1, 1]} : vector<9x96xf32> to vector<1x96xf32>
    %470 = vector.shape_cast %469 : vector<1x96xf32> to vector<96xf32>
    %471 = vector.shape_cast %470 : vector<96xf32> to vector<1x96xf32>
    %472 = arith.mulf %468, %471 : vector<1x96xf32>
    %473 = arith.addf %465, %472 : vector<1x96xf32>
    %c2_267 = arith.constant 2 : index
    %c0_268 = arith.constant 0 : index
    %c0_269 = arith.constant 0 : index
    %474 = vector.load %arg65[%c2_267, %c0_268, %c0_269] : memref<9x1x4xbf16, #tpu.memory_space<vmem>>, vector<1x1x4xbf16>
    %475 = vector.shape_cast %474 : vector<1x1x4xbf16> to vector<1x4xbf16>
    %cst_270 = arith.constant dense<0.000000e+00> : vector<1x96xf32>
    %476 = tpu.matmul %475, %458, %cst_270 {dimension_numbers = #tpu.dot_dimension_numbers<[1], [0], [0], [1], [0, 0, 1, 1], [], []>} : vector<1x4xbf16>, vector<4x96xbf16>, vector<1x96xf32> -> vector<1x96xf32>
    %477 = vector.extract_strided_slice %456 {offsets = [2, 0], sizes = [1, 96], strides = [1, 1]} : vector<9x96xf32> to vector<1x96xf32>
    %478 = vector.shape_cast %477 : vector<1x96xf32> to vector<96xf32>
    %479 = vector.shape_cast %478 : vector<96xf32> to vector<1x96xf32>
    %480 = arith.mulf %476, %479 : vector<1x96xf32>
    %481 = arith.addf %473, %480 : vector<1x96xf32>
    %c3_271 = arith.constant 3 : index
    %c0_272 = arith.constant 0 : index
    %c0_273 = arith.constant 0 : index
    %482 = vector.load %arg65[%c3_271, %c0_272, %c0_273] : memref<9x1x4xbf16, #tpu.memory_space<vmem>>, vector<1x1x4xbf16>
    %483 = vector.shape_cast %482 : vector<1x1x4xbf16> to vector<1x4xbf16>
    %cst_274 = arith.constant dense<0.000000e+00> : vector<1x96xf32>
    %484 = tpu.matmul %483, %458, %cst_274 {dimension_numbers = #tpu.dot_dimension_numbers<[1], [0], [0], [1], [0, 0, 1, 1], [], []>} : vector<1x4xbf16>, vector<4x96xbf16>, vector<1x96xf32> -> vector<1x96xf32>
    %485 = vector.extract_strided_slice %456 {offsets = [3, 0], sizes = [1, 96], strides = [1, 1]} : vector<9x96xf32> to vector<1x96xf32>
    %486 = vector.shape_cast %485 : vector<1x96xf32> to vector<96xf32>
    %487 = vector.shape_cast %486 : vector<96xf32> to vector<1x96xf32>
    %488 = arith.mulf %484, %487 : vector<1x96xf32>
    %489 = arith.addf %481, %488 : vector<1x96xf32>
    %c4_275 = arith.constant 4 : index
    %c0_276 = arith.constant 0 : index
    %c0_277 = arith.constant 0 : index
    %490 = vector.load %arg65[%c4_275, %c0_276, %c0_277] : memref<9x1x4xbf16, #tpu.memory_space<vmem>>, vector<1x1x4xbf16>
    %491 = vector.shape_cast %490 : vector<1x1x4xbf16> to vector<1x4xbf16>
    %cst_278 = arith.constant dense<0.000000e+00> : vector<1x96xf32>
    %492 = tpu.matmul %491, %458, %cst_278 {dimension_numbers = #tpu.dot_dimension_numbers<[1], [0], [0], [1], [0, 0, 1, 1], [], []>} : vector<1x4xbf16>, vector<4x96xbf16>, vector<1x96xf32> -> vector<1x96xf32>
    %493 = vector.extract_strided_slice %456 {offsets = [4, 0], sizes = [1, 96], strides = [1, 1]} : vector<9x96xf32> to vector<1x96xf32>
    %494 = vector.shape_cast %493 : vector<1x96xf32> to vector<96xf32>
    %495 = vector.shape_cast %494 : vector<96xf32> to vector<1x96xf32>
    %496 = arith.mulf %492, %495 : vector<1x96xf32>
    %497 = arith.addf %489, %496 : vector<1x96xf32>
    %c5_279 = arith.constant 5 : index
    %c0_280 = arith.constant 0 : index
    %c0_281 = arith.constant 0 : index
    %498 = vector.load %arg65[%c5_279, %c0_280, %c0_281] : memref<9x1x4xbf16, #tpu.memory_space<vmem>>, vector<1x1x4xbf16>
    %499 = vector.shape_cast %498 : vector<1x1x4xbf16> to vector<1x4xbf16>
    %cst_282 = arith.constant dense<0.000000e+00> : vector<1x96xf32>
    %500 = tpu.matmul %499, %458, %cst_282 {dimension_numbers = #tpu.dot_dimension_numbers<[1], [0], [0], [1], [0, 0, 1, 1], [], []>} : vector<1x4xbf16>, vector<4x96xbf16>, vector<1x96xf32> -> vector<1x96xf32>
    %501 = vector.extract_strided_slice %456 {offsets = [5, 0], sizes = [1, 96], strides = [1, 1]} : vector<9x96xf32> to vector<1x96xf32>
    %502 = vector.shape_cast %501 : vector<1x96xf32> to vector<96xf32>
    %503 = vector.shape_cast %502 : vector<96xf32> to vector<1x96xf32>
    %504 = arith.mulf %500, %503 : vector<1x96xf32>
    %505 = arith.addf %497, %504 : vector<1x96xf32>
    %c6_283 = arith.constant 6 : index
    %c0_284 = arith.constant 0 : index
    %c0_285 = arith.constant 0 : index
    %506 = vector.load %arg65[%c6_283, %c0_284, %c0_285] : memref<9x1x4xbf16, #tpu.memory_space<vmem>>, vector<1x1x4xbf16>
    %507 = vector.shape_cast %506 : vector<1x1x4xbf16> to vector<1x4xbf16>
    %cst_286 = arith.constant dense<0.000000e+00> : vector<1x96xf32>
    %508 = tpu.matmul %507, %458, %cst_286 {dimension_numbers = #tpu.dot_dimension_numbers<[1], [0], [0], [1], [0, 0, 1, 1], [], []>} : vector<1x4xbf16>, vector<4x96xbf16>, vector<1x96xf32> -> vector<1x96xf32>
    %509 = vector.extract_strided_slice %456 {offsets = [6, 0], sizes = [1, 96], strides = [1, 1]} : vector<9x96xf32> to vector<1x96xf32>
    %510 = vector.shape_cast %509 : vector<1x96xf32> to vector<96xf32>
    %511 = vector.shape_cast %510 : vector<96xf32> to vector<1x96xf32>
    %512 = arith.mulf %508, %511 : vector<1x96xf32>
    %513 = arith.addf %505, %512 : vector<1x96xf32>
    %c7_287 = arith.constant 7 : index
    %c0_288 = arith.constant 0 : index
    %c0_289 = arith.constant 0 : index
    %514 = vector.load %arg65[%c7_287, %c0_288, %c0_289] : memref<9x1x4xbf16, #tpu.memory_space<vmem>>, vector<1x1x4xbf16>
    %515 = vector.shape_cast %514 : vector<1x1x4xbf16> to vector<1x4xbf16>
    %cst_290 = arith.constant dense<0.000000e+00> : vector<1x96xf32>
    %516 = tpu.matmul %515, %458, %cst_290 {dimension_numbers = #tpu.dot_dimension_numbers<[1], [0], [0], [1], [0, 0, 1, 1], [], []>} : vector<1x4xbf16>, vector<4x96xbf16>, vector<1x96xf32> -> vector<1x96xf32>
    %517 = vector.extract_strided_slice %456 {offsets = [7, 0], sizes = [1, 96], strides = [1, 1]} : vector<9x96xf32> to vector<1x96xf32>
    %518 = vector.shape_cast %517 : vector<1x96xf32> to vector<96xf32>
    %519 = vector.shape_cast %518 : vector<96xf32> to vector<1x96xf32>
    %520 = arith.mulf %516, %519 : vector<1x96xf32>
    %521 = arith.addf %513, %520 : vector<1x96xf32>
    %c8_291 = arith.constant 8 : index
    %c0_292 = arith.constant 0 : index
    %c0_293 = arith.constant 0 : index
    %522 = vector.load %arg65[%c8_291, %c0_292, %c0_293] : memref<9x1x4xbf16, #tpu.memory_space<vmem>>, vector<1x1x4xbf16>
    %523 = vector.shape_cast %522 : vector<1x1x4xbf16> to vector<1x4xbf16>
    %cst_294 = arith.constant dense<0.000000e+00> : vector<1x96xf32>
    %524 = tpu.matmul %523, %458, %cst_294 {dimension_numbers = #tpu.dot_dimension_numbers<[1], [0], [0], [1], [0, 0, 1, 1], [], []>} : vector<1x4xbf16>, vector<4x96xbf16>, vector<1x96xf32> -> vector<1x96xf32>
    %525 = vector.extract_strided_slice %456 {offsets = [8, 0], sizes = [1, 96], strides = [1, 1]} : vector<9x96xf32> to vector<1x96xf32>
    %526 = vector.shape_cast %525 : vector<1x96xf32> to vector<96xf32>
    %527 = vector.shape_cast %526 : vector<96xf32> to vector<1x96xf32>
    %528 = arith.mulf %524, %527 : vector<1x96xf32>
    %529 = arith.addf %521, %528 : vector<1x96xf32>
    %530 = arith.addf %529, %457 : vector<1x96xf32>
    %c0_295 = arith.constant 0 : index
    %c0_296 = arith.constant 0 : index
    %531 = vector.load %arg58[%c0_295, %c0_296] : memref<96x96xbf16, #tpu.memory_space<vmem>>, vector<96x96xbf16>
    %c0_297 = arith.constant 0 : index
    %c0_298 = arith.constant 0 : index
    %532 = vector.load %arg57[%c0_297, %c0_298] : memref<1x96xf32, #tpu.memory_space<vmem>>, vector<1x96xf32>
    %533 = arith.truncf %530 : vector<1x96xf32> to vector<1x96xbf16>
    %cst_299 = arith.constant dense<0.000000e+00> : vector<1x96xf32>
    %534 = tpu.matmul %533, %531, %cst_299 {dimension_numbers = #tpu.dot_dimension_numbers<[1], [0], [0], [1], [0, 0, 1, 1], [], []>} : vector<1x96xbf16>, vector<96x96xbf16>, vector<1x96xf32> -> vector<1x96xf32>
    %535 = arith.addf %534, %532 : vector<1x96xf32>
    %cst_300 = arith.constant 0.000000e+00 : f32
    %536 = vector.broadcast %cst_300 : f32 to vector<1x96xf32>
    %537 = arith.maximumf %535, %536 : vector<1x96xf32>
    %c0_301 = arith.constant 0 : index
    %c0_302 = arith.constant 0 : index
    %538 = vector.load %arg62[%c0_301, %c0_302] : memref<96x96xbf16, #tpu.memory_space<vmem>>, vector<96x96xbf16>
    %c0_303 = arith.constant 0 : index
    %c0_304 = arith.constant 0 : index
    %539 = vector.load %arg61[%c0_303, %c0_304] : memref<1x96xf32, #tpu.memory_space<vmem>>, vector<1x96xf32>
    %540 = arith.truncf %455 : vector<4x96xf32> to vector<4x96xbf16>
    %cst_305 = arith.constant dense<0.000000e+00> : vector<4x96xf32>
    %541 = tpu.matmul %540, %538, %cst_305 {dimension_numbers = #tpu.dot_dimension_numbers<[1], [0], [0], [1], [0, 0, 1, 1], [], []>} : vector<4x96xbf16>, vector<96x96xbf16>, vector<4x96xf32> -> vector<4x96xf32>
    %542 = vector.broadcast %539 : vector<1x96xf32> to vector<4x96xf32>
    %543 = arith.addf %541, %542 : vector<4x96xf32>
    %cst_306 = arith.constant 0.000000e+00 : f32
    %544 = vector.broadcast %cst_306 : f32 to vector<4x96xf32>
    %545 = arith.maximumf %543, %544 : vector<4x96xf32>
    %c0_307 = arith.constant 0 : index
    %c0_308 = arith.constant 0 : index
    %546 = vector.load %arg60[%c0_307, %c0_308] : memref<9x96xf32, #tpu.memory_space<vmem>>, vector<9x96xf32>
    %c0_309 = arith.constant 0 : index
    %c0_310 = arith.constant 0 : index
    %547 = vector.load %arg59[%c0_309, %c0_310] : memref<1x96xf32, #tpu.memory_space<vmem>>, vector<1x96xf32>
    %548 = arith.truncf %545 : vector<4x96xf32> to vector<4x96xbf16>
    %c0_311 = arith.constant 0 : index
    %c0_312 = arith.constant 0 : index
    %c0_313 = arith.constant 0 : index
    %549 = vector.load %arg65[%c0_311, %c0_312, %c0_313] : memref<9x1x4xbf16, #tpu.memory_space<vmem>>, vector<1x1x4xbf16>
    %550 = vector.shape_cast %549 : vector<1x1x4xbf16> to vector<1x4xbf16>
    %cst_314 = arith.constant dense<0.000000e+00> : vector<1x96xf32>
    %551 = tpu.matmul %550, %548, %cst_314 {dimension_numbers = #tpu.dot_dimension_numbers<[1], [0], [0], [1], [0, 0, 1, 1], [], []>} : vector<1x4xbf16>, vector<4x96xbf16>, vector<1x96xf32> -> vector<1x96xf32>
    %552 = vector.extract_strided_slice %546 {offsets = [0, 0], sizes = [1, 96], strides = [1, 1]} : vector<9x96xf32> to vector<1x96xf32>
    %553 = vector.shape_cast %552 : vector<1x96xf32> to vector<96xf32>
    %554 = vector.shape_cast %553 : vector<96xf32> to vector<1x96xf32>
    %555 = arith.mulf %551, %554 : vector<1x96xf32>
    %c1_315 = arith.constant 1 : index
    %c0_316 = arith.constant 0 : index
    %c0_317 = arith.constant 0 : index
    %556 = vector.load %arg65[%c1_315, %c0_316, %c0_317] : memref<9x1x4xbf16, #tpu.memory_space<vmem>>, vector<1x1x4xbf16>
    %557 = vector.shape_cast %556 : vector<1x1x4xbf16> to vector<1x4xbf16>
    %cst_318 = arith.constant dense<0.000000e+00> : vector<1x96xf32>
    %558 = tpu.matmul %557, %548, %cst_318 {dimension_numbers = #tpu.dot_dimension_numbers<[1], [0], [0], [1], [0, 0, 1, 1], [], []>} : vector<1x4xbf16>, vector<4x96xbf16>, vector<1x96xf32> -> vector<1x96xf32>
    %559 = vector.extract_strided_slice %546 {offsets = [1, 0], sizes = [1, 96], strides = [1, 1]} : vector<9x96xf32> to vector<1x96xf32>
    %560 = vector.shape_cast %559 : vector<1x96xf32> to vector<96xf32>
    %561 = vector.shape_cast %560 : vector<96xf32> to vector<1x96xf32>
    %562 = arith.mulf %558, %561 : vector<1x96xf32>
    %563 = arith.addf %555, %562 : vector<1x96xf32>
    %c2_319 = arith.constant 2 : index
    %c0_320 = arith.constant 0 : index
    %c0_321 = arith.constant 0 : index
    %564 = vector.load %arg65[%c2_319, %c0_320, %c0_321] : memref<9x1x4xbf16, #tpu.memory_space<vmem>>, vector<1x1x4xbf16>
    %565 = vector.shape_cast %564 : vector<1x1x4xbf16> to vector<1x4xbf16>
    %cst_322 = arith.constant dense<0.000000e+00> : vector<1x96xf32>
    %566 = tpu.matmul %565, %548, %cst_322 {dimension_numbers = #tpu.dot_dimension_numbers<[1], [0], [0], [1], [0, 0, 1, 1], [], []>} : vector<1x4xbf16>, vector<4x96xbf16>, vector<1x96xf32> -> vector<1x96xf32>
    %567 = vector.extract_strided_slice %546 {offsets = [2, 0], sizes = [1, 96], strides = [1, 1]} : vector<9x96xf32> to vector<1x96xf32>
    %568 = vector.shape_cast %567 : vector<1x96xf32> to vector<96xf32>
    %569 = vector.shape_cast %568 : vector<96xf32> to vector<1x96xf32>
    %570 = arith.mulf %566, %569 : vector<1x96xf32>
    %571 = arith.addf %563, %570 : vector<1x96xf32>
    %c3_323 = arith.constant 3 : index
    %c0_324 = arith.constant 0 : index
    %c0_325 = arith.constant 0 : index
    %572 = vector.load %arg65[%c3_323, %c0_324, %c0_325] : memref<9x1x4xbf16, #tpu.memory_space<vmem>>, vector<1x1x4xbf16>
    %573 = vector.shape_cast %572 : vector<1x1x4xbf16> to vector<1x4xbf16>
    %cst_326 = arith.constant dense<0.000000e+00> : vector<1x96xf32>
    %574 = tpu.matmul %573, %548, %cst_326 {dimension_numbers = #tpu.dot_dimension_numbers<[1], [0], [0], [1], [0, 0, 1, 1], [], []>} : vector<1x4xbf16>, vector<4x96xbf16>, vector<1x96xf32> -> vector<1x96xf32>
    %575 = vector.extract_strided_slice %546 {offsets = [3, 0], sizes = [1, 96], strides = [1, 1]} : vector<9x96xf32> to vector<1x96xf32>
    %576 = vector.shape_cast %575 : vector<1x96xf32> to vector<96xf32>
    %577 = vector.shape_cast %576 : vector<96xf32> to vector<1x96xf32>
    %578 = arith.mulf %574, %577 : vector<1x96xf32>
    %579 = arith.addf %571, %578 : vector<1x96xf32>
    %c4_327 = arith.constant 4 : index
    %c0_328 = arith.constant 0 : index
    %c0_329 = arith.constant 0 : index
    %580 = vector.load %arg65[%c4_327, %c0_328, %c0_329] : memref<9x1x4xbf16, #tpu.memory_space<vmem>>, vector<1x1x4xbf16>
    %581 = vector.shape_cast %580 : vector<1x1x4xbf16> to vector<1x4xbf16>
    %cst_330 = arith.constant dense<0.000000e+00> : vector<1x96xf32>
    %582 = tpu.matmul %581, %548, %cst_330 {dimension_numbers = #tpu.dot_dimension_numbers<[1], [0], [0], [1], [0, 0, 1, 1], [], []>} : vector<1x4xbf16>, vector<4x96xbf16>, vector<1x96xf32> -> vector<1x96xf32>
    %583 = vector.extract_strided_slice %546 {offsets = [4, 0], sizes = [1, 96], strides = [1, 1]} : vector<9x96xf32> to vector<1x96xf32>
    %584 = vector.shape_cast %583 : vector<1x96xf32> to vector<96xf32>
    %585 = vector.shape_cast %584 : vector<96xf32> to vector<1x96xf32>
    %586 = arith.mulf %582, %585 : vector<1x96xf32>
    %587 = arith.addf %579, %586 : vector<1x96xf32>
    %c5_331 = arith.constant 5 : index
    %c0_332 = arith.constant 0 : index
    %c0_333 = arith.constant 0 : index
    %588 = vector.load %arg65[%c5_331, %c0_332, %c0_333] : memref<9x1x4xbf16, #tpu.memory_space<vmem>>, vector<1x1x4xbf16>
    %589 = vector.shape_cast %588 : vector<1x1x4xbf16> to vector<1x4xbf16>
    %cst_334 = arith.constant dense<0.000000e+00> : vector<1x96xf32>
    %590 = tpu.matmul %589, %548, %cst_334 {dimension_numbers = #tpu.dot_dimension_numbers<[1], [0], [0], [1], [0, 0, 1, 1], [], []>} : vector<1x4xbf16>, vector<4x96xbf16>, vector<1x96xf32> -> vector<1x96xf32>
    %591 = vector.extract_strided_slice %546 {offsets = [5, 0], sizes = [1, 96], strides = [1, 1]} : vector<9x96xf32> to vector<1x96xf32>
    %592 = vector.shape_cast %591 : vector<1x96xf32> to vector<96xf32>
    %593 = vector.shape_cast %592 : vector<96xf32> to vector<1x96xf32>
    %594 = arith.mulf %590, %593 : vector<1x96xf32>
    %595 = arith.addf %587, %594 : vector<1x96xf32>
    %c6_335 = arith.constant 6 : index
    %c0_336 = arith.constant 0 : index
    %c0_337 = arith.constant 0 : index
    %596 = vector.load %arg65[%c6_335, %c0_336, %c0_337] : memref<9x1x4xbf16, #tpu.memory_space<vmem>>, vector<1x1x4xbf16>
    %597 = vector.shape_cast %596 : vector<1x1x4xbf16> to vector<1x4xbf16>
    %cst_338 = arith.constant dense<0.000000e+00> : vector<1x96xf32>
    %598 = tpu.matmul %597, %548, %cst_338 {dimension_numbers = #tpu.dot_dimension_numbers<[1], [0], [0], [1], [0, 0, 1, 1], [], []>} : vector<1x4xbf16>, vector<4x96xbf16>, vector<1x96xf32> -> vector<1x96xf32>
    %599 = vector.extract_strided_slice %546 {offsets = [6, 0], sizes = [1, 96], strides = [1, 1]} : vector<9x96xf32> to vector<1x96xf32>
    %600 = vector.shape_cast %599 : vector<1x96xf32> to vector<96xf32>
    %601 = vector.shape_cast %600 : vector<96xf32> to vector<1x96xf32>
    %602 = arith.mulf %598, %601 : vector<1x96xf32>
    %603 = arith.addf %595, %602 : vector<1x96xf32>
    %c7_339 = arith.constant 7 : index
    %c0_340 = arith.constant 0 : index
    %c0_341 = arith.constant 0 : index
    %604 = vector.load %arg65[%c7_339, %c0_340, %c0_341] : memref<9x1x4xbf16, #tpu.memory_space<vmem>>, vector<1x1x4xbf16>
    %605 = vector.shape_cast %604 : vector<1x1x4xbf16> to vector<1x4xbf16>
    %cst_342 = arith.constant dense<0.000000e+00> : vector<1x96xf32>
    %606 = tpu.matmul %605, %548, %cst_342 {dimension_numbers = #tpu.dot_dimension_numbers<[1], [0], [0], [1], [0, 0, 1, 1], [], []>} : vector<1x4xbf16>, vector<4x96xbf16>, vector<1x96xf32> -> vector<1x96xf32>
    %607 = vector.extract_strided_slice %546 {offsets = [7, 0], sizes = [1, 96], strides = [1, 1]} : vector<9x96xf32> to vector<1x96xf32>
    %608 = vector.shape_cast %607 : vector<1x96xf32> to vector<96xf32>
    %609 = vector.shape_cast %608 : vector<96xf32> to vector<1x96xf32>
    %610 = arith.mulf %606, %609 : vector<1x96xf32>
    %611 = arith.addf %603, %610 : vector<1x96xf32>
    %c8_343 = arith.constant 8 : index
    %c0_344 = arith.constant 0 : index
    %c0_345 = arith.constant 0 : index
    %612 = vector.load %arg65[%c8_343, %c0_344, %c0_345] : memref<9x1x4xbf16, #tpu.memory_space<vmem>>, vector<1x1x4xbf16>
    %613 = vector.shape_cast %612 : vector<1x1x4xbf16> to vector<1x4xbf16>
    %cst_346 = arith.constant dense<0.000000e+00> : vector<1x96xf32>
    %614 = tpu.matmul %613, %548, %cst_346 {dimension_numbers = #tpu.dot_dimension_numbers<[1], [0], [0], [1], [0, 0, 1, 1], [], []>} : vector<1x4xbf16>, vector<4x96xbf16>, vector<1x96xf32> -> vector<1x96xf32>
    %615 = vector.extract_strided_slice %546 {offsets = [8, 0], sizes = [1, 96], strides = [1, 1]} : vector<9x96xf32> to vector<1x96xf32>
    %616 = vector.shape_cast %615 : vector<1x96xf32> to vector<96xf32>
    %617 = vector.shape_cast %616 : vector<96xf32> to vector<1x96xf32>
    %618 = arith.mulf %614, %617 : vector<1x96xf32>
    %619 = arith.addf %611, %618 : vector<1x96xf32>
    %620 = arith.addf %619, %547 : vector<1x96xf32>
    %c0_347 = arith.constant 0 : index
    %c0_348 = arith.constant 0 : index
    %621 = vector.load %arg64[%c0_347, %c0_348] : memref<96x96xbf16, #tpu.memory_space<vmem>>, vector<96x96xbf16>
    %c0_349 = arith.constant 0 : index
    %c0_350 = arith.constant 0 : index
    %622 = vector.load %arg63[%c0_349, %c0_350] : memref<1x96xf32, #tpu.memory_space<vmem>>, vector<1x96xf32>
    %623 = arith.truncf %620 : vector<1x96xf32> to vector<1x96xbf16>
    %cst_351 = arith.constant dense<0.000000e+00> : vector<1x96xf32>
    %624 = tpu.matmul %623, %621, %cst_351 {dimension_numbers = #tpu.dot_dimension_numbers<[1], [0], [0], [1], [0, 0, 1, 1], [], []>} : vector<1x96xbf16>, vector<96x96xbf16>, vector<1x96xf32> -> vector<1x96xf32>
    %625 = arith.addf %624, %622 : vector<1x96xf32>
    %cst_352 = arith.constant 0.000000e+00 : f32
    %626 = vector.broadcast %cst_352 : f32 to vector<1x96xf32>
    %627 = arith.maximumf %625, %626 : vector<1x96xf32>
    %c0_353 = arith.constant 0 : index
    %c0_354 = arith.constant 0 : index
    %628 = vector.load %arg66[%c0_353, %c0_354] : memref<96x192xbf16, #tpu.memory_space<vmem>>, vector<96x192xbf16>
    %c0_355 = arith.constant 0 : index
    %c0_356 = arith.constant 0 : index
    %629 = vector.load %arg68[%c0_355, %c0_356] : memref<96x192xbf16, #tpu.memory_space<vmem>>, vector<96x192xbf16>
    %630 = arith.truncf %537 : vector<1x96xf32> to vector<1x96xbf16>
    %cst_357 = arith.constant dense<0.000000e+00> : vector<1x192xf32>
    %631 = tpu.matmul %630, %628, %cst_357 {dimension_numbers = #tpu.dot_dimension_numbers<[1], [0], [0], [1], [0, 0, 1, 1], [], []>} : vector<1x96xbf16>, vector<96x192xbf16>, vector<1x192xf32> -> vector<1x192xf32>
    %632 = arith.truncf %627 : vector<1x96xf32> to vector<1x96xbf16>
    %cst_358 = arith.constant dense<0.000000e+00> : vector<1x192xf32>
    %633 = tpu.matmul %632, %629, %cst_358 {dimension_numbers = #tpu.dot_dimension_numbers<[1], [0], [0], [1], [0, 0, 1, 1], [], []>} : vector<1x96xbf16>, vector<96x192xbf16>, vector<1x192xf32> -> vector<1x192xf32>
    %634 = arith.addf %631, %633 : vector<1x192xf32>
    %c0_359 = arith.constant 0 : index
    %c0_360 = arith.constant 0 : index
    %635 = vector.load %arg67[%c0_359, %c0_360] : memref<192x192xbf16, #tpu.memory_space<vmem>>, vector<192x192xbf16>
    %c0_361 = arith.constant 0 : index
    %c0_362 = arith.constant 0 : index
    %636 = vector.load %arg68[%c0_361, %c0_362] : memref<96x192xbf16, #tpu.memory_space<vmem>>, vector<96x192xbf16>
    %c0_i32_363 = arith.constant 0 : i32
    %c3_i32_364 = arith.constant 3 : i32
    %637 = arith.addi %c0_i32_363, %c3_i32_364 : i32
    %c1_i32_365 = arith.constant 1 : i32
    %638 = scf.for %arg70 = %c0_i32_363 to %637 step %c1_i32_365 iter_args(%arg71 = %634) -> (vector<1x192xf32>)  : i32 {
      %649 = arith.index_cast %arg70 : i32 to index
      %c0_376 = arith.constant 0 : index
      %c0_377 = arith.constant 0 : index
      %650 = vector.load %arg52[%649, %c0_376, %c0_377] : memref<3x192x96xbf16, #tpu.memory_space<vmem>>, vector<1x192x96xbf16>
      %651 = vector.shape_cast %650 : vector<1x192x96xbf16> to vector<192x96xbf16>
      %652 = arith.index_cast %arg70 : i32 to index
      %c0_378 = arith.constant 0 : index
      %c0_379 = arith.constant 0 : index
      %653 = vector.load %arg51[%652, %c0_378, %c0_379] : memref<3x1x96xf32, #tpu.memory_space<vmem>>, vector<1x1x96xf32>
      %654 = vector.shape_cast %653 : vector<1x1x96xf32> to vector<1x96xf32>
      %655 = arith.truncf %arg71 : vector<1x192xf32> to vector<1x192xbf16>
      %cst_380 = arith.constant dense<0.000000e+00> : vector<1x96xf32>
      %656 = tpu.matmul %655, %651, %cst_380 {dimension_numbers = #tpu.dot_dimension_numbers<[1], [0], [0], [1], [0, 0, 1, 1], [], []>} : vector<1x192xbf16>, vector<192x96xbf16>, vector<1x96xf32> -> vector<1x96xf32>
      %657 = arith.addf %656, %654 : vector<1x96xf32>
      %cst_381 = arith.constant 0.000000e+00 : f32
      %658 = vector.broadcast %cst_381 : f32 to vector<1x96xf32>
      %659 = arith.maximumf %657, %658 : vector<1x96xf32>
      %660 = arith.index_cast %arg70 : i32 to index
      %c0_382 = arith.constant 0 : index
      %c0_383 = arith.constant 0 : index
      %661 = vector.load %arg50[%660, %c0_382, %c0_383] : memref<3x9x96xf32, #tpu.memory_space<vmem>>, vector<1x9x96xf32>
      %662 = vector.shape_cast %661 : vector<1x9x96xf32> to vector<9x96xf32>
      %663 = arith.index_cast %arg70 : i32 to index
      %c0_384 = arith.constant 0 : index
      %c0_385 = arith.constant 0 : index
      %664 = vector.load %arg49[%663, %c0_384, %c0_385] : memref<3x1x96xf32, #tpu.memory_space<vmem>>, vector<1x1x96xf32>
      %665 = vector.shape_cast %664 : vector<1x1x96xf32> to vector<1x96xf32>
      %666 = vector.extract_strided_slice %662 {offsets = [4, 0], sizes = [1, 96], strides = [1, 1]} : vector<9x96xf32> to vector<1x96xf32>
      %667 = vector.shape_cast %666 : vector<1x96xf32> to vector<96xf32>
      %668 = vector.shape_cast %667 : vector<96xf32> to vector<1x96xf32>
      %669 = arith.mulf %659, %668 : vector<1x96xf32>
      %670 = arith.addf %669, %665 : vector<1x96xf32>
      %671 = arith.index_cast %arg70 : i32 to index
      %c0_386 = arith.constant 0 : index
      %c0_387 = arith.constant 0 : index
      %672 = vector.load %arg54[%671, %c0_386, %c0_387] : memref<3x96x96xbf16, #tpu.memory_space<vmem>>, vector<1x96x96xbf16>
      %673 = vector.shape_cast %672 : vector<1x96x96xbf16> to vector<96x96xbf16>
      %674 = arith.index_cast %arg70 : i32 to index
      %c0_388 = arith.constant 0 : index
      %c0_389 = arith.constant 0 : index
      %675 = vector.load %arg53[%674, %c0_388, %c0_389] : memref<3x1x96xf32, #tpu.memory_space<vmem>>, vector<1x1x96xf32>
      %676 = vector.shape_cast %675 : vector<1x1x96xf32> to vector<1x96xf32>
      %677 = arith.truncf %670 : vector<1x96xf32> to vector<1x96xbf16>
      %cst_390 = arith.constant dense<0.000000e+00> : vector<1x96xf32>
      %678 = tpu.matmul %677, %673, %cst_390 {dimension_numbers = #tpu.dot_dimension_numbers<[1], [0], [0], [1], [0, 0, 1, 1], [], []>} : vector<1x96xbf16>, vector<96x96xbf16>, vector<1x96xf32> -> vector<1x96xf32>
      %679 = arith.addf %678, %676 : vector<1x96xf32>
      %cst_391 = arith.constant 0.000000e+00 : f32
      %680 = vector.broadcast %cst_391 : f32 to vector<1x96xf32>
      %681 = arith.maximumf %679, %680 : vector<1x96xf32>
      %682 = arith.truncf %arg71 : vector<1x192xf32> to vector<1x192xbf16>
      %cst_392 = arith.constant dense<0.000000e+00> : vector<1x192xf32>
      %683 = tpu.matmul %682, %635, %cst_392 {dimension_numbers = #tpu.dot_dimension_numbers<[1], [0], [0], [1], [0, 0, 1, 1], [], []>} : vector<1x192xbf16>, vector<192x192xbf16>, vector<1x192xf32> -> vector<1x192xf32>
      %684 = arith.truncf %681 : vector<1x96xf32> to vector<1x96xbf16>
      %cst_393 = arith.constant dense<0.000000e+00> : vector<1x192xf32>
      %685 = tpu.matmul %684, %636, %cst_393 {dimension_numbers = #tpu.dot_dimension_numbers<[1], [0], [0], [1], [0, 0, 1, 1], [], []>} : vector<1x96xbf16>, vector<96x192xbf16>, vector<1x192xf32> -> vector<1x192xf32>
      %686 = arith.addf %683, %685 : vector<1x192xf32>
      scf.yield %686 : vector<1x192xf32>
    }
    %c3_i32_366 = arith.constant 3 : i32
    %c0_367 = arith.constant 0 : index
    %c0_368 = arith.constant 0 : index
    %639 = vector.load %arg5[%c0_367, %c0_368] : memref<192x1024xbf16, #tpu.memory_space<vmem>>, vector<192x1024xbf16>
    %c0_369 = arith.constant 0 : index
    %c0_370 = arith.constant 0 : index
    %640 = vector.load %arg4[%c0_369, %c0_370] : memref<1x1024xf32, #tpu.memory_space<vmem>>, vector<1x1024xf32>
    %641 = arith.truncf %638 : vector<1x192xf32> to vector<1x192xbf16>
    %cst_371 = arith.constant dense<0.000000e+00> : vector<1x1024xf32>
    %642 = tpu.matmul %641, %639, %cst_371 {dimension_numbers = #tpu.dot_dimension_numbers<[1], [0], [0], [1], [0, 0, 1, 1], [], []>} : vector<1x192xbf16>, vector<192x1024xbf16>, vector<1x1024xf32> -> vector<1x1024xf32>
    %643 = arith.addf %642, %640 : vector<1x1024xf32>
    %cst_372 = arith.constant 0.000000e+00 : f32
    %644 = vector.broadcast %cst_372 : f32 to vector<1x1024xf32>
    %645 = arith.maximumf %643, %644 : vector<1x1024xf32>
    %c0_373 = arith.constant 0 : index
    %c0_374 = arith.constant 0 : index
    %c0_375 = arith.constant 0 : index
    %646 = vector.load %arg69[%c0_373, %c0_374, %c0_375] : memref<1x1x1024xf32, #tpu.memory_space<vmem>>, vector<1x1x1024xf32>
    %647 = vector.shape_cast %646 : vector<1x1x1024xf32> to vector<1x1024xf32>
    %648 = vector.shape_cast %645 : vector<1x1024xf32> to vector<1x1x1024xf32>
    tpu.vector_store %arg69[%c0_373, %c0_374, %c0_375], %648 {strides = array<i32>} : memref<1x1x1024xf32, #tpu.memory_space<vmem>>, vector<1x1x1024xf32>,
    return
  }
  func.func @transform_0(%arg0: i32) -> (i32, i32, i32) {
    %c0_i32 = arith.constant 0 : i32
    %c0_i32_0 = arith.constant 0 : i32
    %c0_i32_1 = arith.constant 0 : i32
    return %arg0, %c0_i32, %c0_i32_0 : i32, i32, i32
  }
  func.func @transform_1(%arg0: i32) -> (i32, i32) {
    %c0_i32 = arith.constant 0 : i32
    %c0_i32_0 = arith.constant 0 : i32
    %c0_i32_1 = arith.constant 0 : i32
    return %c0_i32, %c0_i32_0 : i32, i32
  }
  func.func @transform_2(%arg0: i32) -> (i32, i32) {
    %c0_i32 = arith.constant 0 : i32
    %c0_i32_0 = arith.constant 0 : i32
    %c0_i32_1 = arith.constant 0 : i32
    return %c0_i32, %c0_i32_0 : i32, i32
  }
  func.func @transform_3(%arg0: i32) -> (i32, i32) {
    %c0_i32 = arith.constant 0 : i32
    %c0_i32_0 = arith.constant 0 : i32
    %c0_i32_1 = arith.constant 0 : i32
    return %c0_i32, %c0_i32_0 : i32, i32
  }
  func.func @transform_4(%arg0: i32) -> (i32, i32) {
    %c0_i32 = arith.constant 0 : i32
    %c0_i32_0 = arith.constant 0 : i32
    %c0_i32_1 = arith.constant 0 : i32
    return %c0_i32, %c0_i32_0 : i32, i32
  }
  func.func @transform_5(%arg0: i32) -> (i32, i32, i32) {
    %c0_i32 = arith.constant 0 : i32
    %c0_i32_0 = arith.constant 0 : i32
    %c0_i32_1 = arith.constant 0 : i32
    %c0_i32_2 = arith.constant 0 : i32
    return %c0_i32, %c0_i32_0, %c0_i32_1 : i32, i32, i32
  }
  func.func @transform_6(%arg0: i32) -> (i32, i32, i32) {
    %c0_i32 = arith.constant 0 : i32
    %c0_i32_0 = arith.constant 0 : i32
    %c0_i32_1 = arith.constant 0 : i32
    %c0_i32_2 = arith.constant 0 : i32
    return %c0_i32, %c0_i32_0, %c0_i32_1 : i32, i32, i32
  }
  func.func @transform_7(%arg0: i32) -> (i32, i32, i32) {
    %c0_i32 = arith.constant 0 : i32
    %c0_i32_0 = arith.constant 0 : i32
    %c0_i32_1 = arith.constant 0 : i32
    %c0_i32_2 = arith.constant 0 : i32
    return %c0_i32, %c0_i32_0, %c0_i32_1 : i32, i32, i32
  }
  func.func @transform_8(%arg0: i32) -> (i32, i32, i32) {
    %c0_i32 = arith.constant 0 : i32
    %c0_i32_0 = arith.constant 0 : i32
    %c0_i32_1 = arith.constant 0 : i32
    %c0_i32_2 = arith.constant 0 : i32
    return %c0_i32, %c0_i32_0, %c0_i32_1 : i32, i32, i32
  }
  func.func @transform_9(%arg0: i32) -> (i32, i32, i32) {
    %c0_i32 = arith.constant 0 : i32
    %c0_i32_0 = arith.constant 0 : i32
    %c0_i32_1 = arith.constant 0 : i32
    %c0_i32_2 = arith.constant 0 : i32
    return %c0_i32, %c0_i32_0, %c0_i32_1 : i32, i32, i32
  }
  func.func @transform_10(%arg0: i32) -> (i32, i32, i32) {
    %c0_i32 = arith.constant 0 : i32
    %c0_i32_0 = arith.constant 0 : i32
    %c0_i32_1 = arith.constant 0 : i32
    %c0_i32_2 = arith.constant 0 : i32
    return %c0_i32, %c0_i32_0, %c0_i32_1 : i32, i32, i32
  }
  func.func @transform_11(%arg0: i32) -> (i32, i32, i32) {
    %c0_i32 = arith.constant 0 : i32
    %c0_i32_0 = arith.constant 0 : i32
    %c0_i32_1 = arith.constant 0 : i32
    %c0_i32_2 = arith.constant 0 : i32
    return %c0_i32, %c0_i32_0, %c0_i32_1 : i32, i32, i32
  }
  func.func @transform_12(%arg0: i32) -> (i32, i32) {
    %c0_i32 = arith.constant 0 : i32
    %c0_i32_0 = arith.constant 0 : i32
    %c0_i32_1 = arith.constant 0 : i32
    return %c0_i32, %c0_i32_0 : i32, i32
  }
  func.func @transform_13(%arg0: i32) -> (i32, i32) {
    %c0_i32 = arith.constant 0 : i32
    %c0_i32_0 = arith.constant 0 : i32
    %c0_i32_1 = arith.constant 0 : i32
    return %c0_i32, %c0_i32_0 : i32, i32
  }
  func.func @transform_14(%arg0: i32) -> (i32, i32) {
    %c0_i32 = arith.constant 0 : i32
    %c0_i32_0 = arith.constant 0 : i32
    %c0_i32_1 = arith.constant 0 : i32
    return %c0_i32, %c0_i32_0 : i32, i32
  }
  func.func @transform_15(%arg0: i32) -> (i32, i32) {
    %c0_i32 = arith.constant 0 : i32
    %c0_i32_0 = arith.constant 0 : i32
    %c0_i32_1 = arith.constant 0 : i32
    return %c0_i32, %c0_i32_0 : i32, i32
  }
  func.func @transform_16(%arg0: i32) -> (i32, i32) {
    %c0_i32 = arith.constant 0 : i32
    %c0_i32_0 = arith.constant 0 : i32
    %c0_i32_1 = arith.constant 0 : i32
    return %c0_i32, %c0_i32_0 : i32, i32
  }
  func.func @transform_17(%arg0: i32) -> (i32, i32) {
    %c0_i32 = arith.constant 0 : i32
    %c0_i32_0 = arith.constant 0 : i32
    %c0_i32_1 = arith.constant 0 : i32
    return %c0_i32, %c0_i32_0 : i32, i32
  }
  func.func @transform_18(%arg0: i32) -> (i32, i32) {
    %c0_i32 = arith.constant 0 : i32
    %c0_i32_0 = arith.constant 0 : i32
    %c0_i32_1 = arith.constant 0 : i32
    return %c0_i32, %c0_i32_0 : i32, i32
  }
  func.func @transform_19(%arg0: i32) -> (i32, i32) {
    %c0_i32 = arith.constant 0 : i32
    %c0_i32_0 = arith.constant 0 : i32
    %c0_i32_1 = arith.constant 0 : i32
    return %c0_i32, %c0_i32_0 : i32, i32
  }
  func.func @transform_20(%arg0: i32) -> (i32, i32) {
    %c0_i32 = arith.constant 0 : i32
    %c0_i32_0 = arith.constant 0 : i32
    %c0_i32_1 = arith.constant 0 : i32
    return %c0_i32, %c0_i32_0 : i32, i32
  }
  func.func @transform_21(%arg0: i32) -> (i32, i32) {
    %c0_i32 = arith.constant 0 : i32
    %c0_i32_0 = arith.constant 0 : i32
    %c0_i32_1 = arith.constant 0 : i32
    return %c0_i32, %c0_i32_0 : i32, i32
  }
  func.func @transform_22(%arg0: i32) -> (i32, i32, i32) {
    %c0_i32 = arith.constant 0 : i32
    %c0_i32_0 = arith.constant 0 : i32
    %c0_i32_1 = arith.constant 0 : i32
    %c0_i32_2 = arith.constant 0 : i32
    return %c0_i32, %c0_i32_0, %c0_i32_1 : i32, i32, i32
  }
  func.func @transform_23(%arg0: i32) -> (i32, i32) {
    %c0_i32 = arith.constant 0 : i32
    %c0_i32_0 = arith.constant 0 : i32
    %c0_i32_1 = arith.constant 0 : i32
    return %c0_i32, %c0_i32_0 : i32, i32
  }
  func.func @transform_24(%arg0: i32) -> (i32, i32) {
    %c0_i32 = arith.constant 0 : i32
    %c0_i32_0 = arith.constant 0 : i32
    %c0_i32_1 = arith.constant 0 : i32
    return %c0_i32, %c0_i32_0 : i32, i32
  }
  func.func @transform_25(%arg0: i32) -> (i32, i32) {
    %c0_i32 = arith.constant 0 : i32
    %c0_i32_0 = arith.constant 0 : i32
    %c0_i32_1 = arith.constant 0 : i32
    return %c0_i32, %c0_i32_0 : i32, i32
  }
  func.func @transform_26(%arg0: i32) -> (i32, i32, i32) {
    %c0_i32 = arith.constant 0 : i32
    %c0_i32_0 = arith.constant 0 : i32
    %c0_i32_1 = arith.constant 0 : i32
    %c0_i32_2 = arith.constant 0 : i32
    return %c0_i32, %c0_i32_0, %c0_i32_1 : i32, i32, i32
  }
  func.func @transform_27(%arg0: i32) -> (i32, i32, i32) {
    %c0_i32 = arith.constant 0 : i32
    %c0_i32_0 = arith.constant 0 : i32
    %c0_i32_1 = arith.constant 0 : i32
    %c0_i32_2 = arith.constant 0 : i32
    return %c0_i32, %c0_i32_0, %c0_i32_1 : i32, i32, i32
  }
  func.func @transform_28(%arg0: i32) -> (i32, i32, i32) {
    %c0_i32 = arith.constant 0 : i32
    %c0_i32_0 = arith.constant 0 : i32
    %c0_i32_1 = arith.constant 0 : i32
    %c0_i32_2 = arith.constant 0 : i32
    return %c0_i32, %c0_i32_0, %c0_i32_1 : i32, i32, i32
  }
  func.func @transform_29(%arg0: i32) -> (i32, i32, i32) {
    %c0_i32 = arith.constant 0 : i32
    %c0_i32_0 = arith.constant 0 : i32
    %c0_i32_1 = arith.constant 0 : i32
    %c0_i32_2 = arith.constant 0 : i32
    return %c0_i32, %c0_i32_0, %c0_i32_1 : i32, i32, i32
  }
  func.func @transform_30(%arg0: i32) -> (i32, i32, i32) {
    %c0_i32 = arith.constant 0 : i32
    %c0_i32_0 = arith.constant 0 : i32
    %c0_i32_1 = arith.constant 0 : i32
    %c0_i32_2 = arith.constant 0 : i32
    return %c0_i32, %c0_i32_0, %c0_i32_1 : i32, i32, i32
  }
  func.func @transform_31(%arg0: i32) -> (i32, i32, i32) {
    %c0_i32 = arith.constant 0 : i32
    %c0_i32_0 = arith.constant 0 : i32
    %c0_i32_1 = arith.constant 0 : i32
    %c0_i32_2 = arith.constant 0 : i32
    return %c0_i32, %c0_i32_0, %c0_i32_1 : i32, i32, i32
  }
  func.func @transform_32(%arg0: i32) -> (i32, i32, i32) {
    %c0_i32 = arith.constant 0 : i32
    %c0_i32_0 = arith.constant 0 : i32
    %c0_i32_1 = arith.constant 0 : i32
    %c0_i32_2 = arith.constant 0 : i32
    return %c0_i32, %c0_i32_0, %c0_i32_1 : i32, i32, i32
  }
  func.func @transform_33(%arg0: i32) -> (i32, i32) {
    %c0_i32 = arith.constant 0 : i32
    %c0_i32_0 = arith.constant 0 : i32
    %c0_i32_1 = arith.constant 0 : i32
    return %c0_i32, %c0_i32_0 : i32, i32
  }
  func.func @transform_34(%arg0: i32) -> (i32, i32) {
    %c0_i32 = arith.constant 0 : i32
    %c0_i32_0 = arith.constant 0 : i32
    %c0_i32_1 = arith.constant 0 : i32
    return %c0_i32, %c0_i32_0 : i32, i32
  }
  func.func @transform_35(%arg0: i32) -> (i32, i32) {
    %c0_i32 = arith.constant 0 : i32
    %c0_i32_0 = arith.constant 0 : i32
    %c0_i32_1 = arith.constant 0 : i32
    return %c0_i32, %c0_i32_0 : i32, i32
  }
  func.func @transform_36(%arg0: i32) -> (i32, i32) {
    %c0_i32 = arith.constant 0 : i32
    %c0_i32_0 = arith.constant 0 : i32
    %c0_i32_1 = arith.constant 0 : i32
    return %c0_i32, %c0_i32_0 : i32, i32
  }
  func.func @transform_37(%arg0: i32) -> (i32, i32) {
    %c0_i32 = arith.constant 0 : i32
    %c0_i32_0 = arith.constant 0 : i32
    %c0_i32_1 = arith.constant 0 : i32
    return %c0_i32, %c0_i32_0 : i32, i32
  }
  func.func @transform_38(%arg0: i32) -> (i32, i32) {
    %c0_i32 = arith.constant 0 : i32
    %c0_i32_0 = arith.constant 0 : i32
    %c0_i32_1 = arith.constant 0 : i32
    return %c0_i32, %c0_i32_0 : i32, i32
  }
  func.func @transform_39(%arg0: i32) -> (i32, i32) {
    %c0_i32 = arith.constant 0 : i32
    %c0_i32_0 = arith.constant 0 : i32
    %c0_i32_1 = arith.constant 0 : i32
    return %c0_i32, %c0_i32_0 : i32, i32
  }
  func.func @transform_40(%arg0: i32) -> (i32, i32) {
    %c0_i32 = arith.constant 0 : i32
    %c0_i32_0 = arith.constant 0 : i32
    %c0_i32_1 = arith.constant 0 : i32
    return %c0_i32, %c0_i32_0 : i32, i32
  }
  func.func @transform_41(%arg0: i32) -> (i32, i32) {
    %c0_i32 = arith.constant 0 : i32
    %c0_i32_0 = arith.constant 0 : i32
    %c0_i32_1 = arith.constant 0 : i32
    return %c0_i32, %c0_i32_0 : i32, i32
  }
  func.func @transform_42(%arg0: i32) -> (i32, i32) {
    %c0_i32 = arith.constant 0 : i32
    %c0_i32_0 = arith.constant 0 : i32
    %c0_i32_1 = arith.constant 0 : i32
    return %c0_i32, %c0_i32_0 : i32, i32
  }
  func.func @transform_43(%arg0: i32) -> (i32, i32, i32) {
    %c0_i32 = arith.constant 0 : i32
    %c0_i32_0 = arith.constant 0 : i32
    %c0_i32_1 = arith.constant 0 : i32
    %c0_i32_2 = arith.constant 0 : i32
    return %c0_i32, %c0_i32_0, %c0_i32_1 : i32, i32, i32
  }
  func.func @transform_44(%arg0: i32) -> (i32, i32) {
    %c0_i32 = arith.constant 0 : i32
    %c0_i32_0 = arith.constant 0 : i32
    %c0_i32_1 = arith.constant 0 : i32
    return %c0_i32, %c0_i32_0 : i32, i32
  }
  func.func @transform_45(%arg0: i32) -> (i32, i32) {
    %c0_i32 = arith.constant 0 : i32
    %c0_i32_0 = arith.constant 0 : i32
    %c0_i32_1 = arith.constant 0 : i32
    return %c0_i32, %c0_i32_0 : i32, i32
  }
  func.func @transform_46(%arg0: i32) -> (i32, i32) {
    %c0_i32 = arith.constant 0 : i32
    %c0_i32_0 = arith.constant 0 : i32
    %c0_i32_1 = arith.constant 0 : i32
    return %c0_i32, %c0_i32_0 : i32, i32
  }
  func.func @transform_47(%arg0: i32) -> (i32, i32, i32) {
    %c0_i32 = arith.constant 0 : i32
    %c0_i32_0 = arith.constant 0 : i32
    %c0_i32_1 = arith.constant 0 : i32
    %c0_i32_2 = arith.constant 0 : i32
    return %c0_i32, %c0_i32_0, %c0_i32_1 : i32, i32, i32
  }
  func.func @transform_48(%arg0: i32) -> (i32, i32, i32) {
    %c0_i32 = arith.constant 0 : i32
    %c0_i32_0 = arith.constant 0 : i32
    %c0_i32_1 = arith.constant 0 : i32
    %c0_i32_2 = arith.constant 0 : i32
    return %c0_i32, %c0_i32_0, %c0_i32_1 : i32, i32, i32
  }
  func.func @transform_49(%arg0: i32) -> (i32, i32, i32) {
    %c0_i32 = arith.constant 0 : i32
    %c0_i32_0 = arith.constant 0 : i32
    %c0_i32_1 = arith.constant 0 : i32
    %c0_i32_2 = arith.constant 0 : i32
    return %c0_i32, %c0_i32_0, %c0_i32_1 : i32, i32, i32
  }
  func.func @transform_50(%arg0: i32) -> (i32, i32, i32) {
    %c0_i32 = arith.constant 0 : i32
    %c0_i32_0 = arith.constant 0 : i32
    %c0_i32_1 = arith.constant 0 : i32
    %c0_i32_2 = arith.constant 0 : i32
    return %c0_i32, %c0_i32_0, %c0_i32_1 : i32, i32, i32
  }
  func.func @transform_51(%arg0: i32) -> (i32, i32, i32) {
    %c0_i32 = arith.constant 0 : i32
    %c0_i32_0 = arith.constant 0 : i32
    %c0_i32_1 = arith.constant 0 : i32
    %c0_i32_2 = arith.constant 0 : i32
    return %c0_i32, %c0_i32_0, %c0_i32_1 : i32, i32, i32
  }
  func.func @transform_52(%arg0: i32) -> (i32, i32, i32) {
    %c0_i32 = arith.constant 0 : i32
    %c0_i32_0 = arith.constant 0 : i32
    %c0_i32_1 = arith.constant 0 : i32
    %c0_i32_2 = arith.constant 0 : i32
    return %c0_i32, %c0_i32_0, %c0_i32_1 : i32, i32, i32
  }
  func.func @transform_53(%arg0: i32) -> (i32, i32, i32) {
    %c0_i32 = arith.constant 0 : i32
    %c0_i32_0 = arith.constant 0 : i32
    %c0_i32_1 = arith.constant 0 : i32
    %c0_i32_2 = arith.constant 0 : i32
    return %c0_i32, %c0_i32_0, %c0_i32_1 : i32, i32, i32
  }
  func.func @transform_54(%arg0: i32) -> (i32, i32) {
    %c0_i32 = arith.constant 0 : i32
    %c0_i32_0 = arith.constant 0 : i32
    %c0_i32_1 = arith.constant 0 : i32
    return %c0_i32, %c0_i32_0 : i32, i32
  }
  func.func @transform_55(%arg0: i32) -> (i32, i32) {
    %c0_i32 = arith.constant 0 : i32
    %c0_i32_0 = arith.constant 0 : i32
    %c0_i32_1 = arith.constant 0 : i32
    return %c0_i32, %c0_i32_0 : i32, i32
  }
  func.func @transform_56(%arg0: i32) -> (i32, i32) {
    %c0_i32 = arith.constant 0 : i32
    %c0_i32_0 = arith.constant 0 : i32
    %c0_i32_1 = arith.constant 0 : i32
    return %c0_i32, %c0_i32_0 : i32, i32
  }
  func.func @transform_57(%arg0: i32) -> (i32, i32) {
    %c0_i32 = arith.constant 0 : i32
    %c0_i32_0 = arith.constant 0 : i32
    %c0_i32_1 = arith.constant 0 : i32
    return %c0_i32, %c0_i32_0 : i32, i32
  }
  func.func @transform_58(%arg0: i32) -> (i32, i32) {
    %c0_i32 = arith.constant 0 : i32
    %c0_i32_0 = arith.constant 0 : i32
    %c0_i32_1 = arith.constant 0 : i32
    return %c0_i32, %c0_i32_0 : i32, i32
  }
  func.func @transform_59(%arg0: i32) -> (i32, i32) {
    %c0_i32 = arith.constant 0 : i32
    %c0_i32_0 = arith.constant 0 : i32
    %c0_i32_1 = arith.constant 0 : i32
    return %c0_i32, %c0_i32_0 : i32, i32
  }
  func.func @transform_60(%arg0: i32) -> (i32, i32) {
    %c0_i32 = arith.constant 0 : i32
    %c0_i32_0 = arith.constant 0 : i32
    %c0_i32_1 = arith.constant 0 : i32
    return %c0_i32, %c0_i32_0 : i32, i32
  }
  func.func @transform_61(%arg0: i32) -> (i32, i32) {
    %c0_i32 = arith.constant 0 : i32
    %c0_i32_0 = arith.constant 0 : i32
    %c0_i32_1 = arith.constant 0 : i32
    return %c0_i32, %c0_i32_0 : i32, i32
  }
  func.func @transform_62(%arg0: i32) -> (i32, i32) {
    %c0_i32 = arith.constant 0 : i32
    %c0_i32_0 = arith.constant 0 : i32
    %c0_i32_1 = arith.constant 0 : i32
    return %c0_i32, %c0_i32_0 : i32, i32
  }
  func.func @transform_63(%arg0: i32) -> (i32, i32) {
    %c0_i32 = arith.constant 0 : i32
    %c0_i32_0 = arith.constant 0 : i32
    %c0_i32_1 = arith.constant 0 : i32
    return %c0_i32, %c0_i32_0 : i32, i32
  }
  func.func @transform_64(%arg0: i32) -> (i32, i32, i32) {
    %c0_i32 = arith.constant 0 : i32
    %c0_i32_0 = arith.constant 0 : i32
    %c0_i32_1 = arith.constant 0 : i32
    %c0_i32_2 = arith.constant 0 : i32
    return %c0_i32, %c0_i32_0, %c0_i32_1 : i32, i32, i32
  }
  func.func @transform_65(%arg0: i32) -> (i32, i32) {
    %c0_i32 = arith.constant 0 : i32
    %c0_i32_0 = arith.constant 0 : i32
    %c0_i32_1 = arith.constant 0 : i32
    return %c0_i32, %c0_i32_0 : i32, i32
  }
  func.func @transform_66(%arg0: i32) -> (i32, i32) {
    %c0_i32 = arith.constant 0 : i32
    %c0_i32_0 = arith.constant 0 : i32
    %c0_i32_1 = arith.constant 0 : i32
    return %c0_i32, %c0_i32_0 : i32, i32
  }
  func.func @transform_67(%arg0: i32) -> (i32, i32) {
    %c0_i32 = arith.constant 0 : i32
    %c0_i32_0 = arith.constant 0 : i32
    %c0_i32_1 = arith.constant 0 : i32
    return %c0_i32, %c0_i32_0 : i32, i32
  }
  func.func @transform_68(%arg0: i32) -> (i32, i32, i32) {
    %c0_i32 = arith.constant 0 : i32
    %c0_i32_0 = arith.constant 0 : i32
    %c0_i32_1 = arith.constant 0 : i32
    return %arg0, %c0_i32, %c0_i32_0 : i32, i32, i32
  }
}

</mosaic_0001>

<bundles_post_ra>
// kernel: shufflenet_v2_x0_5_features.1
= control target key start
LH: loop header
LB: loop body
LE: loop exit
PB: predicated region body
PF: predicated region fallthrough
CT: control target
= control target key end

     0   :  { %s14669_s6 = smov 1   ;;  %s14670_s10 = smov 2   ;;  %s17396_s0 = inlined_call_operand.smem [shape: u32[69], index: -1, kind: input, shape index: {}] }
   0x1   :  { %s14782_s5 = sld [smem:[%s17396_s0]]   ;;  %s14671_s14 = smov 3  }
   0x2   :  { %s14787_s9 = sld [smem:[%s17396_s0 + %s14669_s6]]   ;;  %s14672_s18 = smov 4  }
   0x3   :  { %s14792_s13 = sld [smem:[%s17396_s0 + %s14670_s10]]   ;;  %s14673_s22 = smov 5  }
   0x4   :  { %s14797_s17 = sld [smem:[%s17396_s0 + %s14671_s14]]   ;;  %s14674_s26 = smov 6  }
   0x5   :  { %s14802_s21 = sld [smem:[%s17396_s0 + %s14672_s18]]   ;;  %s14675_s30 = smov 7  }
   0x6   :  { %s14807_s25 = sld [smem:[%s17396_s0 + %s14673_s22]]   ;;  %s14676_s4 = smov 8  }
   0x7   :  { %17473 = sst [smem:[#allocation49_spill]] %s14782_s5  ;;  %s14677_s10 = smov 9  }
   0x8   :  { %17474 = sst [smem:[#allocation50_spill]] %s14787_s9  ;;  %s14678_s15 = smov 10  }
   0x9   :  { %17475 = sst [smem:[#allocation51_spill]] %s14792_s13  ;;  %s14679_s20 = smov 11  }
   0xa   :  { %17476 = sst [smem:[#allocation52_spill]] %s14797_s17  ;;  %s14681_s1 = smov 13  }
   0xb   :  { %17477 = sst [smem:[#allocation53_spill]] %s14802_s21  ;;  %s14682_s7 = smov 14  }
   0xc   :  { %17478 = sst [smem:[#allocation54_spill]] %s14807_s25  ;;  %s14684_s22 = smov 16  }
   0xd   :  { %s14812_s29 = sld [smem:[%s17396_s0 + %s14674_s26]]   ;;  %s14680_s26 = smov 12  }
   0xe   :  { %s14817_s3 = sld [smem:[%s17396_s0 + %s14675_s30]]   ;;  %s14685_s28 = smov 17  }
   0xf   :  { %s14822_s8 = sld [smem:[%s17396_s0 + %s14676_s4]]  }
  0x10   :  { %s14827_s14 = sld [smem:[%s17396_s0 + %s14677_s10]]  }
  0x11   :  { %s14832_s19 = sld [smem:[%s17396_s0 + %s14678_s15]]   ;;  %s14683_s15 = smov 15  }
  0x12   :  { %s14837_s24 = sld [smem:[%s17396_s0 + %s14679_s20]]  }
  0x13   :  { %s14842_s30 = sld [smem:[%s17396_s0 + %s14680_s26]]  }
  0x14   :  { %17479 = sst [smem:[#allocation55_spill]] %s14817_s3 }
  0x15   :  { %17480 = sst [smem:[#allocation56_spill]] %s14822_s8 }
  0x16   :  { %17481 = sst [smem:[#allocation57_spill]] %s14827_s14 }
  0x17   :  { %s14847_s6 = sld [smem:[%s17396_s0 + %s14681_s1]]  }
  0x18   :  { %17482 = sst [smem:[#allocation58_spill]] %s14837_s24 }
  0x19   :  { %17483 = sst [smem:[#allocation59_spill]] %s14842_s30 }
  0x1a   :  { %s14852_s12 = sld [smem:[%s17396_s0 + %s14682_s7]]   ;;  %s14686_s7 = smov 18  }
  0x1b   :  { %s14857_s20 = sld [smem:[%s17396_s0 + %s14683_s15]]   ;;  %s14687_s15 = smov 19  }
  0x1c   :  { %s14862_s27 = sld [smem:[%s17396_s0 + %s14684_s22]]   ;;  %s14688_s22 = smov 20  }
  0x1d   :  { %17484 = sst [smem:[#allocation60_spill]] %s14847_s6 }
  0x1e   :  { %s14867_s4 = sld [smem:[%s17396_s0 + %s14685_s28]]   ;;  %s14689_s28 = smov 21  }
  0x1f   :  { %s14872_s17 = sld [smem:[%s17396_s0 + %s14686_s7]]   ;;  %s14690_s7 = smov 22  }
  0x20   :  { %17485 = sst [smem:[#allocation61_spill]] %s14852_s12 }
  0x21   :  { %17486 = sst [smem:[#allocation62_spill]] %s14857_s20 }
  0x22   :  { %s14877_s21 = sld [smem:[%s17396_s0 + %s14687_s15]]   ;;  %s14691_s15 = smov 23  }
  0x23   :  { %s14882_s3 = sld [smem:[%s17396_s0 + %s14688_s22]]   ;;  %s14692_s22 = smov 24  }
  0x24   :  { %17487 = sst [smem:[#allocation63_spill]] %s14867_s4 }
  0x25   :  { %s14887_s24 = sld [smem:[%s17396_s0 + %s14689_s28]]   ;;  %s14693_s28 = smov 25  }
  0x26   :  { %s14892_s14 = sld [smem:[%s17396_s0 + %s14690_s7]]   ;;  %s14694_s7 = smov 26  }
  0x27   :  { %s14897_s4 = sld [smem:[%s17396_s0 + %s14691_s15]]   ;;  %s14695_s15 = smov 27  }
  0x28   :  { %17488 = sst [smem:[#allocation64_spill]] %s14877_s21 }
  0x29   :  { %17489 = sst [smem:[#allocation65_spill]] %s14882_s3 }
  0x2a   :  { %s14902_s30 = sld [smem:[%s17396_s0 + %s14692_s22]]   ;;  %s14696_s22 = smov 28  }
  0x2b   :  { %17490 = sst [smem:[#allocation66_spill]] %s14887_s24 }
  0x2c   :  { %17491 = sst [smem:[#allocation67_spill]] %s14892_s14 }
  0x2d   :  { %17492 = sst [smem:[#allocation68_spill]] %s14897_s4 }
  0x2e   :  { %s14907_s24 = sld [smem:[%s17396_s0 + %s14693_s28]]   ;;  %s14697_s28 = smov 29  }
  0x2f   :  { %s14912_s6 = sld [smem:[%s17396_s0 + %s14694_s7]]   ;;  %s14698_s7 = smov 30  }
  0x30   :  { %17493 = sst [smem:[#allocation69_spill]] %s14902_s30 }
  0x31   :  { %s14917_s4 = sld [smem:[%s17396_s0 + %s14695_s15]]   ;;  %s14699_s15 = smov 31  }
  0x32   :  { %s14922_s21 = sld [smem:[%s17396_s0 + %s14696_s22]]   ;;  %s14700_s22 = smov 32  }
  0x33   :  { %s14937_s20 = sld [smem:[%s17396_s0 + %s14699_s15]]   ;;  %s14703_s15 = smov 35  }
  0x34   :  { %17494 = sst [smem:[#allocation70_spill]] %s14907_s24 }
  0x35   :  { %17495 = sst [smem:[#allocation71_spill]] %s14912_s6 }
  0x36   :  { %s14927_s24 = sld [smem:[%s17396_s0 + %s14697_s28]]   ;;  %s14701_s28 = smov 33  }
  0x37   :  { %17496 = sst [smem:[#allocation72_spill]] %s14917_s4 }
  0x38   :  { %17497 = sst [smem:[#allocation73_spill]] %s14922_s21 }
  0x39   :  { %s14932_s6 = sld [smem:[%s17396_s0 + %s14698_s7]]   ;;  %s14702_s7 = smov 34  }
  0x3a   :  { %s14942_s21 = sld [smem:[%s17396_s0 + %s14700_s22]]   ;;  %s14704_s22 = smov 36  }
  0x3b   :  { %s14947_s14 = sld [smem:[%s17396_s0 + %s14701_s28]]   ;;  %s14705_s28 = smov 37  }
  0x3c   :  { %17498 = sst [smem:[#allocation74_spill]] %s14927_s24 }
  0x3d   :  { %s14957_s9 = sld [smem:[%s17396_s0 + %s14703_s15]]   ;;  %s14707_s15 = smov 39  }
  0x3e   :  { %s14967_s25 = sld [smem:[%s17396_s0 + %s14705_s28]]   ;;  %s14709_s28 = smov 41  }
  0x3f   :  { %17499 = sst [smem:[#allocation75_spill]] %s14932_s6 }
  0x40   :  { %17500 = sst [smem:[#allocation76_spill]] %s14942_s21 }
  0x41   :  { %17501 = sst [smem:[#allocation77_spill]] %s14947_s14 }
  0x42   :  { %s14952_s6 = sld [smem:[%s17396_s0 + %s14702_s7]]   ;;  %s14706_s7 = smov 38  }
  0x43   :  { %17503 = sst [smem:[#allocation79_spill]] %s14957_s9 }
  0x44   :  { %s14962_s21 = sld [smem:[%s17396_s0 + %s14704_s22]]   ;;  %s14708_s22 = smov 40  }
  0x45   :  { %17505 = sst [smem:[#allocation81_spill]] %s14967_s25 }
  0x46   :  { %s14977_s13 = sld [smem:[%s17396_s0 + %s14707_s15]]   ;;  %s14711_s15 = smov 43  }
  0x47   :  { %s14987_s5 = sld [smem:[%s17396_s0 + %s14709_s28]]   ;;  %s14713_s28 = smov 45  }
  0x48   :  { %17502 = sst [smem:[#allocation78_spill]] %s14952_s6 }
  0x49   :  { %s14972_s6 = sld [smem:[%s17396_s0 + %s14706_s7]]   ;;  %s14710_s7 = smov 42  }
  0x4a   :  { %17504 = sst [smem:[#allocation80_spill]] %s14962_s21 }
  0x4b   :  { %s14982_s21 = sld [smem:[%s17396_s0 + %s14708_s22]]   ;;  %s14712_s22 = smov 44  }
  0x4c   :  { %17507 = sst [smem:[#allocation83_spill]] %s14977_s13 }
  0x4d   :  { %17509 = sst [smem:[#allocation85_spill]] %s14987_s5 }
  0x4e   :  { %s14997_s30 = sld [smem:[%s17396_s0 + %s14711_s15]]   ;;  %s14715_s15 = smov 47  }
  0x4f   :  { %17506 = sst [smem:[#allocation82_spill]] %s14972_s6 }
  0x50   :  { %s14992_s6 = sld [smem:[%s17396_s0 + %s14710_s7]]   ;;  %s14714_s7 = smov 46  }
  0x51   :  { %17508 = sst [smem:[#allocation84_spill]] %s14982_s21 }
  0x52   :  { %s15002_s21 = sld [smem:[%s17396_s0 + %s14712_s22]]   ;;  %s14716_s22 = smov 48  }
  0x53   :  { %s15007_s5 = sld [smem:[%s17396_s0 + %s14713_s28]]   ;;  %s14717_s28 = smov 49  }
  0x54   :  { %17511 = sst [smem:[#allocation87_spill]] %s14997_s30 }
  0x55   :  { %s15017_s30 = sld [smem:[%s17396_s0 + %s14715_s15]]   ;;  %s14719_s15 = smov 51  }
  0x56   :  { %17510 = sst [smem:[#allocation86_spill]] %s14992_s6 }
  0x57   :  { %s15012_s6 = sld [smem:[%s17396_s0 + %s14714_s7]]   ;;  %s14718_s7 = smov 50  }
  0x58   :  { %17512 = sst [smem:[#allocation88_spill]] %s15002_s21 }
  0x59   :  { %17513 = sst [smem:[#allocation89_spill]] %s15007_s5 }
  0x5a   :  { %s15022_s21 = sld [smem:[%s17396_s0 + %s14716_s22]]   ;;  %s14720_s22 = smov 52  }
  0x5b   :  { %17515 = sst [smem:[#allocation91_spill]] %s15017_s30 }
  0x5c   :  { %s15027_s5 = sld [smem:[%s17396_s0 + %s14717_s28]]   ;;  %s14721_s28 = smov 53  }
  0x5d   :  { %17514 = sst [smem:[#allocation90_spill]] %s15012_s6 }
  0x5e   :  { %s15032_s6 = sld [smem:[%s17396_s0 + %s14718_s7]]   ;;  %s14722_s7 = smov 54  }
  0x5f   :  { %s15037_s30 = sld [smem:[%s17396_s0 + %s14719_s15]]   ;;  %s14723_s15 = smov 55  }
  0x60   :  { %s15042_s25 = sld [smem:[%s17396_s0 + %s14720_s22]]   ;;  %s14724_s22 = smov 56  }
  0x61   :  { %s15062_s14 = sld [smem:[%s17396_s0 + %s14724_s22]]   ;;  %s14728_s22 = smov 60  }
  0x62   :  { %17516 = sst [smem:[#allocation92_spill]] %s15027_s5 }
  0x63   :  { %s15047_s5 = sld [smem:[%s17396_s0 + %s14721_s28]]   ;;  %s14725_s28 = smov 57  }
  0x64   :  { %17517 = sst [smem:[#allocation93_spill]] %s15032_s6 }
  0x65   :  { %17518 = sst [smem:[#allocation94_spill]] %s15037_s30 }
  0x66   :  { %s15052_s6 = sld [smem:[%s17396_s0 + %s14722_s7]]   ;;  %s14726_s7 = smov 58  }
  0x67   :  { %s15057_s30 = sld [smem:[%s17396_s0 + %s14723_s15]]   ;;  %s14727_s15 = smov 59  }
  0x68   :  { %17522 = sst [smem:[#allocation98_spill]] %s15062_s14 }
  0x69   :  { %17519 = sst [smem:[#allocation95_spill]] %s15047_s5 }
  0x6a   :  { %s15067_s5 = sld [smem:[%s17396_s0 + %s14725_s28]]   ;;  %s14729_s28 = smov 61  }
  0x6b   :  { %s15082_s24 = sld [smem:[%s17396_s0 + %s14728_s22]]   ;;  %s14732_s22 = smov 64  }
  0x6c   :  { %17520 = sst [smem:[#allocation96_spill]] %s15052_s6 }
  0x6d   :  { %17521 = sst [smem:[#allocation97_spill]] %s15057_s30 }
  0x6e   :  { %s15072_s6 = sld [smem:[%s17396_s0 + %s14726_s7]]   ;;  %s14730_s7 = smov 62  }
  0x6f   :  { %s15077_s30 = sld [smem:[%s17396_s0 + %s14727_s15]]   ;;  %s14731_s15 = smov 63  }
  0x70   :  { %17523 = sst [smem:[#allocation99_spill]] %s15067_s5 }
  0x71   :  { %s15087_s5 = sld [smem:[%s17396_s0 + %s14729_s28]]   ;;  %s14733_s28 = smov 65  }
  0x72   :  { %s15102_s3 = sld [smem:[%s17396_s0 + %s14732_s22]]   ;;  %s14736_s22 = smov 68  }
  0x74   :  { %17524 = sst [smem:[#allocation100_spill]] %s15072_s6 }
  0x75   :  { %17525 = sst [smem:[#allocation101_spill]] %s15077_s30 }
  0x76   :  { %s15092_s6 = sld [smem:[%s17396_s0 + %s14730_s7]]   ;;  %s14734_s7 = smov 66  }
  0x77   :  { %17526 = sst [smem:[#allocation102_spill]] %s15087_s5 }
  0x78   :  { %s15097_s30 = sld [smem:[%s17396_s0 + %s14731_s15]]   ;;  %s14735_s15 = smov 67  }
  0x79   :  { %17529 = sst [smem:[#allocation105_spill]] %s15102_s3 }
  0x7a   :  { %s15107_s5 = sld [smem:[%s17396_s0 + %s14733_s28]]  }
  0x7b   :  { %s15122_s3 = sld [smem:[%s17396_s0 + %s14736_s22]]  }
  0x7c   :  { %17527 = sst [smem:[#allocation103_spill]] %s15092_s6 }
  0x7d   :  { %s15112_s6 = sld [smem:[%s17396_s0 + %s14734_s7]]  }
  0x7e   :  { %17528 = sst [smem:[#allocation104_spill]] %s15097_s30 }
  0x7f   :  { %s15117_s30 = sld [smem:[%s17396_s0 + %s14735_s15]]  }
  0x80   :  { %17530 = sst [smem:[#allocation106_spill]] %s15107_s5 }
  0x81   :  { %17532 = sst [smem:[#allocation108_spill]] %s15122_s3 }
  0x83   :  { %17531 = sst [smem:[#allocation107_spill]] %s15112_s6 }
  0x84   :  { %142 = vsyncpa [#allocation3], 0 }
  0x85   :  { %143 = vsyncpa [#allocation5], 0 }
  0x86   :  { %144 = vsyncpa [#allocation8], 0 }
  0x87   :  { %145 = vsyncpa [#allocation11], 0 }
  0x88   :  { %146 = vsyncpa [#allocation14], 0 }
  0x89   :  { %147 = vsyncpa [#allocation17], 0 }
  0x8a   :  { %148 = vsyncpa [#allocation20], 0 }
  0x8b   :  { %149 = vsyncpa [#allocation23], 0 }
  0x8c   :  { %150 = vsyncpa [#allocation26], 0 }
  0x8d   :  { %151 = vsyncpa [#allocation29], 0 }
  0x8e   :  { %152 = vsyncpa [#allocation32], 0 }
  0x8f   :  { %153 = vsyncpa [#allocation35], 0  ;;  %s15124_s28 = smov 0  }
  0x90 LB: > { %s17533_s6 = sld [smem:[#allocation107_spill]]  ;;  %s17534_s5 = sld [smem:[#allocation106_spill]]  ;;  %s14635_s28 = sphi %s15124_s28, %s159_s28  }
  0x91   : > { %s17535_s14 = sld [smem:[#allocation98_spill]]  ;;  %s17536_s13 = sld [smem:[#allocation83_spill]] }
  0x92   : > { %s17537_s12 = sld [smem:[#allocation61_spill]]  ;;  %s17538_s9 = sld [smem:[#allocation79_spill]] }
  0x93   : > { %s17539_s8 = sld [smem:[#allocation56_spill]]  ;;  %17541 = sst [smem:[#allocation109_spill]] %s14635_s28 }
  0x94   : > { %s17540_s4 = sld [smem:[#allocation72_spill]]  ;;  %s15130_s0 = sadd.s32 4294967295, %s14635_s28  }
  0x95   : > { %p11099_p0 = scmp.ge.s32.totalorder %s14635_s28, 1  ;;  %p1623_p1 = scmp.lt.s32.totalorder %s14635_s28, 3 }
  0x96   : > { %p17435_p2 = scmp.eq.s32.totalorder %s15130_s0, 0  ;;  %s14737_s2 = smov [#allocation4]  }
  0x97   : > { %p15135_p3 = pnand %p11099_p0, %p1623_p1  ;;  %s1666_s7 = sshll.u32 %s14737_s2, 4  ;;  %s15139_s7 = int_to_ptr.vmem [resolvable:$true] %s1666_s7 }
  0x98   : > { %s14738_s10 = smov [#allocation7]   ;;  %s14739_s16 = smov [#allocation10]  }
  0x99   : > { %s17542_s1 = scalar_select %p15135_p3, 1, 0 }
  0x9a   : > { %p13373_p4 = pneg %p15135_p3  ;;  %s1705_s11 = sshll.u32 %s14738_s10, 4  ;;  %s15143_s11 = int_to_ptr.vmem [resolvable:$true] %s1705_s11 }
  0x9b   : > { %s1733_s18 = sshll.u32 %s14739_s16, 4  ;;  %s14740_s22 = smov [#allocation13]   ;;  %s15151_s18 = int_to_ptr.vmem [resolvable:$true] %s1733_s18 }
  0x9c   : > { %p15147_p5 = pnand %p17435_p2, %p13373_p4  ;;  %s15153_s23 = sshll.u32 %s14740_s22, 4  ;;  %s1776_s23 = int_to_ptr.vmem [resolvable:$true] %s15153_s23 }
  0x9d   : > { %s13905_s26 = scalar_lea.hbm %s17539_s8, 48 }
  0x9e   : > { %p13906_p6 = scmp.ne.s32.totalorder %s17539_s8, %s13905_s26  ;;  %p15159_p7 = pneg %p15147_p5 }
  0x9f   : > { %p13912_p10 = scmp.lt.u32.totalorder %s13905_s26, %s17539_s8 }
  0xa0   : > { %p13908_p8 = pnand %p15159_p7, %p13906_p6 }
  0xa2   : > { %p13909_p9 = pneg %p13908_p8 }
  0xa4   : > { %p13914_p11 = pnand %p13912_p10, %p13909_p9 }
  0xa6   : > { %13917 = shalt.err (!%p13914_p11)
}
  0xa7   : > { %s13918_s10 = scalar_lea.vmem %s15139_s7, 48  ;;  %s13925_s16 = scalar_lea.vmem %s15139_s7, 64 }
  0xa8   : > { %p13919_p12 = scmp.ne.s32.totalorder %s15139_s7, %s13918_s10  ;;  %p13926_p1 = scmp.lt.s32.totalorder %s15139_s7, %s15139_s7 }
  0xa9   : > { %p13927_p4 = scmp.lt.s32.totalorder %s13925_s16, %s13918_s10 }
  0xaa   : > { %p13921_p13 = pnand %p13919_p12, %p15159_p7 }
  0xab   : > { %p13928_p2 = por %p13927_p4, %p13926_p1 }
  0xac   : > { %p13922_p0 = pneg %p13921_p13 }
  0xae   : > { %p13929_p6 = pnand %p13928_p2, %p13922_p0 }
  0xb0   : > { %13932 = shalt.err (!%p13929_p6)
}
  0xb1   : > { %s17438_s22 = smov 16   ;;  %s17440_s26 = smov 1  }
  0xb2   : > { %13379 = dma.hbm_to_vmem [thread:$0]  (!%p15147_p5), %s17539_s8, 48, %s15139_s7, [#allocation5], %s17438_s22, %s17438_s22, %s17440_s26  }
  0xb3   : > { %s13933_s28 = scalar_lea.hbm %s17537_s12, 16 }
  0xb4   : > { %p13934_p8 = scmp.ne.s32.totalorder %s17537_s12, %s13933_s28  ;;  %p13940_p10 = scmp.lt.u32.totalorder %s13933_s28, %s17537_s12 }
  0xb6   : > { %p13936_p9 = pnand %p13934_p8, %p15159_p7 }
  0xb8   : > { %p13937_p2 = pneg %p13936_p9 }
  0xba   : > { %p13942_p11 = pnand %p13940_p10, %p13937_p2 }
  0xbc   : > { %13945 = shalt.err (!%p13942_p11)
}
  0xbd   : > { %s13946_s10 = scalar_lea.vmem %s15143_s11, 16  ;;  %s13953_s16 = scalar_lea.vmem %s15143_s11, 32 }
  0xbe   : > { %p13947_p12 = scmp.ne.s32.totalorder %s15143_s11, %s13946_s10  ;;  %p13954_p1 = scmp.lt.s32.totalorder %s15143_s11, %s15143_s11 }
  0xbf   : > { %p13955_p4 = scmp.lt.s32.totalorder %s13953_s16, %s13946_s10 }
  0xc0   : > { %p13949_p13 = pnand %p13947_p12, %p15159_p7 }
  0xc1   : > { %p13956_p6 = por %p13955_p4, %p13954_p1 }
  0xc2   : > { %p13950_p0 = pneg %p13949_p13 }
  0xc4   : > { %p13957_p8 = pnand %p13956_p6, %p13950_p0 }
  0xc6   : > { %13960 = shalt.err (!%p13957_p8)
}
  0xc7   : > { %13385 = dma.hbm_to_vmem [thread:$0]  (!%p15147_p5), %s17537_s12, 16, %s15143_s11, [#allocation8]  }
  0xc8   : > { %s13961_s28 = scalar_lea.hbm %s14872_s17, 16 }
  0xc9   : > { %p13962_p9 = scmp.ne.s32.totalorder %s14872_s17, %s13961_s28  ;;  %p13968_p11 = scmp.lt.u32.totalorder %s13961_s28, %s14872_s17 }
  0xcb   : > { %p13964_p2 = pnand %p13962_p9, %p15159_p7 }
  0xcd   : > { %p13965_p10 = pneg %p13964_p2 }
  0xcf   : > { %p13970_p12 = pnand %p13968_p11, %p13965_p10 }
  0xd1   : > { %13973 = shalt.err (!%p13970_p12)
}
  0xd2   : > { %s13974_s7 = scalar_lea.vmem %s15151_s18, 16  ;;  %s13981_s10 = scalar_lea.vmem %s15151_s18, 32 }
  0xd3   : > { %p13975_p13 = scmp.ne.s32.totalorder %s15151_s18, %s13974_s7  ;;  %p13982_p4 = scmp.lt.s32.totalorder %s15151_s18, %s15151_s18 }
  0xd4   : > { %p13983_p6 = scmp.lt.s32.totalorder %s13981_s10, %s13974_s7 }
  0xd5   : > { %p13977_p0 = pnand %p13975_p13, %p15159_p7 }
  0xd6   : > { %p13984_p8 = por %p13983_p6, %p13982_p4 }
  0xd7   : > { %p13978_p1 = pneg %p13977_p0 }
  0xd9   : > { %p13985_p9 = pnand %p13984_p8, %p13978_p1 }
  0xdb   : > { %13988 = shalt.err (!%p13985_p9)
}
  0xdc   : > { %13391 = dma.hbm_to_vmem [thread:$0]  (!%p15147_p5), %s14872_s17, 16, %s15151_s18, [#allocation11]  }
  0xdd   : > { %s13989_s11 = scalar_lea.hbm %s17540_s4, 112 }
  0xde   : > { %p13990_p2 = scmp.ne.s32.totalorder %s17540_s4, %s13989_s11  ;;  %p13996_p12 = scmp.lt.u32.totalorder %s13989_s11, %s17540_s4 }
  0xe0   : > { %p13992_p10 = pnand %p13990_p2, %p15159_p7 }
  0xe2   : > { %p13993_p11 = pneg %p13992_p10 }
  0xe4   : > { %p13998_p13 = pnand %p13996_p12, %p13993_p11 }
  0xe6   : > { %14001 = shalt.err (!%p13998_p13)
}
  0xe7   : > { %s14002_s16 = scalar_lea.vmem %s1776_s23, 112  ;;  %s14009_s28 = scalar_lea.vmem %s1776_s23, 128 }
  0xe8   : > { %p14003_p0 = scmp.ne.s32.totalorder %s1776_s23, %s14002_s16  ;;  %p14010_p6 = scmp.lt.s32.totalorder %s1776_s23, %s1776_s23 }
  0xe9   : > { %p14011_p8 = scmp.lt.s32.totalorder %s14009_s28, %s14002_s16 }
  0xea   : > { %p14005_p1 = pnand %p14003_p0, %p15159_p7 }
  0xeb   : > { %p14012_p9 = por %p14011_p8, %p14010_p6 }
  0xec   : > { %p14006_p4 = pneg %p14005_p1 }
  0xee   : > { %p14013_p3 = pnand %p14012_p9, %p14006_p4 }
  0xf0   : > { %14016 = shalt.err (!%p14013_p3)
}
  0xf1   : > { %13397 = dma.hbm_to_vmem [thread:$0]  (!%p15147_p5), %s17540_s4, 112, %s1776_s23, [#allocation14], %s17438_s22, %s17438_s22, %s17440_s26  }
  0xf2   : > { %s14743_s18 = smov [#allocation16]   ;;  %s14744_s10 = smov [#allocation19]  }
  0xf3   : > { %s1807_s7 = sshll.u32 %s14743_s18, 4  ;;  %s1838_s11 = sshll.u32 %s14744_s10, 4  ;;  %s1808_s7 = int_to_ptr.vmem [resolvable:$true] %s1807_s7  ;;  %s1839_s11 = int_to_ptr.vmem [resolvable:$true] %s1838_s11 }
  0xf4   : > { %s14017_s16 = scalar_lea.hbm %s14937_s20, 112 }
  0xf5   : > { %p14018_p2 = scmp.ne.s32.totalorder %s14937_s20, %s14017_s16  ;;  %p14024_p11 = scmp.lt.u32.totalorder %s14017_s16, %s14937_s20 }
  0xf7   : > { %p14020_p3 = pnand %p14018_p2, %p15159_p7 }
  0xf9   : > { %p14021_p10 = pneg %p14020_p3 }
  0xfb   : > { %p14026_p12 = pnand %p14024_p11, %p14021_p10 }
  0xfd   : > { %14029 = shalt.err (!%p14026_p12)
}
  0xfe   : > { %s14030_s28 = scalar_lea.vmem %s1808_s7, 112  ;;  %s14037_s23 = scalar_lea.vmem %s1808_s7, 128 }
  0xff   : > { %p14031_p13 = scmp.ne.s32.totalorder %s1808_s7, %s14030_s28  ;;  %p14038_p4 = scmp.lt.s32.totalorder %s1808_s7, %s1808_s7 }
 0x100   : > { %p14039_p6 = scmp.lt.s32.totalorder %s14037_s23, %s14030_s28 }
 0x101   : > { %p14033_p0 = pnand %p14031_p13, %p15159_p7 }
 0x102   : > { %p14040_p8 = por %p14039_p6, %p14038_p4 }
 0x103   : > { %p14034_p1 = pneg %p14033_p0 }
 0x105   : > { %p14041_p9 = pnand %p14040_p8, %p14034_p1 }
 0x107   : > { %14044 = shalt.err (!%p14041_p9)
}
 0x108   : > { %13403 = dma.hbm_to_vmem [thread:$0]  (!%p15147_p5), %s14937_s20, 112, %s1808_s7, [#allocation17], %s17438_s22, %s17438_s22, %s17440_s26  }
 0x109   : > { %s14045_s18 = scalar_lea.hbm %s17538_s9, 16 }
 0x10a   : > { %p14046_p2 = scmp.ne.s32.totalorder %s17538_s9, %s14045_s18  ;;  %p14052_p11 = scmp.lt.u32.totalorder %s14045_s18, %s17538_s9 }
 0x10c   : > { %p14048_p3 = pnand %p14046_p2, %p15159_p7 }
 0x10e   : > { %p14049_p10 = pneg %p14048_p3 }
 0x110   : > { %p14054_p12 = pnand %p14052_p11, %p14049_p10 }
 0x112   : > { %14057 = shalt.err (!%p14054_p12)
}
 0x113   : > { %s14058_s10 = scalar_lea.vmem %s1839_s11, 16  ;;  %s14065_s16 = scalar_lea.vmem %s1839_s11, 32 }
 0x114   : > { %p14059_p13 = scmp.ne.s32.totalorder %s1839_s11, %s14058_s10  ;;  %p14066_p4 = scmp.lt.s32.totalorder %s1839_s11, %s1839_s11 }
 0x115   : > { %p14067_p6 = scmp.lt.s32.totalorder %s14065_s16, %s14058_s10 }
 0x116   : > { %p14061_p0 = pnand %p14059_p13, %p15159_p7 }
 0x117   : > { %p14068_p8 = por %p14067_p6, %p14066_p4 }
 0x118   : > { %p14062_p1 = pneg %p14061_p0 }
 0x11a   : > { %p14069_p9 = pnand %p14068_p8, %p14062_p1 }
 0x11c   : > { %14072 = shalt.err (!%p14069_p9)
}
 0x11d   : > { %13409 = dma.hbm_to_vmem [thread:$0]  (!%p15147_p5), %s17538_s9, 16, %s1839_s11, [#allocation20]  }
 0x11e   : > { %s14745_s7 = smov [#allocation22]   ;;  %s14746_s23 = smov [#allocation25]  }
 0x11f   : > { %s1866_s28 = sshll.u32 %s14745_s7, 4  ;;  %s1908_s18 = sshll.u32 %s14746_s23, 4  ;;  %s1867_s28 = int_to_ptr.vmem [resolvable:$true] %s1866_s28  ;;  %s1909_s18 = int_to_ptr.vmem [resolvable:$true] %s1908_s18 }
 0x120   : > { %s14073_s22 = scalar_lea.hbm %s17536_s13, 16 }
 0x121   : > { %p14074_p2 = scmp.ne.s32.totalorder %s17536_s13, %s14073_s22  ;;  %p14080_p11 = scmp.lt.u32.totalorder %s14073_s22, %s17536_s13 }
 0x123   : > { %p14076_p3 = pnand %p14074_p2, %p15159_p7 }
 0x125   : > { %p14077_p10 = pneg %p14076_p3 }
 0x127   : > { %p14082_p12 = pnand %p14080_p11, %p14077_p10 }
 0x129   : > { %14085 = shalt.err (!%p14082_p12)
}
 0x12a   : > { %s14086_s10 = scalar_lea.vmem %s1867_s28, 16  ;;  %s14093_s11 = scalar_lea.vmem %s1867_s28, 32 }
 0x12b   : > { %p14087_p13 = scmp.ne.s32.totalorder %s1867_s28, %s14086_s10  ;;  %p14094_p4 = scmp.lt.s32.totalorder %s1867_s28, %s1867_s28 }
 0x12c   : > { %p14095_p6 = scmp.lt.s32.totalorder %s14093_s11, %s14086_s10 }
 0x12d   : > { %p14089_p0 = pnand %p14087_p13, %p15159_p7 }
 0x12e   : > { %p14096_p8 = por %p14095_p6, %p14094_p4 }
 0x12f   : > { %p14090_p1 = pneg %p14089_p0 }
 0x131   : > { %p14097_p9 = pnand %p14096_p8, %p14090_p1 }
 0x133   : > { %14100 = shalt.err (!%p14097_p9)
}
 0x134   : > { %13415 = dma.hbm_to_vmem [thread:$0]  (!%p15147_p5), %s17536_s13, 16, %s1867_s28, [#allocation23]  }
 0x135   : > { %s14101_s22 = scalar_lea.hbm %s15022_s21, 48 }
 0x136   : > { %p14102_p2 = scmp.ne.s32.totalorder %s15022_s21, %s14101_s22  ;;  %p14108_p11 = scmp.lt.u32.totalorder %s14101_s22, %s15022_s21 }
 0x138   : > { %p14104_p3 = pnand %p14102_p2, %p15159_p7 }
 0x13a   : > { %p14105_p10 = pneg %p14104_p3 }
 0x13c   : > { %p14110_p12 = pnand %p14108_p11, %p14105_p10 }
 0x13e   : > { %14113 = shalt.err (!%p14110_p12)
}
 0x13f   : > { %s14114_s16 = scalar_lea.vmem %s1909_s18, 48  ;;  %s14121_s7 = scalar_lea.vmem %s1909_s18, 64 }
 0x140   : > { %p14115_p13 = scmp.ne.s32.totalorder %s1909_s18, %s14114_s16  ;;  %p14122_p4 = scmp.lt.s32.totalorder %s1909_s18, %s1909_s18 }
 0x141   : > { %p14123_p6 = scmp.lt.s32.totalorder %s14121_s7, %s14114_s16 }
 0x142   : > { %p14117_p0 = pnand %p14115_p13, %p15159_p7 }
 0x143   : > { %p14124_p8 = por %p14123_p6, %p14122_p4 }
 0x144   : > { %p14118_p1 = pneg %p14117_p0 }
 0x146   : > { %p14125_p9 = pnand %p14124_p8, %p14118_p1 }
 0x148   : > { %14128 = shalt.err (!%p14125_p9)
}
 0x149   : > { %s17545_s28 = smov 16   ;;  %s14747_s23 = smov [#allocation28]  }
 0x14a   : > { %13421 = dma.hbm_to_vmem [thread:$0]  (!%p15147_p5), %s15022_s21, 48, %s1909_s18, [#allocation26], %s17545_s28, %s17545_s28, %s17440_s26  }
 0x14b   : > { %s1940_s10 = sshll.u32 %s14747_s23, 4  ;;  %s14748_s11 = smov [#allocation31]   ;;  %s1941_s10 = int_to_ptr.vmem [resolvable:$true] %s1940_s10 }
 0x14c   : > { %s1971_s22 = sshll.u32 %s14748_s11, 4  ;;  %s14129_s16 = scalar_lea.hbm %s15042_s25, 48  ;;  %s1972_s22 = int_to_ptr.vmem [resolvable:$true] %s1971_s22 }
 0x14d   : > { %p14130_p2 = scmp.ne.s32.totalorder %s15042_s25, %s14129_s16  ;;  %p14136_p11 = scmp.lt.u32.totalorder %s14129_s16, %s15042_s25 }
 0x14f   : > { %p14132_p3 = pnand %p14130_p2, %p15159_p7 }
 0x151   : > { %p14133_p10 = pneg %p14132_p3 }
 0x153   : > { %p14138_p12 = pnand %p14136_p11, %p14133_p10 }
 0x155   : > { %14141 = shalt.err (!%p14138_p12)
}
 0x156   : > { %s14142_s7 = scalar_lea.vmem %s1941_s10, 48  ;;  %s14149_s18 = scalar_lea.vmem %s1941_s10, 64 }
 0x157   : > { %p14143_p13 = scmp.ne.s32.totalorder %s1941_s10, %s14142_s7  ;;  %p14150_p4 = scmp.lt.s32.totalorder %s1941_s10, %s1941_s10 }
 0x158   : > { %p14151_p6 = scmp.lt.s32.totalorder %s14149_s18, %s14142_s7 }
 0x159   : > { %p14145_p0 = pnand %p14143_p13, %p15159_p7 }
 0x15a   : > { %p14152_p8 = por %p14151_p6, %p14150_p4 }
 0x15b   : > { %p14146_p1 = pneg %p14145_p0 }
 0x15d   : > { %p14153_p9 = pnand %p14152_p8, %p14146_p1 }
 0x15f   : > { %14156 = shalt.err (!%p14153_p9)
}
 0x160   : > { %13427 = dma.hbm_to_vmem [thread:$0]  (!%p15147_p5), %s15042_s25, 48, %s1941_s10, [#allocation29], %s17545_s28, %s17545_s28, %s17440_s26  }
 0x161   : > { %s14157_s23 = scalar_lea.hbm %s17535_s14, 16 }
 0x162   : > { %p14158_p2 = scmp.ne.s32.totalorder %s17535_s14, %s14157_s23  ;;  %p14164_p11 = scmp.lt.u32.totalorder %s14157_s23, %s17535_s14 }
 0x164   : > { %p14160_p3 = pnand %p14158_p2, %p15159_p7 }
 0x166   : > { %p14161_p10 = pneg %p14160_p3 }
 0x168   : > { %p14166_p12 = pnand %p14164_p11, %p14161_p10 }
 0x16a   : > { %14169 = shalt.err (!%p14166_p12)
}
 0x16b   : > { %s14170_s11 = scalar_lea.vmem %s1972_s22, 16  ;;  %s14177_s16 = scalar_lea.vmem %s1972_s22, 32 }
 0x16c   : > { %p14171_p13 = scmp.ne.s32.totalorder %s1972_s22, %s14170_s11  ;;  %p14178_p4 = scmp.lt.s32.totalorder %s1972_s22, %s1972_s22 }
 0x16d   : > { %p14179_p6 = scmp.lt.s32.totalorder %s14177_s16, %s14170_s11 }
 0x16e   : > { %p14173_p0 = pnand %p14171_p13, %p15159_p7 }
 0x16f   : > { %p14180_p8 = por %p14179_p6, %p14178_p4 }
 0x170   : > { %p14174_p1 = pneg %p14173_p0 }
 0x172   : > { %p14181_p9 = pnand %p14180_p8, %p14174_p1 }
 0x174   : > { %14184 = shalt.err (!%p14181_p9)
}
 0x175   : > { %13433 = dma.hbm_to_vmem [thread:$0]  (!%p15147_p5), %s17535_s14, 16, %s1972_s22, [#allocation32]  }
 0x176   : > { %s14749_s10 = smov [#allocation34]   ;;  %s14750_s18 = smov [#allocation2]  }
 0x177   : > { %s1999_s7 = sshll.u32 %s14749_s10, 4  ;;  %s1650_s23 = sshll.u32 %s14750_s18, 4  ;;  %s2000_s7 = int_to_ptr.vmem [resolvable:$true] %s1999_s7  ;;  %s1651_s23 = int_to_ptr.vmem [resolvable:$true] %s1650_s23 }
 0x178   : > { %s14185_s26 = scalar_lea.hbm %s15082_s24, 16 }
 0x179   : > { %p14186_p2 = scmp.ne.s32.totalorder %s15082_s24, %s14185_s26  ;;  %p14192_p11 = scmp.lt.u32.totalorder %s14185_s26, %s15082_s24 }
 0x17b   : > { %p14188_p3 = pnand %p14186_p2, %p15159_p7 }
 0x17d   : > { %p14189_p10 = pneg %p14188_p3 }
 0x17f   : > { %p14194_p12 = pnand %p14192_p11, %p14189_p10 }
 0x181   : > { %14197 = shalt.err (!%p14194_p12)
}
 0x182   : > { %s14198_s11 = scalar_lea.vmem %s2000_s7, 16  ;;  %s14205_s22 = scalar_lea.vmem %s2000_s7, 32 }
 0x183   : > { %p14199_p13 = scmp.ne.s32.totalorder %s2000_s7, %s14198_s11  ;;  %p14206_p4 = scmp.lt.s32.totalorder %s2000_s7, %s2000_s7 }
 0x184   : > { %p14207_p6 = scmp.lt.s32.totalorder %s14205_s22, %s14198_s11 }
 0x185   : > { %p14201_p0 = pnand %p14199_p13, %p15159_p7 }
 0x186   : > { %p14208_p8 = por %p14207_p6, %p14206_p4 }
 0x187   : > { %p14202_p1 = pneg %p14201_p0 }
 0x189   : > { %p14209_p9 = pnand %p14208_p8, %p14202_p1 }
 0x18b   : > { %14212 = shalt.err (!%p14209_p9)
}
 0x18c   : > { %13439 = dma.hbm_to_vmem [thread:$0]  (!%p15147_p5), %s15082_s24, 16, %s2000_s7, [#allocation35]  }
 0x18d   : > { %s14213_s26 = scalar_lea.hbm %s14812_s29, 48 }
 0x18e   : > { %p14214_p2 = scmp.ne.s32.totalorder %s14812_s29, %s14213_s26  ;;  %p14220_p11 = scmp.lt.u32.totalorder %s14213_s26, %s14812_s29 }
 0x190   : > { %p14216_p3 = pnand %p14214_p2, %p15159_p7 }
 0x192   : > { %p14217_p10 = pneg %p14216_p3 }
 0x194   : > { %p14222_p12 = pnand %p14220_p11, %p14217_p10 }
 0x196   : > { %14225 = shalt.err (!%p14222_p12)
}
 0x197   : > { %s14226_s16 = scalar_lea.vmem %s1651_s23, 48  ;;  %s14233_s10 = scalar_lea.vmem %s1651_s23, 64 }
 0x198   : > { %p14227_p13 = scmp.ne.s32.totalorder %s1651_s23, %s14226_s16  ;;  %p14234_p4 = scmp.lt.s32.totalorder %s1651_s23, %s1651_s23 }
 0x199   : > { %p14235_p6 = scmp.lt.s32.totalorder %s14233_s10, %s14226_s16 }
 0x19a   : > { %p14229_p0 = pnand %p14227_p13, %p15159_p7 }
 0x19b   : > { %p14236_p8 = por %p14235_p6, %p14234_p4 }
 0x19c   : > { %p14230_p1 = pneg %p14229_p0 }
 0x19e   : > { %p14237_p9 = pnand %p14236_p8, %p14230_p1 }
 0x1a0   : > { %14240 = shalt.err (!%p14237_p9)
}
 0x1a1   : > { %s17546_s7 = smov 1   ;;  %s14751_s18 = smov [#allocation6]  }
 0x1a2   : > { %13376 = dma.hbm_to_vmem [thread:$0]  (!%p15147_p5), %s14812_s29, 48, %s1651_s23, [#allocation3], %s17545_s28, %s17545_s28, %s17546_s7  }
 0x1a3   : > { %s1682_s11 = sshll.u32 %s14751_s18, 4  ;;  %s14752_s22 = smov [#allocation9]   ;;  %s1683_s11 = int_to_ptr.vmem [resolvable:$true] %s1682_s11 }
 0x1a4   : > { %s1719_s26 = sshll.u32 %s14752_s22, 4  ;;  %s14241_s16 = scalar_lea.hbm %s14832_s19, 48  ;;  %s1720_s26 = int_to_ptr.vmem [resolvable:$true] %s1719_s26 }
 0x1a5   : > { %p14242_p2 = scmp.ne.s32.totalorder %s14832_s19, %s14241_s16  ;;  %p14248_p11 = scmp.lt.u32.totalorder %s14241_s16, %s14832_s19 }
 0x1a7   : > { %p14244_p3 = pnand %p14242_p2, %p15159_p7 }
 0x1a9   : > { %p14245_p10 = pneg %p14244_p3 }
 0x1ab   : > { %p14250_p12 = pnand %p14248_p11, %p14245_p10 }
 0x1ad   : > { %14253 = shalt.err (!%p14250_p12)
}
 0x1ae   : > { %s14254_s10 = scalar_lea.vmem %s1683_s11, 48  ;;  %s14261_s23 = scalar_lea.vmem %s1683_s11, 64 }
 0x1af   : > { %p14255_p13 = scmp.ne.s32.totalorder %s1683_s11, %s14254_s10  ;;  %p14262_p4 = scmp.lt.s32.totalorder %s1683_s11, %s1683_s11 }
 0x1b0   : > { %p14263_p6 = scmp.lt.s32.totalorder %s14261_s23, %s14254_s10 }
 0x1b1   : > { %p14257_p0 = pnand %p14255_p13, %p15159_p7 }
 0x1b2   : > { %p14264_p8 = por %p14263_p6, %p14262_p4 }
 0x1b3   : > { %p14258_p1 = pneg %p14257_p0 }
 0x1b5   : > { %p14265_p9 = pnand %p14264_p8, %p14258_p1 }
 0x1b7   : > { %14268 = shalt.err (!%p14265_p9)
}
 0x1b8   : > { %13382 = dma.hbm_to_vmem [thread:$0]  (!%p15147_p5), %s14832_s19, 48, %s1683_s11, [#allocation5], %s17545_s28, %s17545_s28, %s17546_s7  }
 0x1b9   : > { %s14269_s18 = scalar_lea.hbm %s14862_s27, 16 }
 0x1ba   : > { %p14270_p2 = scmp.ne.s32.totalorder %s14862_s27, %s14269_s18  ;;  %p14276_p11 = scmp.lt.u32.totalorder %s14269_s18, %s14862_s27 }
 0x1bc   : > { %p14272_p3 = pnand %p14270_p2, %p15159_p7 }
 0x1be   : > { %p14273_p10 = pneg %p14272_p3 }
 0x1c0   : > { %p14278_p12 = pnand %p14276_p11, %p14273_p10 }
 0x1c2   : > { %14281 = shalt.err (!%p14278_p12)
}
 0x1c3   : > { %s14282_s22 = scalar_lea.vmem %s1720_s26, 16  ;;  %s14289_s16 = scalar_lea.vmem %s1720_s26, 32 }
 0x1c4   : > { %p14283_p13 = scmp.ne.s32.totalorder %s1720_s26, %s14282_s22  ;;  %p14290_p4 = scmp.lt.s32.totalorder %s1720_s26, %s1720_s26 }
 0x1c5   : > { %p14291_p6 = scmp.lt.s32.totalorder %s14289_s16, %s14282_s22 }
 0x1c6   : > { %p14285_p0 = pnand %p14283_p13, %p15159_p7 }
 0x1c7   : > { %p14292_p8 = por %p14291_p6, %p14290_p4 }
 0x1c8   : > { %p14286_p1 = pneg %p14285_p0 }
 0x1ca   : > { %p14293_p9 = pnand %p14292_p8, %p14286_p1 }
 0x1cc   : > { %14296 = shalt.err (!%p14293_p9)
}
 0x1cd   : > { %s17547_s11 = sld [smem:[#allocation65_spill]]  ;;  %s14753_s10 = smov [#allocation12]  }
 0x1ce   : > { %13388 = dma.hbm_to_vmem [thread:$0]  (!%p15147_p5), %s14862_s27, 16, %s1720_s26, [#allocation8]  }
 0x1cf   : > { %s1747_s23 = sshll.u32 %s14753_s10, 4  ;;  %s14754_s18 = smov [#allocation15]   ;;  %s1748_s23 = int_to_ptr.vmem [resolvable:$true] %s1747_s23 }
 0x1d0   : > { %s1791_s4 = sshll.u32 %s14754_s18, 4  ;;  %s1792_s4 = int_to_ptr.vmem [resolvable:$true] %s1791_s4 }
 0x1d3   : > { %s14297_s8 = scalar_lea.hbm %s17547_s11, 16 }
 0x1d4   : > { %p14298_p2 = scmp.ne.s32.totalorder %s17547_s11, %s14297_s8  ;;  %p14304_p11 = scmp.lt.u32.totalorder %s14297_s8, %s17547_s11 }
 0x1d6   : > { %p14300_p3 = pnand %p14298_p2, %p15159_p7 }
 0x1d8   : > { %p14301_p10 = pneg %p14300_p3 }
 0x1da   : > { %p14306_p12 = pnand %p14304_p11, %p14301_p10 }
 0x1dc   : > { %14309 = shalt.err (!%p14306_p12)
}
 0x1dd   : > { %s14310_s22 = scalar_lea.vmem %s1748_s23, 16  ;;  %s14317_s26 = scalar_lea.vmem %s1748_s23, 32 }
 0x1de   : > { %p14311_p13 = scmp.ne.s32.totalorder %s1748_s23, %s14310_s22  ;;  %p14318_p4 = scmp.lt.s32.totalorder %s1748_s23, %s1748_s23 }
 0x1df   : > { %p14319_p6 = scmp.lt.s32.totalorder %s14317_s26, %s14310_s22 }
 0x1e0   : > { %p14313_p0 = pnand %p14311_p13, %p15159_p7 }
 0x1e1   : > { %p14320_p8 = por %p14319_p6, %p14318_p4 }
 0x1e2   : > { %p14314_p1 = pneg %p14313_p0 }
 0x1e4   : > { %p14321_p9 = pnand %p14320_p8, %p14314_p1 }
 0x1e6   : > { %14324 = shalt.err (!%p14321_p9)
}
 0x1e7   : > { %s17548_s16 = sld [smem:[#allocation74_spill]] }
 0x1e8   : > { %13394 = dma.hbm_to_vmem [thread:$0]  (!%p15147_p5), %s17547_s11, 16, %s1748_s23, [#allocation11]  }
 0x1ed   : > { %s14325_s8 = scalar_lea.hbm %s17548_s16, 112 }
 0x1ee   : > { %p14326_p2 = scmp.ne.s32.totalorder %s17548_s16, %s14325_s8  ;;  %p14332_p11 = scmp.lt.u32.totalorder %s14325_s8, %s17548_s16 }
 0x1f0   : > { %p14328_p3 = pnand %p14326_p2, %p15159_p7 }
 0x1f2   : > { %p14329_p10 = pneg %p14328_p3 }
 0x1f4   : > { %p14334_p12 = pnand %p14332_p11, %p14329_p10 }
 0x1f6   : > { %14337 = shalt.err (!%p14334_p12)
}
 0x1f7   : > { %s14338_s10 = scalar_lea.vmem %s1792_s4, 112  ;;  %s14345_s18 = scalar_lea.vmem %s1792_s4, 128 }
 0x1f8   : > { %p14339_p13 = scmp.ne.s32.totalorder %s1792_s4, %s14338_s10  ;;  %p14346_p4 = scmp.lt.s32.totalorder %s1792_s4, %s1792_s4 }
 0x1f9   : > { %p14347_p6 = scmp.lt.s32.totalorder %s14345_s18, %s14338_s10 }
 0x1fa   : > { %p14341_p0 = pnand %p14339_p13, %p15159_p7 }
 0x1fb   : > { %p14348_p8 = por %p14347_p6, %p14346_p4 }
 0x1fc   : > { %p14342_p1 = pneg %p14341_p0 }
 0x1fe   : > { %p14349_p9 = pnand %p14348_p8, %p14342_p1 }
 0x200   : > { %14352 = shalt.err (!%p14349_p9)
}
 0x201   : > { %s17549_s23 = sld [smem:[#allocation77_spill]]  ;;  %s14755_s22 = smov [#allocation18]  }
 0x202   : > { %13400 = dma.hbm_to_vmem [thread:$0]  (!%p15147_p5), %s17548_s16, 112, %s1792_s4, [#allocation14], %s17545_s28, %s17545_s28, %s17546_s7  }
 0x203   : > { %s1824_s26 = sshll.u32 %s14755_s22, 4  ;;  %s14756_s8 = smov [#allocation21]   ;;  %s1825_s26 = int_to_ptr.vmem [resolvable:$true] %s1824_s26 }
 0x204   : > { %s1852_s9 = sshll.u32 %s14756_s8, 4  ;;  %s1853_s9 = int_to_ptr.vmem [resolvable:$true] %s1852_s9 }
 0x207   : > { %s14353_s10 = scalar_lea.hbm %s17549_s23, 16 }
 0x208   : > { %p14354_p2 = scmp.ne.s32.totalorder %s17549_s23, %s14353_s10  ;;  %p14360_p11 = scmp.lt.u32.totalorder %s14353_s10, %s17549_s23 }
 0x20a   : > { %p14356_p3 = pnand %p14354_p2, %p15159_p7 }
 0x20c   : > { %p14357_p10 = pneg %p14356_p3 }
 0x20e   : > { %p14362_p12 = pnand %p14360_p11, %p14357_p10 }
 0x210   : > { %14365 = shalt.err (!%p14362_p12)
}
 0x211   : > { %s14366_s18 = scalar_lea.vmem %s1825_s26, 16  ;;  %s14373_s4 = scalar_lea.vmem %s1825_s26, 32 }
 0x212   : > { %p14367_p13 = scmp.ne.s32.totalorder %s1825_s26, %s14366_s18  ;;  %p14374_p4 = scmp.lt.s32.totalorder %s1825_s26, %s1825_s26 }
 0x213   : > { %p14375_p6 = scmp.lt.s32.totalorder %s14373_s4, %s14366_s18 }
 0x214   : > { %p14369_p0 = pnand %p14367_p13, %p15159_p7 }
 0x215   : > { %p14376_p8 = por %p14375_p6, %p14374_p4 }
 0x216   : > { %p14370_p1 = pneg %p14369_p0 }
 0x218   : > { %p14377_p9 = pnand %p14376_p8, %p14370_p1 }
 0x21a   : > { %14380 = shalt.err (!%p14377_p9)
}
 0x21b   : > { %s17550_s22 = sld [smem:[#allocation81_spill]] }
 0x21c   : > { %13406 = dma.hbm_to_vmem [thread:$0]  (!%p15147_p5), %s17549_s23, 16, %s1825_s26, [#allocation17]  }
 0x221   : > { %s14381_s8 = scalar_lea.hbm %s17550_s22, 16 }
 0x222   : > { %p14382_p2 = scmp.ne.s32.totalorder %s17550_s22, %s14381_s8  ;;  %p14388_p11 = scmp.lt.u32.totalorder %s14381_s8, %s17550_s22 }
 0x224   : > { %p14384_p3 = pnand %p14382_p2, %p15159_p7 }
 0x226   : > { %p14385_p10 = pneg %p14384_p3 }
 0x228   : > { %p14390_p12 = pnand %p14388_p11, %p14385_p10 }
 0x22a   : > { %14393 = shalt.err (!%p14390_p12)
}
 0x22b   : > { %s14394_s10 = scalar_lea.vmem %s1853_s9, 16  ;;  %s14401_s18 = scalar_lea.vmem %s1853_s9, 32 }
 0x22c   : > { %p14395_p13 = scmp.ne.s32.totalorder %s1853_s9, %s14394_s10  ;;  %p14402_p4 = scmp.lt.s32.totalorder %s1853_s9, %s1853_s9 }
 0x22d   : > { %p14403_p6 = scmp.lt.s32.totalorder %s14401_s18, %s14394_s10 }
 0x22e   : > { %p14397_p0 = pnand %p14395_p13, %p15159_p7 }
 0x22f   : > { %p14404_p8 = por %p14403_p6, %p14402_p4 }
 0x230   : > { %p14398_p1 = pneg %p14397_p0 }
 0x232   : > { %p14405_p9 = pnand %p14404_p8, %p14398_p1 }
 0x234   : > { %14408 = shalt.err (!%p14405_p9)
}
 0x235   : > { %s17551_s26 = sld [smem:[#allocation85_spill]]  ;;  %s14757_s4 = smov [#allocation24]  }
 0x236   : > { %13412 = dma.hbm_to_vmem [thread:$0]  (!%p15147_p5), %s17550_s22, 16, %s1853_s9, [#allocation20]  }
 0x237   : > { %s1880_s8 = sshll.u32 %s14757_s4, 4  ;;  %s14758_s11 = smov [#allocation27]   ;;  %s1881_s8 = int_to_ptr.vmem [resolvable:$true] %s1880_s8 }
 0x238   : > { %s1924_s12 = sshll.u32 %s14758_s11, 4  ;;  %s1925_s12 = int_to_ptr.vmem [resolvable:$true] %s1924_s12 }
 0x23b   : > { %s14409_s13 = scalar_lea.hbm %s17551_s26, 16 }
 0x23c   : > { %p14410_p2 = scmp.ne.s32.totalorder %s17551_s26, %s14409_s13  ;;  %p14416_p11 = scmp.lt.u32.totalorder %s14409_s13, %s17551_s26 }
 0x23e   : > { %p14412_p3 = pnand %p14410_p2, %p15159_p7 }
 0x240   : > { %p14413_p10 = pneg %p14412_p3 }
 0x242   : > { %p14418_p12 = pnand %p14416_p11, %p14413_p10 }
 0x244   : > { %14421 = shalt.err (!%p14418_p12)
}
 0x245   : > { %s14422_s10 = scalar_lea.vmem %s1881_s8, 16  ;;  %s14429_s9 = scalar_lea.vmem %s1881_s8, 32 }
 0x246   : > { %p14423_p13 = scmp.ne.s32.totalorder %s1881_s8, %s14422_s10  ;;  %p14430_p4 = scmp.lt.s32.totalorder %s1881_s8, %s1881_s8 }
 0x247   : > { %p14431_p6 = scmp.lt.s32.totalorder %s14429_s9, %s14422_s10 }
 0x248   : > { %p14425_p0 = pnand %p14423_p13, %p15159_p7 }
 0x249   : > { %p14432_p8 = por %p14431_p6, %p14430_p4 }
 0x24a   : > { %p14426_p1 = pneg %p14425_p0 }
 0x24c   : > { %p14433_p9 = pnand %p14432_p8, %p14426_p1 }
 0x24e   : > { %14436 = shalt.err (!%p14433_p9)
}
 0x24f   : > { %s17552_s11 = sld [smem:[#allocation93_spill]] }
 0x250   : > { %13418 = dma.hbm_to_vmem [thread:$0]  (!%p15147_p5), %s17551_s26, 16, %s1881_s8, [#allocation23]  }
 0x255   : > { %s14437_s13 = scalar_lea.hbm %s17552_s11, 48 }
 0x256   : > { %p14438_p2 = scmp.ne.s32.totalorder %s17552_s11, %s14437_s13  ;;  %p14444_p11 = scmp.lt.u32.totalorder %s14437_s13, %s17552_s11 }
 0x258   : > { %p14440_p3 = pnand %p14438_p2, %p15159_p7 }
 0x25a   : > { %p14441_p10 = pneg %p14440_p3 }
 0x25c   : > { %p14446_p12 = pnand %p14444_p11, %p14441_p10 }
 0x25e   : > { %14449 = shalt.err (!%p14446_p12)
}
 0x25f   : > { %s14450_s18 = scalar_lea.vmem %s1925_s12, 48  ;;  %s14457_s4 = scalar_lea.vmem %s1925_s12, 64 }
 0x260   : > { %p14451_p13 = scmp.ne.s32.totalorder %s1925_s12, %s14450_s18  ;;  %p14458_p4 = scmp.lt.s32.totalorder %s1925_s12, %s1925_s12 }
 0x261   : > { %p14459_p6 = scmp.lt.s32.totalorder %s14457_s4, %s14450_s18 }
 0x262   : > { %p14453_p0 = pnand %p14451_p13, %p15159_p7 }
 0x263   : > { %p14460_p8 = por %p14459_p6, %p14458_p4 }
 0x264   : > { %p14454_p1 = pneg %p14453_p0 }
 0x266   : > { %p14461_p9 = pnand %p14460_p8, %p14454_p1 }
 0x268   : > { %14464 = shalt.err (!%p14461_p9)
}
 0x269   : > { %s17553_s8 = sld [smem:[#allocation96_spill]]  ;;  %s14759_s10 = smov [#allocation30]  }
 0x26a   : > { %13424 = dma.hbm_to_vmem [thread:$0]  (!%p15147_p5), %s17552_s11, 48, %s1925_s12, [#allocation26], %s17545_s28, %s17545_s28, %s17546_s7  }
 0x26b   : > { %s1957_s9 = sshll.u32 %s14759_s10, 4  ;;  %s14760_s13 = smov [#allocation33]   ;;  %s1958_s9 = int_to_ptr.vmem [resolvable:$true] %s1957_s9 }
 0x26c   : > { %s1985_s14 = sshll.u32 %s14760_s13, 4  ;;  %s1986_s14 = int_to_ptr.vmem [resolvable:$true] %s1985_s14 }
 0x26f   : > { %s14465_s18 = scalar_lea.hbm %s17553_s8, 16 }
 0x270   : > { %p14466_p2 = scmp.ne.s32.totalorder %s17553_s8, %s14465_s18  ;;  %p14472_p11 = scmp.lt.u32.totalorder %s14465_s18, %s17553_s8 }
 0x272   : > { %p14468_p3 = pnand %p14466_p2, %p15159_p7 }
 0x274   : > { %p14469_p10 = pneg %p14468_p3 }
 0x276   : > { %p14474_p12 = pnand %p14472_p11, %p14469_p10 }
 0x278   : > { %14477 = shalt.err (!%p14474_p12)
}
 0x279   : > { %s14478_s4 = scalar_lea.vmem %s1958_s9, 16  ;;  %s14485_s12 = scalar_lea.vmem %s1958_s9, 32 }
 0x27a   : > { %p14479_p13 = scmp.ne.s32.totalorder %s1958_s9, %s14478_s4  ;;  %p14486_p4 = scmp.lt.s32.totalorder %s1958_s9, %s1958_s9 }
 0x27b   : > { %p14487_p6 = scmp.lt.s32.totalorder %s14485_s12, %s14478_s4 }
 0x27c   : > { %p14481_p0 = pnand %p14479_p13, %p15159_p7 }
 0x27d   : > { %p14488_p8 = por %p14487_p6, %p14486_p4 }
 0x27e   : > { %p14482_p1 = pneg %p14481_p0 }
 0x280   : > { %p14489_p9 = pnand %p14488_p8, %p14482_p1 }
 0x282   : > { %14492 = shalt.err (!%p14489_p9)
}
 0x283   : > { %s17554_s28 = sld [smem:[#allocation100_spill]] }
 0x284   : > { %13430 = dma.hbm_to_vmem [thread:$0]  (!%p15147_p5), %s17553_s8, 16, %s1958_s9, [#allocation29]  }
 0x289   : > { %s17555_s7 = smov %s17554_s28  ;;  %s14493_s10 = scalar_lea.hbm %s17554_s28, 16 }
 0x28a   : > { %p14494_p2 = scmp.ne.s32.totalorder %s17555_s7, %s14493_s10  ;;  %p14500_p11 = scmp.lt.u32.totalorder %s14493_s10, %s17555_s7 }
 0x28c   : > { %p14496_p3 = pnand %p14494_p2, %p15159_p7 }
 0x28e   : > { %p14497_p10 = pneg %p14496_p3 }
 0x290   : > { %p14502_p12 = pnand %p14500_p11, %p14497_p10 }
 0x292   : > { %14505 = shalt.err (!%p14502_p12)
}
 0x293   : > { %s14506_s13 = scalar_lea.vmem %s1986_s14, 16  ;;  %s14513_s18 = scalar_lea.vmem %s1986_s14, 32 }
 0x294   : > { %p14507_p13 = scmp.ne.s32.totalorder %s1986_s14, %s14506_s13  ;;  %p14514_p4 = scmp.lt.s32.totalorder %s1986_s14, %s1986_s14 }
 0x295   : > { %p14515_p6 = scmp.lt.s32.totalorder %s14513_s18, %s14506_s13 }
 0x296   : > { %p14509_p0 = pnand %p14507_p13, %p15159_p7 }
 0x297   : > { %p14516_p8 = por %p14515_p6, %p14514_p4 }
 0x298   : > { %p14510_p1 = pneg %p14509_p0 }
 0x29a   : > { %p14517_p9 = pnand %p14516_p8, %p14510_p1 }
 0x29c   : > { %14520 = shalt.err (!%p14517_p9)
}
 0x29d   : > { %s17556_s9 = sld [smem:[#allocation103_spill]]  ;;  %s14761_s4 = smov [#allocation36]  }
 0x29e   : > { %13436 = dma.hbm_to_vmem [thread:$0]  (!%p15147_p5), %s17555_s7, 16, %s1986_s14, [#allocation32]  }
 0x29f   : > { %s2013_s12 = sshll.u32 %s14761_s4, 4  ;;  %s2014_s12 = int_to_ptr.vmem [resolvable:$true] %s2013_s12 }
 0x2a3   : > { %s14521_s28 = scalar_lea.hbm %s17556_s9, 16 }
 0x2a4   : > { %p14522_p2 = scmp.ne.s32.totalorder %s17556_s9, %s14521_s28  ;;  %p14528_p11 = scmp.lt.u32.totalorder %s14521_s28, %s17556_s9 }
 0x2a6   : > { %p14524_p3 = pnand %p14522_p2, %p15159_p7 }
 0x2a8   : > { %p14525_p10 = pneg %p14524_p3 }
 0x2aa   : > { %p14530_p12 = pnand %p14528_p11, %p14525_p10 }
 0x2ac   : > { %14533 = shalt.err (!%p14530_p12)
}
 0x2ad   : > { %s14534_s10 = scalar_lea.vmem %s2014_s12, 16  ;;  %s14541_s13 = scalar_lea.vmem %s2014_s12, 32 }
 0x2ae   : > { %p14535_p13 = scmp.ne.s32.totalorder %s2014_s12, %s14534_s10  ;;  %p14542_p4 = scmp.lt.s32.totalorder %s2014_s12, %s2014_s12 }
 0x2af   : > { %p14543_p6 = scmp.lt.s32.totalorder %s14541_s13, %s14534_s10 }
 0x2b0   : > { %p14537_p0 = pnand %p14535_p13, %p15159_p7 }
 0x2b1   : > { %p14544_p8 = por %p14543_p6, %p14542_p4 }
 0x2b2   : > { %p14538_p1 = pneg %p14537_p0 }
 0x2b4   : > { %p14545_p9 = pnand %p14544_p8, %p14538_p1 }
 0x2b6   : > { %14548 = shalt.err (!%p14545_p9)
}
 0x2b7   : > { %13442 = dma.hbm_to_vmem [thread:$0]  (!%p15147_p5), %s17556_s9, 16, %s2014_s12, [#allocation35]  }
 0x2b8   : > { %p17557_p2 = scmp.ne.s32.totalorder %s17542_s1, 0 }
 0x2b9   : > { %p17558_p3 = scmp.eq.s32.totalorder (!%p17557_p2), %s15130_s0, 0 }
 0x2ba   : > { %2049 = sbr.rel (%p17557_p2) target bundleno = 7614 (0x1dbe), region = 292 }
 0x2c1   : > { %14586 = dma.done.wait (%p17558_p3), [#allocation3], 48   ;;  %p17559_p10 = pmov %p17558_p3 }
 0x2c2   : > { %p17560_p7 = pmov %p17558_p3 }
 0x2c3   : > { %14588 = vsyncadd (%p17559_p10), [#allocation3], 4294967248 }
 0x2c4   : > { %14590 = dma.done.wait (%p17560_p7), [#allocation5], 96   ;;  %p17561_p11 = pmov %p17558_p3 }
 0x2c5   : > { %p17562_p12 = pmov %p17558_p3 }
 0x2c6   : > { %14592 = vsyncadd (%p17561_p11), [#allocation5], 4294967200 }
 0x2c7   : > { %14594 = dma.done.wait (%p17562_p12), [#allocation8], 32   ;;  %p17563_p5 = pmov %p17558_p3 }
 0x2c8   : > { %p17564_p13 = pmov %p17558_p3 }
 0x2c9   : > { %14596 = vsyncadd (%p17563_p5), [#allocation8], 4294967264 }
 0x2ca   : > { %14598 = dma.done.wait (%p17564_p13), [#allocation11], 32   ;;  %p17565_p0 = pmov %p17558_p3 }
 0x2cc   : > { %14600 = vsyncadd (%p17565_p0), [#allocation11], 4294967264  ;;  %p17566_p1 = pmov %p17565_p0 }
 0x2cd   : > { %p17567_p4 = pmov %p17565_p0 }
 0x2ce   : > { %14602 = dma.done.wait (%p17566_p1), [#allocation14], 224  }
 0x2cf   : > { %14604 = vsyncadd (%p17567_p4), [#allocation14], 4294967072  ;;  %p17568_p6 = pmov %p17565_p0 }
 0x2d0   : > { %p17569_p8 = pmov %p17565_p0 }
 0x2d1   : > { %14606 = dma.done.wait (%p17568_p6), [#allocation17], 128  }
 0x2d2   : > { %14608 = vsyncadd (%p17569_p8), [#allocation17], 4294967168  ;;  %p17570_p9 = pmov %p17565_p0 }
 0x2d3   : > { %p17571_p2 = pmov %p17565_p0 }
 0x2d4   : > { %14610 = dma.done.wait (%p17570_p9), [#allocation20], 32  }
 0x2d5   : > { %14612 = vsyncadd (%p17571_p2), [#allocation20], 4294967264  ;;  %p17572_p3 = pmov %p17565_p0 }
 0x2d6   : > { %p17573_p10 = pmov %p17565_p0 }
 0x2d7   : > { %14614 = dma.done.wait (%p17572_p3), [#allocation23], 32  }
 0x2d8   : > { %14616 = vsyncadd (%p17573_p10), [#allocation23], 4294967264  ;;  %p17574_p7 = pmov %p17565_p0 }
 0x2d9   : > { %p17575_p11 = pmov %p17565_p0 }
 0x2da   : > { %14618 = dma.done.wait (%p17574_p7), [#allocation26], 96  }
 0x2db   : > { %14620 = vsyncadd (%p17575_p11), [#allocation26], 4294967200  ;;  %p17576_p12 = pmov %p17565_p0 }
 0x2dc   : > { %p17577_p5 = pmov %p17565_p0 }
 0x2dd   : > { %14622 = dma.done.wait (%p17576_p12), [#allocation29], 64  }
 0x2de   : > { %14624 = vsyncadd (%p17577_p5), [#allocation29], 4294967232  ;;  %p17578_p13 = pmov %p17565_p0 }
 0x2e0   : > { %14626 = dma.done.wait (%p17578_p13), [#allocation32], 32  }
 0x2e1   : > { %14628 = vsyncadd (%p17565_p0), [#allocation32], 4294967264  ;;  %p17579_p1 = pmov %p17565_p0 }
 0x2e2   : > { %p17580_p4 = pmov %p17565_p0 }
 0x2e3   : > { %14630 = dma.done.wait (%p17579_p1), [#allocation35], 32  }
 0x2e4   : > { %14632 = vsyncadd (%p17580_p4), [#allocation35], 4294967264  ;;  %s17581_s3 = sld [smem:[#allocation108_spill]]  ;;  %s17582_s14 = sld [smem:[#allocation69_spill]]  ;;  %vm2419_vm0 = vcmask 1044480   ;;  %vm2420_vm1 = vcmask 1045504  }
 0x2e5   : > { %s17583_s1 = sld [smem:[#allocation49_spill]]  ;;  %p2290_p6 = scmp.lt.s32.totalorder %s15130_s0, 1  ;;  %v14762_v0 = vmov 65535   ;;  %vm2370_vm2 = vcmask 220160   ;;  %vm14764_vm3 = vmmov 0   ;;  %vm3738_vm4 = vcmask 523264  }
 0x2e6   : > { %s17584_s15 = sld [smem:[#allocation51_spill]]  ;;  %v2421_v1 = vsel %vm2419_vm0, 4294967295, %v14762_v0  ;;  %s17586_s28 = sld [smem:[#allocation50_spill]]  ;;  %vm4301_vm5 = vcmask 1043456   ;;  %vm4297_vm6 = vcmask 195584  }
 0x2e7   : > { %s17640_s0 = smov (!%p2290_p6, %s15130_s0), 1  ;;  %v2422_v9 = vsel %vm2420_vm1, %v2421_v1, 0  ;;  %s17587_s10 = sld [smem:[#allocation67_spill]] }
 0x2e8   : > { %s11150_s2 = sshll.u32 %s17640_s0, 3  ;;  %s11748_s18 = sshll.u32 %s17640_s0, 8 }
 0x2e9   : > { %s17585_s0 = sld [smem:[#allocation54_spill]] }
 0x2ea   : > { %s15490_s4 = scalar_lea.vmem %s17581_s3, %s11150_s2  ;;  %v15493_v2 = vld [vmem:[%s17582_s14] sm:$0xf]  ;;  %v15496_v3 = vld [vmem:[%s17582_s14 + $0x4] sm:$0xf]  ;;  %v15499_v4 = vld [vmem:[%s17582_s14 + $0x8] sm:$0xf] }
 0x2eb   : > { %v15502_v5 = vld [vmem:[%s17582_s14 + $0xc] sm:$0xf]  ;;  %v15505_v6 = vld [vmem:[%s17582_s14 + $0x10] sm:$0xf]  ;;  %v15508_v7 = vld [vmem:[%s17582_s14 + $0x14] sm:$0xf]  ;;  %s15511_s12 = scalar_lea.vmem %s17583_s1, %s11748_s18 }
 0x2ec   : > { %v13666_v8 = vld [vmem:[%s17584_s15] sm:$0xff]   ;;  %v13667_v10 = vld [vmem:[%s17584_s15 + $0x8] sm:$0x3f]   ;;  %v2302_v17 = vld [vmem:[%s15511_s12 + $0x10] sm:$0xff]  ;;  %s17588_s13 = sld [smem:[#allocation62_spill]]  ;;  %s17589_s1 = sld [smem:[#allocation64_spill]] }
 0x2ed   : > { %12433 = vmatprep.subr.bf16.mxu0 %v13666_v8  ;;  %13255 = vmatprep.subr.bf16.mxu1 %v13666_v8  ;;  %v2300_v11 = vld [vmem:[%s15511_s12] sm:$0xff]  ;;  %v2301_v12 = vld [vmem:[%s15511_s12 + $0x8] sm:$0xff]  ;;  %v2424_v14 = vand.u32 %v13667_v10, %v2422_v9  ;;  %v2303_v18 = vld [vmem:[%s15511_s12 + $0x18] sm:$0xff]  ;;  %s17590_s2 = sld [smem:[#allocation60_spill]]  ;;  %s17591_s18 = sld [smem:[#allocation59_spill]] }
 0x2ee   : > { %v2316_v13 = vld [vmem:[%s15511_s12 + $0x80] sm:$0xff]  ;;  %12434 = vmatpush3.bf16.msra.mxu0 %v13666_v8  ;;  %13257 = vmatpush3.bf16.msra.mxu1 %v13666_v8  ;;  %v2337_v15 = vpack.c.bf16 %v2301_v12, %v2300_v11  ;;  %v2317_v16 = vld [vmem:[%s15511_s12 + $0x88] sm:$0xff]  ;;  %v2318_v20 = vld [vmem:[%s15511_s12 + $0x90] sm:$0xff]  ;;  %v2338_v26 = vpack.c.bf16 %v2303_v18, %v2302_v17 }
 0x2ef   : > { %v2345_v19 = vpack.c.bf16 %v2317_v16, %v2316_v13  ;;  %v2319_v21 = vld [vmem:[%s15511_s12 + $0x98] sm:$0xff]  ;;  %v2304_v22 = vld [vmem:[%s15511_s12 + $0x20] sm:$0xff]  ;;  %12435 = vmatprep.subr.bf16.mxu0 %v2424_v14  ;;  %13256 = vmatprep.subr.bf16.mxu1 %v2424_v14  ;;  %v2305_v23 = vld [vmem:[%s15511_s12 + $0x28] sm:$0xff] }
 0x2f0   : > { %v2320_v24 = vld [vmem:[%s15511_s12 + $0xa0] sm:$0xff]  ;;  %v2321_v25 = vld [vmem:[%s15511_s12 + $0xa8] sm:$0xff]  ;;  %12437 = vmatprep.mubr.msk.bf16.mxu0 %vm2370_vm2, %v2337_v15  ;;  %v2346_v27 = vpack.c.bf16 %v2319_v21, %v2318_v20  ;;  %v2339_v28 = vpack.c.bf16 %v2305_v23, %v2304_v22  ;;  %v2306_v30 = vld [vmem:[%s15511_s12 + $0x30] sm:$0xff] }
 0x2f1   : > { %12453 = vmatprep.mubr.msk.bf16.mxu1 %vm2370_vm2, %v2345_v19  ;;  %v2347_v29 = vpack.c.bf16 %v2321_v25, %v2320_v24  ;;  %v2307_v31 = vld [vmem:[%s15511_s12 + $0x38] sm:$0xff]  ;;  %v2322_v32 = vld [vmem:[%s15511_s12 + $0xb0] sm:$0xff]  ;;  %v2308_v34 = vld [vmem:[%s15511_s12 + $0x40] sm:$0xff] }
 0x2f2   : > { %12436 = vmatpush3.bf16.msra.mxu0 %v2424_v14  ;;  %13258 = vmatpush3.bf16.msra.mxu1 %v2424_v14  ;;  %v2323_v33 = vld [vmem:[%s15511_s12 + $0xb8] sm:$0xff]  ;;  %v2309_v35 = vld [vmem:[%s15511_s12 + $0x48] sm:$0xff]  ;;  %v2324_v36 = vld [vmem:[%s15511_s12 + $0xc0] sm:$0xff]  ;;  %v2340_v38 = vpack.c.bf16 %v2307_v31, %v2306_v30 }
 0x2f3   : > { %v2325_v37 = vld [vmem:[%s15511_s12 + $0xc8] sm:$0xff]  ;;  %v2348_v39 = vpack.c.bf16 %v2323_v33, %v2322_v32  ;;  %v2341_v40 = vpack.c.bf16 %v2309_v35, %v2308_v34  ;;  %v2310_v42 = vld [vmem:[%s15511_s12 + $0x50] sm:$0xff]  ;;  %v2311_v43 = vld [vmem:[%s15511_s12 + $0x58] sm:$0xff] }
 0x2f4   : > { %v2349_v41 = vpack.c.bf16 %v2325_v37, %v2324_v36  ;;  %v2326_v44 = vld [vmem:[%s15511_s12 + $0xd0] sm:$0xff]  ;;  %v2327_v45 = vld [vmem:[%s15511_s12 + $0xd8] sm:$0xff]  ;;  %v2312_v46 = vld [vmem:[%s15511_s12 + $0x60] sm:$0xff]  ;;  %v2342_v50 = vpack.c.bf16 %v2311_v43, %v2310_v42 }
 0x2f5   : > { %12438 = vmatmul.mubr.msk.bf16.vlgmr.msra.gmra.mrb[0].mxu0 %vm2370_vm2, %v2338_v26  ;;  %12454 = vmatmul.mubr.msk.bf16.vlgmr.msra.gmra.mrb[0].mxu1 %vm2370_vm2, %v2346_v27  ;;  %v2313_v47 = vld [vmem:[%s15511_s12 + $0x68] sm:$0xff]  ;;  %v2328_v48 = vld [vmem:[%s15511_s12 + $0xe0] sm:$0xff]  ;;  %v2350_v51 = vpack.c.bf16 %v2327_v45, %v2326_v44  ;;  %v2314_v54 = vld [vmem:[%s15511_s12 + $0x70] sm:$0xff] }
 0x2f6   : > { %12441 = vmatprep.mubr.msk.bf16.mxu0 %vm2370_vm2, %v2339_v28  ;;  %12457 = vmatprep.mubr.msk.bf16.mxu1 %vm2370_vm2, %v2347_v29  ;;  %v2329_v49 = vld [vmem:[%s15511_s12 + $0xe8] sm:$0xff]  ;;  %v2343_v52 = vpack.c.bf16 %v2313_v47, %v2312_v46  ;;  %v2315_v55 = vld [vmem:[%s15511_s12 + $0x78] sm:$0xff]  ;;  %v2330_v56 = vld [vmem:[%s15511_s12 + $0xf0] sm:$0xff] }
 0x2f7   : > { %v2351_v53 = vpack.c.bf16 %v2329_v49, %v2328_v48  ;;  %v2331_v57 = vld [vmem:[%s15511_s12 + $0xf8] sm:$0xff]  ;;  %v2344_v58 = vpack.c.bf16 %v2315_v55, %v2314_v54  ;;  %v13670_v60 = vld [vmem:[%s17585_s0 + $0x4] ss:$8 sps:$4 sm:$0xff]   ;;  %v15566_v62 = vld [vmem:[%s17586_s28] ss:$0 sm:$0xff]  ;;  %s17592_s12 = sld [smem:[#allocation66_spill]] }
 0x2f8   : > { %v2352_v59 = vpack.c.bf16 %v2331_v57, %v2330_v56  ;;  %v13673_v61 = vld [vmem:[%s17585_s0 + $0x84] ss:$8 sps:$4 sm:$0xff]   ;;  %s17593_s28 = sld [smem:[#allocation63_spill]] }
 0x2fd   : > { %12442 = vmatmul.mubr.msk.bf16.gmra.mrb[4].mxu0 %vm2370_vm2, %v2340_v38  ;;  %12458 = vmatmul.mubr.msk.bf16.gmra.mrb[4].mxu1 %vm2370_vm2, %v2348_v39 }
 0x2fe   : > { %12445 = vmatprep.mubr.msk.bf16.mxu0 %vm2370_vm2, %v2341_v40  ;;  %12461 = vmatprep.mubr.msk.bf16.mxu1 %vm2370_vm2, %v2349_v41 }
 0x305   : > { %12446 = vmatmul.mubr.msk.bf16.gmra.mrb[8].mxu0 %vm2370_vm2, %v2342_v50  ;;  %12462 = vmatmul.mubr.msk.bf16.gmra.mrb[8].mxu1 %vm2370_vm2, %v2350_v51 }
 0x306   : > { %12449 = vmatprep.mubr.msk.bf16.mxu0 %vm2370_vm2, %v2343_v52  ;;  %12465 = vmatprep.mubr.msk.bf16.mxu1 %vm2370_vm2, %v2351_v53 }
 0x30d   : > { %12450 = vmatmul.mubr.msk.bf16.gmra.mrb[12].mxu0 %vm2370_vm2, %v2344_v58  ;;  %12466 = vmatmul.mubr.msk.bf16.gmra.mrb[12].mxu1 %vm2370_vm2, %v2352_v59 }
 0x30e   : > { %2715 = vmatprep.mubr.bf16.mxu1 %v13670_v60  ;;  %2951 = vmatprep.mubr.bf16.mxu0 %v13673_v61 }
 0x3c8   : > { %v12439_v63 = vpop.f32.mrb[0].mxu0  ;;  %v12455_v0 = vpop.f32.mrb[0].mxu1 }
 0x3c9   : > { %v2469_v1 = vadd.f32 %v12439_v63, %v15566_v62  ;;  %v2533_v8 = vadd.f32 %v12455_v0, %v15566_v62  ;;  %v2460_v9 = vpop.f32.mrb[1].mxu0  ;;  %v2524_v10 = vpop.f32.mrb[1].mxu1 }
 0x3ca   : > { %v2461_v11 = vadd.f32 %v15566_v62, %v2460_v9  ;;  %v2525_v12 = vadd.f32 %v15566_v62, %v2524_v10  ;;  %v12440_v13 = vpop.f32.mrb[2].mxu0  ;;  %v12456_v14 = vpop.f32.mrb[2].mxu1 }
 0x3cb   : > { %v2589_v15 = vmax.f32 %v2469_v1, 0.0  ;;  %v2472_v16 = vadd.f32 %v12440_v13, %v15566_v62  ;;  %v2536_v17 = vadd.f32 %v12456_v14, %v15566_v62  ;;  %v2463_v18 = vpop.f32.mrb[3].mxu0  ;;  %v2527_v19 = vpop.f32.mrb[3].mxu1  ;;  %v2605_v22 = vmax.f32 %v2533_v8, 0.0 }
 0x3cc   : > { %v2464_v20 = vadd.f32 %v15566_v62, %v2463_v18  ;;  %v2528_v21 = vadd.f32 %v15566_v62, %v2527_v19  ;;  %v2587_v25 = vmax.f32 %v2461_v11, 0.0  ;;  %v2603_v26 = vmax.f32 %v2525_v12, 0.0 }
 0x3cd   : > { %v2590_v23 = vmax.f32 %v2472_v16, 0.0  ;;  %v2606_v24 = vmax.f32 %v2536_v17, 0.0 }
 0x3ce   : > { %v2588_v27 = vmax.f32 %v2464_v20, 0.0  ;;  %v2604_v28 = vmax.f32 %v2528_v21, 0.0 }
 0x3cf   : > { %v15576_v29 = vpack.c.bf16 %v2590_v23, %v2589_v15  ;;  %v15578_v30 = vpack.c.bf16 %v2606_v24, %v2605_v22 }
 0x3d0   : > { %v15580_v31 = vpack.c.bf16 %v2588_v27, %v2587_v25  ;;  %v15582_v32 = vpack.c.bf16 %v2604_v28, %v2603_v26  ;;  %v12443_v33 = vpop.f32.mrb[4].mxu0  ;;  %v12459_v34 = vpop.f32.mrb[4].mxu1 }
 0x3d1   : > { %v2485_v35 = vadd.f32 %v12443_v33, %v15566_v62  ;;  %v2549_v36 = vadd.f32 %v12459_v34, %v15566_v62  ;;  %v2476_v37 = vpop.f32.mrb[5].mxu0  ;;  %v2540_v38 = vpop.f32.mrb[5].mxu1 }
 0x3d2   : > { %v2477_v39 = vadd.f32 %v15566_v62, %v2476_v37  ;;  %v2541_v40 = vadd.f32 %v15566_v62, %v2540_v38  ;;  %v12444_v41 = vpop.f32.mrb[6].mxu0  ;;  %v12460_v42 = vpop.f32.mrb[6].mxu1  ;;  %11773 = vmatprep.subr.bf16.mxu1 %v15582_v32  ;;  %11853 = vmatprep.subr.bf16.mxu0 %v15582_v32 }
 0x3d3   : > { %v2593_v43 = vmax.f32 %v2485_v35, 0.0  ;;  %v2488_v44 = vadd.f32 %v12444_v41, %v15566_v62  ;;  %v2552_v45 = vadd.f32 %v12460_v42, %v15566_v62  ;;  %v2479_v46 = vpop.f32.mrb[7].mxu0  ;;  %v2543_v47 = vpop.f32.mrb[7].mxu1  ;;  %11774 = vmatpush3.bf16.msra.mxu1 %v15580_v31  ;;  %11854 = vmatpush3.bf16.msra.mxu0 %v15580_v31  ;;  %v2609_v50 = vmax.f32 %v2549_v36, 0.0 }
 0x3d4   : > { %v2480_v48 = vadd.f32 %v15566_v62, %v2479_v46  ;;  %v2544_v49 = vadd.f32 %v15566_v62, %v2543_v47  ;;  %11775 = vmatprep.subr.bf16.mxu1 %v15578_v30  ;;  %11855 = vmatprep.subr.bf16.mxu0 %v15578_v30  ;;  %v2591_v53 = vmax.f32 %v2477_v39, 0.0  ;;  %v2607_v54 = vmax.f32 %v2541_v40, 0.0 }
 0x3d5   : > { %v2594_v51 = vmax.f32 %v2488_v44, 0.0  ;;  %v2610_v52 = vmax.f32 %v2552_v45, 0.0 }
 0x3d6   : > { %v2592_v55 = vmax.f32 %v2480_v48, 0.0  ;;  %v2608_v56 = vmax.f32 %v2544_v49, 0.0 }
 0x3d7   : > { %v15598_v57 = vpack.c.bf16 %v2594_v51, %v2593_v43  ;;  %v15600_v58 = vpack.c.bf16 %v2610_v52, %v2609_v50  ;;  %11776 = vmatpush3.bf16.msra.mxu1 %v15576_v29  ;;  %11856 = vmatpush3.bf16.msra.mxu0 %v15576_v29 }
 0x3d8   : > { %v15604_v59 = vpack.c.bf16 %v2592_v55, %v2591_v53  ;;  %v15606_v60 = vpack.c.bf16 %v2608_v56, %v2607_v54  ;;  %v12447_v61 = vpop.f32.mrb[8].mxu0  ;;  %v12463_v63 = vpop.f32.mrb[8].mxu1 }
 0x3d9   : > { %v2501_v0 = vadd.f32 %v12447_v61, %v15566_v62  ;;  %v2565_v1 = vadd.f32 %v12463_v63, %v15566_v62  ;;  %v2492_v8 = vpop.f32.mrb[9].mxu0  ;;  %v2556_v9 = vpop.f32.mrb[9].mxu1 }
 0x3da   : > { %v2493_v10 = vadd.f32 %v15566_v62, %v2492_v8  ;;  %v2557_v11 = vadd.f32 %v15566_v62, %v2556_v9  ;;  %v12448_v12 = vpop.f32.mrb[10].mxu0  ;;  %v12464_v13 = vpop.f32.mrb[10].mxu1  ;;  %11777 = vmatprep.subr.bf16.mxu1 %v15606_v60  ;;  %11857 = vmatprep.subr.bf16.mxu0 %v15606_v60 }
 0x3db   : > { %v2597_v14 = vmax.f32 %v2501_v0, 0.0  ;;  %v2504_v15 = vadd.f32 %v12448_v12, %v15566_v62  ;;  %v2568_v16 = vadd.f32 %v12464_v13, %v15566_v62  ;;  %v2495_v17 = vpop.f32.mrb[11].mxu0  ;;  %v2559_v18 = vpop.f32.mrb[11].mxu1  ;;  %11778 = vmatpush3.bf16.msra.mxu1 %v15604_v59  ;;  %11858 = vmatpush3.bf16.msra.mxu0 %v15604_v59  ;;  %v2613_v21 = vmax.f32 %v2565_v1, 0.0  ;;  %v13674_v12 = vld [vmem:[%s17585_s0 + $0x14] ss:$8 sps:$4 sm:$0xff]  }
 0x3dc   : > { %v2496_v19 = vadd.f32 %v15566_v62, %v2495_v17  ;;  %v2560_v20 = vadd.f32 %v15566_v62, %v2559_v18  ;;  %11779 = vmatprep.subr.bf16.mxu1 %v15600_v58  ;;  %11859 = vmatprep.subr.bf16.mxu0 %v15600_v58  ;;  %v2595_v24 = vmax.f32 %v2493_v10, 0.0  ;;  %v2611_v25 = vmax.f32 %v2557_v11, 0.0  ;;  %v13668_v10 = vld [vmem:[%s17585_s0] ss:$8 sps:$4 sm:$0xff]   ;;  %v13677_v13 = vld [vmem:[%s17585_s0 + $0x94] ss:$8 sps:$4 sm:$0xff]  }
 0x3dd   : > { %v2598_v22 = vmax.f32 %v2504_v15, 0.0  ;;  %v2614_v23 = vmax.f32 %v2568_v16, 0.0  ;;  %v13671_v11 = vld [vmem:[%s17585_s0 + $0x80] ss:$8 sps:$4 sm:$0xff]   ;;  %v13679_v15 = vld [vmem:[%s17585_s0 + $0x90] ss:$8 sps:$4 sm:$0xff]  }
 0x3de   : > { %v2596_v26 = vmax.f32 %v2496_v19, 0.0  ;;  %v2612_v27 = vmax.f32 %v2560_v20, 0.0  ;;  %v13680_v16 = vld [vmem:[%s17585_s0 + $0x24] ss:$8 sps:$4 sm:$0xff]   ;;  %v13682_v18 = vld [vmem:[%s17585_s0 + $0x20] ss:$8 sps:$4 sm:$0xff]  }
 0x3df   : > { %v15622_v28 = vpack.c.bf16 %v2598_v22, %v2597_v14  ;;  %v15624_v33 = vpack.c.bf16 %v2614_v23, %v2613_v21  ;;  %11780 = vmatpush3.bf16.msra.mxu1 %v15598_v57  ;;  %11860 = vmatpush3.bf16.msra.mxu0 %v15598_v57  ;;  %v13676_v14 = vld [vmem:[%s17585_s0 + $0x10] ss:$8 sps:$4 sm:$0xff]   ;;  %v13683_v17 = vld [vmem:[%s17585_s0 + $0xa4] ss:$8 sps:$4 sm:$0xff]   ;;  %v13685_v19 = vld [vmem:[%s17585_s0 + $0xa0] ss:$8 sps:$4 sm:$0xff]  }
 0x3e0   : > { %v15628_v34 = vpack.c.bf16 %v2596_v26, %v2595_v24  ;;  %v15630_v35 = vpack.c.bf16 %v2612_v27, %v2611_v25  ;;  %v12451_v36 = vpop.f32.mrb[12].mxu0  ;;  %v12467_v37 = vpop.f32.mrb[12].mxu1  ;;  %v13686_v20 = vld [vmem:[%s17585_s0 + $0x34] ss:$8 sps:$4 sm:$0xff]   ;;  %v13688_v22 = vld [vmem:[%s17585_s0 + $0x30] ss:$8 sps:$4 sm:$0xff]  }
 0x3e1   : > { %v2517_v38 = vadd.f32 %v12451_v36, %v15566_v62  ;;  %v2581_v39 = vadd.f32 %v12467_v37, %v15566_v62  ;;  %v2508_v40 = vpop.f32.mrb[13].mxu0  ;;  %v2572_v41 = vpop.f32.mrb[13].mxu1  ;;  %v13689_v21 = vld [vmem:[%s17585_s0 + $0xb4] ss:$8 sps:$4 sm:$0xff]   ;;  %v13691_v23 = vld [vmem:[%s17585_s0 + $0xb0] ss:$8 sps:$4 sm:$0xff]  }
 0x3e2   : > { %v2509_v42 = vadd.f32 %v15566_v62, %v2508_v40  ;;  %v2573_v43 = vadd.f32 %v15566_v62, %v2572_v41  ;;  %v12452_v44 = vpop.f32.mrb[14].mxu0  ;;  %v12468_v45 = vpop.f32.mrb[14].mxu1  ;;  %11781 = vmatprep.subr.bf16.mxu1 %v15630_v35  ;;  %11861 = vmatprep.subr.bf16.mxu0 %v15630_v35  ;;  %v13694_v24 = vld [vmem:[%s17585_s0 + $0x44] ss:$8 sps:$4 sm:$0xff]   ;;  %v13692_v26 = vld [vmem:[%s17585_s0 + $0x40] ss:$8 sps:$4 sm:$0xff]  }
 0x3e3   : > { %v2601_v46 = vmax.f32 %v2517_v38, 0.0  ;;  %v2520_v47 = vadd.f32 %v12452_v44, %v15566_v62  ;;  %v2584_v48 = vadd.f32 %v12468_v45, %v15566_v62  ;;  %v2511_v49 = vpop.f32.mrb[15].mxu0  ;;  %v2575_v50 = vpop.f32.mrb[15].mxu1  ;;  %11782 = vmatpush3.bf16.msra.mxu1 %v15628_v34  ;;  %11862 = vmatpush3.bf16.msra.mxu0 %v15628_v34  ;;  %v2617_v53 = vmax.f32 %v2581_v39, 0.0  ;;  %v13697_v25 = vld [vmem:[%s17585_s0 + $0x104] ss:$8 sps:$4 sm:$0xff]  }
 0x3e4   : > { %v2512_v51 = vadd.f32 %v15566_v62, %v2511_v49  ;;  %v2576_v52 = vadd.f32 %v15566_v62, %v2575_v50  ;;  %11783 = vmatprep.subr.bf16.mxu1 %v15624_v33  ;;  %11863 = vmatprep.subr.bf16.mxu0 %v15624_v33  ;;  %v2599_v56 = vmax.f32 %v2509_v42, 0.0  ;;  %v2615_v61 = vmax.f32 %v2573_v43, 0.0  ;;  %v13695_v27 = vld [vmem:[%s17585_s0 + $0x100] ss:$8 sps:$4 sm:$0xff]   ;;  %v13698_v36 = vld [vmem:[%s17585_s0 + $0x54] ss:$8 sps:$4 sm:$0xff]  }
 0x3e5   : > { %v2602_v54 = vmax.f32 %v2520_v47, 0.0  ;;  %v2618_v55 = vmax.f32 %v2584_v48, 0.0  ;;  %v13701_v37 = vld [vmem:[%s17585_s0 + $0x114] ss:$8 sps:$4 sm:$0xff]   ;;  %v13700_v38 = vld [vmem:[%s17585_s0 + $0x50] ss:$8 sps:$4 sm:$0xff]  }
 0x3e6   : > { %v2600_v63 = vmax.f32 %v2512_v51, 0.0  ;;  %v2616_v0 = vmax.f32 %v2576_v52, 0.0  ;;  %v13703_v39 = vld [vmem:[%s17585_s0 + $0x110] ss:$8 sps:$4 sm:$0xff]   ;;  %v13704_v40 = vld [vmem:[%s17585_s0 + $0x64] ss:$8 sps:$4 sm:$0xff]  }
 0x3e7   : > { %v15646_v1 = vpack.c.bf16 %v2602_v54, %v2601_v46  ;;  %v15648_v8 = vpack.c.bf16 %v2618_v55, %v2617_v53  ;;  %11784 = vmatpush3.bf16.msra.mxu1 %v15622_v28  ;;  %11864 = vmatpush3.bf16.msra.mxu0 %v15622_v28  ;;  %v13707_v41 = vld [vmem:[%s17585_s0 + $0x124] ss:$8 sps:$4 sm:$0xff]   ;;  %v13706_v42 = vld [vmem:[%s17585_s0 + $0x60] ss:$8 sps:$4 sm:$0xff]   ;;  %v13710_v44 = vld [vmem:[%s17585_s0 + $0x74] ss:$8 sps:$4 sm:$0xff]  }
 0x3e8   : > { %v15652_v62 = vpack.c.bf16 %v2600_v63, %v2599_v56  ;;  %v15654_v9 = vpack.c.bf16 %v2616_v0, %v2615_v61  ;;  %v13709_v43 = vld [vmem:[%s17585_s0 + $0x120] ss:$8 sps:$4 sm:$0xff]   ;;  %v13713_v45 = vld [vmem:[%s17585_s0 + $0x134] ss:$8 sps:$4 sm:$0xff]   ;;  %v13712_v46 = vld [vmem:[%s17585_s0 + $0x70] ss:$8 sps:$4 sm:$0xff]  }
 0x3e9   : > { %v13715_v47 = vld [vmem:[%s17585_s0 + $0x130] ss:$8 sps:$4 sm:$0xff]   ;;  %v13718_v48 = vld [vmem:[%s17585_s0 + $0xc4] ss:$8 sps:$4 sm:$0xff]   ;;  %v13716_v50 = vld [vmem:[%s17585_s0 + $0xc0] ss:$8 sps:$4 sm:$0xff]  }
 0x3ea   : > { %11785 = vmatprep.subr.bf16.mxu1 %v15654_v9  ;;  %11865 = vmatprep.subr.bf16.mxu0 %v15654_v9  ;;  %v13721_v49 = vld [vmem:[%s17585_s0 + $0x184] ss:$8 sps:$4 sm:$0xff]   ;;  %v13719_v51 = vld [vmem:[%s17585_s0 + $0x180] ss:$8 sps:$4 sm:$0xff]   ;;  %v13722_v52 = vld [vmem:[%s17585_s0 + $0xd4] ss:$8 sps:$4 sm:$0xff]  }
 0x3eb   : > { %11786 = vmatpush3.bf16.msra.mxu1 %v15652_v62  ;;  %11866 = vmatpush3.bf16.msra.mxu0 %v15652_v62  ;;  %v13734_v53 = vld [vmem:[%s17585_s0 + $0x194] ss:$8 sps:$4 sm:$0xff]   ;;  %v13724_v54 = vld [vmem:[%s17585_s0 + $0xd0] ss:$8 sps:$4 sm:$0xff]   ;;  %v13725_v56 = vld [vmem:[%s17585_s0 + $0xe4] ss:$8 sps:$4 sm:$0xff]  }
 0x3ec   : > { %11787 = vmatprep.subr.bf16.mxu1 %v15648_v8  ;;  %11867 = vmatprep.subr.bf16.mxu0 %v15648_v8  ;;  %v13738_v55 = vld [vmem:[%s17585_s0 + $0x190] ss:$8 sps:$4 sm:$0xff]   ;;  %v13740_v61 = vld [vmem:[%s17585_s0 + $0x1a4] ss:$8 sps:$4 sm:$0xff]   ;;  %v13727_v63 = vld [vmem:[%s17585_s0 + $0xe0] ss:$8 sps:$4 sm:$0xff]  }
 0x3ed   : > { %v13744_v0 = vld [vmem:[%s17585_s0 + $0x1a0] ss:$8 sps:$4 sm:$0xff]  }
 0x3ef   : > { %11788 = vmatpush3.bf16.msra.mxu1 %v15646_v1  ;;  %11868 = vmatpush3.bf16.msra.mxu0 %v15646_v1 }
 0x3f0   : > { %11813 = vmatprep.subr.bf16.mxu1 %v15582_v32  ;;  %11933 = vmatprep.subr.bf16.mxu0 %v15582_v32 }
 0x3f2   : > { %2716 = vmatmul.mubr.bf16.vlgmr.msra.gmra.mrb[16].mxu1 %v13668_v10  ;;  %2952 = vmatmul.mubr.bf16.vlgmr.msra.gmra.mrb[16].mxu0 %v13671_v11  ;;  %v13728_v10 = vld [vmem:[%s17585_s0 + $0xf4] ss:$8 sps:$4 sm:$0xff]  }
 0x3f3   : > { %11814 = vmatpush3.bf16.msra.mxu1 %v15580_v31  ;;  %11934 = vmatpush3.bf16.msra.mxu0 %v15580_v31  ;;  %v13746_v11 = vld [vmem:[%s17585_s0 + $0x1b4] ss:$8 sps:$4 sm:$0xff]  }
 0x3f4   : > { %11815 = vmatprep.subr.bf16.mxu1 %v15578_v30  ;;  %11935 = vmatprep.subr.bf16.mxu0 %v15578_v30 }
 0x3f5   : > { %2723 = vmatprep.mubr.bf16.mxu1 %v13674_v12  ;;  %2959 = vmatprep.mubr.bf16.mxu0 %v13677_v13  ;;  %v13730_v12 = vld [vmem:[%s17585_s0 + $0xf0] ss:$8 sps:$4 sm:$0xff]  }
 0x3f6   : > { %v13750_v13 = vld [vmem:[%s17585_s0 + $0x1b0] ss:$8 sps:$4 sm:$0xff]  }
 0x3f7   : > { %11816 = vmatpush3.bf16.msra.mxu1 %v15576_v29  ;;  %11936 = vmatpush3.bf16.msra.mxu0 %v15576_v29 }
 0x3f8   : > { %11817 = vmatprep.subr.bf16.mxu1 %v15606_v60  ;;  %11937 = vmatprep.subr.bf16.mxu0 %v15606_v60 }
 0x3fa   : > { %2724 = vmatmul.mubr.bf16.gmra.mrb[20].mxu1 %v13676_v14  ;;  %2960 = vmatmul.mubr.bf16.gmra.mrb[20].mxu0 %v13679_v15  ;;  %v13733_v14 = vld [vmem:[%s17585_s0 + $0x144] ss:$8 sps:$4 sm:$0xff]  }
 0x3fb   : > { %11818 = vmatpush3.bf16.msra.mxu1 %v15604_v59  ;;  %11938 = vmatpush3.bf16.msra.mxu0 %v15604_v59  ;;  %v13754_v15 = vld [vmem:[%s17585_s0 + $0x204] ss:$8 sps:$4 sm:$0xff]  }
 0x3fc   : > { %11819 = vmatprep.subr.bf16.mxu1 %v15600_v58  ;;  %11939 = vmatprep.subr.bf16.mxu0 %v15600_v58 }
 0x3fd   : > { %2731 = vmatprep.mubr.bf16.mxu1 %v13680_v16  ;;  %2967 = vmatprep.mubr.bf16.mxu0 %v13683_v17  ;;  %v13731_v16 = vld [vmem:[%s17585_s0 + $0x140] ss:$8 sps:$4 sm:$0xff]  }
 0x3fe   : > { %v13752_v17 = vld [vmem:[%s17585_s0 + $0x200] ss:$8 sps:$4 sm:$0xff]  }
 0x3ff   : > { %11820 = vmatpush3.bf16.msra.mxu1 %v15598_v57  ;;  %11940 = vmatpush3.bf16.msra.mxu0 %v15598_v57 }
 0x400   : > { %11821 = vmatprep.subr.bf16.mxu1 %v15630_v35  ;;  %11941 = vmatprep.subr.bf16.mxu0 %v15630_v35 }
 0x402   : > { %2732 = vmatmul.mubr.bf16.gmra.mrb[24].mxu1 %v13682_v18  ;;  %2968 = vmatmul.mubr.bf16.gmra.mrb[24].mxu0 %v13685_v19  ;;  %v13736_v18 = vld [vmem:[%s17585_s0 + $0x154] ss:$8 sps:$4 sm:$0xff]  }
 0x403   : > { %11822 = vmatpush3.bf16.msra.mxu1 %v15628_v34  ;;  %11942 = vmatpush3.bf16.msra.mxu0 %v15628_v34  ;;  %v13758_v19 = vld [vmem:[%s17585_s0 + $0x214] ss:$8 sps:$4 sm:$0xff]  }
 0x404   : > { %11823 = vmatprep.subr.bf16.mxu1 %v15624_v33  ;;  %11943 = vmatprep.subr.bf16.mxu0 %v15624_v33 }
 0x405   : > { %2739 = vmatprep.mubr.bf16.mxu1 %v13686_v20  ;;  %2975 = vmatprep.mubr.bf16.mxu0 %v13689_v21  ;;  %v13739_v20 = vld [vmem:[%s17585_s0 + $0x150] ss:$8 sps:$4 sm:$0xff]  }
 0x406   : > { %v13762_v21 = vld [vmem:[%s17585_s0 + $0x210] ss:$8 sps:$4 sm:$0xff]  }
 0x407   : > { %11824 = vmatpush3.bf16.msra.mxu1 %v15622_v28  ;;  %11944 = vmatpush3.bf16.msra.mxu0 %v15622_v28 }
 0x408   : > { %11825 = vmatprep.subr.bf16.mxu1 %v15654_v9  ;;  %11945 = vmatprep.subr.bf16.mxu0 %v15654_v9 }
 0x40a   : > { %2740 = vmatmul.mubr.bf16.gmra.mrb[28].mxu1 %v13688_v22  ;;  %2976 = vmatmul.mubr.bf16.gmra.mrb[28].mxu0 %v13691_v23  ;;  %v13742_v22 = vld [vmem:[%s17585_s0 + $0x164] ss:$8 sps:$4 sm:$0xff]   ;;  %v13772_v23 = vld [vmem:[%s17585_s0 + $0x1f4] ss:$8 sps:$4 sm:$0xff]  }
 0x40b   : > { %11826 = vmatpush3.bf16.msra.mxu1 %v15652_v62  ;;  %11946 = vmatpush3.bf16.msra.mxu0 %v15652_v62 }
 0x40c   : > { %11827 = vmatprep.subr.bf16.mxu1 %v15648_v8  ;;  %11947 = vmatprep.subr.bf16.mxu0 %v15648_v8 }
 0x40d   : > { %2829 = vmatprep.mubr.bf16.mxu1 %v13694_v24  ;;  %3195 = vmatprep.mubr.bf16.mxu0 %v13697_v25  ;;  %v13775_v24 = vld [vmem:[%s17585_s0 + $0x1f0] ss:$8 sps:$4 sm:$0xff]  }
 0x40f   : > { %11828 = vmatpush3.bf16.msra.mxu1 %v15646_v1  ;;  %11948 = vmatpush3.bf16.msra.mxu0 %v15646_v1 }
 0x410   : > { %11893 = vmatprep.subr.bf16.mxu1 %v15582_v32  ;;  %12013 = vmatprep.subr.bf16.mxu0 %v15582_v32 }
 0x412   : > { %2830 = vmatmul.mubr.bf16.vlgmr.msra.gmra.mrb[32].mxu1 %v13692_v26  ;;  %3196 = vmatmul.mubr.bf16.vlgmr.msra.gmra.mrb[32].mxu0 %v13695_v27 }
 0x413   : > { %11894 = vmatpush3.bf16.msra.mxu1 %v15580_v31  ;;  %12014 = vmatpush3.bf16.msra.mxu0 %v15580_v31 }
 0x414   : > { %11895 = vmatprep.subr.bf16.mxu1 %v15578_v30  ;;  %12015 = vmatprep.subr.bf16.mxu0 %v15578_v30 }
 0x415   : > { %2837 = vmatprep.mubr.bf16.mxu1 %v13698_v36  ;;  %3203 = vmatprep.mubr.bf16.mxu0 %v13701_v37 }
 0x417   : > { %11896 = vmatpush3.bf16.msra.mxu1 %v15576_v29  ;;  %12016 = vmatpush3.bf16.msra.mxu0 %v15576_v29 }
 0x418   : > { %11897 = vmatprep.subr.bf16.mxu1 %v15606_v60  ;;  %12017 = vmatprep.subr.bf16.mxu0 %v15606_v60 }
 0x41a   : > { %2838 = vmatmul.mubr.bf16.gmra.mrb[36].mxu1 %v13700_v38  ;;  %3204 = vmatmul.mubr.bf16.gmra.mrb[36].mxu0 %v13703_v39 }
 0x41b   : > { %11898 = vmatpush3.bf16.msra.mxu1 %v15604_v59  ;;  %12018 = vmatpush3.bf16.msra.mxu0 %v15604_v59 }
 0x41c   : > { %11899 = vmatprep.subr.bf16.mxu1 %v15600_v58  ;;  %12019 = vmatprep.subr.bf16.mxu0 %v15600_v58 }
 0x41d   : > { %2845 = vmatprep.mubr.bf16.mxu1 %v13704_v40  ;;  %3211 = vmatprep.mubr.bf16.mxu0 %v13707_v41 }
 0x41f   : > { %11900 = vmatpush3.bf16.msra.mxu1 %v15598_v57  ;;  %12020 = vmatpush3.bf16.msra.mxu0 %v15598_v57 }
 0x420   : > { %11901 = vmatprep.subr.bf16.mxu1 %v15630_v35  ;;  %12021 = vmatprep.subr.bf16.mxu0 %v15630_v35 }
 0x422   : > { %2846 = vmatmul.mubr.bf16.gmra.mrb[40].mxu1 %v13706_v42  ;;  %3212 = vmatmul.mubr.bf16.gmra.mrb[40].mxu0 %v13709_v43 }
 0x423   : > { %11902 = vmatpush3.bf16.msra.mxu1 %v15628_v34  ;;  %12022 = vmatpush3.bf16.msra.mxu0 %v15628_v34 }
 0x424   : > { %11903 = vmatprep.subr.bf16.mxu1 %v15624_v33  ;;  %12023 = vmatprep.subr.bf16.mxu0 %v15624_v33 }
 0x425   : > { %2853 = vmatprep.mubr.bf16.mxu1 %v13710_v44  ;;  %3219 = vmatprep.mubr.bf16.mxu0 %v13713_v45 }
 0x427   : > { %11904 = vmatpush3.bf16.msra.mxu1 %v15622_v28  ;;  %12024 = vmatpush3.bf16.msra.mxu0 %v15622_v28 }
 0x428   : > { %11905 = vmatprep.subr.bf16.mxu1 %v15654_v9  ;;  %12025 = vmatprep.subr.bf16.mxu0 %v15654_v9 }
 0x42a   : > { %2854 = vmatmul.mubr.bf16.gmra.mrb[44].mxu1 %v13712_v46  ;;  %3220 = vmatmul.mubr.bf16.gmra.mrb[44].mxu0 %v13715_v47 }
 0x42b   : > { %11906 = vmatpush3.bf16.msra.mxu1 %v15652_v62  ;;  %12026 = vmatpush3.bf16.msra.mxu0 %v15652_v62 }
 0x42c   : > { %11907 = vmatprep.subr.bf16.mxu1 %v15648_v8  ;;  %12027 = vmatprep.subr.bf16.mxu0 %v15648_v8 }
 0x42d   : > { %3073 = vmatprep.mubr.bf16.mxu1 %v13718_v48  ;;  %3439 = vmatprep.mubr.bf16.mxu0 %v13721_v49 }
 0x42f   : > { %11908 = vmatpush3.bf16.msra.mxu1 %v15646_v1  ;;  %12028 = vmatpush3.bf16.msra.mxu0 %v15646_v1 }
 0x430   : > { %11973 = vmatprep.subr.bf16.mxu1 %v15582_v32  ;;  %12093 = vmatprep.subr.bf16.mxu0 %v15582_v32 }
 0x432   : > { %3074 = vmatmul.mubr.bf16.vlgmr.msra.gmra.mrb[48].mxu1 %v13716_v50  ;;  %3440 = vmatmul.mubr.bf16.vlgmr.msra.gmra.mrb[48].mxu0 %v13719_v51 }
 0x433   : > { %11974 = vmatpush3.bf16.msra.mxu1 %v15580_v31  ;;  %12094 = vmatpush3.bf16.msra.mxu0 %v15580_v31 }
 0x434   : > { %11975 = vmatprep.subr.bf16.mxu1 %v15578_v30  ;;  %12095 = vmatprep.subr.bf16.mxu0 %v15578_v30 }
 0x435   : > { %3081 = vmatprep.mubr.bf16.mxu1 %v13722_v52  ;;  %3447 = vmatprep.mubr.bf16.mxu0 %v13734_v53  ;;  %v14763_v52 = vmov 0.0  }
 0x437   : > { %11976 = vmatpush3.bf16.msra.mxu1 %v15576_v29  ;;  %12096 = vmatpush3.bf16.msra.mxu0 %v15576_v29 }
 0x438   : > { %11977 = vmatprep.subr.bf16.mxu1 %v15606_v60  ;;  %12097 = vmatprep.subr.bf16.mxu0 %v15606_v60 }
 0x43a   : > { %3082 = vmatmul.mubr.bf16.gmra.mrb[52].mxu1 %v13724_v54  ;;  %3448 = vmatmul.mubr.bf16.gmra.mrb[52].mxu0 %v13738_v55 }
 0x43b   : > { %11978 = vmatpush3.bf16.msra.mxu1 %v15604_v59  ;;  %12098 = vmatpush3.bf16.msra.mxu0 %v15604_v59 }
 0x43c   : > { %11979 = vmatprep.subr.bf16.mxu1 %v15600_v58  ;;  %12099 = vmatprep.subr.bf16.mxu0 %v15600_v58 }
 0x43d   : > { %3089 = vmatprep.mubr.bf16.mxu1 %v13725_v56  ;;  %3455 = vmatprep.mubr.bf16.mxu0 %v13740_v61 }
 0x43f   : > { %11980 = vmatpush3.bf16.msra.mxu1 %v15598_v57  ;;  %12100 = vmatpush3.bf16.msra.mxu0 %v15598_v57 }
 0x440   : > { %11981 = vmatprep.subr.bf16.mxu1 %v15630_v35  ;;  %12101 = vmatprep.subr.bf16.mxu0 %v15630_v35 }
 0x442   : > { %3090 = vmatmul.mubr.bf16.gmra.mrb[56].mxu1 %v13727_v63  ;;  %3456 = vmatmul.mubr.bf16.gmra.mrb[56].mxu0 %v13744_v0 }
 0x443   : > { %11982 = vmatpush3.bf16.msra.mxu1 %v15628_v34  ;;  %12102 = vmatpush3.bf16.msra.mxu0 %v15628_v34 }
 0x444   : > { %11983 = vmatprep.subr.bf16.mxu1 %v15624_v33  ;;  %12103 = vmatprep.subr.bf16.mxu0 %v15624_v33 }
 0x445   : > { %3097 = vmatprep.mubr.bf16.mxu1 %v13728_v10  ;;  %3463 = vmatprep.mubr.bf16.mxu0 %v13746_v11 }
 0x447   : > { %11984 = vmatpush3.bf16.msra.mxu1 %v15622_v28  ;;  %12104 = vmatpush3.bf16.msra.mxu0 %v15622_v28 }
 0x448   : > { %11985 = vmatprep.subr.bf16.mxu1 %v15654_v9  ;;  %12105 = vmatprep.subr.bf16.mxu0 %v15654_v9 }
 0x44a   : > { %3098 = vmatmul.mubr.bf16.gmra.mrb[60].mxu1 %v13730_v12  ;;  %3464 = vmatmul.mubr.bf16.gmra.mrb[60].mxu0 %v13750_v13 }
 0x44b   : > { %11986 = vmatpush3.bf16.msra.mxu1 %v15652_v62  ;;  %12106 = vmatpush3.bf16.msra.mxu0 %v15652_v62 }
 0x44c   : > { %11987 = vmatprep.subr.bf16.mxu1 %v15648_v8  ;;  %12107 = vmatprep.subr.bf16.mxu0 %v15648_v8 }
 0x44d   : > { %3317 = vmatprep.mubr.bf16.mxu1 %v13733_v14  ;;  %3683 = vmatprep.mubr.bf16.mxu0 %v13754_v15 }
 0x44f   : > { %11988 = vmatpush3.bf16.msra.mxu1 %v15646_v1  ;;  %12108 = vmatpush3.bf16.msra.mxu0 %v15646_v1 }
 0x450   : > { %12053 = vmatprep.subr.bf16.mxu1 %v15582_v32  ;;  %v13764_v32 = vld [vmem:[%s17585_s0 + $0x224] ss:$8 sps:$4 sm:$0xff]   ;;  %12469 = vmatprep.subr.bf16.mxu0 %v14763_v52 }
 0x452   : > { %3318 = vmatmul.mubr.bf16.vlgmr.msra.gmra.mrb[64].mxu1 %v13731_v16  ;;  %3684 = vmatmul.mubr.bf16.vlgmr.msra.gmra.mrb[64].mxu0 %v13752_v17 }
 0x453   : > { %12054 = vmatpush3.bf16.msra.mxu1 %v15580_v31  ;;  %3325 = vmatprep.mubr.bf16.mxu1 %v13736_v18  ;;  %v13768_v31 = vld [vmem:[%s17585_s0 + $0x220] ss:$8 sps:$4 sm:$0xff]  }
 0x454   : > { %12055 = vmatprep.subr.bf16.mxu1 %v15578_v30  ;;  %3691 = vmatprep.mubr.bf16.mxu0 %v13758_v19  ;;  %v13745_v30 = vld [vmem:[%s17585_s0 + $0x160] ss:$8 sps:$4 sm:$0xff]  }
 0x457   : > { %12056 = vmatpush3.bf16.msra.mxu1 %v15576_v29  ;;  %v13748_v29 = vld [vmem:[%s17585_s0 + $0x174] ss:$8 sps:$4 sm:$0xff]  }
 0x458   : > { %12057 = vmatprep.subr.bf16.mxu1 %v15606_v60  ;;  %v13770_v60 = vld [vmem:[%s17585_s0 + $0x234] ss:$8 sps:$4 sm:$0xff]  }
 0x45a   : > { %3326 = vmatmul.mubr.bf16.gmra.mrb[68].mxu1 %v13739_v20  ;;  %3692 = vmatmul.mubr.bf16.gmra.mrb[68].mxu0 %v13762_v21 }
 0x45b   : > { %12058 = vmatpush3.bf16.msra.mxu1 %v15604_v59  ;;  %3333 = vmatprep.mubr.bf16.mxu1 %v13742_v22  ;;  %v13774_v59 = vld [vmem:[%s17585_s0 + $0x230] ss:$8 sps:$4 sm:$0xff]  }
 0x45c   : > { %12059 = vmatprep.subr.bf16.mxu1 %v15600_v58  ;;  %3699 = vmatprep.mubr.bf16.mxu0 %v13764_v32  ;;  %v13751_v58 = vld [vmem:[%s17585_s0 + $0x170] ss:$8 sps:$4 sm:$0xff]  }
 0x45f   : > { %12060 = vmatpush3.bf16.msra.mxu1 %v15598_v57  ;;  %v13757_v57 = vld [vmem:[%s17585_s0 + $0x1c4] ss:$8 sps:$4 sm:$0xff]  }
 0x460   : > { %12061 = vmatprep.subr.bf16.mxu1 %v15630_v35  ;;  %v13766_v35 = vld [vmem:[%s17585_s0 + $0x1e4] ss:$8 sps:$4 sm:$0xff]  }
 0x462   : > { %3334 = vmatmul.mubr.bf16.gmra.mrb[72].mxu1 %v13745_v30  ;;  %3700 = vmatmul.mubr.bf16.gmra.mrb[72].mxu0 %v13768_v31 }
 0x463   : > { %12062 = vmatpush3.bf16.msra.mxu1 %v15628_v34  ;;  %3341 = vmatprep.mubr.bf16.mxu1 %v13748_v29  ;;  %v13760_v34 = vld [vmem:[%s17585_s0 + $0x1d4] ss:$8 sps:$4 sm:$0xff]  }
 0x464   : > { %12063 = vmatprep.subr.bf16.mxu1 %v15624_v33  ;;  %3707 = vmatprep.mubr.bf16.mxu0 %v13770_v60  ;;  %v13755_v33 = vld [vmem:[%s17585_s0 + $0x1c0] ss:$8 sps:$4 sm:$0xff]  }
 0x467   : > { %12064 = vmatpush3.bf16.msra.mxu1 %v15622_v28  ;;  %v13763_v28 = vld [vmem:[%s17585_s0 + $0x1d0] ss:$8 sps:$4 sm:$0xff]  }
 0x468   : > { %12065 = vmatprep.subr.bf16.mxu1 %v15654_v9  ;;  %v13769_v9 = vld [vmem:[%s17585_s0 + $0x1e0] ss:$8 sps:$4 sm:$0xff]  }
 0x46a   : > { %3342 = vmatmul.mubr.bf16.gmra.mrb[76].mxu1 %v13751_v58  ;;  %3708 = vmatmul.mubr.bf16.gmra.mrb[76].mxu0 %v13774_v59 }
 0x46b   : > { %12066 = vmatpush3.bf16.msra.mxu1 %v15652_v62  ;;  %3561 = vmatprep.mubr.bf16.mxu1 %v13757_v57 }
 0x46c   : > { %12067 = vmatprep.subr.bf16.mxu1 %v15648_v8  ;;  %12477 = vmatprep.mubr.msk.bf16.mxu0 %vm14764_vm3, %v14763_v52 }
 0x46f   : > { %12068 = vmatpush3.bf16.msra.mxu1 %v15646_v1 }
 0x470   : > { %12493 = vmatprep.subr.bf16.mxu1 %v14763_v52 }
 0x472   : > { %3562 = vmatmul.mubr.bf16.vlgmr.msra.gmra.mrb[80].mxu1 %v13755_v33 }
 0x473   : > { %3569 = vmatprep.mubr.bf16.mxu1 %v13760_v34 }
 0x47a   : > { %3570 = vmatmul.mubr.bf16.gmra.mrb[84].mxu1 %v13763_v28 }
 0x47b   : > { %3577 = vmatprep.mubr.bf16.mxu1 %v13766_v35 }
 0x482   : > { %3578 = vmatmul.mubr.bf16.gmra.mrb[88].mxu1 %v13769_v9 }
 0x483   : > { %3585 = vmatprep.mubr.bf16.mxu1 %v13772_v23 }
 0x48a   : > { %3586 = vmatmul.mubr.bf16.gmra.mrb[92].mxu1 %v13775_v24 }
 0x48b   : > { %12501 = vmatprep.mubr.msk.bf16.mxu1 %vm14764_vm3, %v14763_v52 }
 0x4c5   : > { %v11789_v62 = vpop.f32.mrb[16].mxu1  ;;  %v11869_v25 = vpop.f32.mrb[16].mxu0 }
 0x4c6   : > { %v11790_v26 = vpop.f32.mrb[17].mxu1  ;;  %v11870_v8 = vpop.f32.mrb[17].mxu0 }
 0x4c7   : > { %v15846_v27 = vadd.f32 %v11790_v26, %v11789_v62  ;;  %v11792_v1 = vpop.f32.mrb[18].mxu1  ;;  %v11871_v36 = vadd.f32 %v11870_v8, %v11869_v25  ;;  %v11872_v37 = vpop.f32.mrb[18].mxu0 }
 0x4c8   : > { %v11793_v38 = vpop.f32.mrb[19].mxu1  ;;  %v11873_v39 = vpop.f32.mrb[19].mxu0 }
 0x4c9   : > { %v11794_v40 = vadd.f32 %v11793_v38, %v11792_v1  ;;  %v11874_v41 = vadd.f32 %v11873_v39, %v11872_v37 }
 0x4cd   : > { %v11795_v42 = vpop.f32.mrb[20].mxu1  ;;  %v11875_v43 = vpop.f32.mrb[20].mxu0 }
 0x4ce   : > { %v11796_v44 = vpop.f32.mrb[21].mxu1  ;;  %v11876_v45 = vpop.f32.mrb[21].mxu0 }
 0x4cf   : > { %v15848_v46 = vadd.f32 %v11796_v44, %v11795_v42  ;;  %v11798_v47 = vpop.f32.mrb[22].mxu1  ;;  %v15850_v48 = vadd.f32 %v11876_v45, %v11875_v43  ;;  %v11878_v49 = vpop.f32.mrb[22].mxu0 }
 0x4d0   : > { %v11799_v50 = vpop.f32.mrb[23].mxu1  ;;  %v11879_v51 = vpop.f32.mrb[23].mxu0 }
 0x4d1   : > { %v11800_v53 = vadd.f32 %v11799_v50, %v11798_v47  ;;  %v11880_v54 = vadd.f32 %v11879_v51, %v11878_v49 }
 0x4d5   : > { %v11801_v55 = vpop.f32.mrb[24].mxu1  ;;  %v11881_v56 = vpop.f32.mrb[24].mxu0 }
 0x4d6   : > { %v11802_v61 = vpop.f32.mrb[25].mxu1  ;;  %v11882_v63 = vpop.f32.mrb[25].mxu0 }
 0x4d7   : > { %v15854_v0 = vadd.f32 %v11802_v61, %v11801_v55  ;;  %v11804_v10 = vpop.f32.mrb[26].mxu1  ;;  %v15856_v11 = vadd.f32 %v11882_v63, %v11881_v56  ;;  %v11884_v12 = vpop.f32.mrb[26].mxu0 }
 0x4d8   : > { %v11805_v13 = vpop.f32.mrb[27].mxu1  ;;  %v11885_v14 = vpop.f32.mrb[27].mxu0 }
 0x4d9   : > { %v15858_v15 = vadd.f32 %v11805_v13, %v11804_v10  ;;  %v15860_v16 = vadd.f32 %v11885_v14, %v11884_v12 }
 0x4dd   : > { %v11807_v17 = vpop.f32.mrb[28].mxu1  ;;  %v11887_v18 = vpop.f32.mrb[28].mxu0 }
 0x4de   : > { %v11808_v19 = vpop.f32.mrb[29].mxu1  ;;  %v11888_v20 = vpop.f32.mrb[29].mxu0 }
 0x4df   : > { %v15862_v21 = vadd.f32 %v11808_v19, %v11807_v17  ;;  %v11810_v22 = vpop.f32.mrb[30].mxu1  ;;  %v15864_v32 = vadd.f32 %v11888_v20, %v11887_v18  ;;  %v11890_v30 = vpop.f32.mrb[30].mxu0 }
 0x4e0   : > { %v11811_v31 = vpop.f32.mrb[31].mxu1  ;;  %v11891_v29 = vpop.f32.mrb[31].mxu0 }
 0x4e1   : > { %v15866_v60 = vadd.f32 %v11811_v31, %v11810_v22  ;;  %v15868_v58 = vadd.f32 %v11891_v29, %v11890_v30 }
 0x4e5   : > { %v11829_v59 = vpop.f32.mrb[32].mxu1  ;;  %v11949_v57 = vpop.f32.mrb[32].mxu0 }
 0x4e6   : > { %v11830_v33 = vpop.f32.mrb[33].mxu1  ;;  %v11950_v34 = vpop.f32.mrb[33].mxu0 }
 0x4e7   : > { %v11831_v28 = vadd.f32 %v11830_v33, %v11829_v59  ;;  %v11832_v35 = vpop.f32.mrb[34].mxu1  ;;  %v15870_v9 = vadd.f32 %v11950_v34, %v11949_v57  ;;  %v11952_v23 = vpop.f32.mrb[34].mxu0 }
 0x4e8   : > { %v11833_v24 = vpop.f32.mrb[35].mxu1  ;;  %v11953_v62 = vpop.f32.mrb[35].mxu0 }
 0x4e9   : > { %v2862_v25 = vmax.f32 %v15846_v27, %v11831_v28  ;;  %v11834_v26 = vadd.f32 %v11833_v24, %v11832_v35  ;;  %v15873_v8 = vadd.f32 %v11953_v62, %v11952_v23 }
 0x4eb   : > { %v2863_v1 = vmax.f32 %v11794_v40, %v11834_v26  ;;  %v15879_v37 = vmax.f32 %v2862_v25, %v11871_v36 }
 0x4ed   : > { %v11835_v38 = vpop.f32.mrb[36].mxu1  ;;  %v15881_v39 = vmax.f32 %v2863_v1, %v11874_v41  ;;  %v11955_v42 = vpop.f32.mrb[36].mxu0 }
 0x4ee   : > { %v11836_v43 = vpop.f32.mrb[37].mxu1  ;;  %v11956_v44 = vpop.f32.mrb[37].mxu0 }
 0x4ef   : > { %v11837_v27 = vadd.f32 %v11836_v43, %v11835_v38  ;;  %v11838_v45 = vpop.f32.mrb[38].mxu1  ;;  %v15883_v47 = vadd.f32 %v11956_v44, %v11955_v42  ;;  %v11958_v49 = vpop.f32.mrb[38].mxu0 }
 0x4f0   : > { %v11839_v50 = vpop.f32.mrb[39].mxu1  ;;  %v11959_v51 = vpop.f32.mrb[39].mxu0 }
 0x4f1   : > { %v2864_v55 = vmax.f32 %v15848_v46, %v11837_v27  ;;  %v11840_v56 = vadd.f32 %v11839_v50, %v11838_v45  ;;  %v15886_v61 = vadd.f32 %v11959_v51, %v11958_v49 }
 0x4f3   : > { %v2865_v36 = vmax.f32 %v11800_v53, %v11840_v56  ;;  %v15889_v40 = vmax.f32 %v2864_v55, %v15850_v48 }
 0x4f5   : > { %v11841_v41 = vpop.f32.mrb[40].mxu1  ;;  %v15891_v63 = vmax.f32 %v2865_v36, %v11880_v54  ;;  %v11961_v10 = vpop.f32.mrb[40].mxu0 }
 0x4f6   : > { %v11842_v12 = vpop.f32.mrb[41].mxu1  ;;  %v11962_v13 = vpop.f32.mrb[41].mxu0 }
 0x4f7   : > { %v11843_v14 = vadd.f32 %v11842_v12, %v11841_v41  ;;  %v11844_v17 = vpop.f32.mrb[42].mxu1  ;;  %v15893_v18 = vadd.f32 %v11962_v13, %v11961_v10  ;;  %v11964_v19 = vpop.f32.mrb[42].mxu0 }
 0x4f8   : > { %v11845_v20 = vpop.f32.mrb[43].mxu1  ;;  %v11965_v46 = vpop.f32.mrb[43].mxu0 }
 0x4f9   : > { %v2866_v22 = vmax.f32 %v15854_v0, %v11843_v14  ;;  %v11846_v30 = vadd.f32 %v11845_v20, %v11844_v17  ;;  %v15896_v53 = vadd.f32 %v11965_v46, %v11964_v19 }
 0x4fb   : > { %v2867_v48 = vmax.f32 %v15858_v15, %v11846_v30  ;;  %v15900_v54 = vmax.f32 %v2866_v22, %v15856_v11 }
 0x4fd   : > { %v11847_v31 = vpop.f32.mrb[44].mxu1  ;;  %v15903_v29 = vmax.f32 %v2867_v48, %v15860_v16  ;;  %v11967_v59 = vpop.f32.mrb[44].mxu0 }
 0x4fe   : > { %v11848_v57 = vpop.f32.mrb[45].mxu1  ;;  %v11968_v33 = vpop.f32.mrb[45].mxu0 }
 0x4ff   : > { %v11849_v34 = vadd.f32 %v11848_v57, %v11847_v31  ;;  %v11850_v28 = vpop.f32.mrb[46].mxu1  ;;  %v15905_v35 = vadd.f32 %v11968_v33, %v11967_v59  ;;  %v11970_v0 = vpop.f32.mrb[46].mxu0 }
 0x500   : > { %v11851_v23 = vpop.f32.mrb[47].mxu1  ;;  %v11971_v24 = vpop.f32.mrb[47].mxu0 }
 0x501   : > { %v2868_v62 = vmax.f32 %v15862_v21, %v11849_v34  ;;  %v11852_v15 = vadd.f32 %v11851_v23, %v11850_v28  ;;  %v15908_v25 = vadd.f32 %v11971_v24, %v11970_v0 }
 0x503   : > { %v2869_v11 = vmax.f32 %v15866_v60, %v11852_v15  ;;  %v15912_v16 = vmax.f32 %v2868_v62, %v15864_v32 }
 0x505   : > { %v11909_v26 = vpop.f32.mrb[48].mxu1  ;;  %v15915_v1 = vmax.f32 %v2869_v11, %v15868_v58  ;;  %v12029_v38 = vpop.f32.mrb[48].mxu0 }
 0x506   : > { %v11910_v42 = vpop.f32.mrb[49].mxu1  ;;  %v12030_v43 = vpop.f32.mrb[49].mxu0 }
 0x507   : > { %v11911_v44 = vadd.f32 %v11910_v42, %v11909_v26  ;;  %v11912_v27 = vpop.f32.mrb[50].mxu1  ;;  %v15917_v45 = vadd.f32 %v12030_v43, %v12029_v38  ;;  %v12032_v21 = vpop.f32.mrb[50].mxu0 }
 0x508   : > { %v11913_v49 = vpop.f32.mrb[51].mxu1  ;;  %v12033_v50 = vpop.f32.mrb[51].mxu0 }
 0x509   : > { %v3106_v51 = vmax.f32 %v15879_v37, %v11911_v44  ;;  %v11914_v60 = vadd.f32 %v11913_v49, %v11912_v27  ;;  %v15920_v55 = vadd.f32 %v12033_v50, %v12032_v21 }
 0x50b   : > { %v3107_v32 = vmax.f32 %v15881_v39, %v11914_v60  ;;  %v15924_v58 = vmax.f32 %v3106_v51, %v15870_v9 }
 0x50d   : > { %v11915_v56 = vpop.f32.mrb[52].mxu1  ;;  %v15927_v36 = vmax.f32 %v3107_v32, %v15873_v8  ;;  %v12035_v41 = vpop.f32.mrb[52].mxu0 }
 0x50e   : > { %v11916_v10 = vpop.f32.mrb[53].mxu1  ;;  %v12036_v12 = vpop.f32.mrb[53].mxu0 }
 0x50f   : > { %v11917_v13 = vadd.f32 %v11916_v10, %v11915_v56  ;;  %v11918_v14 = vpop.f32.mrb[54].mxu1  ;;  %v15929_v17 = vadd.f32 %v12036_v12, %v12035_v41  ;;  %v12038_v37 = vpop.f32.mrb[54].mxu0 }
 0x510   : > { %v11919_v19 = vpop.f32.mrb[55].mxu1  ;;  %v12039_v20 = vpop.f32.mrb[55].mxu0 }
 0x511   : > { %v3108_v46 = vmax.f32 %v15889_v40, %v11917_v13  ;;  %v11920_v39 = vadd.f32 %v11919_v19, %v11918_v14  ;;  %v15932_v22 = vadd.f32 %v12039_v20, %v12038_v37 }
 0x513   : > { %v3109_v9 = vmax.f32 %v15891_v63, %v11920_v39  ;;  %v15936_v8 = vmax.f32 %v3108_v46, %v15883_v47 }
 0x515   : > { %v11921_v30 = vpop.f32.mrb[56].mxu1  ;;  %v15939_v48 = vmax.f32 %v3109_v9, %v15886_v61  ;;  %v12041_v31 = vpop.f32.mrb[56].mxu0 }
 0x516   : > { %v11922_v59 = vpop.f32.mrb[57].mxu1  ;;  %v12042_v57 = vpop.f32.mrb[57].mxu0 }
 0x517   : > { %v11923_v33 = vadd.f32 %v11922_v59, %v11921_v30  ;;  %v11924_v34 = vpop.f32.mrb[58].mxu1  ;;  %v15941_v28 = vadd.f32 %v12042_v57, %v12041_v31  ;;  %v12044_v40 = vpop.f32.mrb[58].mxu0 }
 0x518   : > { %v11925_v0 = vpop.f32.mrb[59].mxu1  ;;  %v12045_v23 = vpop.f32.mrb[59].mxu0 }
 0x519   : > { %v3110_v24 = vmax.f32 %v15900_v54, %v11923_v33  ;;  %v11926_v63 = vadd.f32 %v11925_v0, %v11924_v34  ;;  %v15944_v62 = vadd.f32 %v12045_v23, %v12044_v40 }
 0x51b   : > { %v3111_v47 = vmax.f32 %v15903_v29, %v11926_v63  ;;  %v15948_v61 = vmax.f32 %v3110_v24, %v15893_v18 }
 0x51d   : > { %v11927_v15 = vpop.f32.mrb[60].mxu1  ;;  %v15951_v11 = vmax.f32 %v3111_v47, %v15896_v53  ;;  %v12047_v26 = vpop.f32.mrb[60].mxu0 }
 0x51e   : > { %v11928_v38 = vpop.f32.mrb[61].mxu1  ;;  %v12048_v42 = vpop.f32.mrb[61].mxu0 }
 0x51f   : > { %v11929_v43 = vadd.f32 %v11928_v38, %v11927_v15  ;;  %v11930_v44 = vpop.f32.mrb[62].mxu1  ;;  %v15953_v27 = vadd.f32 %v12048_v42, %v12047_v26  ;;  %v12050_v54 = vpop.f32.mrb[62].mxu0 }
 0x520   : > { %v11931_v21 = vpop.f32.mrb[63].mxu1  ;;  %v12051_v49 = vpop.f32.mrb[63].mxu0 }
 0x521   : > { %v3112_v50 = vmax.f32 %v15912_v16, %v11929_v43  ;;  %v11932_v29 = vadd.f32 %v11931_v21, %v11930_v44  ;;  %v15956_v51 = vadd.f32 %v12051_v49, %v12050_v54 }
 0x523   : > { %v3113_v18 = vmax.f32 %v15915_v1, %v11932_v29  ;;  %v15960_v53 = vmax.f32 %v3112_v50, %v15905_v35 }
 0x525   : > { %v11989_v60 = vpop.f32.mrb[64].mxu1  ;;  %v15963_v32 = vmax.f32 %v3113_v18, %v15908_v25  ;;  %v12109_v56 = vpop.f32.mrb[64].mxu0 }
 0x526   : > { %v11990_v41 = vpop.f32.mrb[65].mxu1  ;;  %v12110_v10 = vpop.f32.mrb[65].mxu0 }
 0x527   : > { %v11991_v12 = vadd.f32 %v11990_v41, %v11989_v60  ;;  %v11992_v13 = vpop.f32.mrb[66].mxu1  ;;  %v15965_v14 = vadd.f32 %v12110_v10, %v12109_v56  ;;  %v12112_v16 = vpop.f32.mrb[66].mxu0 }
 0x528   : > { %v11993_v37 = vpop.f32.mrb[67].mxu1  ;;  %v12113_v19 = vpop.f32.mrb[67].mxu0 }
 0x529   : > { %v3350_v20 = vmax.f32 %v15924_v58, %v11991_v12  ;;  %v11994_v1 = vadd.f32 %v11993_v37, %v11992_v13  ;;  %v12114_v46 = vadd.f32 %v12113_v19, %v12112_v16 }
 0x52b   : > { %v3351_v35 = vmax.f32 %v15927_v36, %v11994_v1  ;;  %v3472_v39 = vmax.f32 %v3350_v20, %v15917_v45 }
 0x52d   : > { %v11995_v25 = vpop.f32.mrb[68].mxu1  ;;  %v3473_v9 = vmax.f32 %v3351_v35, %v15920_v55  ;;  %v12115_v30 = vpop.f32.mrb[68].mxu0 }
 0x52e   : > { %v11996_v31 = vpop.f32.mrb[69].mxu1  ;;  %v12116_v59 = vpop.f32.mrb[69].mxu0 }
 0x52f   : > { %v11997_v57 = vadd.f32 %v11996_v31, %v11995_v25  ;;  %v11998_v33 = vpop.f32.mrb[70].mxu1  ;;  %v15971_v34 = vadd.f32 %v12116_v59, %v12115_v30  ;;  %v12118_v40 = vpop.f32.mrb[70].mxu0 }
 0x530   : > { %v11999_v0 = vpop.f32.mrb[71].mxu1  ;;  %v12119_v23 = vpop.f32.mrb[71].mxu0 }
 0x531   : > { %v3352_v58 = vmax.f32 %v15936_v8, %v11997_v57  ;;  %v12000_v24 = vadd.f32 %v11999_v0, %v11998_v33  ;;  %v12120_v63 = vadd.f32 %v12119_v23, %v12118_v40 }
 0x533   : > { %v3353_v36 = vmax.f32 %v15939_v48, %v12000_v24  ;;  %v3474_v45 = vmax.f32 %v3352_v58, %v15929_v17 }
 0x535   : > { %v12001_v47 = vpop.f32.mrb[72].mxu1  ;;  %v3475_v55 = vmax.f32 %v3353_v36, %v15932_v22  ;;  %v12121_v15 = vpop.f32.mrb[72].mxu0 }
 0x536   : > { %v12002_v26 = vpop.f32.mrb[73].mxu1  ;;  %v12122_v38 = vpop.f32.mrb[73].mxu0 }
 0x537   : > { %v12003_v42 = vadd.f32 %v12002_v26, %v12001_v47  ;;  %v12004_v43 = vpop.f32.mrb[74].mxu1  ;;  %v15977_v44 = vadd.f32 %v12122_v38, %v12121_v15  ;;  %v12124_v54 = vpop.f32.mrb[74].mxu0 }
 0x538   : > { %v12005_v21 = vpop.f32.mrb[75].mxu1  ;;  %v12125_v49 = vpop.f32.mrb[75].mxu0 }
 0x539   : > { %v3354_v8 = vmax.f32 %v15948_v61, %v12003_v42  ;;  %v12006_v50 = vadd.f32 %v12005_v21, %v12004_v43  ;;  %v12126_v29 = vadd.f32 %v12125_v49, %v12124_v54 }
 0x53b   : > { %v3355_v48 = vmax.f32 %v15951_v11, %v12006_v50  ;;  %v3476_v17 = vmax.f32 %v3354_v8, %v15941_v28 }
 0x53d   : > { %v12007_v18 = vpop.f32.mrb[76].mxu1  ;;  %v3477_v22 = vmax.f32 %v3355_v48, %v15944_v62  ;;  %v12127_v60 = vpop.f32.mrb[76].mxu0 }
 0x53e   : > { %v12008_v56 = vpop.f32.mrb[77].mxu1  ;;  %v12128_v41 = vpop.f32.mrb[77].mxu0 }
 0x53f   : > { %v12009_v10 = vadd.f32 %v12008_v56, %v12007_v18  ;;  %v12010_v12 = vpop.f32.mrb[78].mxu1  ;;  %v12129_v13 = vadd.f32 %v12128_v41, %v12127_v60  ;;  %v12130_v16 = vpop.f32.mrb[78].mxu0  ;;  %v16011_v41 = vld [vmem:[%s17587_s10] sm:$0xff]  }
 0x540   : > { %v12011_v37 = vpop.f32.mrb[79].mxu1  ;;  %v12131_v19 = vpop.f32.mrb[79].mxu0 }
 0x541   : > { %v3356_v61 = vmax.f32 %v15960_v53, %v12009_v10  ;;  %v12012_v20 = vadd.f32 %v12011_v37, %v12010_v12  ;;  %v12132_v1 = vadd.f32 %v12131_v19, %v12130_v16  ;;  %v16014_v10 = vld [vmem:[%s17587_s10 + $0x10] sm:$0xff]   ;;  %v16041_v12 = vld [vmem:[%s17587_s10 + $0x8] sm:$0xff]   ;;  %v16071_v16 = vld [vmem:[%s17587_s10 + $0x18] sm:$0xff]  }
 0x542   : > { %v16074_v37 = vld [vmem:[%s17587_s10 + $0x30] sm:$0xff]   ;;  %v16101_v19 = vld [vmem:[%s17587_s10 + $0x28] sm:$0xff]  }
 0x543   : > { %v3357_v11 = vmax.f32 %v15963_v32, %v12012_v20  ;;  %v3478_v28 = vmax.f32 %v3356_v61, %v15953_v27  ;;  %v16104_v61 = vld [vmem:[%s17587_s10 + $0x40] sm:$0xff]   ;;  %v16125_v20 = vld [vmem:[%s17587_s10 + $0x38] sm:$0xff]  }
 0x545   : > { %v12069_v35 = vpop.f32.mrb[80].mxu1  ;;  %v3479_v62 = vmax.f32 %v3357_v11, %v15956_v51  ;;  %v13786_v11 = vld [vmem:[%s17588_s13 + $0x8] ss:$0 sps:$4 sm:$0xff]  }
 0x546   : > { %v12070_v25 = vpop.f32.mrb[81].mxu1 }
 0x547   : > { %v12071_v30 = vadd.f32 %v12070_v25, %v12069_v35  ;;  %v12072_v31 = vpop.f32.mrb[82].mxu1  ;;  %v16138_v35 = vld [vmem:[%s17589_s1] sm:$0xff]  }
 0x548   : > { %v12073_v59 = vpop.f32.mrb[83].mxu1 }
 0x549   : > { %v3594_v57 = vmax.f32 %v3472_v39, %v12071_v30  ;;  %v12074_v33 = vadd.f32 %v12073_v59, %v12072_v31  ;;  %v3783_v30 = vlaneseq }
 0x54b   : > { %v3716_v40 = vmax.f32 %v3594_v57, %v15965_v14  ;;  %v3595_v0 = vmax.f32 %v3473_v9, %v12074_v33 }
 0x54d   : > { %v3717_v23 = vmax.f32 %v3595_v0, %v12114_v46  ;;  %v12075_v53 = vpop.f32.mrb[84].mxu1 }
 0x54e   : > { %v12076_v58 = vpop.f32.mrb[85].mxu1 }
 0x54f   : > { %v15988_v24 = vpack.c.bf16 %v3717_v23, %v3716_v40  ;;  %v12077_v32 = vadd.f32 %v12076_v58, %v12075_v53  ;;  %v12078_v36 = vpop.f32.mrb[86].mxu1  ;;  %v16141_v23 = vshrl.u32 %v3783_v30, 7 }
 0x550   : > { %v12079_v27 = vpop.f32.mrb[87].mxu1 }
 0x551   : > { %v3596_v47 = vmax.f32 %v3474_v45, %v12077_v32  ;;  %v12080_v15 = vadd.f32 %v12079_v27, %v12078_v36  ;;  %12470 = vmatpush3.bf16.msra.mxu0 %v15988_v24  ;;  %12494 = vmatpush3.bf16.msra.mxu1 %v15988_v24  ;;  %v16144_v53 = vsub.s32 0, %v16141_v23  ;;  %v16147_v58 = vsub.s32 1, %v16141_v23  ;;  %v16153_v36 = vld [vmem:[%s17590_s2] sm:$0xff] }
 0x552   : > { %12471 = vmatprep.subr.bf16.mxu0 %v14763_v52  ;;  %12495 = vmatprep.subr.bf16.mxu1 %v14763_v52  ;;  %v16150_v32 = vsub.s32 2, %v16141_v23 }
 0x553   : > { %v3718_v51 = vmax.f32 %v3596_v47, %v15971_v34  ;;  %v3597_v14 = vmax.f32 %v3475_v55, %v12080_v15  ;;  %v3786_v27 = vrot.slane %v16153_v36, %v16144_v53  ;;  %v3844_v47 = vrot.slane %v16153_v36, %v16147_v58 }
 0x554   : > { %v3904_v15 = vrot.slane %v16153_v36, %v16150_v32 }
 0x555   : > { %v3719_v46 = vmax.f32 %v3597_v14, %v12120_v63  ;;  %v12081_v39 = vpop.f32.mrb[88].mxu1 }
 0x556   : > { %v12082_v9 = vpop.f32.mrb[89].mxu1 }
 0x557   : > { %v15995_v26 = vpack.c.bf16 %v3719_v46, %v3718_v51  ;;  %v12083_v38 = vadd.f32 %v12082_v9, %v12081_v39  ;;  %v12084_v42 = vpop.f32.mrb[90].mxu1 }
 0x558   : > { %v12085_v45 = vpop.f32.mrb[91].mxu1 }
 0x559   : > { %v3598_v43 = vmax.f32 %v3476_v17, %v12083_v38  ;;  %v12086_v54 = vadd.f32 %v12085_v45, %v12084_v42  ;;  %12472 = vmatpush3.bf16.msra.mxu0 %v15995_v26  ;;  %12496 = vmatpush3.bf16.msra.mxu1 %v15995_v26 }
 0x55a   : > { %12473 = vmatprep.subr.bf16.mxu0 %v14763_v52  ;;  %12497 = vmatprep.subr.bf16.mxu1 %v14763_v52 }
 0x55b   : > { %v3720_v34 = vmax.f32 %v3598_v43, %v15977_v44  ;;  %v3599_v63 = vmax.f32 %v3477_v22, %v12086_v54 }
 0x55d   : > { %v3721_v55 = vmax.f32 %v3599_v63, %v12126_v29  ;;  %v12087_v21 = vpop.f32.mrb[92].mxu1 }
 0x55e   : > { %v12088_v49 = vpop.f32.mrb[93].mxu1 }
 0x55f   : > { %v16002_v8 = vpack.c.bf16 %v3721_v55, %v3720_v34  ;;  %v12089_v50 = vadd.f32 %v12088_v49, %v12087_v21  ;;  %v12090_v48 = vpop.f32.mrb[94].mxu1 }
 0x560   : > { %v12091_v17 = vpop.f32.mrb[95].mxu1 }
 0x561   : > { %v3600_v18 = vmax.f32 %v3478_v28, %v12089_v50  ;;  %v12092_v60 = vadd.f32 %v12091_v17, %v12090_v48  ;;  %12474 = vmatpush3.bf16.msra.mxu0 %v16002_v8  ;;  %12498 = vmatpush3.bf16.msra.mxu1 %v16002_v8  ;;  %v4303_v28 = vsel %vm4301_vm5, %v13786_v11, 0 }
 0x562   : > { %12475 = vmatprep.subr.bf16.mxu0 %v14763_v52  ;;  %12499 = vmatprep.subr.bf16.mxu1 %v14763_v52 }
 0x563   : > { %v3722_v44 = vmax.f32 %v3600_v18, %v12129_v13  ;;  %v3601_v29 = vmax.f32 %v3479_v62, %v12092_v60  ;;  %v16044_v13 = vld [vmem:[%s17587_s10 + $0x20] sm:$0xff]   ;;  %v16162_v18 = vsub.s32 3, %v16141_v23  ;;  %v16165_v60 = vsub.s32 4, %v16141_v23 }
 0x565   : > { %v3723_v22 = vmax.f32 %v3601_v29, %v12132_v1  ;;  %v13785_v1 = vld [vmem:[%s17588_s13] sm:$0xff]   ;;  %v4024_v29 = vrot.slane %v16153_v36, %v16165_v60 }
 0x567   : > { %v16008_v56 = vpack.c.bf16 %v3723_v22, %v3722_v44  ;;  %v3964_v44 = vrot.slane %v16153_v36, %v16162_v18 }
 0x569   : > { %12476 = vmatpush3.bf16.msra.mxu0 %v16008_v56  ;;  %12500 = vmatpush3.bf16.msra.mxu1 %v16008_v56 }
 0x56a   : > { %12481 = vmatprep.subr.bf16.mxu0 %v14763_v52  ;;  %12517 = vmatprep.subr.bf16.mxu1 %v14763_v52 }
 0x56c   : > { %12478 = vmatmul.mubr.msk.bf16.vlgmr.msra.gmra.mrb[80].mxu0 %vm3738_vm4, %v16011_v41  ;;  %12502 = vmatmul.mubr.msk.bf16.vlgmr.msra.gmra.mrb[96].mxu1 %vm3738_vm4, %v16014_v10 }
 0x56d   : > { %12482 = vmatpush3.bf16.msra.mxu0 %v15988_v24  ;;  %12518 = vmatpush3.bf16.msra.mxu1 %v15988_v24 }
 0x56e   : > { %12483 = vmatprep.subr.bf16.mxu0 %v14763_v52  ;;  %12519 = vmatprep.subr.bf16.mxu1 %v14763_v52 }
 0x56f   : > { %12489 = vmatprep.mubr.msk.bf16.mxu0 %vm14764_vm3, %v14763_v52  ;;  %12525 = vmatprep.mubr.msk.bf16.mxu1 %vm14764_vm3, %v14763_v52 }
 0x571   : > { %12484 = vmatpush3.bf16.msra.mxu0 %v15995_v26  ;;  %12520 = vmatpush3.bf16.msra.mxu1 %v15995_v26 }
 0x572   : > { %12485 = vmatprep.subr.bf16.mxu0 %v14763_v52  ;;  %12521 = vmatprep.subr.bf16.mxu1 %v14763_v52 }
 0x575   : > { %12486 = vmatpush3.bf16.msra.mxu0 %v16002_v8  ;;  %12522 = vmatpush3.bf16.msra.mxu1 %v16002_v8 }
 0x576   : > { %12487 = vmatprep.subr.bf16.mxu0 %v14763_v52  ;;  %12523 = vmatprep.subr.bf16.mxu1 %v14763_v52 }
 0x579   : > { %12488 = vmatpush3.bf16.msra.mxu0 %v16008_v56  ;;  %12524 = vmatpush3.bf16.msra.mxu1 %v16008_v56 }
 0x57a   : > { %12505 = vmatprep.subr.bf16.mxu0 %v14763_v52  ;;  %12541 = vmatprep.subr.bf16.mxu1 %v14763_v52 }
 0x57c   : > { %12490 = vmatmul.mubr.msk.bf16.vlgmr.msra.gmra.mrb[84].mxu0 %vm3738_vm4, %v16041_v12  ;;  %12526 = vmatmul.mubr.msk.bf16.vlgmr.msra.gmra.mrb[100].mxu1 %vm3738_vm4, %v16044_v13 }
 0x57d   : > { %12506 = vmatpush3.bf16.msra.mxu0 %v15988_v24  ;;  %12542 = vmatpush3.bf16.msra.mxu1 %v15988_v24 }
 0x57e   : > { %12507 = vmatprep.subr.bf16.mxu0 %v14763_v52  ;;  %12543 = vmatprep.subr.bf16.mxu1 %v14763_v52 }
 0x57f   : > { %12513 = vmatprep.mubr.msk.bf16.mxu0 %vm14764_vm3, %v14763_v52  ;;  %12549 = vmatprep.mubr.msk.bf16.mxu1 %vm14764_vm3, %v14763_v52 }
 0x581   : > { %12508 = vmatpush3.bf16.msra.mxu0 %v15995_v26  ;;  %12544 = vmatpush3.bf16.msra.mxu1 %v15995_v26 }
 0x582   : > { %12509 = vmatprep.subr.bf16.mxu0 %v14763_v52  ;;  %12545 = vmatprep.subr.bf16.mxu1 %v14763_v52 }
 0x585   : > { %12510 = vmatpush3.bf16.msra.mxu0 %v16002_v8  ;;  %12546 = vmatpush3.bf16.msra.mxu1 %v16002_v8 }
 0x586   : > { %12511 = vmatprep.subr.bf16.mxu0 %v14763_v52  ;;  %12547 = vmatprep.subr.bf16.mxu1 %v14763_v52 }
 0x589   : > { %12512 = vmatpush3.bf16.msra.mxu0 %v16008_v56  ;;  %12548 = vmatpush3.bf16.msra.mxu1 %v16008_v56 }
 0x58a   : > { %12529 = vmatprep.subr.bf16.mxu0 %v14763_v52  ;;  %12565 = vmatprep.subr.bf16.mxu1 %v14763_v52 }
 0x58c   : > { %12514 = vmatmul.mubr.msk.bf16.vlgmr.msra.gmra.mrb[88].mxu0 %vm3738_vm4, %v16071_v16  ;;  %12550 = vmatmul.mubr.msk.bf16.vlgmr.msra.gmra.mrb[104].mxu1 %vm3738_vm4, %v16074_v37 }
 0x58d   : > { %12530 = vmatpush3.bf16.msra.mxu0 %v15988_v24  ;;  %12566 = vmatpush3.bf16.msra.mxu1 %v15988_v24 }
 0x58e   : > { %12531 = vmatprep.subr.bf16.mxu0 %v14763_v52  ;;  %12567 = vmatprep.subr.bf16.mxu1 %v14763_v52 }
 0x58f   : > { %12537 = vmatprep.mubr.msk.bf16.mxu0 %vm14764_vm3, %v14763_v52  ;;  %12573 = vmatprep.mubr.msk.bf16.mxu1 %vm14764_vm3, %v14763_v52 }
 0x591   : > { %12532 = vmatpush3.bf16.msra.mxu0 %v15995_v26  ;;  %12568 = vmatpush3.bf16.msra.mxu1 %v15995_v26 }
 0x592   : > { %12533 = vmatprep.subr.bf16.mxu0 %v14763_v52  ;;  %12569 = vmatprep.subr.bf16.mxu1 %v14763_v52 }
 0x595   : > { %12534 = vmatpush3.bf16.msra.mxu0 %v16002_v8  ;;  %12570 = vmatpush3.bf16.msra.mxu1 %v16002_v8 }
 0x596   : > { %12535 = vmatprep.subr.bf16.mxu0 %v14763_v52  ;;  %12571 = vmatprep.subr.bf16.mxu1 %v14763_v52 }
 0x599   : > { %12536 = vmatpush3.bf16.msra.mxu0 %v16008_v56  ;;  %12572 = vmatpush3.bf16.msra.mxu1 %v16008_v56 }
 0x59a   : > { %12553 = vmatprep.subr.bf16.mxu0 %v14763_v52  ;;  %12597 = vmatprep.subr.bf16.mxu1 %v14763_v52 }
 0x59c   : > { %12538 = vmatmul.mubr.msk.bf16.vlgmr.msra.gmra.mrb[92].mxu0 %vm3738_vm4, %v16101_v19  ;;  %12574 = vmatmul.mubr.msk.bf16.vlgmr.msra.gmra.mrb[108].mxu1 %vm3738_vm4, %v16104_v61 }
 0x59d   : > { %12554 = vmatpush3.bf16.msra.mxu0 %v15988_v24  ;;  %12561 = vmatprep.mubr.msk.bf16.mxu0 %vm14764_vm3, %v14763_v52 }
 0x59e   : > { %12555 = vmatprep.subr.bf16.mxu0 %v14763_v52  ;;  %12605 = vmatprep.mubr.msk.bf16.mxu1 %vm14764_vm3, %v14763_v52 }
 0x5a1   : > { %12556 = vmatpush3.bf16.msra.mxu0 %v15995_v26 }
 0x5a2   : > { %12557 = vmatprep.subr.bf16.mxu0 %v14763_v52 }
 0x5a5   : > { %12558 = vmatpush3.bf16.msra.mxu0 %v16002_v8 }
 0x5a6   : > { %12559 = vmatprep.subr.bf16.mxu0 %v14763_v52 }
 0x5a9   : > { %12560 = vmatpush3.bf16.msra.mxu0 %v16008_v56 }
 0x5aa   : > { %12577 = vmatprep.subr.bf16.mxu0 %v14763_v52 }
 0x5ac   : > { %12562 = vmatmul.mubr.msk.bf16.vlgmr.msra.gmra.mrb[96].mxu0 %vm3738_vm4, %v16125_v20 }
 0x5ad   : > { %12581 = vmatprep.mubr.msk.bf16.mxu0 %vm14764_vm3, %v14763_v52  ;;  %12578 = vmatpush3.bf16.msra.mxu0 %v13785_v1 }
 0x5ae   : > { %12579 = vmatprep.subr.bf16.mxu0 %v14763_v52 }
 0x5b1   : > { %12580 = vmatpush3.bf16.msra.mxu0 %v4303_v28 }
 0x5b2   : > { %12585 = vmatprep.subr.bf16.mxu0 %v16138_v35 }
 0x63f   : > { %v3776_v62 = vpop.f32.mrb[80].mxu0  ;;  %v3894_v25 = vpop.f32.mrb[96].mxu1 }
 0x640   : > { %v12479_v31 = vpop.f32.mrb[81].mxu0  ;;  %v12503_v59 = vpop.f32.mrb[97].mxu1  ;;  %v3787_v46 = vmul.f32 %v3786_v27, %v3776_v62  ;;  %v3905_v38 = vmul.f32 %v3904_v15, %v3894_v25 }
 0x641   : > { %v3779_v57 = vpop.f32.mrb[82].mxu0  ;;  %v3897_v33 = vpop.f32.mrb[98].mxu1 }
 0x642   : > { %v12480_v40 = vpop.f32.mrb[83].mxu0  ;;  %v12504_v0 = vpop.f32.mrb[99].mxu1  ;;  %v3788_v54 = vmul.f32 %v3786_v27, %v3779_v57  ;;  %v3906_v55 = vmul.f32 %v3904_v15, %v3897_v33 }
 0x64f   : > { %v3834_v51 = vpop.f32.mrb[84].mxu0  ;;  %v4014_v14 = vpop.f32.mrb[100].mxu1 }
 0x650   : > { %v3845_v39 = vmul.f32 %v3844_v47, %v3834_v51  ;;  %v12491_v9 = vpop.f32.mrb[85].mxu0  ;;  %v12527_v42 = vpop.f32.mrb[101].mxu1  ;;  %v4025_v62 = vmul.f32 %v4024_v29, %v4014_v14  ;;  %v16172_v51 = vsub.s32 5, %v16141_v23 }
 0x651   : > { %v3837_v45 = vpop.f32.mrb[86].mxu0  ;;  %v4017_v43 = vpop.f32.mrb[102].mxu1 }
 0x652   : > { %v3847_v34 = vadd.f32 %v3845_v39, %v3787_v46  ;;  %v3846_v63 = vmul.f32 %v3844_v47, %v3837_v45  ;;  %v12492_v21 = vpop.f32.mrb[87].mxu0  ;;  %v12528_v49 = vpop.f32.mrb[103].mxu1  ;;  %v4026_v33 = vmul.f32 %v4024_v29, %v4017_v43  ;;  %v16175_v46 = vsub.s32 6, %v16141_v23 }
 0x653   : > { %v4084_v14 = vrot.slane %v16153_v36, %v16172_v51 }
 0x654   : > { %v3848_v50 = vadd.f32 %v3846_v63, %v3788_v54  ;;  %v3907_v48 = vadd.f32 %v3905_v38, %v3847_v34  ;;  %v4144_v39 = vrot.slane %v16153_v36, %v16175_v46 }
 0x656   : > { %v3908_v17 = vadd.f32 %v3906_v55, %v3848_v50 }
 0x65f   : > { %v3954_v22 = vpop.f32.mrb[88].mxu0  ;;  %v4134_v1 = vpop.f32.mrb[104].mxu1 }
 0x660   : > { %v3965_v11 = vmul.f32 %v3964_v44, %v3954_v22  ;;  %v12515_v28 = vpop.f32.mrb[89].mxu0  ;;  %v12551_v25 = vpop.f32.mrb[105].mxu1  ;;  %v4145_v43 = vmul.f32 %v4144_v39, %v4134_v1  ;;  %v16182_v22 = vsub.s32 7, %v16141_v23 }
 0x661   : > { %v3957_v30 = vpop.f32.mrb[90].mxu0  ;;  %v4137_v31 = vpop.f32.mrb[106].mxu1  ;;  %v11340_v28 = vld [vmem:[%s17590_s2 + $0x8] ss:$0 sm:$0xff] }
 0x662   : > { %v3967_v59 = vadd.f32 %v3965_v11, %v3907_v48  ;;  %v3966_v57 = vmul.f32 %v3964_v44, %v3957_v30  ;;  %v12516_v40 = vpop.f32.mrb[91].mxu0  ;;  %v12552_v0 = vpop.f32.mrb[107].mxu1  ;;  %v4146_v49 = vmul.f32 %v4144_v39, %v4137_v31  ;;  %v4204_v11 = vrot.slane %v16153_v36, %v16182_v22  ;;  %v13788_v36 = vld [vmem:[%s17589_s1 + $0x8] ss:$0 sps:$4 sm:$0xff]   ;;  %s17597_s1 = sld [smem:[#allocation68_spill]] }
 0x664   : > { %v3968_v27 = vadd.f32 %v3966_v57, %v3908_v17  ;;  %v4027_v47 = vadd.f32 %v4025_v62, %v3967_v59 }
 0x666   : > { %v4028_v15 = vadd.f32 %v4026_v33, %v3968_v27 }
 0x66f   : > { %v4074_v9 = vpop.f32.mrb[92].mxu0  ;;  %v4254_v38 = vpop.f32.mrb[108].mxu1 }
 0x670   : > { %v4085_v42 = vmul.f32 %v4084_v14, %v4074_v9  ;;  %v12539_v45 = vpop.f32.mrb[93].mxu0  ;;  %v12575_v54 = vpop.f32.mrb[109].mxu1  ;;  %v4265_v30 = vmul.f32 %v11340_v28, %v4254_v38  ;;  %v4380_v38 = vsel %vm4301_vm5, %v13788_v36, 0 }
 0x671   : > { %v4077_v34 = vpop.f32.mrb[94].mxu0  ;;  %v4257_v63 = vpop.f32.mrb[110].mxu1 }
 0x672   : > { %v4087_v55 = vadd.f32 %v4085_v42, %v4027_v47  ;;  %v4086_v21 = vmul.f32 %v4084_v14, %v4077_v34  ;;  %v12540_v50 = vpop.f32.mrb[95].mxu0  ;;  %v12576_v48 = vpop.f32.mrb[111].mxu1  ;;  %v4266_v27 = vmul.f32 %v11340_v28, %v4257_v63  ;;  %v11341_v47 = vld [vmem:[%s17591_s18] ss:$0 sm:$0xff]  ;;  %s17594_s18 = smov %s17593_s28 }
 0x674   : > { %v4088_v17 = vadd.f32 %v4086_v21, %v4028_v15  ;;  %v4147_v44 = vadd.f32 %v4145_v43, %v4087_v55  ;;  %v11346_v21 = vld [vmem:[#allocation10] ss:$0 sm:$0xff] }
 0x676   : > { %v4148_v29 = vadd.f32 %v4146_v49, %v4088_v17 }
 0x67f   : > { %v4194_v1 = vpop.f32.mrb[96].mxu0 }
 0x680   : > { %v4205_v62 = vmul.f32 %v4204_v11, %v4194_v1  ;;  %v12563_v25 = vpop.f32.mrb[97].mxu0 }
 0x681   : > { %v4197_v59 = vpop.f32.mrb[98].mxu0 }
 0x682   : > { %v4207_v31 = vadd.f32 %v4205_v62, %v4147_v44  ;;  %v4206_v57 = vmul.f32 %v4204_v11, %v4197_v59  ;;  %v12564_v33 = vpop.f32.mrb[99].mxu0 }
 0x684   : > { %v4208_v40 = vadd.f32 %v4206_v57, %v4148_v29  ;;  %v4267_v0 = vadd.f32 %v4265_v30, %v4207_v31 }
 0x686   : > { %v4268_v15 = vadd.f32 %v4266_v27, %v4208_v40  ;;  %v4275_v14 = vadd.f32 %v11341_v47, %v4267_v0 }
 0x688   : > { %v4276_v39 = vadd.f32 %v11341_v47, %v4268_v15 }
 0x68a   : > { %v4281_v9 = vpack.c.bf16 %v4276_v39, %v4275_v14 }
 0x68c   : > { %12582 = vmatmul.mubr.msk.bf16.vlgmr.msra.gmra.mrb[100].mxu0 %vm4297_vm6, %v4281_v9 }
 0x68d   : > { %12586 = vmatpush3.bf16.msra.mxu0 %v16138_v35  ;;  %12589 = vmatprep.mubr.msk.bf16.mxu0 %vm4297_vm6, %v15988_v24  ;;  %v11342_v24 = vld [vmem:[#allocation7] ss:$0 sm:$0xff] }
 0x68e   : > { %13280 = vmatprep.subr.msk.bf16.mxu0 %vm4301_vm5, %v13788_v36 }
 0x691   : > { %12588 = vmatpush3.bf16.msra.mxu0 %v4380_v38 }
 0x692   : > { %12609 = vmatprep.subr.bf16.mxu0 %v14763_v52 }
 0x694   : > { %12590 = vmatmul.mubr.msk.bf16.vlgmr.msra.gmra.mrb[104].mxu0 %vm4297_vm6, %v15995_v26 }
 0x695   : > { %12593 = vmatprep.mubr.msk.bf16.mxu0 %vm4297_vm6, %v16002_v8 }
 0x69c   : > { %12594 = vmatmul.mubr.msk.bf16.gmra.mrb[108].mxu0 %vm4297_vm6, %v16008_v56 }
 0x69d   : > { %12617 = vmatprep.mubr.msk.bf16.mxu0 %vm14764_vm3, %v14763_v52 }
 0x75f   : > { %v4339_v35 = vpop.f32.mrb[100].mxu0 }
 0x760   : > { %v4340_v42 = vadd.f32 %v11342_v24, %v4339_v35  ;;  %v12583_v45 = vpop.f32.mrb[101].mxu0 }
 0x761   : > { %v4342_v43 = vpop.f32.mrb[102].mxu0 }
 0x762   : > { %v4343_v54 = vadd.f32 %v11342_v24, %v4342_v43  ;;  %v12584_v34 = vpop.f32.mrb[103].mxu0  ;;  %v4346_v63 = vmax.f32 %v4340_v42, 0.0 }
 0x764   : > { %v4347_v55 = vmax.f32 %v4343_v54, 0.0 }
 0x766   : > { %v16204_v26 = vpack.c.bf16 %v4347_v55, %v4346_v63 }
 0x767   : > { %v12591_v49 = vpop.f32.mrb[104].mxu0 }
 0x768   : > { %v4425_v8 = vadd.f32 %v12591_v49, %v11346_v21  ;;  %v4416_v50 = vpop.f32.mrb[105].mxu0 }
 0x769   : > { %v4417_v48 = vadd.f32 %v11346_v21, %v4416_v50  ;;  %v12592_v56 = vpop.f32.mrb[106].mxu0 }
 0x76a   : > { %v4428_v17 = vadd.f32 %v12592_v56, %v11346_v21  ;;  %v4419_v44 = vpop.f32.mrb[107].mxu0  ;;  %v4449_v11 = vmax.f32 %v4425_v8, 0.0 }
 0x76b   : > { %v4420_v29 = vadd.f32 %v11346_v21, %v4419_v44  ;;  %v4447_v1 = vmax.f32 %v4417_v48, 0.0 }
 0x76c   : > { %v4450_v28 = vmax.f32 %v4428_v17, 0.0 }
 0x76d   : > { %v4448_v62 = vmax.f32 %v4420_v29, 0.0 }
 0x76e   : > { %v16206_v25 = vpack.c.bf16 %v4450_v28, %v4449_v11 }
 0x76f   : > { %v16208_v30 = vpack.c.bf16 %v4448_v62, %v4447_v1  ;;  %v12595_v59 = vpop.f32.mrb[108].mxu0 }
 0x770   : > { %v4441_v31 = vadd.f32 %v12595_v59, %v11346_v21  ;;  %v4432_v57 = vpop.f32.mrb[109].mxu0 }
 0x771   : > { %v4433_v33 = vadd.f32 %v11346_v21, %v4432_v57  ;;  %v12596_v40 = vpop.f32.mrb[110].mxu0  ;;  %12598 = vmatpush3.bf16.msra.mxu1 %v16208_v30  ;;  %12610 = vmatpush3.bf16.msra.mxu0 %v16208_v30 }
 0x772   : > { %v4444_v0 = vadd.f32 %v12596_v40, %v11346_v21  ;;  %v4435_v27 = vpop.f32.mrb[111].mxu0  ;;  %12599 = vmatprep.subr.bf16.mxu1 %v14763_v52  ;;  %12611 = vmatprep.subr.bf16.mxu0 %v14763_v52  ;;  %v4453_v15 = vmax.f32 %v4441_v31, 0.0 }
 0x773   : > { %v4436_v47 = vadd.f32 %v11346_v21, %v4435_v27  ;;  %v4451_v39 = vmax.f32 %v4433_v33, 0.0 }
 0x774   : > { %v4454_v14 = vmax.f32 %v4444_v0, 0.0 }
 0x775   : > { %v4452_v9 = vmax.f32 %v4436_v47, 0.0  ;;  %12600 = vmatpush3.bf16.msra.mxu1 %v16206_v25  ;;  %12612 = vmatpush3.bf16.msra.mxu0 %v16206_v25 }
 0x776   : > { %v16216_v36 = vpack.c.bf16 %v4454_v14, %v4453_v15  ;;  %12601 = vmatprep.subr.bf16.mxu1 %v14763_v52  ;;  %12613 = vmatprep.subr.bf16.mxu0 %v14763_v52 }
 0x777   : > { %v16220_v38 = vpack.c.bf16 %v4452_v9, %v4451_v39 }
 0x779   : > { %12602 = vmatpush3.bf16.msra.mxu1 %v16220_v38  ;;  %12614 = vmatpush3.bf16.msra.mxu0 %v16220_v38 }
 0x77a   : > { %12603 = vmatprep.subr.bf16.mxu1 %v14763_v52  ;;  %12615 = vmatprep.subr.bf16.mxu0 %v14763_v52 }
 0x77d   : > { %12604 = vmatpush3.bf16.msra.mxu1 %v16216_v36  ;;  %12616 = vmatpush3.bf16.msra.mxu0 %v16216_v36 }
 0x77e   : > { %12621 = vmatprep.subr.bf16.mxu1 %v14763_v52  ;;  %12633 = vmatprep.subr.bf16.mxu0 %v14763_v52 }
 0x780   : > { %12606 = vmatmul.mubr.msk.bf16.vlgmr.msra.gmra.mrb[112].mxu1 %vm3738_vm4, %v16011_v41  ;;  %12618 = vmatmul.mubr.msk.bf16.vlgmr.msra.gmra.mrb[112].mxu0 %vm3738_vm4, %v16041_v12  ;;  %v13789_v41 = vld [vmem:[%s17592_s12] sm:$0xff]  }
 0x781   : > { %12622 = vmatpush3.bf16.msra.mxu1 %v16208_v30  ;;  %12634 = vmatpush3.bf16.msra.mxu0 %v16208_v30 }
 0x782   : > { %12623 = vmatprep.subr.bf16.mxu1 %v14763_v52  ;;  %12635 = vmatprep.subr.bf16.mxu0 %v14763_v52 }
 0x783   : > { %12629 = vmatprep.mubr.msk.bf16.mxu1 %vm14764_vm3, %v14763_v52  ;;  %12641 = vmatprep.mubr.msk.bf16.mxu0 %vm14764_vm3, %v14763_v52 }
 0x785   : > { %12624 = vmatpush3.bf16.msra.mxu1 %v16206_v25  ;;  %12636 = vmatpush3.bf16.msra.mxu0 %v16206_v25 }
 0x786   : > { %12625 = vmatprep.subr.bf16.mxu1 %v14763_v52  ;;  %12637 = vmatprep.subr.bf16.mxu0 %v14763_v52 }
 0x789   : > { %12626 = vmatpush3.bf16.msra.mxu1 %v16220_v38  ;;  %12638 = vmatpush3.bf16.msra.mxu0 %v16220_v38 }
 0x78a   : > { %12627 = vmatprep.subr.bf16.mxu1 %v14763_v52  ;;  %12639 = vmatprep.subr.bf16.mxu0 %v14763_v52 }
 0x78d   : > { %12628 = vmatpush3.bf16.msra.mxu1 %v16216_v36  ;;  %12640 = vmatpush3.bf16.msra.mxu0 %v16216_v36 }
 0x78e   : > { %12645 = vmatprep.subr.bf16.mxu1 %v14763_v52  ;;  %12657 = vmatprep.subr.bf16.mxu0 %v14763_v52 }
 0x790   : > { %12630 = vmatmul.mubr.msk.bf16.vlgmr.msra.gmra.mrb[116].mxu1 %vm3738_vm4, %v16014_v10  ;;  %12642 = vmatmul.mubr.msk.bf16.vlgmr.msra.gmra.mrb[116].mxu0 %vm3738_vm4, %v16071_v16  ;;  %v13790_v10 = vld [vmem:[%s17592_s12 + $0x8] ss:$0 sps:$4 sm:$0xff]  }
 0x791   : > { %12646 = vmatpush3.bf16.msra.mxu1 %v16208_v30  ;;  %12658 = vmatpush3.bf16.msra.mxu0 %v16208_v30  ;;  %v4933_v12 = vsel %vm4301_vm5, %v13790_v10, 0 }
 0x792   : > { %12647 = vmatprep.subr.bf16.mxu1 %v14763_v52  ;;  %12659 = vmatprep.subr.bf16.mxu0 %v14763_v52 }
 0x793   : > { %12653 = vmatprep.mubr.msk.bf16.mxu1 %vm14764_vm3, %v14763_v52  ;;  %12665 = vmatprep.mubr.msk.bf16.mxu0 %vm14764_vm3, %v14763_v52 }
 0x795   : > { %12648 = vmatpush3.bf16.msra.mxu1 %v16206_v25  ;;  %12660 = vmatpush3.bf16.msra.mxu0 %v16206_v25 }
 0x796   : > { %12649 = vmatprep.subr.bf16.mxu1 %v14763_v52  ;;  %12661 = vmatprep.subr.bf16.mxu0 %v14763_v52 }
 0x799   : > { %12650 = vmatpush3.bf16.msra.mxu1 %v16220_v38  ;;  %12662 = vmatpush3.bf16.msra.mxu0 %v16220_v38 }
 0x79a   : > { %12651 = vmatprep.subr.bf16.mxu1 %v14763_v52  ;;  %12663 = vmatprep.subr.bf16.mxu0 %v14763_v52 }
 0x79d   : > { %12652 = vmatpush3.bf16.msra.mxu1 %v16216_v36  ;;  %12664 = vmatpush3.bf16.msra.mxu0 %v16216_v36 }
 0x79e   : > { %12669 = vmatprep.subr.bf16.mxu1 %v14763_v52  ;;  %12681 = vmatprep.subr.bf16.mxu0 %v14763_v52 }
 0x7a0   : > { %12654 = vmatmul.mubr.msk.bf16.vlgmr.msra.gmra.mrb[120].mxu1 %vm3738_vm4, %v16044_v13  ;;  %12666 = vmatmul.mubr.msk.bf16.vlgmr.msra.gmra.mrb[120].mxu0 %vm3738_vm4, %v16101_v19  ;;  %v4455_v13 = vld [vmem:[%s17593_s28] sm:$0xff]  ;;  %s17595_s28 = sld [smem:[#allocation70_spill]] }
 0x7a1   : > { %12670 = vmatpush3.bf16.msra.mxu1 %v16208_v30  ;;  %12682 = vmatpush3.bf16.msra.mxu0 %v16208_v30  ;;  %v4506_v16 = vrot.slane %v4455_v13, %v16144_v53  ;;  %v4602_v8 = vrot.slane %v4455_v13, %v16150_v32  ;;  %v4651_v50 = vrot.slane %v4455_v13, %v16162_v18 }
 0x7a2   : > { %12671 = vmatprep.subr.bf16.mxu1 %v14763_v52  ;;  %12683 = vmatprep.subr.bf16.mxu0 %v14763_v52  ;;  %v4700_v0 = vrot.slane %v4455_v13, %v16165_v60  ;;  %v4749_v27 = vrot.slane %v4455_v13, %v16172_v51 }
 0x7a3   : > { %12677 = vmatprep.mubr.msk.bf16.mxu1 %vm14764_vm3, %v14763_v52  ;;  %12689 = vmatprep.mubr.msk.bf16.mxu0 %vm14764_vm3, %v14763_v52 }
 0x7a5   : > { %12672 = vmatpush3.bf16.msra.mxu1 %v16206_v25  ;;  %12684 = vmatpush3.bf16.msra.mxu0 %v16206_v25 }
 0x7a6   : > { %12673 = vmatprep.subr.bf16.mxu1 %v14763_v52  ;;  %12685 = vmatprep.subr.bf16.mxu0 %v14763_v52  ;;  %s17596_s0 = smov %s17595_s28 }
 0x7a9   : > { %12674 = vmatpush3.bf16.msra.mxu1 %v16220_v38  ;;  %12686 = vmatpush3.bf16.msra.mxu0 %v16220_v38 }
 0x7aa   : > { %12675 = vmatprep.subr.bf16.mxu1 %v14763_v52  ;;  %12687 = vmatprep.subr.bf16.mxu0 %v14763_v52 }
 0x7ad   : > { %12676 = vmatpush3.bf16.msra.mxu1 %v16216_v36  ;;  %12688 = vmatpush3.bf16.msra.mxu0 %v16216_v36 }
 0x7ae   : > { %12693 = vmatprep.subr.bf16.mxu1 %v14763_v52  ;;  %12705 = vmatprep.subr.bf16.mxu0 %v14763_v52 }
 0x7b0   : > { %12678 = vmatmul.mubr.msk.bf16.vlgmr.msra.gmra.mrb[124].mxu1 %vm3738_vm4, %v16074_v37  ;;  %12690 = vmatmul.mubr.msk.bf16.vlgmr.msra.gmra.mrb[124].mxu0 %vm3738_vm4, %v16125_v20  ;;  %v4553_v37 = vrot.slane %v4455_v13, %v16147_v58 }
 0x7b1   : > { %12694 = vmatpush3.bf16.msra.mxu1 %v16208_v30  ;;  %12701 = vmatprep.mubr.msk.bf16.mxu1 %vm14764_vm3, %v14763_v52 }
 0x7b2   : > { %12695 = vmatprep.subr.bf16.mxu1 %v14763_v52  ;;  %12709 = vmatprep.mubr.msk.bf16.mxu0 %vm14764_vm3, %v14763_v52 }
 0x7b3   : > { %12706 = vmatpush3.bf16.msra.mxu0 %v13789_v41 }
 0x7b4   : > { %12707 = vmatprep.subr.bf16.mxu0 %v14763_v52 }
 0x7b5   : > { %12696 = vmatpush3.bf16.msra.mxu1 %v16206_v25 }
 0x7b6   : > { %12697 = vmatprep.subr.bf16.mxu1 %v14763_v52 }
 0x7b7   : > { %12708 = vmatpush3.bf16.msra.mxu0 %v4933_v12 }
 0x7b8   : > { %12713 = vmatprep.subr.bf16.mxu0 %v14763_v52 }
 0x7b9   : > { %12698 = vmatpush3.bf16.msra.mxu1 %v16220_v38 }
 0x7ba   : > { %12699 = vmatprep.subr.bf16.mxu1 %v14763_v52 }
 0x7bd   : > { %12700 = vmatpush3.bf16.msra.mxu1 %v16216_v36 }
 0x7c0   : > { %12702 = vmatmul.mubr.msk.bf16.vlgmr.msra.gmra.mrb[128].mxu1 %vm3738_vm4, %v16104_v61 }
 0x853   : > { %v4496_v19 = vpop.f32.mrb[112].mxu1  ;;  %v4543_v20 = vpop.f32.mrb[112].mxu0 }
 0x854   : > { %v4507_v24 = vmul.f32 %v4506_v16, %v4496_v19  ;;  %v12607_v35 = vpop.f32.mrb[113].mxu1  ;;  %v4554_v61 = vmul.f32 %v4553_v37, %v4543_v20  ;;  %v12619_v42 = vpop.f32.mrb[113].mxu0 }
 0x855   : > { %v4499_v45 = vpop.f32.mrb[114].mxu1  ;;  %v4546_v43 = vpop.f32.mrb[114].mxu0  ;;  %v4847_v42 = vrot.slane %v4455_v13, %v16182_v22 }
 0x856   : > { %v4556_v54 = vadd.f32 %v4554_v61, %v4507_v24  ;;  %v4508_v34 = vmul.f32 %v4506_v16, %v4499_v45  ;;  %v12608_v63 = vpop.f32.mrb[115].mxu1  ;;  %v4555_v55 = vmul.f32 %v4553_v37, %v4546_v43  ;;  %v12620_v21 = vpop.f32.mrb[115].mxu0  ;;  %v4798_v61 = vrot.slane %v4455_v13, %v16175_v46 }
 0x858   : > { %v4557_v49 = vadd.f32 %v4555_v55, %v4508_v34 }
 0x863   : > { %v4592_v48 = vpop.f32.mrb[116].mxu1  ;;  %v4641_v56 = vpop.f32.mrb[116].mxu0 }
 0x864   : > { %v4603_v17 = vmul.f32 %v4602_v8, %v4592_v48  ;;  %v12631_v44 = vpop.f32.mrb[117].mxu1  ;;  %v4652_v29 = vmul.f32 %v4651_v50, %v4641_v56  ;;  %v12643_v11 = vpop.f32.mrb[117].mxu0 }
 0x865   : > { %v4595_v28 = vpop.f32.mrb[118].mxu1  ;;  %v4644_v1 = vpop.f32.mrb[118].mxu0 }
 0x866   : > { %v4605_v62 = vadd.f32 %v4603_v17, %v4556_v54  ;;  %v4604_v25 = vmul.f32 %v4602_v8, %v4595_v28  ;;  %v4653_v30 = vmul.f32 %v4651_v50, %v4644_v1  ;;  %v12632_v59 = vpop.f32.mrb[119].mxu1  ;;  %v12644_v31 = vpop.f32.mrb[119].mxu0  ;;  %v11362_v28 = vld [vmem:[%s17594_s18 + $0x8] ss:$0 sm:$0xff] }
 0x868   : > { %v4606_v57 = vadd.f32 %v4604_v25, %v4557_v49  ;;  %v4654_v33 = vadd.f32 %v4652_v29, %v4605_v62 }
 0x86a   : > { %v4655_v40 = vadd.f32 %v4653_v30, %v4606_v57  ;;  %v11363_v57 = vld [vmem:[#allocation9] ss:$0 sm:$0xff] }
 0x873   : > { %v4690_v47 = vpop.f32.mrb[120].mxu1  ;;  %v4739_v15 = vpop.f32.mrb[120].mxu0 }
 0x874   : > { %v4701_v14 = vmul.f32 %v4700_v0, %v4690_v47  ;;  %v12655_v39 = vpop.f32.mrb[121].mxu1  ;;  %v4750_v9 = vmul.f32 %v4749_v27, %v4739_v15  ;;  %v12667_v36 = vpop.f32.mrb[121].mxu0  ;;  %v16338_v47 = vld [vmem:[%s17595_s28] sm:$0xff]   ;;  %v13792_v15 = vld [vmem:[%s17596_s0 + $0x8] ss:$0 sps:$4 sm:$0xff]   ;;  %s16361_s28 = smov 0  }
 0x875   : > { %v4693_v38 = vpop.f32.mrb[122].mxu1  ;;  %v4742_v41 = vpop.f32.mrb[122].mxu0  ;;  %v11364_v39 = vld [vmem:[#allocation12] ss:$0 sm:$0xff] }
 0x876   : > { %v4703_v10 = vadd.f32 %v4701_v14, %v4654_v33  ;;  %v4702_v12 = vmul.f32 %v4700_v0, %v4693_v38  ;;  %v4751_v16 = vmul.f32 %v4749_v27, %v4742_v41  ;;  %v12656_v37 = vpop.f32.mrb[123].mxu1  ;;  %v12668_v19 = vpop.f32.mrb[123].mxu0  ;;  %v16344_v14 = vsel %vm4301_vm5, %v13792_v15, 0 }
 0x877   : > { %v13793_v19 = vld [vmem:[%s17597_s1] sm:$0xff]  }
 0x878   : > { %v4704_v20 = vadd.f32 %v4702_v12, %v4655_v40  ;;  %v4752_v24 = vadd.f32 %v4750_v9, %v4703_v10 }
 0x87a   : > { %v4753_v35 = vadd.f32 %v4751_v16, %v4704_v20 }
 0x883   : > { %v4788_v45 = vpop.f32.mrb[124].mxu1  ;;  %v4837_v43 = vpop.f32.mrb[124].mxu0 }
 0x884   : > { %v4799_v54 = vmul.f32 %v4798_v61, %v4788_v45  ;;  %v12679_v34 = vpop.f32.mrb[125].mxu1  ;;  %v4848_v63 = vmul.f32 %v4847_v42, %v4837_v43  ;;  %v12691_v55 = vpop.f32.mrb[125].mxu0 }
 0x885   : > { %v4791_v21 = vpop.f32.mrb[126].mxu1  ;;  %v4840_v49 = vpop.f32.mrb[126].mxu0 }
 0x886   : > { %v4801_v8 = vadd.f32 %v4799_v54, %v4752_v24  ;;  %v4800_v50 = vmul.f32 %v4798_v61, %v4791_v21  ;;  %v4849_v48 = vmul.f32 %v4847_v42, %v4840_v49  ;;  %v12680_v56 = vpop.f32.mrb[127].mxu1  ;;  %v12692_v17 = vpop.f32.mrb[127].mxu0  ;;  %v13794_v24 = vld [vmem:[%s17597_s1 + $0x8] ss:$0 sps:$4 sm:$0xff]  }
 0x888   : > { %v4802_v44 = vadd.f32 %v4800_v50, %v4753_v35  ;;  %v4850_v29 = vadd.f32 %v4848_v63, %v4801_v8  ;;  %v5055_v35 = vsel %vm4301_vm5, %v13794_v24, 0 }
 0x88a   : > { %v4851_v11 = vadd.f32 %v4849_v48, %v4802_v44 }
 0x893   : > { %v4886_v13 = vpop.f32.mrb[128].mxu1 }
 0x894   : > { %v4897_v1 = vmul.f32 %v11362_v28, %v4886_v13  ;;  %v12703_v62 = vpop.f32.mrb[129].mxu1 }
 0x895   : > { %v4889_v25 = vpop.f32.mrb[130].mxu1 }
 0x896   : > { %v4899_v30 = vadd.f32 %v4897_v1, %v4850_v29  ;;  %v4898_v59 = vmul.f32 %v11362_v28, %v4889_v25  ;;  %v12704_v31 = vpop.f32.mrb[131].mxu1 }
 0x898   : > { %v4900_v33 = vadd.f32 %v4898_v59, %v4851_v11  ;;  %v4907_v40 = vadd.f32 %v11363_v57, %v4899_v30 }
 0x89a   : > { %v4908_v0 = vadd.f32 %v11363_v57, %v4900_v33 }
 0x89c   : > { %v4913_v27 = vpack.c.bf16 %v4908_v0, %v4907_v40 }
 0x89e   : > { %12710 = vmatmul.mubr.msk.bf16.vlgmr.msra.gmra.mrb[128].mxu0 %vm4297_vm6, %v4913_v27 }
 0x89f   : > { %12717 = vmatprep.mubr.msk.bf16.mxu0 %vm14764_vm3, %v14763_v52  ;;  %12714 = vmatpush3.bf16.msra.mxu0 %v16338_v47 }
 0x8a0   : > { %12715 = vmatprep.subr.bf16.mxu0 %v14763_v52 }
 0x8a3   : > { %12716 = vmatpush3.bf16.msra.mxu0 %v16344_v14 }
 0x8a4   : > { %12721 = vmatprep.subr.bf16.mxu0 %v14763_v52 }
 0x971   : > { %v4969_v9 = vpop.f32.mrb[128].mxu0 }
 0x972   : > { %v4970_v36 = vadd.f32 %v11364_v39, %v4969_v9  ;;  %v12711_v38 = vpop.f32.mrb[129].mxu0 }
 0x973   : > { %v4972_v41 = vpop.f32.mrb[130].mxu0 }
 0x974   : > { %v4973_v10 = vadd.f32 %v11364_v39, %v4972_v41  ;;  %v12712_v12 = vpop.f32.mrb[131].mxu0  ;;  %v4976_v16 = vmax.f32 %v4970_v36, 0.0 }
 0x976   : > { %v4977_v37 = vmax.f32 %v4973_v10, 0.0 }
 0x978   : > { %v4985_v20 = vpack.c.bf16 %v4977_v37, %v4976_v16 }
 0x97a   : > { %12718 = vmatmul.mubr.msk.bf16.vlgmr.msra.gmra.mrb[132].mxu0 %vm4297_vm6, %v4985_v20 }
 0x97b   : > { %12722 = vmatpush3.bf16.msra.mxu0 %v13793_v19  ;;  %12725 = vmatprep.mubr.msk.bf16.mxu0 %vm14764_vm3, %v14763_v52 }
 0x97c   : > { %12723 = vmatprep.subr.bf16.mxu0 %v14763_v52 }
 0x97f   : > { %12724 = vmatpush3.bf16.msra.mxu0 %v5055_v35 }
 0x986   : > { %12726 = vmatmul.mubr.msk.bf16.vlgmr.msra.gmra.mrb[132].mxu0 %vm4297_vm6, %v16204_v26 }
 0xa59   : > { %v5091_v61 = vpop.f32.mrb[132].mxu0  }
 0xa5a   : > { %v12727_v42 = vpop.f32.mrb[133].mxu0 }
 0xa5b   : > { %v5094_v45 = vpop.f32.mrb[134].mxu0  }
 0xa5c   : > { %v12728_v43 = vpop.f32.mrb[135].mxu0 }
 0xa5d LB: >> { %s17598_s0 = sld [smem:[#allocation57_spill]]  ;;  %v14765_v26 = vmov 0.0   ;;  %vm14766_vm7 = vmmov 0   ;;  %s11749_s1 = smul.u32 24, %s14647_s28  ;;  %v16378_v55 = vpack.c.bf16 %v14639_v45, %v14643_v61  ;;  %vm5148_vm8 = vcmask 392192   ;;  %s14647_s28 = sphi %s16361_s28, %s5109_s28   ;;  %v14643_v61 = vphi %v5091_v61, %v17603_v61   ;;  %v14639_v45 = vphi %v5094_v45, %v17602_v45  }
 0xa5e   : >> { %12729 = vmatprep.subr.bf16.mxu0 %v14765_v26  ;;  %12735 = vmatprep.mubr.msk.bf16.mxu0 %vm14766_vm7, %v14765_v26  ;;  %s17599_s3 = sld [smem:[#allocation71_spill]]  ;;  %vm5209_vm9 = vcmask 130048   ;;  %s11380_s8 = sshll.u32 %s14647_s28, 4 }
 0xa5f   : >> { %12739 = vmatprep.subr.bf16.mxu1 %v14765_v26  ;;  %12741 = vmatprep.mubr.msk.bf16.mxu1 %vm14766_vm7, %v14765_v26 }
 0xa63   : >> { %s5114_s2 = scalar_lea.vmem %s17598_s0, %s11749_s1  ;;  %s5121_s0 = scalar_lea.vmem [#allocation4], %s14647_s28 }
 0xa64   : >> { %v13795_v54 = vld [vmem:[%s5114_s2] sm:$0xff]   ;;  %v13796_v34 = vld [vmem:[%s5114_s2 + $0x8] sm:$0xff]   ;;  %v13797_v63 = vld [vmem:[%s5114_s2 + $0x10] sm:$0xff]   ;;  %s17600_s1 = sld [smem:[#allocation58_spill]]  ;;  %s17601_s2 = sld [smem:[#allocation55_spill]] }
 0xa65   : >> { %12730 = vmatpush3.bf16.msra.mxu0 %v13795_v54  ;;  %v11375_v21 = vld [vmem:[%s5121_s0] ss:$0 sm:$0xff]  ;;  %v13800_v1 = vld [vmem:[%s17599_s3 + $0x8] sm:$0xff]   ;;  %v13801_v62 = vld [vmem:[%s17599_s3 + $0x30] sm:$0xff]   ;;  %s11750_s0 = smul.u32 12, %s14647_s28 }
 0xa66   : >> { %12731 = vmatprep.subr.bf16.mxu0 %v14765_v26  ;;  %v13798_v28 = vld [vmem:[%s17599_s3] sm:$0xff]   ;;  %v13802_v25 = vld [vmem:[%s17599_s3 + $0x10] sm:$0xff]   ;;  %v13803_v59 = vld [vmem:[%s17599_s3 + $0x18] sm:$0xff]  }
 0xa67   : >> { %v13799_v13 = vld [vmem:[%s17599_s3 + $0x20] sm:$0xff]   ;;  %v13804_v31 = vld [vmem:[%s17599_s3 + $0x28] sm:$0xff]   ;;  %v13805_v57 = vld [vmem:[%s17599_s3 + $0x38] sm:$0xff]  }
 0xa68   : >> { %v13806_v30 = vld [vmem:[%s17599_s3 + $0x40] sm:$0xff]  }
 0xa69   : >> { %12732 = vmatpush3.bf16.msra.mxu0 %v13796_v34 }
 0xa6a   : >> { %12733 = vmatprep.subr.bf16.mxu0 %v14765_v26  ;;  %s5750_s7 = scalar_lea.vmem %s17600_s1, %s11750_s0  ;;  %s16441_s9 = scalar_lea.vmem %s17601_s2, %s11380_s8 }
 0xa6b   : >> { %v13807_v33 = vld [vmem:[%s5750_s7] sm:$0xff]   ;;  %v13808_v40 = vld [vmem:[%s5750_s7 + $0x8] ss:$0 sps:$4 sm:$0xff]   ;;  %s5199_s8 = scalar_lea.vmem [#allocation2], %s14647_s28  ;;  %s5754_s7 = scalar_lea.vmem [#allocation6], %s14647_s28 }
 0xa6c   : >> { %v5776_v0 = vsel %vm4301_vm5, %v13808_v40, 0  ;;  %v5197_v36 = vld [vmem:[%s16441_s9] sm:$0xff]  ;;  %s5109_s28 = sadd.s32 1, %s14647_s28  }
 0xa6d   : >> { %12734 = vmatpush3.bf16.msra.mxu0 %v13797_v63  ;;  %v5257_v16 = vrot.slane %v5197_v36, %v16144_v53  ;;  %v5315_v37 = vrot.slane %v5197_v36, %v16147_v58  ;;  %p5106_p8 = scmp.ge.s32.totalorder %s5109_s28, 3  }
 0xa6e   : >> { %12763 = vmatprep.subr.bf16.mxu0 %v14765_v26  ;;  %s17605_s28 = sld [smem:[#allocation84_spill]] (%p5106_p8)  ;;  %s17607_s2 = sld [smem:[#allocation80_spill]] (%p5106_p8) }
 0xa6f   : > { %s17608_s0 = sld [smem:[#allocation78_spill]] (%p5106_p8) }
 0xa70   : >> { %12736 = vmatmul.mubr.msk.bf16.vlgmr.msra.gmra.mrb[0].mxu0 %vm5148_vm8, %v16378_v55 }
 0xa71   : >> { %12765 = vmatprep.mubr.msk.bf16.mxu0 %vm14766_vm7, %v14765_v26 }
 0xa74   : > { %s17606_s1 = smov (%p5106_p8), %s17605_s28 }
 0xb43   : >> { %v5186_v49 = vpop.f32.mrb[0].mxu0 }
 0xb44   : >> { %v5187_v8 = vadd.f32 %v11375_v21, %v5186_v49  ;;  %v12737_v50 = vpop.f32.mrb[1].mxu0 }
 0xb45   : >> { %v5189_v48 = vpop.f32.mrb[2].mxu0  ;;  %v5375_v50 = vrot.slane %v5197_v36, %v16150_v32 }
 0xb46   : >> { %v5190_v56 = vadd.f32 %v11375_v21, %v5189_v48  ;;  %v12738_v17 = vpop.f32.mrb[3].mxu0  ;;  %v5193_v44 = vmax.f32 %v5187_v8, 0.0 }
 0xb48   : >> { %v5194_v29 = vmax.f32 %v5190_v56, 0.0 }
 0xb4a   : >> { %v5201_v11 = vpack.c.bf16 %v5194_v29, %v5193_v44 }
 0xb4c   : >> { %12740 = vmatpush3.bf16.msra.mxu1 %v5201_v11  ;;  %12764 = vmatpush3.bf16.msra.mxu0 %v5201_v11 }
 0xb4d   : >> { %12745 = vmatprep.subr.bf16.mxu1 %v14765_v26  ;;  %12775 = vmatprep.subr.bf16.mxu0 %v14765_v26 }
 0xb4f   : >> { %12742 = vmatmul.mubr.msk.bf16.vlgmr.msra.gmra.mrb[0].mxu1 %vm5209_vm9, %v13798_v28  ;;  %12766 = vmatmul.mubr.msk.bf16.vlgmr.msra.gmra.mrb[4].mxu0 %vm5209_vm9, %v13799_v13 }
 0xb50   : >> { %12746 = vmatpush3.bf16.msra.mxu1 %v5201_v11  ;;  %12776 = vmatpush3.bf16.msra.mxu0 %v5201_v11 }
 0xb51   : >> { %12747 = vmatprep.mubr.msk.bf16.mxu1 %vm14766_vm7, %v14765_v26  ;;  %12751 = vmatprep.subr.bf16.mxu1 %v14765_v26 }
 0xb52   : >> { %12777 = vmatprep.mubr.msk.bf16.mxu0 %vm14766_vm7, %v14765_v26  ;;  %12787 = vmatprep.subr.bf16.mxu0 %v14765_v26 }
 0xb57   : >> { %12748 = vmatmul.mubr.msk.bf16.vlgmr.msra.gmra.mrb[4].mxu1 %vm5209_vm9, %v13800_v1  ;;  %12778 = vmatmul.mubr.msk.bf16.vlgmr.msra.gmra.mrb[8].mxu0 %vm5209_vm9, %v13801_v62 }
 0xb58   : >> { %12752 = vmatpush3.bf16.msra.mxu1 %v5201_v11  ;;  %12788 = vmatpush3.bf16.msra.mxu0 %v5201_v11 }
 0xb59   : >> { %12753 = vmatprep.mubr.msk.bf16.mxu1 %vm14766_vm7, %v14765_v26  ;;  %12757 = vmatprep.subr.bf16.mxu1 %v14765_v26 }
 0xb5a   : >> { %12789 = vmatprep.mubr.msk.bf16.mxu0 %vm14766_vm7, %v14765_v26  ;;  %12801 = vmatprep.subr.bf16.mxu0 %v14765_v26 }
 0xb5f   : >> { %12754 = vmatmul.mubr.msk.bf16.vlgmr.msra.gmra.mrb[8].mxu1 %vm5209_vm9, %v13802_v25  ;;  %12790 = vmatmul.mubr.msk.bf16.vlgmr.msra.gmra.mrb[12].mxu0 %vm5209_vm9, %v13806_v30 }
 0xb60   : >> { %12758 = vmatpush3.bf16.msra.mxu1 %v5201_v11  ;;  %12759 = vmatprep.mubr.msk.bf16.mxu1 %vm14766_vm7, %v14765_v26 }
 0xb61   : >> { %12769 = vmatprep.subr.bf16.mxu1 %v14765_v26  ;;  %12802 = vmatpush3.bf16.msra.mxu0 %v16338_v47 }
 0xb62   : >> { %12803 = vmatprep.subr.bf16.mxu0 %v14765_v26  ;;  %12805 = vmatprep.mubr.msk.bf16.mxu0 %vm14766_vm7, %v14765_v26 }
 0xb65   : >> { %12804 = vmatpush3.bf16.msra.mxu0 %v16344_v14  ;;  %v13809_v14 = vld [vmem:[%s17605_s28] sm:$0xff] (%p5106_p8)   ;;  %s17611_s28 = sld [smem:[#allocation82_spill]] (%p5106_p8) }
 0xb66   : >> { %12809 = vmatprep.subr.bf16.mxu0 %v14765_v26 }
 0xb67   : >> { %12760 = vmatmul.mubr.msk.bf16.vlgmr.msra.gmra.mrb[12].mxu1 %vm5209_vm9, %v13803_v59  ;;  %v5435_v59 = vrot.slane %v5197_v36, %v16162_v18 }
 0xb68   : >> { %12770 = vmatpush3.bf16.msra.mxu1 %v5201_v11  ;;  %12771 = vmatprep.mubr.msk.bf16.mxu1 %vm14766_vm7, %v14765_v26 }
 0xb69   : >> { %12781 = vmatprep.subr.bf16.mxu1 %v14765_v26 }
 0xb6f   : >> { %12772 = vmatmul.mubr.msk.bf16.vlgmr.msra.gmra.mrb[16].mxu1 %vm5209_vm9, %v13804_v31  ;;  %v5495_v31 = vrot.slane %v5197_v36, %v16165_v60 }
 0xb70   : >> { %12782 = vmatpush3.bf16.msra.mxu1 %v5201_v11  ;;  %12783 = vmatprep.mubr.msk.bf16.mxu1 %vm14766_vm7, %v14765_v26 }
 0xb71   : >> { %12793 = vmatprep.subr.bf16.mxu1 %v14765_v26 }
 0xb77   : >> { %12784 = vmatmul.mubr.msk.bf16.vlgmr.msra.gmra.mrb[20].mxu1 %vm5209_vm9, %v13805_v57 }
 0xb78   : >> { %12797 = vmatprep.mubr.msk.bf16.mxu1 %vm14766_vm7, %v14765_v26  ;;  %12794 = vmatpush3.bf16.msra.mxu1 %v13807_v33 }
 0xb79   : >> { %12795 = vmatprep.subr.bf16.mxu1 %v14765_v26 }
 0xb7c   : >> { %12796 = vmatpush3.bf16.msra.mxu1 %v5776_v0 }
 0xb7d   : > { %12837 = vmatprep.subr.bf16.mxu1 (%p5106_p8), %v14763_v52 }
 0xc22   : >> { %v5247_v27 = vpop.f32.mrb[0].mxu1  ;;  %v5485_v15 = vpop.f32.mrb[4].mxu0 }
 0xc23   : >> { %v12743_v39 = vpop.f32.mrb[1].mxu1  ;;  %v12767_v9 = vpop.f32.mrb[5].mxu0  ;;  %v5258_v24 = vmul.f32 %v5257_v16, %v5247_v27  ;;  %v5496_v40 = vmul.f32 %v5495_v31, %v5485_v15 }
 0xc24   : >> { %v5250_v38 = vpop.f32.mrb[2].mxu1  ;;  %v5488_v41 = vpop.f32.mrb[6].mxu0 }
 0xc25   : >> { %v12744_v10 = vpop.f32.mrb[3].mxu1  ;;  %v12768_v12 = vpop.f32.mrb[7].mxu0  ;;  %v5259_v54 = vmul.f32 %v5257_v16, %v5250_v38 }
 0xc26   : >> { %v5555_v10 = vrot.slane %v5197_v36, %v16172_v51 }
 0xc2a   : >> { %v5305_v19 = vpop.f32.mrb[4].mxu1  ;;  %v5605_v20 = vpop.f32.mrb[8].mxu0 }
 0xc2b   : >> { %v5316_v35 = vmul.f32 %v5315_v37, %v5305_v19  ;;  %v12749_v61 = vpop.f32.mrb[5].mxu1  ;;  %v12779_v42 = vpop.f32.mrb[9].mxu0  ;;  %v5615_v19 = vrot.slane %v5197_v36, %v16175_v46 }
 0xc2c   : >> { %v5308_v45 = vpop.f32.mrb[6].mxu1  ;;  %v5608_v43 = vpop.f32.mrb[10].mxu0 }
 0xc2d   : >> { %v5318_v34 = vadd.f32 %v5316_v35, %v5258_v24  ;;  %v5317_v63 = vmul.f32 %v5315_v37, %v5308_v45  ;;  %v12750_v21 = vpop.f32.mrb[7].mxu1  ;;  %v12780_v49 = vpop.f32.mrb[11].mxu0  ;;  %v5497_v37 = vmul.f32 %v5495_v31, %v5488_v41  ;;  %v5616_v42 = vmul.f32 %v5615_v19, %v5605_v20  ;;  %v11416_v31 = vld [vmem:[%s5199_s8] ss:$0 sm:$0xff]  ;;  %s17609_s8 = sld [smem:[#allocation86_spill]] (%p5106_p8) }
 0xc2f   : >> { %v5319_v8 = vadd.f32 %v5317_v63, %v5259_v54 }
 0xc32   : >> { %v5365_v48 = vpop.f32.mrb[8].mxu1  ;;  %v5725_v56 = vpop.f32.mrb[12].mxu0 }
 0xc33   : >> { %v5376_v17 = vmul.f32 %v5375_v50, %v5365_v48  ;;  %v12755_v44 = vpop.f32.mrb[9].mxu1  ;;  %v12791_v29 = vpop.f32.mrb[13].mxu0  ;;  %v11415_v48 = vld [vmem:[%s16441_s9 + $0x8] ss:$0 sm:$0xff]  ;;  %s17604_s9 = sld [smem:[#allocation87_spill]] (%p5106_p8) }
 0xc34   : >> { %v5368_v11 = vpop.f32.mrb[10].mxu1  ;;  %v5728_v28 = vpop.f32.mrb[14].mxu0  ;;  %v5736_v29 = vmul.f32 %v11415_v48, %v5725_v56 }
 0xc35   : >> { %v5378_v13 = vadd.f32 %v5376_v17, %v5318_v34  ;;  %v5377_v1 = vmul.f32 %v5375_v50, %v5368_v11  ;;  %v12756_v62 = vpop.f32.mrb[11].mxu1  ;;  %v12792_v25 = vpop.f32.mrb[15].mxu0  ;;  %v5675_v50 = vrot.slane %v5197_v36, %v16182_v22 }
 0xc37   : >> { %v5379_v30 = vadd.f32 %v5377_v1, %v5319_v8  ;;  %v5617_v8 = vmul.f32 %v5615_v19, %v5608_v43  ;;  %v11425_v19 = vcombine.low %v15505_v6, %v15508_v7 }
 0xc39   : > { %v16532_v6 = vld [vmem:[%s17604_s9 + $0x8] sm:$0x3] (%p5106_p8)  ;;  %v16540_v7 = vld [vmem:[%s17604_s9 + $0xc] sm:$0x3] (%p5106_p8)  ;;  %v16548_v47 = vld [vmem:[%s17604_s9 + $0x10] sm:$0x3] (%p5106_p8) }
 0xc3a   : >> { %v5425_v57 = vpop.f32.mrb[12].mxu1 }
 0xc3b   : >> { %v5436_v33 = vmul.f32 %v5435_v59, %v5425_v57  ;;  %v12761_v0 = vpop.f32.mrb[13].mxu1 }
 0xc3c   : >> { %v5428_v27 = vpop.f32.mrb[14].mxu1 }
 0xc3d   : >> { %v5438_v39 = vadd.f32 %v5436_v33, %v5378_v13  ;;  %v5437_v9 = vmul.f32 %v5435_v59, %v5428_v27  ;;  %v12762_v38 = vpop.f32.mrb[15].mxu1  ;;  %v5737_v59 = vmul.f32 %v11415_v48, %v5728_v28  ;;  %v11423_v28 = vcombine.low %v15493_v2, %v15496_v3  ;;  %v16498_v2 = vld [vmem:[%s17604_s9 + $0x2] sm:$0x3] (%p5106_p8)  ;;  %v16503_v3 = vld [vmem:[%s17604_s9 + $0xa] sm:$0x3] (%p5106_p8) }
 0xc3f   : >> { %v5498_v12 = vadd.f32 %v5496_v40, %v5438_v39  ;;  %v5439_v16 = vadd.f32 %v5437_v9, %v5379_v30  ;;  %v11418_v40 = vld [vmem:[%s5754_s7] ss:$0 sm:$0xff]  ;;  %s17610_s7 = sld [smem:[#allocation90_spill]] (%p5106_p8) }
 0xc41   : >> { %v5499_v24 = vadd.f32 %v5497_v37, %v5439_v16  ;;  %v11424_v37 = vcombine.low %v15499_v4, %v15502_v5  ;;  %v16517_v4 = vld [vmem:[%s17604_s9 + $0x4] sm:$0x3] (%p5106_p8)  ;;  %v16520_v5 = vld [vmem:[%s17604_s9 + $0xe] sm:$0x3] (%p5106_p8) }
 0xc42   : >> { %v5545_v35 = vpop.f32.mrb[16].mxu1 }
 0xc43   : >> { %v5556_v61 = vmul.f32 %v5555_v10, %v5545_v35  ;;  %v12773_v45 = vpop.f32.mrb[17].mxu1 }
 0xc44   : >> { %v5548_v54 = vpop.f32.mrb[18].mxu1 }
 0xc45   : >> { %v5558_v15 = vadd.f32 %v5556_v61, %v5498_v12  ;;  %v5557_v34 = vmul.f32 %v5555_v10, %v5548_v54  ;;  %v12774_v63 = vpop.f32.mrb[19].mxu1  ;;  %v16486_v54 = vld [vmem:[%s17604_s9 + $0x6] sm:$0x3] (%p5106_p8) }
 0xc46   : > { %v13813_v63 = vld [vmem:[%s17607_s2 + $0x8] sm:$0xff] (%p5106_p8)  }
 0xc47   : >> { %v5618_v21 = vadd.f32 %v5616_v42, %v5558_v15  ;;  %v5559_v49 = vadd.f32 %v5557_v34, %v5499_v24  ;;  %v13811_v15 = vld [vmem:[%s17606_s1 + $0x10] sm:$0xff] (%p5106_p8)   ;;  %v13812_v34 = vld [vmem:[%s17607_s2] sm:$0xff] (%p5106_p8)  }
 0xc49   : >> { %v5619_v17 = vadd.f32 %v5617_v8, %v5559_v49 }
 0xc4a   : >> { %v5665_v41 = vpop.f32.mrb[20].mxu1 }
 0xc4b   : >> { %v5676_v44 = vmul.f32 %v5675_v50, %v5665_v41  ;;  %v12785_v11 = vpop.f32.mrb[21].mxu1 }
 0xc4c   : >> { %v5668_v13 = vpop.f32.mrb[22].mxu1 }
 0xc4d   : >> { %v5678_v20 = vadd.f32 %v5676_v44, %v5618_v21  ;;  %v5677_v1 = vmul.f32 %v5675_v50, %v5668_v13  ;;  %v12786_v62 = vpop.f32.mrb[23].mxu1  ;;  %v13814_v21 = vld [vmem:[%s17607_s2 + $0x10] sm:$0xff] (%p5106_p8)  }
 0xc4f   : >> { %v5738_v25 = vadd.f32 %v5736_v29, %v5678_v20  ;;  %v5679_v30 = vadd.f32 %v5677_v1, %v5619_v17  ;;  %v5925_v17 = vld [vmem:[%s17608_s0] sm:$0xff] (%p5106_p8) }
 0xc50   : > { %v5977_v13 = vrot.slane (%p5106_p8), %v5925_v17, %v16144_v53  ;;  %v6027_v20 = vrot.slane (%p5106_p8), %v5925_v17, %v16147_v58 }
 0xc51   : >> { %v5739_v57 = vadd.f32 %v5737_v59, %v5679_v30  ;;  %v5746_v43 = vadd.f32 %v11416_v31, %v5738_v25 }
 0xc53   : >> { %v5747_v33 = vadd.f32 %v11416_v31, %v5739_v57 }
 0xc55   : >> { %v5756_v36 = vpack.c.bf16 %v5747_v33, %v5746_v43 }
 0xc57   : >> { %12798 = vmatmul.mubr.msk.bf16.vlgmr.msra.gmra.mrb[24].mxu1 %vm4297_vm6, %v5756_v36 }
 0xc58   : > { %12839 = vmatprep.mubr.msk.bf16.mxu1 (%p5106_p8), %vm14764_vm3, %v14763_v52 }
 0xd2a   : >> { %v5812_v56 = vpop.f32.mrb[24].mxu1 }
 0xd2b   : >> { %v5813_v0 = vadd.f32 %v11418_v40, %v5812_v56  ;;  %v12799_v27 = vpop.f32.mrb[25].mxu1  ;;  %v6078_v56 = vrot.slane (%p5106_p8), %v5925_v17, %v16150_v32 }
 0xd2c   : >> { %v5815_v39 = vpop.f32.mrb[26].mxu1 }
 0xd2d   : >> { %v5816_v9 = vadd.f32 %v11418_v40, %v5815_v39  ;;  %v12800_v38 = vpop.f32.mrb[27].mxu1  ;;  %v5819_v10 = vmax.f32 %v5813_v0, 0.0  ;;  %v6129_v0 = vrot.slane (%p5106_p8), %v5925_v17, %v16162_v18 }
 0xd2f   : >> { %v5820_v12 = vmax.f32 %v5816_v9, 0.0 }
 0xd31   : >> { %v5821_v16 = vpack.c.bf16 %v5820_v12, %v5819_v10 }
 0xd33   : >> { %12806 = vmatmul.mubr.msk.bf16.vlgmr.msra.gmra.mrb[16].mxu0 %vm4297_vm6, %v5821_v16 }
 0xd34   : >> { %12810 = vmatpush3.bf16.msra.mxu0 %v11423_v28  ;;  %12815 = vmatprep.mubr.msk.bf16.mxu0 %vm14766_vm7, %v14765_v26 }
 0xd35   : >> { %12811 = vmatprep.subr.bf16.mxu0 %v14765_v26 }
 0xd38   : >> { %12812 = vmatpush3.bf16.msra.mxu0 %v11424_v37 }
 0xd39   : >> { %12813 = vmatprep.subr.bf16.mxu0 %v14765_v26 }
 0xd3c   : >> { %12814 = vmatpush3.bf16.msra.mxu0 %v11425_v19 }
 0xd3d   : > { %12819 = vmatprep.subr.bf16.mxu0 (%p5106_p8), %v14763_v52 }
 0xd3f   : >> { %12816 = vmatmul.mubr.msk.bf16.vlgmr.msra.gmra.mrb[16].mxu0 %vm5148_vm8, %v16378_v55  ;;  %v16483_v55 = vld [vmem:[%s17604_s9] sm:$0x3] (%p5106_p8) }
 0xd40   : > { %12821 = vmatprep.mubr.msk.bf16.mxu0 (%p5106_p8), %vm14764_vm3, %v14763_v52 }
 0xe10   : > { %5108 = sbr.rel (!%p5106_p8) target bundleno = 2653 (0xa5d), region = 570 }
 0xe12   : >> { %v5918_v24 = vpop.f32.mrb[16].mxu0  }
 0xe13   : >> { %v12817_v35 = vpop.f32.mrb[17].mxu0 }
 0xe14   : >> { %v5921_v42 = vpop.f32.mrb[18].mxu0  }
 0xe15   : >> { %v12818_v61 = vpop.f32.mrb[19].mxu0  ;;  %v17602_v45 = vmov %v5921_v42  ;;  %v5928_v26 = vpack.c.bf16 (%p5106_p8), %v5921_v42, %v5918_v24  ;;  %v6180_v42 = vrot.slane (%p5106_p8), %v5925_v17, %v16165_v60 }
 0xe16   : >> { %v17603_v61 = vmov %v5918_v24  ;;  %v13810_v45 = vld [vmem:[%s17606_s1 + $0x8] sm:$0xff] (%p5106_p8)  }
 0xe17   : > { %12820 = vmatpush3.bf16.msra.mxu0 %v5928_v26  ;;  %12838 = vmatpush3.bf16.msra.mxu1 %v5928_v26  ;;  %v6231_v61 = vrot.slane %v5925_v17, %v16172_v51 }
 0xe18   : > { %12825 = vmatprep.subr.bf16.mxu0 %v14763_v52  ;;  %12849 = vmatprep.subr.bf16.mxu1 %v14763_v52 }
 0xe1a   : > { %12822 = vmatmul.mubr.msk.bf16.vlgmr.msra.gmra.mrb[0].mxu0 %vm5209_vm9, %v16483_v55  ;;  %12840 = vmatmul.mubr.msk.bf16.vlgmr.msra.gmra.mrb[0].mxu1 %vm5209_vm9, %v16486_v54 }
 0xe1b   : > { %12826 = vmatpush3.bf16.msra.mxu0 %v5928_v26  ;;  %12827 = vmatprep.mubr.msk.bf16.mxu0 %vm14764_vm3, %v14763_v52 }
 0xe1c   : > { %12831 = vmatprep.subr.bf16.mxu0 %v14763_v52  ;;  %12850 = vmatpush3.bf16.msra.mxu1 %v5928_v26 }
 0xe1d   : > { %12851 = vmatprep.mubr.msk.bf16.mxu1 %vm14764_vm3, %v14763_v52  ;;  %12861 = vmatprep.subr.bf16.mxu1 %v14763_v52 }
 0xe22   : > { %12828 = vmatmul.mubr.msk.bf16.vlgmr.msra.gmra.mrb[4].mxu0 %vm5209_vm9, %v16498_v2  ;;  %12852 = vmatmul.mubr.msk.bf16.vlgmr.msra.gmra.mrb[4].mxu1 %vm5209_vm9, %v16503_v3 }
 0xe23   : > { %12832 = vmatpush3.bf16.msra.mxu0 %v5928_v26  ;;  %12833 = vmatprep.mubr.msk.bf16.mxu0 %vm14764_vm3, %v14763_v52 }
 0xe24   : > { %12843 = vmatprep.subr.bf16.mxu0 %v14763_v52  ;;  %12862 = vmatpush3.bf16.msra.mxu1 %v5928_v26 }
 0xe25   : > { %12863 = vmatprep.mubr.msk.bf16.mxu1 %vm14764_vm3, %v14763_v52  ;;  %12873 = vmatprep.subr.bf16.mxu1 %v14763_v52 }
 0xe2a   : > { %12834 = vmatmul.mubr.msk.bf16.vlgmr.msra.gmra.mrb[8].mxu0 %vm5209_vm9, %v16517_v4  ;;  %12864 = vmatmul.mubr.msk.bf16.vlgmr.msra.gmra.mrb[8].mxu1 %vm5209_vm9, %v16520_v5 }
 0xe2b   : > { %12844 = vmatpush3.bf16.msra.mxu0 %v5928_v26  ;;  %12845 = vmatprep.mubr.msk.bf16.mxu0 %vm14764_vm3, %v14763_v52 }
 0xe2c   : > { %12855 = vmatprep.subr.bf16.mxu0 %v14763_v52  ;;  %12879 = vmatprep.mubr.msk.bf16.mxu1 %vm14764_vm3, %v14763_v52 }
 0xe2d   : > { %12874 = vmatpush3.bf16.msra.mxu1 %v13812_v34 }
 0xe2e   : > { %12875 = vmatprep.subr.bf16.mxu1 %v14763_v52 }
 0xe31   : > { %12876 = vmatpush3.bf16.msra.mxu1 %v13813_v63 }
 0xe32   : > { %12846 = vmatmul.mubr.msk.bf16.vlgmr.msra.gmra.mrb[12].mxu0 %vm5209_vm9, %v16532_v6  ;;  %12877 = vmatprep.subr.bf16.mxu1 %v14763_v52 }
 0xe33   : > { %12856 = vmatpush3.bf16.msra.mxu0 %v5928_v26  ;;  %12857 = vmatprep.mubr.msk.bf16.mxu0 %vm14764_vm3, %v14763_v52 }
 0xe34   : > { %12867 = vmatprep.subr.bf16.mxu0 %v14763_v52 }
 0xe35   : > { %12878 = vmatpush3.bf16.msra.mxu1 %v13814_v21 }
 0xe36   : > { %12893 = vmatprep.subr.bf16.mxu1 %v14763_v52 }
 0xe3a   : > { %12858 = vmatmul.mubr.msk.bf16.vlgmr.msra.gmra.mrb[16].mxu0 %vm5209_vm9, %v16540_v7 }
 0xe3b   : > { %12868 = vmatpush3.bf16.msra.mxu0 %v5928_v26  ;;  %12869 = vmatprep.mubr.msk.bf16.mxu0 %vm14764_vm3, %v14763_v52 }
 0xe3c   : > { %12883 = vmatprep.subr.bf16.mxu0 %v14763_v52 }
 0xe42   : > { %12870 = vmatmul.mubr.msk.bf16.vlgmr.msra.gmra.mrb[20].mxu0 %vm5209_vm9, %v16548_v47 }
 0xe43   : > { %12884 = vmatpush3.bf16.msra.mxu0 %v13809_v14  ;;  %12889 = vmatprep.mubr.msk.bf16.mxu0 %vm14764_vm3, %v14763_v52 }
 0xe44   : > { %12885 = vmatprep.subr.bf16.mxu0 %v14763_v52 }
 0xe47   : > { %12886 = vmatpush3.bf16.msra.mxu0 %v13810_v45 }
 0xe48   : > { %12887 = vmatprep.subr.bf16.mxu0 %v14763_v52 }
 0xe4b   : > { %12888 = vmatpush3.bf16.msra.mxu0 %v13811_v15 }
 0xe4c   : > { %12899 = vmatprep.subr.bf16.mxu0 %v14763_v52 }
 0xe4e   : > { %12890 = vmatmul.mubr.msk.bf16.vlgmr.msra.gmra.mrb[24].mxu0 %vm5148_vm8, %v5928_v26 }
 0xe4f   : > { %12901 = vmatprep.mubr.msk.bf16.mxu0 %vm14764_vm3, %v14763_v52 }
 0xeed   : > { %v5968_v49 = vpop.f32.mrb[0].mxu0  ;;  %v6120_v8 = vpop.f32.mrb[0].mxu1 }
 0xeee   : > { %v12823_v50 = vpop.f32.mrb[1].mxu0  ;;  %v12841_v48 = vpop.f32.mrb[1].mxu1  ;;  %v5978_v25 = vmul.f32 %v5977_v13, %v5968_v49  ;;  %v6130_v10 = vmul.f32 %v6129_v0, %v6120_v8  ;;  %v6282_v8 = vrot.slane %v5925_v17, %v16175_v46 }
 0xeef   : > { %v5971_v41 = vpop.f32.mrb[2].mxu0  ;;  %v6123_v44 = vpop.f32.mrb[2].mxu1  ;;  %v6333_v50 = vrot.slane %v5925_v17, %v16182_v22  ;;  %v11451_v17 = vld [vmem:[#allocation22] ss:$0 sm:$0xff] }
 0xef0   : > { %v12824_v29 = vpop.f32.mrb[3].mxu0  ;;  %v12842_v11 = vpop.f32.mrb[3].mxu1 }
 0xef5   : > { %v6018_v1 = vpop.f32.mrb[4].mxu0  ;;  %v6222_v62 = vpop.f32.mrb[4].mxu1 }
 0xef6   : > { %v6028_v30 = vmul.f32 %v6027_v20, %v6018_v1  ;;  %v12829_v59 = vpop.f32.mrb[5].mxu0  ;;  %v12853_v31 = vpop.f32.mrb[5].mxu1  ;;  %v6232_v15 = vmul.f32 %v6231_v61, %v6222_v62 }
 0xef7   : > { %v6021_v57 = vpop.f32.mrb[6].mxu0  ;;  %v6225_v43 = vpop.f32.mrb[6].mxu1  ;;  %v11445_v31 = vld [vmem:[#allocation18] ss:$0 sm:$0xff] }
 0xef8   : > { %v6029_v33 = vadd.f32 %v6028_v30, %v5978_v25  ;;  %v12830_v36 = vpop.f32.mrb[7].mxu0  ;;  %v12854_v40 = vpop.f32.mrb[7].mxu1  ;;  %v11444_v25 = vld [vmem:[%s17608_s0 + $0x8] ss:$0 sm:$0xff]  ;;  %s17612_s0 = smov %s17611_s28 }
 0xefd   : > { %v6069_v27 = vpop.f32.mrb[8].mxu0  ;;  %v6324_v39 = vpop.f32.mrb[8].mxu1 }
 0xefe   : > { %v6079_v9 = vmul.f32 %v6078_v56, %v6069_v27  ;;  %v12835_v38 = vpop.f32.mrb[9].mxu0  ;;  %v12865_v12 = vpop.f32.mrb[9].mxu1  ;;  %v6334_v29 = vmul.f32 %v6333_v50, %v6324_v39 }
 0xeff   : > { %v6072_v28 = vpop.f32.mrb[10].mxu0  ;;  %v6327_v16 = vpop.f32.mrb[10].mxu1 }
 0xf00   : > { %v6080_v37 = vadd.f32 %v6079_v9, %v6029_v33  ;;  %v12836_v19 = vpop.f32.mrb[11].mxu0  ;;  %v12866_v24 = vpop.f32.mrb[11].mxu1 }
 0xf02   : > { %v6131_v35 = vadd.f32 %v6130_v10, %v6080_v37 }
 0xf05   : > { %v6171_v26 = vpop.f32.mrb[12].mxu0 }
 0xf06   : > { %v6181_v14 = vmul.f32 %v6180_v42, %v6171_v26  ;;  %v12847_v45 = vpop.f32.mrb[13].mxu0 }
 0xf07   : > { %v6174_v34 = vpop.f32.mrb[14].mxu0 }
 0xf08   : > { %v6182_v63 = vadd.f32 %v6181_v14, %v6131_v35  ;;  %v12848_v21 = vpop.f32.mrb[15].mxu0 }
 0xf0a   : > { %v6233_v49 = vadd.f32 %v6232_v15, %v6182_v63 }
 0xf0d   : > { %v6273_v48 = vpop.f32.mrb[16].mxu0 }
 0xf0e   : > { %v6283_v41 = vmul.f32 %v6282_v8, %v6273_v48  ;;  %v12859_v44 = vpop.f32.mrb[17].mxu0 }
 0xf0f   : > { %v6276_v11 = vpop.f32.mrb[18].mxu0 }
 0xf10   : > { %v6284_v13 = vadd.f32 %v6283_v41, %v6233_v49  ;;  %v12860_v20 = vpop.f32.mrb[19].mxu0 }
 0xf12   : > { %v6335_v1 = vadd.f32 %v6334_v29, %v6284_v13 }
 0xf15   : > { %v6375_v30 = vpop.f32.mrb[20].mxu0 }
 0xf16   : > { %v6385_v59 = vmul.f32 %v11444_v25, %v6375_v30  ;;  %v12871_v62 = vpop.f32.mrb[21].mxu0 }
 0xf17   : > { %v6378_v57 = vpop.f32.mrb[22].mxu0 }
 0xf18   : > { %v6386_v43 = vadd.f32 %v6385_v59, %v6335_v1  ;;  %v12872_v33 = vpop.f32.mrb[23].mxu0 }
 0xf1a   : > { %v6393_v36 = vadd.f32 %v11445_v31, %v6386_v43 }
 0xf1c   : > { %v6401_v40 = vpack.c.bf16 %v6393_v36, %v6393_v36 }
 0xf1e   : > { %12880 = vmatmul.mubr.msk.bf16.vlgmr.msra.gmra.mrb[12].mxu1 %vm5148_vm8, %v6401_v40 }
 0xf1f   : > { %12895 = vmatprep.mubr.msk.bf16.mxu1 %vm14764_vm3, %v14763_v52 }
 0xf21   : > { %v6539_v56 = vpop.f32.mrb[24].mxu0 }
 0xf22   : > { %v6540_v0 = vadd.f32 %v11451_v17, %v6539_v56  ;;  %v12891_v27 = vpop.f32.mrb[25].mxu0 }
 0xf23   : > { %v6542_v39 = vpop.f32.mrb[26].mxu0 }
 0xf24   : > { %v6543_v9 = vadd.f32 %v11451_v17, %v6542_v39  ;;  %v12892_v38 = vpop.f32.mrb[27].mxu0  ;;  %v6546_v10 = vmax.f32 %v6540_v0, 0.0 }
 0xf26   : > { %v6547_v12 = vmax.f32 %v6543_v9, 0.0 }
 0xf28   : > { %v6551_v28 = vpack.c.bf16 %v6547_v12, %v6546_v10 }
 0xf2a   : > { %12894 = vmatpush3.bf16.msra.mxu1 %v6551_v28  ;;  %12900 = vmatpush3.bf16.msra.mxu0 %v6551_v28 }
 0xf2b   : > { %12905 = vmatprep.subr.bf16.mxu1 %v14763_v52  ;;  %12911 = vmatprep.subr.bf16.mxu0 %v14763_v52 }
 0xf2d   : > { %12896 = vmatmul.mubr.msk.bf16.vlgmr.msra.gmra.mrb[16].mxu1 %vm5209_vm9, %v16483_v55  ;;  %12902 = vmatmul.mubr.msk.bf16.vlgmr.msra.gmra.mrb[28].mxu0 %vm5209_vm9, %v16498_v2  ;;  %v13815_v55 = vld [vmem:[%s17609_s8] sm:$0xff]   ;;  %v13817_v2 = vld [vmem:[%s17609_s8 + $0x10] sm:$0xff]  }
 0xf2e   : > { %12906 = vmatpush3.bf16.msra.mxu1 %v6551_v28  ;;  %12912 = vmatpush3.bf16.msra.mxu0 %v6551_v28 }
 0xf2f   : > { %12907 = vmatprep.mubr.msk.bf16.mxu1 %vm14764_vm3, %v14763_v52  ;;  %12913 = vmatprep.mubr.msk.bf16.mxu0 %vm14764_vm3, %v14763_v52 }
 0xf30   : > { %12917 = vmatprep.subr.bf16.mxu1 %v14763_v52  ;;  %12923 = vmatprep.subr.bf16.mxu0 %v14763_v52 }
 0xf35   : > { %12908 = vmatmul.mubr.msk.bf16.vlgmr.msra.gmra.mrb[20].mxu1 %vm5209_vm9, %v16517_v4  ;;  %12914 = vmatmul.mubr.msk.bf16.vlgmr.msra.gmra.mrb[32].mxu0 %vm5209_vm9, %v16486_v54  ;;  %v13816_v54 = vld [vmem:[%s17609_s8 + $0x8] sm:$0xff]  }
 0xf36   : > { %12918 = vmatpush3.bf16.msra.mxu1 %v6551_v28  ;;  %12924 = vmatpush3.bf16.msra.mxu0 %v6551_v28 }
 0xf37   : > { %12919 = vmatprep.mubr.msk.bf16.mxu1 %vm14764_vm3, %v14763_v52  ;;  %12925 = vmatprep.mubr.msk.bf16.mxu0 %vm14764_vm3, %v14763_v52 }
 0xf38   : > { %12929 = vmatprep.subr.bf16.mxu1 %v14763_v52  ;;  %12935 = vmatprep.subr.bf16.mxu0 %v14763_v52 }
 0xf3d   : > { %12920 = vmatmul.mubr.msk.bf16.vlgmr.msra.gmra.mrb[24].mxu1 %vm5209_vm9, %v16532_v6  ;;  %12926 = vmatmul.mubr.msk.bf16.vlgmr.msra.gmra.mrb[36].mxu0 %vm5209_vm9, %v16503_v3  ;;  %v16633_v3 = vld [vmem:[%s17610_s7] sm:$0xff]  }
 0xf3e   : > { %12930 = vmatpush3.bf16.msra.mxu1 %v6551_v28  ;;  %12936 = vmatpush3.bf16.msra.mxu0 %v6551_v28 }
 0xf3f   : > { %12931 = vmatprep.mubr.msk.bf16.mxu1 %vm14764_vm3, %v14763_v52  ;;  %12941 = vmatprep.subr.bf16.mxu1 %v14763_v52 }
 0xf40   : > { %12937 = vmatprep.mubr.msk.bf16.mxu0 %vm14764_vm3, %v14763_v52  ;;  %12947 = vmatprep.subr.bf16.mxu0 %v14763_v52 }
 0xf45   : > { %12932 = vmatmul.mubr.msk.bf16.vlgmr.msra.gmra.mrb[28].mxu1 %vm5209_vm9, %v16540_v7  ;;  %12938 = vmatmul.mubr.msk.bf16.vlgmr.msra.gmra.mrb[40].mxu0 %vm5209_vm9, %v16520_v5 }
 0xf46   : > { %12942 = vmatpush3.bf16.msra.mxu1 %v6551_v28  ;;  %12943 = vmatprep.mubr.msk.bf16.mxu1 %vm14764_vm3, %v14763_v52 }
 0xf47   : > { %12953 = vmatprep.mubr.msk.bf16.mxu0 %vm14764_vm3, %v14763_v52  ;;  %12957 = vmatprep.subr.bf16.mxu1 %v14763_v52 }
 0xf48   : > { %12948 = vmatpush3.bf16.msra.mxu0 %v13815_v55 }
 0xf49   : > { %12949 = vmatprep.subr.bf16.mxu0 %v14763_v52 }
 0xf4c   : > { %12950 = vmatpush3.bf16.msra.mxu0 %v13816_v54 }
 0xf4d   : > { %12944 = vmatmul.mubr.msk.bf16.vlgmr.msra.gmra.mrb[32].mxu1 %vm5209_vm9, %v16548_v47  ;;  %12951 = vmatprep.subr.bf16.mxu0 %v14763_v52  ;;  %v6548_v47 = vld [vmem:[%s17611_s28] sm:$0xff]  ;;  %s17613_s28 = sld [smem:[#allocation88_spill]] }
 0xf4e   : > { %12963 = vmatprep.mubr.msk.bf16.mxu1 %vm14764_vm3, %v14763_v52  ;;  %12958 = vmatpush3.bf16.msra.mxu1 %v16633_v3  ;;  %v6595_v16 = vrot.slane %v6548_v47, %v16144_v53  ;;  %v6640_v37 = vrot.slane %v6548_v47, %v16147_v58  ;;  %v6686_v21 = vrot.slane %v6548_v47, %v16150_v32 }
 0xf4f   : > { %12959 = vmatprep.subr.bf16.mxu1 %v14763_v52  ;;  %v6732_v49 = vrot.slane %v6548_v47, %v16162_v18  ;;  %v6778_v59 = vrot.slane %v6548_v47, %v16165_v60  ;;  %v6824_v62 = vrot.slane %v6548_v47, %v16172_v51  ;;  %v6870_v38 = vrot.slane %v6548_v47, %v16175_v46 }
 0xf50   : > { %12952 = vmatpush3.bf16.msra.mxu0 %v13817_v2  ;;  %v6916_v10 = vrot.slane %v6548_v47, %v16182_v22 }
 0xf53   : > { %s17614_s1 = smov %s17613_s28 }
 0xff1   : > { %v16637_v4 = vpop.f32.mrb[12].mxu1 }
 0xff2   : > { %v12881_v5 = vpop.f32.mrb[13].mxu1 }
 0xff3   : > { %v6467_v6 = vpop.f32.mrb[14].mxu1 }
 0xff4   : > { %v12882_v7 = vpop.f32.mrb[15].mxu1 }
0x1000   : > { %v6586_v19 = vpop.f32.mrb[16].mxu1  ;;  %v6631_v24 = vpop.f32.mrb[28].mxu0 }
0x1001   : > { %v6596_v35 = vmul.f32 %v6595_v16, %v6586_v19  ;;  %v12897_v42 = vpop.f32.mrb[17].mxu1  ;;  %v6641_v61 = vmul.f32 %v6640_v37, %v6631_v24  ;;  %v12903_v26 = vpop.f32.mrb[29].mxu0 }
0x1002   : > { %v6589_v14 = vpop.f32.mrb[18].mxu1  ;;  %v6634_v45 = vpop.f32.mrb[30].mxu0 }
0x1003   : > { %v12898_v15 = vpop.f32.mrb[19].mxu1  ;;  %v6642_v34 = vadd.f32 %v6641_v61, %v6596_v35  ;;  %v12904_v63 = vpop.f32.mrb[31].mxu0  ;;  %v11465_v35 = vld [vmem:[%s17612_s0 + $0x8] ss:$0 sm:$0xff]  ;;  %v11466_v14 = vld [vmem:[#allocation21] ss:$0 sm:$0xff] }
0x1004   : > { %s17615_s0 = sld [smem:[#allocation89_spill]] }
0x1008   : > { %v6677_v8 = vpop.f32.mrb[20].mxu1  ;;  %v6723_v50 = vpop.f32.mrb[32].mxu0 }
0x1009   : > { %v6687_v48 = vmul.f32 %v6686_v21, %v6677_v8  ;;  %v6733_v41 = vmul.f32 %v6732_v49, %v6723_v50  ;;  %v12909_v44 = vpop.f32.mrb[21].mxu1  ;;  %v12915_v29 = vpop.f32.mrb[33].mxu0  ;;  %v16651_v21 = vld [vmem:[%s17610_s7 + $0x8] sm:$0xff]   ;;  %v16656_v49 = vld [vmem:[%s17610_s7 + $0x10] sm:$0xff]  }
0x100a   : > { %v6680_v11 = vpop.f32.mrb[22].mxu1  ;;  %v6726_v13 = vpop.f32.mrb[34].mxu0  ;;  %12960 = vmatpush3.bf16.msra.mxu1 %v16651_v21  ;;  %v11467_v8 = vld [vmem:[#allocation24] ss:$0 sm:$0xff] }
0x100b   : > { %v6688_v20 = vadd.f32 %v6687_v48, %v6642_v34  ;;  %v12910_v1 = vpop.f32.mrb[23].mxu1  ;;  %v12916_v25 = vpop.f32.mrb[35].mxu0  ;;  %12961 = vmatprep.subr.bf16.mxu1 %v14763_v52  ;;  %v13821_v13 = vld [vmem:[%s17613_s28] sm:$0xff]   ;;  %s16708_s28 = smov 0  }
0x100c   : > { %v11446_v1 = vld [vmem:[#allocation19] ss:$0 sm:$0xff] }
0x100d   : > { %v6734_v30 = vadd.f32 %v6733_v41, %v6688_v20  ;;  %v13822_v25 = vld [vmem:[%s17614_s1 + $0x8] sm:$0xff]  }
0x100e   : > { %12962 = vmatpush3.bf16.msra.mxu1 %v16656_v49 }
0x100f   : > { %12967 = vmatprep.subr.bf16.mxu1 %v14763_v52 }
0x1010   : > { %v6769_v31 = vpop.f32.mrb[24].mxu1  ;;  %v6815_v57 = vpop.f32.mrb[36].mxu0 }
0x1011   : > { %v6779_v43 = vmul.f32 %v6778_v59, %v6769_v31  ;;  %v6825_v33 = vmul.f32 %v6824_v62, %v6815_v57  ;;  %v12921_v36 = vpop.f32.mrb[25].mxu1  ;;  %v12927_v40 = vpop.f32.mrb[37].mxu0  ;;  %v13823_v59 = vld [vmem:[%s17614_s1 + $0x10] sm:$0xff]   ;;  %v16671_v57 = vld [vmem:[%s17615_s0] sm:$0xf] }
0x1012   : > { %v6772_v17 = vpop.f32.mrb[26].mxu1  ;;  %v6818_v56 = vpop.f32.mrb[38].mxu0  ;;  %v16683_v36 = vld [vmem:[%s17615_s0 + $0x10] sm:$0xf]  ;;  %v16686_v40 = vld [vmem:[%s17615_s0 + $0x14] sm:$0xf] }
0x1013   : > { %v6780_v0 = vadd.f32 %v6779_v43, %v6734_v30  ;;  %v12922_v27 = vpop.f32.mrb[27].mxu1  ;;  %v12928_v39 = vpop.f32.mrb[39].mxu0  ;;  %v6465_v30 = vadd.f32 %v11446_v1, %v16637_v4  ;;  %v16674_v43 = vld [vmem:[%s17615_s0 + $0x4] sm:$0xf]  ;;  %v16677_v4 = vld [vmem:[%s17615_s0 + $0x8] sm:$0xf] }
0x1014   : > { %v16689_v17 = vld [vmem:[%s17615_s0 + $0x18] sm:$0xf]  ;;  %v16692_v56 = vld [vmem:[%s17615_s0 + $0x1c] sm:$0xf]  ;;  %v16698_v27 = vld [vmem:[%s17615_s0 + $0x24] sm:$0xf] }
0x1015   : > { %v6826_v9 = vadd.f32 %v6825_v33, %v6780_v0  ;;  %v6470_v62 = vmax.f32 %v6465_v30, 0.0  ;;  %v16680_v33 = vld [vmem:[%s17615_s0 + $0xc] sm:$0xf]  ;;  %v16695_v0 = vld [vmem:[%s17615_s0 + $0x20] sm:$0xf] }
0x1016   : > { %v16701_v39 = vld [vmem:[%s17615_s0 + $0x28] sm:$0xf] }
0x1017   : > { %v7060_v31 = vpack.c.bf16 %v6470_v62, %v6470_v62 }
0x1018   : > { %v6861_v12 = vpop.f32.mrb[28].mxu1  ;;  %v6907_v28 = vpop.f32.mrb[40].mxu0 }
0x1019   : > { %v6871_v55 = vmul.f32 %v6870_v38, %v6861_v12  ;;  %v6917_v54 = vmul.f32 %v6916_v10, %v6907_v28  ;;  %v12933_v2 = vpop.f32.mrb[29].mxu1  ;;  %v12939_v5 = vpop.f32.mrb[41].mxu0 }
0x101a   : > { %v6864_v6 = vpop.f32.mrb[30].mxu1  ;;  %v6910_v7 = vpop.f32.mrb[42].mxu0 }
0x101b   : > { %v6872_v16 = vadd.f32 %v6871_v55, %v6826_v9  ;;  %v12934_v37 = vpop.f32.mrb[31].mxu1  ;;  %v12940_v19 = vpop.f32.mrb[43].mxu0  ;;  %v16704_v9 = vld [vmem:[%s17615_s0 + $0x2c] sm:$0xf] }
0x101d   : > { %v6918_v24 = vadd.f32 %v6917_v54, %v6872_v16 }
0x1020   : > { %v6953_v42 = vpop.f32.mrb[32].mxu1 }
0x1021   : > { %v6963_v61 = vmul.f32 %v11465_v35, %v6953_v42  ;;  %v12945_v26 = vpop.f32.mrb[33].mxu1 }
0x1022   : > { %v6956_v47 = vpop.f32.mrb[34].mxu1 }
0x1023   : > { %v6964_v45 = vadd.f32 %v6963_v61, %v6918_v24  ;;  %v12946_v15 = vpop.f32.mrb[35].mxu1 }
0x1025   : > { %v6971_v34 = vadd.f32 %v11466_v14, %v6964_v45 }
0x1027   : > { %v6979_v63 = vpack.c.bf16 %v6971_v34, %v6971_v34 }
0x1029   : > { %12954 = vmatmul.mubr.msk.bf16.vlgmr.msra.gmra.mrb[44].mxu0 %vm5148_vm8, %v6979_v63 }
0x10fc   : > { %v7041_v50 = vpop.f32.mrb[44].mxu0 }
0x10fd   : > { %v7042_v48 = vadd.f32 %v11467_v8, %v7041_v50  ;;  %v12955_v41 = vpop.f32.mrb[45].mxu0 }
0x10fe   : > { %v7044_v44 = vpop.f32.mrb[46].mxu0 }
0x10ff   : > { %v7047_v29 = vmax.f32 %v7042_v48, 0.0  ;;  %v12956_v11 = vpop.f32.mrb[47].mxu0 }
0x1101   : > { %v7061_v20 = vpack.c.bf16 %v7047_v29, %v7047_v29 }
0x1103   : > { %12964 = vmatmul.mubr.msk.bf16.vlgmr.msra.gmra.mrb[36].mxu1 %vm5148_vm8, %v7061_v20 }
0x1104   : > { %12968 = vmatpush3.bf16.msra.mxu1 %v13821_v13  ;;  %12973 = vmatprep.mubr.msk.bf16.mxu1 %vm14764_vm3, %v14763_v52 }
0x1105   : > { %12969 = vmatprep.subr.bf16.mxu1 %v14763_v52 }
0x1108   : > { %12970 = vmatpush3.bf16.msra.mxu1 %v13822_v25 }
0x1109   : > { %12971 = vmatprep.subr.bf16.mxu1 %v14763_v52 }
0x110c   : > { %12972 = vmatpush3.bf16.msra.mxu1 %v13823_v59 }
0x110f   : > { %12974 = vmatmul.mubr.msk.bf16.vlgmr.msra.gmra.mrb[36].mxu1 %vm5148_vm8, %v7060_v31 }
0x11e2   : > { %v7178_v38 = vpop.f32.mrb[36].mxu1  }
0x11e3   : > { %v12975_v10 = vpop.f32.mrb[37].mxu1 }
0x11e4   : > { %v7181_v12 = vpop.f32.mrb[38].mxu1 }
0x11e5   : > { %v12976_v28 = vpop.f32.mrb[39].mxu1 }
0x11e6 LB: >> { %s17616_s1 = sld [smem:[#allocation75_spill]]  ;;  %v14767_v55 = vmov 0.0   ;;  %vm14768_vm10 = vmmov 0   ;;  %s11751_s0 = smul.u32 48, %s14655_s28  ;;  %v16727_v37 = vpack.c.bf16 %v14651_v38, %v14651_v38  ;;  %vm7263_vm11 = vcmask 785408   ;;  %s14655_s28 = sphi %s16708_s28, %s7201_s28   ;;  %v14651_v38 = vphi %v7178_v38, %v17620_v38  }
0x11e7   : >> { %12977 = vmatprep.subr.bf16.mxu0 %v14767_v55  ;;  %12989 = vmatprep.mubr.msk.bf16.mxu0 %vm14768_vm10, %v14767_v55  ;;  %vm7320_vm12 = vcmask 1041408   ;;  %vm7316_vm13 = vcmask 31744   ;;  %v11516_v1 = vcombine.low %v16671_v57, %v16674_v43  ;;  %v11517_v25 = vcombine.low %v16677_v4, %v16680_v33 }
0x11e8   : >> { %12993 = vmatprep.subr.bf16.mxu1 %v14767_v55  ;;  %12995 = vmatprep.mubr.msk.bf16.mxu1 %vm14768_vm10, %v14767_v55  ;;  %v11518_v30 = vcombine.low %v16683_v36, %v16686_v40  ;;  %v11519_v59 = vcombine.low %v16689_v17, %v16692_v56  ;;  %v11520_v62 = vcombine.low %v16695_v0, %v16698_v27 }
0x11ec   : >> { %s7205_s2 = scalar_lea.vmem %s17616_s1, %s11751_s0  ;;  %s17617_s1 = sld [smem:[#allocation91_spill]] }
0x11ed   : >> { %v13824_v54 = vld [vmem:[%s7205_s2] sm:$0xff]   ;;  %v13825_v2 = vld [vmem:[%s7205_s2 + $0x8] sm:$0xff]   ;;  %v13826_v5 = vld [vmem:[%s7205_s2 + $0x10] sm:$0xff]   ;;  %s7218_s0 = scalar_lea.vmem [#allocation15], %s14655_s28 }
0x11ee   : >> { %12978 = vmatpush3.bf16.msra.mxu0 %v13824_v54  ;;  %v13827_v6 = vld [vmem:[%s7205_s2 + $0x18] sm:$0xff]   ;;  %v13828_v7 = vld [vmem:[%s7205_s2 + $0x20] sm:$0xff]   ;;  %v13829_v16 = vld [vmem:[%s7205_s2 + $0x28] sm:$0xff]   ;;  %s17618_s2 = sld [smem:[#allocation76_spill]] }
0x11ef   : >> { %12979 = vmatprep.subr.bf16.mxu0 %v14767_v55  ;;  %v11481_v19 = vld [vmem:[%s7218_s0] ss:$0 sm:$0xff]  ;;  %s11752_s0 = smul.u32 24, %s14655_s28 }
0x11f2   : >> { %12980 = vmatpush3.bf16.msra.mxu0 %v13825_v2  ;;  %v7315_v15 = vld [vmem:[%s17617_s1] sm:$0x3]  ;;  %v11497_v34 = vld [vmem:[%s17617_s1 + $0x8] sm:$0x3]  ;;  %v11491_v63 = vld [vmem:[%s17617_s1 + $0x2] sm:$0x3] }
0x11f3   : >> { %12981 = vmatprep.subr.bf16.mxu0 %v14767_v55  ;;  %v11501_v8 = vld [vmem:[%s17617_s1 + $0xc] sm:$0x3]  ;;  %v11493_v50 = vld [vmem:[%s17617_s1 + $0x4] sm:$0x3]  ;;  %v11505_v48 = vld [vmem:[%s17617_s1 + $0x10] sm:$0x3] }
0x11f4   : >> { %v11495_v41 = vld [vmem:[%s17617_s1 + $0x6] sm:$0x3]  ;;  %v11499_v44 = vld [vmem:[%s17617_s1 + $0xa] sm:$0x3]  ;;  %v11503_v29 = vld [vmem:[%s17617_s1 + $0xe] sm:$0x3]  ;;  %s7786_s3 = scalar_lea.vmem %s17618_s2, %s11752_s0 }
0x11f5   : >> { %v13830_v11 = vld [vmem:[%s7786_s3] sm:$0xff]   ;;  %v13831_v13 = vld [vmem:[%s7786_s3 + $0x8] sm:$0xff]   ;;  %v13832_v20 = vld [vmem:[%s7786_s3 + $0x10] sm:$0xff]   ;;  %s17619_s1 = sld [smem:[#allocation73_spill]]  ;;  %s11489_s3 = sshll.u32 %s14655_s28, 4 }
0x11f6   : >> { %12982 = vmatpush3.bf16.msra.mxu0 %v13826_v5  ;;  %s7793_s0 = scalar_lea.vmem [#allocation16], %s14655_s28 }
0x11f7   : >> { %12983 = vmatprep.subr.bf16.mxu0 %v14767_v55 }
0x11fa   : >> { %12984 = vmatpush3.bf16.msra.mxu0 %v13827_v6 }
0x11fb   : >> { %12985 = vmatprep.subr.bf16.mxu0 %v14767_v55  ;;  %s16803_s2 = scalar_lea.vmem %s17619_s1, %s11489_s3  ;;  %s7312_s1 = scalar_lea.vmem [#allocation13], %s14655_s28 }
0x11fc   : >> { %v7310_v28 = vld [vmem:[%s16803_s2] sm:$0xff]  ;;  %s7201_s28 = sadd.s32 1, %s14655_s28  }
0x11fd   : >> { %p7198_p9 = scmp.ge.s32.totalorder %s7201_s28, 7  }
0x11fe   : >> { %12986 = vmatpush3.bf16.msra.mxu0 %v13828_v7  ;;  %v7367_v7 = vrot.slane %v7310_v28, %v16144_v53  ;;  %s17621_s3 = sld [smem:[#allocation105_spill]] (%p7198_p9)  ;;  %s17622_s28 = sld [smem:[#allocation102_spill]] (%p7198_p9) }
0x11ff   : >> { %12987 = vmatprep.subr.bf16.mxu0 %v14767_v55 }
0x1202   : >> { %12988 = vmatpush3.bf16.msra.mxu0 %v13829_v16  ;;  %v7417_v16 = vrot.slane %v7310_v28, %v16147_v58 }
0x1203   : >> { %13017 = vmatprep.subr.bf16.mxu0 %v14767_v55 }
0x1204   : > { %v16877_v57 = vld [vmem:[%s17621_s3 + $0x2] sm:$0x1] (%p7198_p9)  ;;  %v16882_v43 = vld [vmem:[%s17621_s3 + $0x7] sm:$0x1] (%p7198_p9)  ;;  %v16895_v4 = vld [vmem:[%s17621_s3 + $0x4] sm:$0x1] (%p7198_p9) }
0x1205   : >> { %12990 = vmatmul.mubr.msk.bf16.vlgmr.msra.gmra.mrb[0].mxu0 %vm7263_vm11, %v16727_v37  ;;  %v16903_v33 = vld [vmem:[%s17621_s3 + $0x6] sm:$0x1] (%p7198_p9)  ;;  %v16911_v36 = vld [vmem:[%s17621_s3 + $0x8] sm:$0x1] (%p7198_p9) }
0x1206   : >> { %13019 = vmatprep.mubr.msk.bf16.mxu0 %vm14768_vm10, %v14767_v55  ;;  %v13833_v40 = vld [vmem:[%s17622_s28] sm:$0xff] (%p7198_p9)  }
0x12d8   : >> { %v7301_v24 = vpop.f32.mrb[0].mxu0 }
0x12d9   : >> { %v7302_v35 = vadd.f32 %v11481_v19, %v7301_v24  ;;  %v12991_v42 = vpop.f32.mrb[1].mxu0 }
0x12da   : >> { %v7304_v61 = vpop.f32.mrb[2].mxu0 }
0x12db   : >> { %v7307_v26 = vmax.f32 %v7302_v35, 0.0  ;;  %v12992_v14 = vpop.f32.mrb[3].mxu0 }
0x12dd   : >> { %v7314_v47 = vpack.c.bf16 %v7307_v26, %v7307_v26 }
0x12df   : >> { %v7322_v45 = vsel %vm7320_vm12, %v7314_v47, 0 }
0x12e0   : >> { %12994 = vmatpush3.bf16.msra.mxu1 %v7322_v45  ;;  %13018 = vmatpush3.bf16.msra.mxu0 %v7322_v45 }
0x12e1   : >> { %12999 = vmatprep.subr.bf16.mxu1 %v14767_v55  ;;  %13029 = vmatprep.subr.bf16.mxu0 %v14767_v55 }
0x12e3   : >> { %12996 = vmatmul.mubr.msk.bf16.vlgmr.msra.gmra.mrb[0].mxu1 %vm7316_vm13, %v7315_v15  ;;  %13020 = vmatmul.mubr.msk.bf16.vlgmr.msra.gmra.mrb[4].mxu0 %vm7316_vm13, %v11497_v34 }
0x12e4   : >> { %13000 = vmatpush3.bf16.msra.mxu1 %v7322_v45  ;;  %13030 = vmatpush3.bf16.msra.mxu0 %v7322_v45 }
0x12e5   : >> { %13001 = vmatprep.mubr.msk.bf16.mxu1 %vm14768_vm10, %v14767_v55  ;;  %13005 = vmatprep.subr.bf16.mxu1 %v14767_v55 }
0x12e6   : >> { %13031 = vmatprep.mubr.msk.bf16.mxu0 %vm14768_vm10, %v14767_v55  ;;  %13041 = vmatprep.subr.bf16.mxu0 %v14767_v55 }
0x12eb   : >> { %13002 = vmatmul.mubr.msk.bf16.vlgmr.msra.gmra.mrb[4].mxu1 %vm7316_vm13, %v11491_v63  ;;  %13032 = vmatmul.mubr.msk.bf16.vlgmr.msra.gmra.mrb[8].mxu0 %vm7316_vm13, %v11501_v8  ;;  %v7468_v63 = vrot.slane %v7310_v28, %v16150_v32 }
0x12ec   : >> { %13006 = vmatpush3.bf16.msra.mxu1 %v7322_v45  ;;  %13042 = vmatpush3.bf16.msra.mxu0 %v7322_v45 }
0x12ed   : >> { %13007 = vmatprep.mubr.msk.bf16.mxu1 %vm14768_vm10, %v14767_v55  ;;  %13011 = vmatprep.subr.bf16.mxu1 %v14767_v55 }
0x12ee   : >> { %13043 = vmatprep.mubr.msk.bf16.mxu0 %vm14768_vm10, %v14767_v55  ;;  %13067 = vmatprep.subr.bf16.mxu0 %v14767_v55 }
0x12f3   : >> { %13008 = vmatmul.mubr.msk.bf16.vlgmr.msra.gmra.mrb[8].mxu1 %vm7316_vm13, %v11493_v50  ;;  %13044 = vmatmul.mubr.msk.bf16.vlgmr.msra.gmra.mrb[12].mxu0 %vm7316_vm13, %v11505_v48 }
0x12f4   : >> { %13012 = vmatpush3.bf16.msra.mxu1 %v7322_v45  ;;  %13013 = vmatprep.mubr.msk.bf16.mxu1 %vm14768_vm10, %v14767_v55 }
0x12f5   : >> { %13023 = vmatprep.subr.bf16.mxu1 %v14767_v55  ;;  %13079 = vmatprep.mubr.msk.bf16.mxu0 %vm14768_vm10, %v14767_v55 }
0x12f6   : >> { %13068 = vmatpush3.bf16.msra.mxu0 %v11516_v1 }
0x12f7   : >> { %13069 = vmatprep.subr.bf16.mxu0 %v14767_v55 }
0x12fa   : >> { %13070 = vmatpush3.bf16.msra.mxu0 %v11517_v25  ;;  %v7519_v25 = vrot.slane %v7310_v28, %v16162_v18 }
0x12fb   : >> { %13014 = vmatmul.mubr.msk.bf16.vlgmr.msra.gmra.mrb[12].mxu1 %vm7316_vm13, %v11495_v41  ;;  %13071 = vmatprep.subr.bf16.mxu0 %v14767_v55 }
0x12fc   : >> { %13024 = vmatpush3.bf16.msra.mxu1 %v7322_v45  ;;  %13025 = vmatprep.mubr.msk.bf16.mxu1 %vm14768_vm10, %v14767_v55 }
0x12fd   : >> { %13035 = vmatprep.subr.bf16.mxu1 %v14767_v55 }
0x12fe   : >> { %13072 = vmatpush3.bf16.msra.mxu0 %v11518_v30  ;;  %v7570_v30 = vrot.slane %v7310_v28, %v16165_v60 }
0x12ff   : >> { %13073 = vmatprep.subr.bf16.mxu0 %v14767_v55 }
0x1302   : >> { %13074 = vmatpush3.bf16.msra.mxu0 %v11519_v59 }
0x1303   : >> { %13026 = vmatmul.mubr.msk.bf16.vlgmr.msra.gmra.mrb[16].mxu1 %vm7316_vm13, %v11499_v44  ;;  %13075 = vmatprep.subr.bf16.mxu0 %v14767_v55 }
0x1304   : >> { %13036 = vmatpush3.bf16.msra.mxu1 %v7322_v45  ;;  %13037 = vmatprep.mubr.msk.bf16.mxu1 %vm14768_vm10, %v14767_v55 }
0x1305   : >> { %13047 = vmatprep.subr.bf16.mxu1 %v14767_v55 }
0x1306   : >> { %13076 = vmatpush3.bf16.msra.mxu0 %v11520_v62 }
0x1307   : >> { %13077 = vmatprep.subr.bf16.mxu0 %v14767_v55 }
0x130b   : >> { %13038 = vmatmul.mubr.msk.bf16.vlgmr.msra.gmra.mrb[20].mxu1 %vm7316_vm13, %v11503_v29 }
0x130c   : >> { %13053 = vmatprep.mubr.msk.bf16.mxu1 %vm14768_vm10, %v14767_v55  ;;  %13048 = vmatpush3.bf16.msra.mxu1 %v13830_v11 }
0x130d   : >> { %13049 = vmatprep.subr.bf16.mxu1 %v14767_v55 }
0x1310   : >> { %13050 = vmatpush3.bf16.msra.mxu1 %v13831_v13 }
0x1311   : >> { %13051 = vmatprep.subr.bf16.mxu1 %v14767_v55 }
0x1314   : >> { %13052 = vmatpush3.bf16.msra.mxu1 %v13832_v20 }
0x1315   : >> { %13057 = vmatprep.subr.bf16.mxu1 %v14767_v55 }
0x13b6   : >> { %v7358_v31 = vpop.f32.mrb[0].mxu1  ;;  %v7561_v38 = vpop.f32.mrb[4].mxu0 }
0x13b7   : >> { %v12997_v10 = vpop.f32.mrb[1].mxu1  ;;  %v13021_v12 = vpop.f32.mrb[5].mxu0  ;;  %v7368_v35 = vmul.f32 %v7367_v7, %v7358_v31  ;;  %v7571_v31 = vmul.f32 %v7570_v30, %v7561_v38  ;;  %v7672_v7 = vrot.slane %v7310_v28, %v16175_v46  ;;  %v7723_v38 = vrot.slane %v7310_v28, %v16182_v22 }
0x13b8   : >> { %v7361_v54 = vpop.f32.mrb[2].mxu1  ;;  %v7564_v2 = vpop.f32.mrb[6].mxu0 }
0x13b9   : >> { %v12998_v5 = vpop.f32.mrb[3].mxu1  ;;  %v13022_v6 = vpop.f32.mrb[7].mxu0 }
0x13ba   : >> { %v7621_v6 = vrot.slane %v7310_v28, %v16172_v51  ;;  %v11521_v28 = vcombine.low %v16701_v39, %v16704_v9 }
0x13bc   : >> { %13078 = vmatpush3.bf16.msra.mxu0 %v11521_v28 }
0x13bd   : > { %13083 = vmatprep.subr.bf16.mxu0 (%p7198_p9), %v14763_v52 }
0x13be   : >> { %v7408_v19 = vpop.f32.mrb[4].mxu1  ;;  %v7663_v24 = vpop.f32.mrb[8].mxu0 }
0x13bf   : >> { %v7418_v42 = vmul.f32 %v7417_v16, %v7408_v19  ;;  %v13003_v61 = vpop.f32.mrb[5].mxu1  ;;  %v13033_v26 = vpop.f32.mrb[9].mxu0  ;;  %13080 = vmatmul.mubr.msk.bf16.vlgmr.msra.gmra.mrb[16].mxu0 %vm7263_vm11, %v16727_v37 }
0x13c0   : >> { %v7411_v14 = vpop.f32.mrb[6].mxu1  ;;  %v7666_v47 = vpop.f32.mrb[10].mxu0  ;;  %13085 = vmatprep.mubr.msk.bf16.mxu0 (%p7198_p9), %vm14764_vm3, %v14763_v52 }
0x13c1   : >> { %v7419_v45 = vadd.f32 %v7418_v42, %v7368_v35  ;;  %v13004_v15 = vpop.f32.mrb[7].mxu1  ;;  %v13034_v34 = vpop.f32.mrb[11].mxu0  ;;  %v7673_v35 = vmul.f32 %v7672_v7, %v7663_v24 }
0x13c6   : >> { %v7459_v8 = vpop.f32.mrb[8].mxu1  ;;  %v7765_v50 = vpop.f32.mrb[12].mxu0 }
0x13c7   : >> { %v7469_v48 = vmul.f32 %v7468_v63, %v7459_v8  ;;  %v13009_v41 = vpop.f32.mrb[9].mxu1  ;;  %v13045_v44 = vpop.f32.mrb[13].mxu0 }
0x13c8   : >> { %v7462_v29 = vpop.f32.mrb[10].mxu1  ;;  %v7768_v11 = vpop.f32.mrb[14].mxu0 }
0x13c9   : >> { %v7470_v13 = vadd.f32 %v7469_v48, %v7419_v45  ;;  %v13010_v20 = vpop.f32.mrb[11].mxu1  ;;  %v13046_v1 = vpop.f32.mrb[15].mxu0  ;;  %v11507_v45 = vld [vmem:[%s16803_s2 + $0x8] ss:$0 sm:$0xff]  ;;  %v11508_v29 = vld [vmem:[%s7312_s1] ss:$0 sm:$0xff]  ;;  %s17623_s2 = smov (%p7198_p9), %s17622_s28 }
0x13ca   : >> { %v7775_v63 = vmul.f32 %v11507_v45, %v7765_v50  ;;  %v11510_v50 = vld [vmem:[%s7793_s0] ss:$0 sm:$0xff]  ;;  %v13834_v17 = vld [vmem:[%s17623_s2 + $0x8] sm:$0xff] (%p7198_p9)   ;;  %s17624_s1 = sld [smem:[#allocation99_spill]] (%p7198_p9)  ;;  %v13835_v56 = vld [vmem:[%s17623_s2 + $0x10] sm:$0xff] (%p7198_p9)   ;;  %s17625_s0 = sld [smem:[#allocation97_spill]] (%p7198_p9) }
0x13cb   : > { %v13836_v0 = vld [vmem:[%s17623_s2 + $0x18] sm:$0xff] (%p7198_p9)   ;;  %v13837_v27 = vld [vmem:[%s17623_s2 + $0x20] sm:$0xff] (%p7198_p9)   ;;  %v13838_v39 = vld [vmem:[%s17623_s2 + $0x28] sm:$0xff] (%p7198_p9)   ;;  %s17626_s28 = sld [smem:[#allocation104_spill]] (%p7198_p9) }
0x13ce   : >> { %v7510_v59 = vpop.f32.mrb[12].mxu1 }
0x13cf   : >> { %v7520_v62 = vmul.f32 %v7519_v25, %v7510_v59  ;;  %v13015_v10 = vpop.f32.mrb[13].mxu1 }
0x13d0   : >> { %v7513_v12 = vpop.f32.mrb[14].mxu1  ;;  %v13839_v9 = vld [vmem:[%s17624_s1] sm:$0xff] (%p7198_p9)  }
0x13d1   : >> { %v7521_v54 = vadd.f32 %v7520_v62, %v7470_v13  ;;  %v13016_v2 = vpop.f32.mrb[15].mxu1 }
0x13d3   : >> { %v7572_v5 = vadd.f32 %v7571_v31, %v7521_v54 }
0x13d6   : >> { %v7612_v16 = vpop.f32.mrb[16].mxu1 }
0x13d7   : >> { %v7622_v19 = vmul.f32 %v7621_v6, %v7612_v16  ;;  %v13027_v42 = vpop.f32.mrb[17].mxu1 }
0x13d8   : >> { %v7615_v61 = vpop.f32.mrb[18].mxu1  ;;  %v13840_v42 = vld [vmem:[%s17624_s1 + $0x8] sm:$0xff] (%p7198_p9)  }
0x13d9   : >> { %v7623_v26 = vadd.f32 %v7622_v19, %v7572_v5  ;;  %v13028_v14 = vpop.f32.mrb[19].mxu1  ;;  %v13841_v61 = vld [vmem:[%s17624_s1 + $0x10] sm:$0xff] (%p7198_p9)  }
0x13da   : > { %v13843_v14 = vld [vmem:[%s17624_s1 + $0x20] sm:$0xff] (%p7198_p9)  }
0x13db   : >> { %v7674_v47 = vadd.f32 %v7673_v35, %v7623_v26  ;;  %v16846_v35 = vld [vmem:[%s17621_s3] sm:$0x1] (%p7198_p9)  ;;  %v13842_v26 = vld [vmem:[%s17624_s1 + $0x18] sm:$0xff] (%p7198_p9)  }
0x13de   : >> { %v7714_v15 = vpop.f32.mrb[20].mxu1 }
0x13df   : >> { %v7724_v34 = vmul.f32 %v7723_v38, %v7714_v15  ;;  %v13039_v8 = vpop.f32.mrb[21].mxu1 }
0x13e0   : >> { %v7717_v48 = vpop.f32.mrb[22].mxu1 }
0x13e1   : >> { %v7725_v41 = vadd.f32 %v7724_v34, %v7674_v47  ;;  %v13040_v44 = vpop.f32.mrb[23].mxu1  ;;  %v13844_v47 = vld [vmem:[%s17624_s1 + $0x28] sm:$0xff] (%p7198_p9)  }
0x13e2   : > { %v7984_v44 = vld [vmem:[%s17625_s0] sm:$0xff] (%p7198_p9) }
0x13e3   : >> { %v7776_v11 = vadd.f32 %v7775_v63, %v7725_v41 }
0x13e5   : >> { %v7783_v24 = vadd.f32 %v11508_v29, %v7776_v11  ;;  %v8084_v29 = vrot.slane (%p7198_p9), %v7984_v44, 1 }
0x13e7   : >> { %v7795_v13 = vpack.c.bf16 %v7783_v24, %v7783_v24 }
0x13e9   : >> { %13054 = vmatmul.mubr.msk.bf16.vlgmr.msra.gmra.mrb[24].mxu1 %vm5148_vm8, %v7795_v13 }
0x13ea   : >> { %13058 = vmatpush3.bf16.msra.mxu1 %v16633_v3  ;;  %13063 = vmatprep.mubr.msk.bf16.mxu1 %vm14768_vm10, %v14767_v55  ;;  %v16849_v3 = vld [vmem:[%s17621_s3 + $0x3] sm:$0x1] (%p7198_p9) }
0x13eb   : >> { %13059 = vmatprep.subr.bf16.mxu1 %v14767_v55 }
0x13ee   : >> { %13060 = vmatpush3.bf16.msra.mxu1 %v16651_v21  ;;  %v16861_v21 = vld [vmem:[%s17621_s3 + $0x1] sm:$0x1] (%p7198_p9) }
0x13ef   : >> { %13061 = vmatprep.subr.bf16.mxu1 %v14767_v55 }
0x13f2   : >> { %13062 = vmatpush3.bf16.msra.mxu1 %v16656_v49  ;;  %v16866_v49 = vld [vmem:[%s17621_s3 + $0x5] sm:$0x1] (%p7198_p9) }
0x13f3   : > { %13101 = vmatprep.subr.bf16.mxu1 (%p7198_p9), %v14763_v52 }
0x1492   : >> { %v7978_v55 = vpop.f32.mrb[16].mxu0 }
0x1493   : >> { %v13081_v10 = vpop.f32.mrb[17].mxu0 }
0x1494   : >> { %v7981_v12 = vpop.f32.mrb[18].mxu0 }
0x1495   : >> { %v13082_v54 = vpop.f32.mrb[19].mxu0 }
0x14bc   : >> { %v7857_v20 = vpop.f32.mrb[24].mxu1 }
0x14bd   : >> { %v7858_v1 = vadd.f32 %v11510_v50, %v7857_v20  ;;  %v13055_v25 = vpop.f32.mrb[25].mxu1 }
0x14be   : >> { %v7860_v30 = vpop.f32.mrb[26].mxu1 }
0x14bf   : >> { %v7863_v59 = vmax.f32 %v7858_v1, 0.0  ;;  %v13056_v62 = vpop.f32.mrb[27].mxu1 }
0x14c1   : >> { %v7864_v31 = vpack.c.bf16 %v7863_v59, %v7863_v59 }
0x14c3   : >> { %13064 = vmatmul.mubr.msk.bf16.vlgmr.msra.gmra.mrb[28].mxu1 %vm5148_vm8, %v7864_v31  ;;  %v8133_v31 = vrot.slane (%p7198_p9), %v7984_v44, 2 }
0x14c4   : > { %13103 = vmatprep.mubr.msk.bf16.mxu1 (%p7198_p9), %vm14764_vm3, %v14763_v52 }
0x1593   : > { %7200 = sbr.rel (!%p7198_p9) target bundleno = 4582 (0x11e6), region = 581 }
0x1596   : >> { %v7902_v2 = vpop.f32.mrb[28].mxu1 }
0x1597   : >> { %v7979_v5 = vadd.f32 %v7978_v55, %v7902_v2   ;;  %v13065_v6 = vpop.f32.mrb[29].mxu1  ;;  %v8182_v55 = vrot.slane (%p7198_p9), %v7984_v44, 3 }
0x1598   : >> { %v7905_v7 = vpop.f32.mrb[30].mxu1 }
0x1599   : >> { %v13066_v37 = vpop.f32.mrb[31].mxu1  ;;  %v17620_v38 = vmov %v7979_v5  ;;  %v16836_v16 = vpack.c.bf16 (%p7198_p9), %v7979_v5, %v7979_v5 }
0x159b   : > { %v7995_v19 = vsel %vm7320_vm12, %v16836_v16, 0 }
0x159c   : > { %13084 = vmatpush3.bf16.msra.mxu0 %v7995_v19  ;;  %13102 = vmatpush3.bf16.msra.mxu1 %v7995_v19 }
0x159d   : > { %13089 = vmatprep.subr.bf16.mxu0 %v14763_v52  ;;  %13113 = vmatprep.subr.bf16.mxu1 %v14763_v52 }
0x159f   : > { %13086 = vmatmul.mubr.msk.bf16.vlgmr.msra.gmra.mrb[0].mxu0 %vm7316_vm13, %v16846_v35  ;;  %13104 = vmatmul.mubr.msk.bf16.vlgmr.msra.gmra.mrb[0].mxu1 %vm7316_vm13, %v16849_v3 }
0x15a0   : > { %13090 = vmatpush3.bf16.msra.mxu0 %v7995_v19  ;;  %13091 = vmatprep.mubr.msk.bf16.mxu0 %vm14764_vm3, %v14763_v52 }
0x15a1   : > { %13095 = vmatprep.subr.bf16.mxu0 %v14763_v52  ;;  %13114 = vmatpush3.bf16.msra.mxu1 %v7995_v19 }
0x15a2   : > { %13115 = vmatprep.mubr.msk.bf16.mxu1 %vm14764_vm3, %v14763_v52  ;;  %13125 = vmatprep.subr.bf16.mxu1 %v14763_v52 }
0x15a7   : > { %13092 = vmatmul.mubr.msk.bf16.vlgmr.msra.gmra.mrb[4].mxu0 %vm7316_vm13, %v16861_v21  ;;  %13116 = vmatmul.mubr.msk.bf16.vlgmr.msra.gmra.mrb[4].mxu1 %vm7316_vm13, %v16866_v49 }
0x15a8   : > { %13096 = vmatpush3.bf16.msra.mxu0 %v7995_v19  ;;  %13097 = vmatprep.mubr.msk.bf16.mxu0 %vm14764_vm3, %v14763_v52 }
0x15a9   : > { %13107 = vmatprep.subr.bf16.mxu0 %v14763_v52  ;;  %13126 = vmatpush3.bf16.msra.mxu1 %v7995_v19 }
0x15aa   : > { %13127 = vmatprep.mubr.msk.bf16.mxu1 %vm14764_vm3, %v14763_v52  ;;  %13137 = vmatprep.subr.bf16.mxu1 %v14763_v52 }
0x15af   : > { %13098 = vmatmul.mubr.msk.bf16.vlgmr.msra.gmra.mrb[8].mxu0 %vm7316_vm13, %v16877_v57  ;;  %13128 = vmatmul.mubr.msk.bf16.vlgmr.msra.gmra.mrb[8].mxu1 %vm7316_vm13, %v16882_v43 }
0x15b0   : > { %13108 = vmatpush3.bf16.msra.mxu0 %v7995_v19  ;;  %13109 = vmatprep.mubr.msk.bf16.mxu0 %vm14764_vm3, %v14763_v52 }
0x15b1   : > { %13119 = vmatprep.subr.bf16.mxu0 %v14763_v52  ;;  %13149 = vmatprep.mubr.msk.bf16.mxu1 %vm14764_vm3, %v14763_v52 }
0x15b2   : > { %13138 = vmatpush3.bf16.msra.mxu1 %v13839_v9 }
0x15b3   : > { %13139 = vmatprep.subr.bf16.mxu1 %v14763_v52 }
0x15b6   : > { %13140 = vmatpush3.bf16.msra.mxu1 %v13840_v42 }
0x15b7   : > { %13110 = vmatmul.mubr.msk.bf16.vlgmr.msra.gmra.mrb[12].mxu0 %vm7316_vm13, %v16895_v4  ;;  %13141 = vmatprep.subr.bf16.mxu1 %v14763_v52 }
0x15b8   : > { %13120 = vmatpush3.bf16.msra.mxu0 %v7995_v19  ;;  %13121 = vmatprep.mubr.msk.bf16.mxu0 %vm14764_vm3, %v14763_v52 }
0x15b9   : > { %13131 = vmatprep.subr.bf16.mxu0 %v14763_v52 }
0x15ba   : > { %13142 = vmatpush3.bf16.msra.mxu1 %v13841_v61 }
0x15bb   : > { %13143 = vmatprep.subr.bf16.mxu1 %v14763_v52 }
0x15be   : > { %13144 = vmatpush3.bf16.msra.mxu1 %v13842_v26 }
0x15bf   : > { %13122 = vmatmul.mubr.msk.bf16.vlgmr.msra.gmra.mrb[16].mxu0 %vm7316_vm13, %v16903_v33  ;;  %13145 = vmatprep.subr.bf16.mxu1 %v14763_v52 }
0x15c0   : > { %13132 = vmatpush3.bf16.msra.mxu0 %v7995_v19  ;;  %13133 = vmatprep.mubr.msk.bf16.mxu0 %vm14764_vm3, %v14763_v52 }
0x15c1   : > { %13153 = vmatprep.subr.bf16.mxu0 %v14763_v52 }
0x15c2   : > { %13146 = vmatpush3.bf16.msra.mxu1 %v13843_v14 }
0x15c3   : > { %13147 = vmatprep.subr.bf16.mxu1 %v14763_v52 }
0x15c6   : > { %13148 = vmatpush3.bf16.msra.mxu1 %v13844_v47 }
0x15c7   : > { %13134 = vmatmul.mubr.msk.bf16.vlgmr.msra.gmra.mrb[20].mxu0 %vm7316_vm13, %v16911_v36  ;;  %13169 = vmatprep.subr.bf16.mxu1 %v14763_v52 }
0x15c8   : > { %13154 = vmatpush3.bf16.msra.mxu0 %v13833_v40  ;;  %13165 = vmatprep.mubr.msk.bf16.mxu0 %vm14764_vm3, %v14763_v52 }
0x15c9   : > { %13155 = vmatprep.subr.bf16.mxu0 %v14763_v52 }
0x15cc   : > { %13156 = vmatpush3.bf16.msra.mxu0 %v13834_v17 }
0x15cd   : > { %13157 = vmatprep.subr.bf16.mxu0 %v14763_v52 }
0x15d0   : > { %13158 = vmatpush3.bf16.msra.mxu0 %v13835_v56  ;;  %v8231_v56 = vrot.slane %v7984_v44, 4 }
0x15d1   : > { %13159 = vmatprep.subr.bf16.mxu0 %v14763_v52 }
0x15d4   : > { %13160 = vmatpush3.bf16.msra.mxu0 %v13836_v0  ;;  %v8280_v0 = vrot.slane %v7984_v44, 5 }
0x15d5   : > { %13161 = vmatprep.subr.bf16.mxu0 %v14763_v52 }
0x15d8   : > { %13162 = vmatpush3.bf16.msra.mxu0 %v13837_v27 }
0x15d9   : > { %13163 = vmatprep.subr.bf16.mxu0 %v14763_v52 }
0x15dc   : > { %13164 = vmatpush3.bf16.msra.mxu0 %v13838_v39 }
0x15dd   : > { %13175 = vmatprep.subr.bf16.mxu0 %v14763_v52 }
0x15df   : > { %13166 = vmatmul.mubr.msk.bf16.vlgmr.msra.gmra.mrb[24].mxu0 %vm7263_vm11, %v16836_v16 }
0x15e0   : > { %13177 = vmatprep.mubr.msk.bf16.mxu0 %vm14764_vm3, %v14763_v52 }
0x1672   : > { %v8031_v38 = vpop.f32.mrb[0].mxu0  ;;  %v8176_v45 = vpop.f32.mrb[0].mxu1 }
0x1673   : > { %v13087_v15 = vpop.f32.mrb[1].mxu0  ;;  %v13105_v34 = vpop.f32.mrb[1].mxu1  ;;  %v8037_v13 = vmul.f32 %v8031_v38, %v7984_v44  ;;  %v8184_v5 = vmul.f32 %v8182_v55, %v8176_v45  ;;  %v8329_v38 = vrot.slane %v7984_v44, 6  ;;  %v8378_v45 = vrot.slane %v7984_v44, 7  ;;  %v11547_v44 = vld [vmem:[#allocation34] ss:$0 sm:$0xff] }
0x1674   : > { %v8034_v63 = vpop.f32.mrb[2].mxu0  ;;  %v8179_v8 = vpop.f32.mrb[2].mxu1 }
0x1675   : > { %v13088_v48 = vpop.f32.mrb[3].mxu0  ;;  %v13106_v41 = vpop.f32.mrb[3].mxu1 }
0x167a   : > { %v8077_v11 = vpop.f32.mrb[4].mxu0  ;;  %v8274_v24 = vpop.f32.mrb[4].mxu1 }
0x167b   : > { %v8086_v28 = vmul.f32 %v8084_v29, %v8077_v11  ;;  %v13093_v50 = vpop.f32.mrb[5].mxu0  ;;  %v13117_v20 = vpop.f32.mrb[5].mxu1  ;;  %v8282_v42 = vmul.f32 %v8280_v0, %v8274_v24 }
0x167c   : > { %v8080_v1 = vpop.f32.mrb[6].mxu0  ;;  %v8277_v25 = vpop.f32.mrb[6].mxu1 }
0x167d   : > { %v8087_v30 = vadd.f32 %v8086_v28, %v8037_v13  ;;  %v13094_v59 = vpop.f32.mrb[7].mxu0  ;;  %v13118_v62 = vpop.f32.mrb[7].mxu1  ;;  %v7985_v13 = vld [vmem:[%s17625_s0 + $0x8] sm:$0x1]  ;;  %v7986_v1 = vld [vmem:[#allocation30] sm:$0x1]  ;;  %s17627_s0 = smov %s17626_s28 }
0x1682   : > { %v8127_v10 = vpop.f32.mrb[8].mxu0  ;;  %v8372_v12 = vpop.f32.mrb[8].mxu1 }
0x1683   : > { %v8135_v54 = vmul.f32 %v8133_v31, %v8127_v10  ;;  %v13099_v2 = vpop.f32.mrb[9].mxu0  ;;  %v13129_v6 = vpop.f32.mrb[9].mxu1  ;;  %v8380_v8 = vmul.f32 %v8378_v45, %v8372_v12 }
0x1684   : > { %v8130_v7 = vpop.f32.mrb[10].mxu0  ;;  %v8375_v37 = vpop.f32.mrb[10].mxu1 }
0x1685   : > { %v8136_v16 = vadd.f32 %v8135_v54, %v8087_v30  ;;  %v13100_v19 = vpop.f32.mrb[11].mxu0  ;;  %v13130_v40 = vpop.f32.mrb[11].mxu1  ;;  %v17016_v7 = vld [vmem:[%s15117_s30 + $0x10] ss:$8 sps:$4 sm:$0xff]   ;;  %v17024_v37 = vld [vmem:[%s15117_s30 + $0x20] ss:$8 sps:$4 sm:$0xff]  }
0x1686   : > { %v17032_v19 = vld [vmem:[%s15117_s30 + $0x30] ss:$8 sps:$4 sm:$0xff]   ;;  %v17036_v40 = vld [vmem:[%s15117_s30 + $0x44] ss:$8 sps:$4 sm:$0xff]  }
0x1687   : > { %v8185_v17 = vadd.f32 %v8184_v5, %v8136_v16  ;;  %v17028_v16 = vld [vmem:[%s15117_s30 + $0x34] ss:$8 sps:$4 sm:$0xff]  }
0x168a   : > { %v8225_v27 = vpop.f32.mrb[12].mxu0 }
0x168b   : > { %v8233_v39 = vmul.f32 %v8231_v56, %v8225_v27  ;;  %v13111_v9 = vpop.f32.mrb[13].mxu0 }
0x168c   : > { %v8228_v61 = vpop.f32.mrb[14].mxu0 }
0x168d   : > { %v8234_v26 = vadd.f32 %v8233_v39, %v8185_v17  ;;  %v13112_v14 = vpop.f32.mrb[15].mxu0  ;;  %v17040_v17 = vld [vmem:[%s15117_s30 + $0x40] ss:$8 sps:$4 sm:$0xff]  }
0x168f   : > { %v8283_v47 = vadd.f32 %v8282_v42, %v8234_v26 }
0x1692   : > { %v8323_v15 = vpop.f32.mrb[16].mxu0 }
0x1693   : > { %v8331_v34 = vmul.f32 %v8329_v38, %v8323_v15  ;;  %v13123_v63 = vpop.f32.mrb[17].mxu0 }
0x1694   : > { %v8326_v48 = vpop.f32.mrb[18].mxu0 }
0x1695   : > { %v8332_v41 = vadd.f32 %v8331_v34, %v8283_v47  ;;  %v13124_v29 = vpop.f32.mrb[19].mxu0 }
0x1697   : > { %v8381_v11 = vadd.f32 %v8380_v8, %v8332_v41 }
0x169a   : > { %v8421_v28 = vpop.f32.mrb[20].mxu0 }
0x169b   : > { %v8427_v50 = vmul.f32 %v8421_v28, %v7985_v13  ;;  %v13135_v20 = vpop.f32.mrb[21].mxu0 }
0x169c   : > { %v8424_v24 = vpop.f32.mrb[22].mxu0 }
0x169d   : > { %v8428_v25 = vadd.f32 %v8427_v50, %v8381_v11  ;;  %v13136_v30 = vpop.f32.mrb[23].mxu0 }
0x169f   : > { %v8429_v59 = vadd.f32 %v8428_v25, %v7986_v1 }
0x16a1   : > { %v8443_v62 = vpack.c.bf16 %v8429_v59, %v8429_v59 }
0x16a3   : > { %13150 = vmatmul.mubr.msk.bf16.vlgmr.msra.gmra.mrb[12].mxu1 %vm7263_vm11, %v8443_v62 }
0x16a4   : > { %13171 = vmatprep.mubr.msk.bf16.mxu1 %vm14764_vm3, %v14763_v52 }
0x16b2   : > { %v8616_v31 = vpop.f32.mrb[24].mxu0 }
0x16b3   : > { %v8617_v55 = vadd.f32 %v11547_v44, %v8616_v31  ;;  %v13167_v10 = vpop.f32.mrb[25].mxu0 }
0x16b4   : > { %v8619_v12 = vpop.f32.mrb[26].mxu0 }
0x16b5   : > { %v8622_v54 = vmax.f32 %v8617_v55, 0.0  ;;  %v13168_v2 = vpop.f32.mrb[27].mxu0 }
0x16b7   : > { %v8626_v5 = vpack.c.bf16 %v8622_v54, %v8622_v54 }
0x16b9   : > { %v8628_v6 = vsel %vm7320_vm12, %v8626_v5, 0 }
0x16ba   : > { %13170 = vmatpush3.bf16.msra.mxu1 %v8628_v6  ;;  %13176 = vmatpush3.bf16.msra.mxu0 %v8628_v6 }
0x16bb   : > { %13181 = vmatprep.subr.bf16.mxu1 %v14763_v52  ;;  %13187 = vmatprep.subr.bf16.mxu0 %v14763_v52 }
0x16bd   : > { %13172 = vmatmul.mubr.msk.bf16.vlgmr.msra.gmra.mrb[16].mxu1 %vm7316_vm13, %v16846_v35  ;;  %13178 = vmatmul.mubr.msk.bf16.vlgmr.msra.gmra.mrb[28].mxu0 %vm7316_vm13, %v16861_v21  ;;  %v13845_v35 = vld [vmem:[%s17626_s28] sm:$0xff]   ;;  %v13847_v21 = vld [vmem:[%s17627_s0 + $0x10] sm:$0xff]   ;;  %s17628_s28 = sld [smem:[#allocation101_spill]] }
0x16be   : > { %13182 = vmatpush3.bf16.msra.mxu1 %v8628_v6  ;;  %13188 = vmatpush3.bf16.msra.mxu0 %v8628_v6 }
0x16bf   : > { %13183 = vmatprep.mubr.msk.bf16.mxu1 %vm14764_vm3, %v14763_v52  ;;  %13189 = vmatprep.mubr.msk.bf16.mxu0 %vm14764_vm3, %v14763_v52 }
0x16c0   : > { %13193 = vmatprep.subr.bf16.mxu1 %v14763_v52  ;;  %13199 = vmatprep.subr.bf16.mxu0 %v14763_v52 }
0x16c3   : > { %v8623_v9 = vld [vmem:[%s17628_s28] sm:$0xff] }
0x16c4   : > { %v8712_v42 = vrot.slane %v8623_v9, 1  ;;  %v8756_v41 = vrot.slane %v8623_v9, 2  ;;  %v8800_v29 = vrot.slane %v8623_v9, 3  ;;  %v8844_v31 = vrot.slane %v8623_v9, 4 }
0x16c5   : > { %13184 = vmatmul.mubr.msk.bf16.vlgmr.msra.gmra.mrb[20].mxu1 %vm7316_vm13, %v16877_v57  ;;  %13190 = vmatmul.mubr.msk.bf16.vlgmr.msra.gmra.mrb[32].mxu0 %vm7316_vm13, %v16849_v3  ;;  %v13846_v3 = vld [vmem:[%s17627_s0 + $0x8] sm:$0xff]   ;;  %v13849_v57 = vld [vmem:[%s17627_s0 + $0x20] sm:$0xff]   ;;  %v8888_v55 = vrot.slane %v8623_v9, 5 }
0x16c6   : > { %13194 = vmatpush3.bf16.msra.mxu1 %v8628_v6  ;;  %13200 = vmatpush3.bf16.msra.mxu0 %v8628_v6 }
0x16c7   : > { %13195 = vmatprep.mubr.msk.bf16.mxu1 %vm14764_vm3, %v14763_v52  ;;  %13201 = vmatprep.mubr.msk.bf16.mxu0 %vm14764_vm3, %v14763_v52 }
0x16c8   : > { %13205 = vmatprep.subr.bf16.mxu1 %v14763_v52  ;;  %13211 = vmatprep.subr.bf16.mxu0 %v14763_v52 }
0x16cd   : > { %13196 = vmatmul.mubr.msk.bf16.vlgmr.msra.gmra.mrb[24].mxu1 %vm7316_vm13, %v16895_v4  ;;  %13202 = vmatmul.mubr.msk.bf16.vlgmr.msra.gmra.mrb[36].mxu0 %vm7316_vm13, %v16866_v49  ;;  %v13848_v49 = vld [vmem:[%s17627_s0 + $0x18] sm:$0xff]   ;;  %v17005_v4 = vld [vmem:[%s15117_s30] ss:$8 sps:$4 sm:$0xff]  }
0x16ce   : > { %13206 = vmatpush3.bf16.msra.mxu1 %v8628_v6  ;;  %13212 = vmatpush3.bf16.msra.mxu0 %v8628_v6 }
0x16cf   : > { %13207 = vmatprep.mubr.msk.bf16.mxu1 %vm14764_vm3, %v14763_v52  ;;  %13217 = vmatprep.subr.bf16.mxu1 %v14763_v52 }
0x16d0   : > { %13213 = vmatprep.mubr.msk.bf16.mxu0 %vm14764_vm3, %v14763_v52  ;;  %13223 = vmatprep.subr.bf16.mxu0 %v14763_v52 }
0x16d5   : > { %13208 = vmatmul.mubr.msk.bf16.vlgmr.msra.gmra.mrb[28].mxu1 %vm7316_vm13, %v16903_v33  ;;  %13214 = vmatmul.mubr.msk.bf16.vlgmr.msra.gmra.mrb[40].mxu0 %vm7316_vm13, %v16882_v43  ;;  %v13850_v43 = vld [vmem:[%s17627_s0 + $0x28] sm:$0xff]   ;;  %s17629_s0 = smov %s17628_s28  ;;  %s17148_s28 = smov 0  }
0x16d6   : > { %13218 = vmatpush3.bf16.msra.mxu1 %v8628_v6  ;;  %13219 = vmatprep.mubr.msk.bf16.mxu1 %vm14764_vm3, %v14763_v52  ;;  %v17008_v33 = vld [vmem:[%s15117_s30 + $0x4] ss:$8 sps:$4 sm:$0xff]  }
0x16d7   : > { %13235 = vmatprep.mubr.msk.bf16.mxu0 %vm14764_vm3, %v14763_v52  ;;  %13224 = vmatpush3.bf16.msra.mxu0 %v13845_v35 }
0x16d8   : > { %13225 = vmatprep.subr.bf16.mxu0 %v14763_v52  ;;  %9206 = vmatprep.subr.bf16.mxu1 %v17008_v33 }
0x16db   : > { %13226 = vmatpush3.bf16.msra.mxu0 %v13846_v3 }
0x16dc   : > { %13227 = vmatprep.subr.bf16.mxu0 %v14763_v52 }
0x16dd   : > { %13220 = vmatmul.mubr.msk.bf16.vlgmr.msra.gmra.mrb[32].mxu1 %vm7316_vm13, %v16911_v36  ;;  %v17011_v36 = vld [vmem:[%s15117_s30 + $0x14] ss:$8 sps:$4 sm:$0xff]  }
0x16de   : > { %9207 = vmatpush1.bf16.msra.mxu1 %v17005_v4 }
0x16df   : > { %13228 = vmatpush3.bf16.msra.mxu0 %v13847_v21  ;;  %9208 = vmatprep.subr.bf16.mxu1 %v17011_v36 }
0x16e0   : > { %13229 = vmatprep.subr.bf16.mxu0 %v14763_v52 }
0x16e2   : > { %9209 = vmatpush1.bf16.msra.mxu1 %v17016_v7 }
0x16e3   : > { %13230 = vmatpush3.bf16.msra.mxu0 %v13848_v49 }
0x16e4   : > { %13231 = vmatprep.subr.bf16.mxu0 %v14763_v52 }
0x16e7   : > { %13232 = vmatpush3.bf16.msra.mxu0 %v13849_v57 }
0x16e8   : > { %13233 = vmatprep.subr.bf16.mxu0 %v14763_v52  ;;  %v17020_v52 = vld [vmem:[%s15117_s30 + $0x24] ss:$8 sps:$4 sm:$0xff]  }
0x16e9   : > { %9210 = vmatprep.subr.bf16.mxu1 %v17020_v52 }
0x16ea   : > { %9211 = vmatpush1.bf16.msra.mxu1 %v17024_v37 }
0x16eb   : > { %13234 = vmatpush3.bf16.msra.mxu0 %v13850_v43  ;;  %9212 = vmatprep.subr.bf16.mxu1 %v17028_v16 }
0x16ee   : > { %9213 = vmatpush1.bf16.msra.mxu1 %v17032_v19 }
0x16ef   : > { %9214 = vmatprep.subr.bf16.mxu1 %v17036_v40 }
0x16f2   : > { %9215 = vmatpush1.bf16.msra.mxu1 %v17040_v17 }
0x1776   : > { %v17044_v56 = vpop.f32.mrb[12].mxu1 }
0x1777   : > { %v13151_v0 = vpop.f32.mrb[13].mxu1 }
0x1778   : > { %v8521_v27 = vpop.f32.mrb[14].mxu1  ;;  %v8932_v0 = vrot.slane %v8623_v9, 6 }
0x1779   : > { %v13152_v39 = vpop.f32.mrb[15].mxu1  ;;  %v8976_v27 = vrot.slane %v8623_v9, 7 }
0x1790   : > { %v8664_v61 = vpop.f32.mrb[16].mxu1  ;;  %v8705_v26 = vpop.f32.mrb[28].mxu0 }
0x1791   : > { %v8670_v14 = vmul.f32 %v8664_v61, %v8623_v9  ;;  %v13173_v47 = vpop.f32.mrb[17].mxu1  ;;  %v8714_v38 = vmul.f32 %v8712_v42, %v8705_v26  ;;  %v13179_v45 = vpop.f32.mrb[29].mxu0  ;;  %v8625_v9 = vld [vmem:[#allocation33] sm:$0x1] }
0x1792   : > { %v8667_v15 = vpop.f32.mrb[18].mxu1  ;;  %v8708_v34 = vpop.f32.mrb[30].mxu0 }
0x1793   : > { %v13174_v63 = vpop.f32.mrb[19].mxu1  ;;  %v8715_v8 = vadd.f32 %v8714_v38, %v8670_v14  ;;  %v13180_v48 = vpop.f32.mrb[31].mxu0 }
0x1794   : > { %v8624_v48 = vld [vmem:[%s17629_s0 + $0x8] sm:$0x1] }
0x1798   : > { %v8750_v11 = vpop.f32.mrb[20].mxu1  ;;  %v8794_v13 = vpop.f32.mrb[32].mxu0 }
0x1799   : > { %v8758_v28 = vmul.f32 %v8756_v41, %v8750_v11  ;;  %v8802_v50 = vmul.f32 %v8800_v29, %v8794_v13  ;;  %v13185_v20 = vpop.f32.mrb[21].mxu1  ;;  %v13191_v1 = vpop.f32.mrb[33].mxu0 }
0x179a   : > { %v8753_v24 = vpop.f32.mrb[22].mxu1  ;;  %v8797_v25 = vpop.f32.mrb[34].mxu0 }
0x179b   : > { %v8759_v30 = vadd.f32 %v8758_v28, %v8715_v8  ;;  %v13186_v59 = vpop.f32.mrb[23].mxu1  ;;  %v13192_v62 = vpop.f32.mrb[35].mxu0  ;;  %v17050_v24 = vld [vmem:[%s15117_s30 + $0x54] ss:$8 sps:$4 sm:$0xff]   ;;  %v17053_v25 = vld [vmem:[%s15117_s30 + $0x50] ss:$8 sps:$4 sm:$0xff]  }
0x179c   : > { %9216 = vmatprep.subr.bf16.mxu1 %v17050_v24  ;;  %v14769_v59 = vmov 0   ;;  %v9035_v62 = vld [vmem:[#allocation36] sm:$0x1] }
0x179d   : > { %v8803_v44 = vadd.f32 %v8802_v50, %v8759_v30  ;;  %9217 = vmatpush1.bf16.msra.mxu1 %v17053_v25  ;;  %v13871_v30 = vld [vmem:[%s17534_s5 + $0x4] ss:$8 sps:$4 sm:$0xff]   ;;  %9238 = vmatprep.mubr.bf16.mxu1 %v14769_v59 }
0x179e   : > { %9310 = vmatprep.subr.bf16.mxu1 %v13871_v30  ;;  %v17127_v30 = vld [vmem:[%s17533_s6 + $0x90] sm:$0xff] }
0x17a0   : > { %v8838_v10 = vpop.f32.mrb[24].mxu1  ;;  %v8882_v12 = vpop.f32.mrb[36].mxu0 }
0x17a1   : > { %v8846_v54 = vmul.f32 %v8844_v31, %v8838_v10  ;;  %v8890_v2 = vmul.f32 %v8888_v55, %v8882_v12  ;;  %v13197_v5 = vpop.f32.mrb[25].mxu1  ;;  %v13203_v6 = vpop.f32.mrb[37].mxu0 }
0x17a2   : > { %v8841_v35 = vpop.f32.mrb[26].mxu1  ;;  %v8885_v3 = vpop.f32.mrb[38].mxu0  ;;  %v13874_v6 = vld [vmem:[%s17534_s5 + $0x14] ss:$8 sps:$4 sm:$0xff]  }
0x17a3   : > { %v8847_v21 = vadd.f32 %v8846_v54, %v8803_v44  ;;  %v13198_v49 = vpop.f32.mrb[27].mxu1  ;;  %v13204_v57 = vpop.f32.mrb[39].mxu0  ;;  %v13872_v35 = vld [vmem:[%s17534_s5 + $0x10] ss:$8 sps:$4 sm:$0xff]   ;;  %v13877_v3 = vld [vmem:[%s17534_s5 + $0x24] ss:$8 sps:$4 sm:$0xff]  }
0x17a4   : > { %v13880_v49 = vld [vmem:[%s17534_s5 + $0x34] ss:$8 sps:$4 sm:$0xff]   ;;  %v13878_v57 = vld [vmem:[%s17534_s5 + $0x30] ss:$8 sps:$4 sm:$0xff]  }
0x17a5   : > { %v8891_v43 = vadd.f32 %v8890_v2, %v8847_v21  ;;  %v13869_v2 = vld [vmem:[%s17534_s5] ss:$8 sps:$4 sm:$0xff]  }
0x17a6   : > { %v13875_v21 = vld [vmem:[%s17534_s5 + $0x20] ss:$8 sps:$4 sm:$0xff]  }
0x17a8   : > { %v8926_v39 = vpop.f32.mrb[28].mxu1  ;;  %v8970_v42 = vpop.f32.mrb[40].mxu0 }
0x17a9   : > { %v8934_v61 = vmul.f32 %v8932_v0, %v8926_v39  ;;  %v8978_v26 = vmul.f32 %v8976_v27, %v8970_v42  ;;  %v13209_v14 = vpop.f32.mrb[29].mxu1  ;;  %v13215_v47 = vpop.f32.mrb[41].mxu0  ;;  %v8442_v0 = vld [vmem:[#allocation31] sm:$0x1]  ;;  %v13881_v27 = vld [vmem:[%s17534_s5 + $0x40] ss:$8 sps:$4 sm:$0xff]  }
0x17aa   : > { %v8929_v38 = vpop.f32.mrb[30].mxu1  ;;  %v8973_v45 = vpop.f32.mrb[42].mxu0  ;;  %v8519_v39 = vadd.f32 %v17044_v56, %v8442_v0  ;;  %v13886_v42 = vld [vmem:[%s17534_s5 + $0x54] ss:$8 sps:$4 sm:$0xff]   ;;  %v17073_v56 = vld [vmem:[%s17533_s6] sm:$0xff]  ;;  %v17076_v47 = vld [vmem:[%s17533_s6 + $0x8] sm:$0xff] }
0x17ab   : > { %v8935_v15 = vadd.f32 %v8934_v61, %v8891_v43  ;;  %v13210_v34 = vpop.f32.mrb[31].mxu1  ;;  %v13216_v63 = vpop.f32.mrb[43].mxu0  ;;  %v13883_v43 = vld [vmem:[%s17534_s5 + $0x44] ss:$8 sps:$4 sm:$0xff]   ;;  %v13884_v61 = vld [vmem:[%s17534_s5 + $0x50] ss:$8 sps:$4 sm:$0xff]  }
0x17ac   : > { %v17079_v38 = vld [vmem:[%s17533_s6 + $0x10] sm:$0xff]  ;;  %v17082_v45 = vld [vmem:[%s17533_s6 + $0x18] sm:$0xff]  ;;  %v17088_v34 = vld [vmem:[%s17533_s6 + $0x28] sm:$0xff] }
0x17ad   : > { %v8979_v8 = vadd.f32 %v8978_v26, %v8935_v15  ;;  %v8524_v26 = vmax.f32 %v8519_v39, 0.0  ;;  %v17085_v15 = vld [vmem:[%s17533_s6 + $0x20] sm:$0xff]  ;;  %v17091_v63 = vld [vmem:[%s17533_s6 + $0x30] sm:$0xff] }
0x17af   : > { %v9141_v14 = vpack.c.bf16 %v8524_v26, %v8524_v26 }
0x17b0   : > { %v9014_v41 = vpop.f32.mrb[32].mxu1 }
0x17b1   : > { %v9020_v29 = vmul.f32 %v9014_v41, %v8624_v48  ;;  %v13221_v11 = vpop.f32.mrb[33].mxu1  ;;  %v17097_v48 = vld [vmem:[%s17533_s6 + $0x40] sm:$0xff]  ;;  %v17100_v41 = vld [vmem:[%s17533_s6 + $0x48] sm:$0xff] }
0x17b2   : > { %v9017_v13 = vpop.f32.mrb[34].mxu1  ;;  %v17106_v11 = vld [vmem:[%s17533_s6 + $0x58] sm:$0xff] }
0x17b3   : > { %v9021_v28 = vadd.f32 %v9020_v29, %v8979_v8  ;;  %v13222_v50 = vpop.f32.mrb[35].mxu1  ;;  %v17094_v8 = vld [vmem:[%s17533_s6 + $0x38] sm:$0xff]  ;;  %v17103_v29 = vld [vmem:[%s17533_s6 + $0x50] sm:$0xff]  ;;  %v17112_v13 = vld [vmem:[%s17533_s6 + $0x68] sm:$0xff] }
0x17b4   : > { %v17118_v50 = vld [vmem:[%s17533_s6 + $0x78] sm:$0xff] }
0x17b5   : > { %v9022_v20 = vadd.f32 %v9021_v28, %v8625_v9  ;;  %v17109_v9 = vld [vmem:[%s17533_s6 + $0x60] sm:$0xff]  ;;  %v17115_v28 = vld [vmem:[%s17533_s6 + $0x70] sm:$0xff] }
0x17b7   : > { %v9036_v1 = vpack.c.bf16 %v9022_v20, %v9022_v20  ;;  %v17121_v20 = vld [vmem:[%s17533_s6 + $0x80] sm:$0xff] }
0x17b9   : > { %13236 = vmatmul.mubr.msk.bf16.vlgmr.msra.gmra.mrb[44].mxu0 %vm7263_vm11, %v9036_v1  ;;  %v17124_v1 = vld [vmem:[%s17533_s6 + $0x88] sm:$0xff] }
0x188c   : > { %v9110_v44 = vpop.f32.mrb[44].mxu0 }
0x188d   : > { %v9111_v31 = vadd.f32 %v9110_v44, %v9035_v62  ;;  %v13237_v55 = vpop.f32.mrb[45].mxu0  ;;  %v17133_v62 = vld [vmem:[%s17533_s6 + $0xa0] sm:$0xff]  ;;  %v17136_v44 = vld [vmem:[%s17533_s6 + $0xa8] sm:$0xff] }
0x188e   : > { %v9113_v10 = vpop.f32.mrb[46].mxu0  ;;  %v17142_v55 = vld [vmem:[%s17533_s6 + $0xb8] sm:$0xff] }
0x188f   : > { %v9116_v12 = vmax.f32 %v9111_v31, 0.0  ;;  %v13238_v54 = vpop.f32.mrb[47].mxu0  ;;  %v17139_v31 = vld [vmem:[%s17533_s6 + $0xb0] sm:$0xff] }
0x1891   : > { %v9142_v5 = vpack.c.bf16 %v9116_v12, %v9116_v12 }
0x1893   : > { %11583 = vmatmul.mubr.msk.bf16.vlgmr.msra.gmra.mrb[36].mxu1 %vm7263_vm11, %v9142_v5 }
0x1894   : > { %9311 = vmatpush1.bf16.msra.mxu1 %v13869_v2  ;;  %9342 = vmatprep.mubr.bf16.mxu1 %v14769_v59  ;;  %v17130_v59 = vld [vmem:[%s17533_s6 + $0x98] sm:$0xff] }
0x1895   : > { %9312 = vmatprep.subr.bf16.mxu1 %v13874_v6 }
0x1898   : > { %9313 = vmatpush1.bf16.msra.mxu1 %v13872_v35 }
0x1899   : > { %9314 = vmatprep.subr.bf16.mxu1 %v13877_v3 }
0x189c   : > { %9315 = vmatpush1.bf16.msra.mxu1 %v13875_v21 }
0x189d   : > { %9316 = vmatprep.subr.bf16.mxu1 %v13880_v49 }
0x18a0   : > { %9317 = vmatpush1.bf16.msra.mxu1 %v13878_v57 }
0x18a1   : > { %9318 = vmatprep.subr.bf16.mxu1 %v13883_v43 }
0x18a4   : > { %9319 = vmatpush1.bf16.msra.mxu1 %v13881_v27 }
0x18a5   : > { %9320 = vmatprep.subr.bf16.mxu1 %v13886_v42 }
0x18a8   : > { %9321 = vmatpush1.bf16.msra.mxu1 %v13884_v61 }
0x18ab   : > { %11596 = vmatmul.mubr.msk.bf16.vlgmr.msra.gmra.mrb[36].mxu1 %vm7263_vm11, %v9141_v14 }
0x197e   : > { %v9344_v10 = vpop.f32.mrb[36].mxu1  }
0x197f   : > { %v9346_v12 = vpop.f32.mrb[37].mxu1  }
0x1980   : > { %v9348_v54 = vpop.f32.mrb[38].mxu1 }
0x1981   : > { %v9349_v2 = vpop.f32.mrb[39].mxu1 }
0x1982 LB: >> { %s17630_s0 = sld [smem:[#allocation94_spill]]  ;;  %9642 = vmatprep.subr.bf16.mxu1 %v17008_v33  ;;  %v14770_v5 = vmov 0   ;;  %s11753_s1 = smul.u32 96, %s14667_s28  ;;  %v17158_v6 = vpack.c.bf16 %v14659_v12, %v14659_v12  ;;  %v17191_v14 = vpack.c.bf16 %v14663_v10, %v14663_v10  ;;  %v14771_v54 = vmov 0.0   ;;  %s14667_s28 = sphi %s17148_s28, %s9380_s28   ;;  %v14663_v10 = vphi %v9344_v10, %v17635_v10   ;;  %v14659_v12 = vphi %v9346_v12, %v17634_v12  }
0x1983   : >> { %9489 = vmatprep.subr.bf16.mxu0 %v14770_v5  ;;  %9643 = vmatpush1.bf16.msra.mxu1 %v17005_v4  ;;  %s17631_s3 = sld [smem:[#allocation95_spill]]  ;;  %vm14772_vm14 = vmmov 0   ;;  %s9410_s5 = scalar_lea.vmem [#allocation27], %s14667_s28 }
0x1984   : >> { %9644 = vmatprep.subr.bf16.mxu1 %v17011_v36  ;;  %9674 = vmatprep.mubr.bf16.mxu1 %v14770_v5  ;;  %s9533_s6 = scalar_lea.vmem [#allocation25], %s14667_s28 }
0x1985   : >> { %11610 = vmatprep.mubr.msk.bf16.mxu0 %vm3738_vm4, %v17158_v6 }
0x1987   : >> { %9645 = vmatpush1.bf16.msra.mxu1 %v17016_v7 }
0x1988   : >> { %s17162_s2 = scalar_lea.vmem %s17630_s0, %s11753_s1  ;;  %9646 = vmatprep.subr.bf16.mxu1 %v17020_v52  ;;  %s11754_s1 = smul.u32 48, %s14667_s28 }
0x1989   : >> { %v13887_v35 = vld [vmem:[%s17162_s2] sm:$0xff]   ;;  %v13888_v3 = vld [vmem:[%s17162_s2 + $0x8] sm:$0xff]   ;;  %v13889_v21 = vld [vmem:[%s17162_s2 + $0x10] sm:$0xff]  }
0x198a   : >> { %9490 = vmatpush1.bf16.msra.mxu0 %v13887_v35  ;;  %v13890_v49 = vld [vmem:[%s17162_s2 + $0x18] sm:$0xff]   ;;  %s17178_s0 = scalar_lea.vmem %s17631_s3, %s11754_s1  ;;  %v13891_v57 = vld [vmem:[%s17162_s2 + $0x20] sm:$0xff]   ;;  %v13892_v43 = vld [vmem:[%s17162_s2 + $0x28] sm:$0xff]   ;;  %s17632_s3 = sld [smem:[#allocation92_spill]] }
0x198b   : >> { %9491 = vmatprep.subr.bf16.mxu0 %v14770_v5  ;;  %9647 = vmatpush1.bf16.msra.mxu1 %v17024_v37  ;;  %v13893_v0 = vld [vmem:[%s17162_s2 + $0x30] sm:$0xff]   ;;  %v13894_v27 = vld [vmem:[%s17162_s2 + $0x38] sm:$0xff]   ;;  %v13895_v39 = vld [vmem:[%s17162_s2 + $0x40] sm:$0xff]  }
0x198c   : >> { %9648 = vmatprep.subr.bf16.mxu1 %v17028_v16  ;;  %v13896_v42 = vld [vmem:[%s17162_s2 + $0x48] sm:$0xff]   ;;  %v13897_v61 = vld [vmem:[%s17162_s2 + $0x50] sm:$0xff]   ;;  %v13898_v26 = vld [vmem:[%s17162_s2 + $0x58] sm:$0xff]   ;;  %s11611_s2 = sshll.u32 %s14667_s28, 4 }
0x198d   : >> { %v13899_v12 = vld [vmem:[%s17178_s0] sm:$0xff]   ;;  %v13900_v2 = vld [vmem:[%s17178_s0 + $0x8] sm:$0xff]   ;;  %v13901_v35 = vld [vmem:[%s17178_s0 + $0x10] sm:$0xff]  }
0x198e   : >> { %9492 = vmatpush1.bf16.msra.mxu0 %v13888_v3  ;;  %v13902_v10 = vld [vmem:[%s17178_s0 + $0x18] sm:$0xff]   ;;  %v13904_v3 = vld [vmem:[%s17178_s0 + $0x28] sm:$0xff]  }
0x198f   : >> { %9493 = vmatprep.subr.bf16.mxu0 %v14770_v5  ;;  %9649 = vmatpush1.bf16.msra.mxu1 %v17032_v19 }
0x1990   : >> { %9650 = vmatprep.subr.bf16.mxu1 %v17036_v40  ;;  %s9531_s1 = scalar_lea.vmem %s17632_s3, %s11611_s2 }
0x1992   : >> { %9494 = vmatpush1.bf16.msra.mxu0 %v13889_v21  ;;  %v9411_v21 = vld [vmem:[%s9410_s5] sm:$0x1]  ;;  %s9555_s5 = scalar_lea.vmem [#allocation28], %s14667_s28  ;;  %s9380_s28 = sadd.s32 1, %s14667_s28  }
0x1993   : >> { %9495 = vmatprep.subr.bf16.mxu0 %v14770_v5  ;;  %9651 = vmatpush1.bf16.msra.mxu1 %v17040_v17  ;;  %p9377_p2 = scmp.ge.s32.totalorder %s9380_s28, 3  }
0x1994   : >> { %9652 = vmatprep.subr.bf16.mxu1 %v17050_v24  ;;  %s17637_s28 = sld [smem:[#allocation52_spill]] (%p9377_p2) }
0x1996   : >> { %9496 = vmatpush1.bf16.msra.mxu0 %v13890_v49  ;;  %v9532_v49 = vld [vmem:[%s9531_s1] sm:$0xff] }
0x1997   : >> { %9497 = vmatprep.subr.bf16.mxu0 %v14770_v5  ;;  %9653 = vmatpush1.bf16.msra.mxu1 %v17053_v25 }
0x199a   : >> { %9498 = vmatpush1.bf16.msra.mxu0 %v13891_v57 }
0x199b   : >> { %9499 = vmatprep.subr.bf16.mxu0 %v14770_v5 }
0x199e   : >> { %9500 = vmatpush1.bf16.msra.mxu0 %v13892_v43 }
0x199f   : >> { %9501 = vmatprep.subr.bf16.mxu0 %v14770_v5 }
0x19a2   : >> { %9502 = vmatpush1.bf16.msra.mxu0 %v13893_v0  ;;  %v9536_v0 = vrot.slane %v9532_v49, 4 }
0x19a3   : >> { %9503 = vmatprep.subr.bf16.mxu0 %v14770_v5 }
0x19a6   : >> { %9504 = vmatpush1.bf16.msra.mxu0 %v13894_v27 }
0x19a7   : >> { %9505 = vmatprep.subr.bf16.mxu0 %v14770_v5 }
0x19aa   : >> { %9506 = vmatpush1.bf16.msra.mxu0 %v13895_v39 }
0x19ab   : >> { %9507 = vmatprep.subr.bf16.mxu0 %v14770_v5 }
0x19ae   : >> { %9508 = vmatpush1.bf16.msra.mxu0 %v13896_v42 }
0x19af   : >> { %9509 = vmatprep.subr.bf16.mxu0 %v14770_v5 }
0x19b2   : >> { %9510 = vmatpush1.bf16.msra.mxu0 %v13897_v61 }
0x19b3   : >> { %9511 = vmatprep.subr.bf16.mxu0 %v14770_v5  ;;  %v13903_v5 = vld [vmem:[%s17178_s0 + $0x20] sm:$0xff]  }
0x19b6   : >> { %9512 = vmatpush1.bf16.msra.mxu0 %v13898_v26  ;;  %v9534_v26 = vld [vmem:[%s9533_s6] sm:$0x1]  ;;  %s17636_s6 = sld [smem:[#allocation53_spill]] (%p9377_p2) }
0x19b7   : >> { %13239 = vmatprep.subr.bf16.mxu0 %v14771_v54 }
0x19b9   : >> { %9522 = vmatmul.mubr.bf16.vlgmr.msra.gmra.mrb[0].mxu0 %v17191_v14 }
0x19ba   : >> { %13240 = vmatpush3.bf16.msra.mxu0 %v13899_v12  ;;  %13251 = vmatprep.mubr.msk.bf16.mxu0 %vm14772_vm14, %v14771_v54 }
0x19bb   : >> { %13241 = vmatprep.subr.bf16.mxu0 %v14771_v54 }
0x19bc   : > { %v9852_v4 = vld [vmem:[%s17636_s6 + $0x40] sm:$0xff] (%p9377_p2)  ;;  %v9853_v37 = vld [vmem:[%s17636_s6 + $0x48] sm:$0xff] (%p9377_p2) }
0x19bd   : > { %v9856_v33 = vld [vmem:[%s17636_s6 + $0x60] sm:$0xff] (%p9377_p2)  ;;  %v9857_v16 = vld [vmem:[%s17636_s6 + $0x68] sm:$0xff] (%p9377_p2) }
0x19be   : >> { %13242 = vmatpush3.bf16.msra.mxu0 %v13900_v2  ;;  %v11655_v52 = vcombine.high (%p9377_p2), %v9852_v4, %v9856_v33  ;;  %v9860_v19 = vld [vmem:[%s17636_s6 + $0x80] sm:$0xff] (%p9377_p2)  ;;  %v11657_v40 = vcombine.high (%p9377_p2), %v9853_v37, %v9857_v16  ;;  %v9861_v24 = vld [vmem:[%s17636_s6 + $0x88] sm:$0xff] (%p9377_p2) }
0x19bf   : >> { %13243 = vmatprep.subr.bf16.mxu0 %v14771_v54  ;;  %v9864_v17 = vld [vmem:[%s17636_s6 + $0xa0] sm:$0xff] (%p9377_p2)  ;;  %v9865_v25 = vld [vmem:[%s17636_s6 + $0xa8] sm:$0xff] (%p9377_p2) }
0x19c2   : >> { %13244 = vmatpush3.bf16.msra.mxu0 %v13901_v35 }
0x19c3   : >> { %13245 = vmatprep.subr.bf16.mxu0 %v14771_v54 }
0x19c6   : >> { %13246 = vmatpush3.bf16.msra.mxu0 %v13902_v10  ;;  %v9556_v10 = vld [vmem:[%s9555_s5] sm:$0x1] }
0x19c7   : >> { %13247 = vmatprep.subr.bf16.mxu0 %v14771_v54 }
0x19ca   : >> { %13248 = vmatpush3.bf16.msra.mxu0 %v13903_v5 }
0x19cb   : >> { %13249 = vmatprep.subr.bf16.mxu0 %v14771_v54  ;;  %v11622_v54 = vcombine.high %v17073_v56, %v17076_v47 }
0x19cd   : >> { %9803 = vmatprep.subr.bf16.mxu1 %v11622_v54  ;;  %v11632_v54 = vcombine.high %v17103_v29, %v17106_v11 }
0x19ce   : >> { %13250 = vmatpush3.bf16.msra.mxu0 %v13904_v3 }
0x1a8c   : >> { %v9523_v57 = vpop.f32.mrb[0].mxu0 }
0x1a8d   : >> { %v9524_v43 = vadd.f32 %v9523_v57, %v9411_v21  ;;  %v9525_v27 = vpop.f32.mrb[1].mxu0 }
0x1a8e   : >> { %v9526_v39 = vpop.f32.mrb[2].mxu0  ;;  %v11621_v27 = vcombine.low %v17073_v56, %v17076_v47  ;;  %v11654_v56 = vcombine.low (%p9377_p2), %v9852_v4, %v9856_v33  ;;  %v11656_v47 = vcombine.low (%p9377_p2), %v9853_v37, %v9857_v16  ;;  %v9909_v37 = vld [vmem:[%s17636_s6 + $0x208] sm:$0xff] (%p9377_p2) }
0x1a8f   : >> { %v9529_v42 = vmax.f32 %v9524_v43, 0.0  ;;  %v9527_v61 = vpop.f32.mrb[3].mxu0  ;;  %v11624_v39 = vcombine.high %v17079_v38, %v17082_v45  ;;  %v9913_v16 = vld [vmem:[%s17636_s6 + $0x228] sm:$0xff] (%p9377_p2) }
0x1a90   : >> { %v11626_v61 = vcombine.high %v17085_v15, %v17088_v34 }
0x1a91   : >> { %v9538_v12 = vmul.f32 %v9536_v0, %v9529_v42  ;;  %v11623_v42 = vcombine.low %v17079_v38, %v17082_v45  ;;  %v11663_v38 = vcombine.high (%p9377_p2), %v9860_v19, %v9864_v17  ;;  %v11665_v45 = vcombine.high (%p9377_p2), %v9861_v24, %v9865_v25 }
0x1a93   : >> { %v9539_v2 = vadd.f32 %v9538_v12, %v9534_v26  ;;  %v11625_v26 = vcombine.low %v17085_v15, %v17088_v34  ;;  %v11628_v12 = vcombine.high %v17091_v63, %v17094_v8  ;;  %v9868_v15 = vld [vmem:[%s17636_s6 + $0xc0] sm:$0xff] (%p9377_p2) }
0x1a94   : > { %v9872_v34 = vld [vmem:[%s17636_s6 + $0xe0] sm:$0xff] (%p9377_p2) }
0x1a95   : >> { %v9557_v35 = vpack.c.bf16 %v9539_v2, %v9539_v2  ;;  %v11627_v2 = vcombine.low %v17091_v63, %v17094_v8  ;;  %v9869_v63 = vld [vmem:[%s17636_s6 + $0xc8] sm:$0xff] (%p9377_p2) }
0x1a96   : > { %v9873_v8 = vld [vmem:[%s17636_s6 + $0xe8] sm:$0xff] (%p9377_p2) }
0x1a97   : >> { %13252 = vmatmul.mubr.msk.bf16.vlgmr.msra.gmra.mrb[4].mxu0 %vm7263_vm11, %v9557_v35  ;;  %v11629_v35 = vcombine.low %v17097_v48, %v17100_v41 }
0x1b6a   : >> { %v9631_v5 = vpop.f32.mrb[4].mxu0 }
0x1b6b   : >> { %v9632_v3 = vadd.f32 %v9631_v5, %v9556_v10  ;;  %v13253_v21 = vpop.f32.mrb[5].mxu0  ;;  %v11631_v10 = vcombine.low %v17103_v29, %v17106_v11  ;;  %v11634_v5 = vcombine.high %v17109_v9, %v17112_v13  ;;  %v11671_v29 = vcombine.high (%p9377_p2), %v9868_v15, %v9872_v34 }
0x1b6c   : >> { %v9634_v49 = vpop.f32.mrb[6].mxu0  ;;  %v11636_v21 = vcombine.high %v17115_v28, %v17118_v50  ;;  %v11673_v11 = vcombine.high (%p9377_p2), %v9869_v63, %v9873_v8 }
0x1b6d   : >> { %v9637_v57 = vmax.f32 %v9632_v3, 0.0  ;;  %v13254_v43 = vpop.f32.mrb[7].mxu0  ;;  %v11633_v3 = vcombine.low %v17109_v9, %v17112_v13  ;;  %v11635_v49 = vcombine.low %v17115_v28, %v17118_v50  ;;  %v9876_v9 = vld [vmem:[%s17636_s6 + $0x100] sm:$0xff] (%p9377_p2)  ;;  %v9877_v28 = vld [vmem:[%s17636_s6 + $0x108] sm:$0xff] (%p9377_p2) }
0x1b6e   : >> { %v11637_v43 = vcombine.low %v17121_v20, %v17124_v1  ;;  %v9880_v13 = vld [vmem:[%s17636_s6 + $0x120] sm:$0xff] (%p9377_p2)  ;;  %v9881_v50 = vld [vmem:[%s17636_s6 + $0x128] sm:$0xff] (%p9377_p2) }
0x1b6f   : >> { %v9638_v0 = vpack.c.bf16 %v9637_v57, %v9637_v57  ;;  %v11638_v57 = vcombine.high %v17121_v20, %v17124_v1  ;;  %v11670_v20 = vcombine.low (%p9377_p2), %v9868_v15, %v9872_v34  ;;  %v11672_v1 = vcombine.low (%p9377_p2), %v9869_v63, %v9873_v8  ;;  %v9924_v8 = vld [vmem:[%s17636_s6 + $0x280] sm:$0xff] (%p9377_p2) }
0x1b70   : > { %v11712_v15 = vcombine.low (%p9377_p2), %v9909_v37, %v9913_v16 }
0x1b71   : >> { %11620 = vmatmul.mubr.msk.bf16.vlgmr.msra.gmra.mrb[0].mxu1 %vm7263_vm11, %v9638_v0  ;;  %v11639_v0 = vcombine.low %v17127_v30, %v17130_v59 }
0x1b72   : >> { %9804 = vmatpush1.bf16.msra.mxu1 %v11621_v27  ;;  %11645 = vmatprep.mubr.msk.bf16.mxu1 %vm3738_vm4, %v17158_v6  ;;  %v11630_v6 = vcombine.high %v17097_v48, %v17100_v41  ;;  %v11640_v27 = vcombine.high %v17127_v30, %v17130_v59  ;;  %v11662_v48 = vcombine.low (%p9377_p2), %v9860_v19, %v9864_v17 }
0x1b73   : >> { %9805 = vmatprep.subr.bf16.mxu1 %v11624_v39  ;;  %v11642_v39 = vcombine.high %v17133_v62, %v17136_v44  ;;  %v11664_v41 = vcombine.low (%p9377_p2), %v9861_v24, %v9865_v25  ;;  %v11679_v30 = vcombine.high (%p9377_p2), %v9876_v9, %v9880_v13  ;;  %v11681_v59 = vcombine.high (%p9377_p2), %v9877_v28, %v9881_v50  ;;  %v9916_v25 = vld [vmem:[%s17636_s6 + $0x240] sm:$0xff] (%p9377_p2) }
0x1b74   : > { %v11713_v24 = vcombine.high (%p9377_p2), %v9909_v37, %v9913_v16  ;;  %v9870_v16 = vld [vmem:[%s17636_s6 + $0xd0] sm:$0xff] (%p9377_p2) }
0x1b76   : >> { %9806 = vmatpush1.bf16.msra.mxu1 %v11623_v42  ;;  %v11641_v42 = vcombine.low %v17133_v62, %v17136_v44  ;;  %v9884_v62 = vld [vmem:[%s17636_s6 + $0x140] sm:$0xff] (%p9377_p2) }
0x1b77   : >> { %9807 = vmatprep.subr.bf16.mxu1 %v11626_v61  ;;  %v11644_v61 = vcombine.high %v17139_v31, %v17142_v55  ;;  %v9888_v44 = vld [vmem:[%s17636_s6 + $0x160] sm:$0xff] (%p9377_p2) }
0x1b7a   : >> { %9808 = vmatpush1.bf16.msra.mxu1 %v11625_v26  ;;  %v11643_v26 = vcombine.low %v17139_v31, %v17142_v55  ;;  %v9885_v31 = vld [vmem:[%s17636_s6 + $0x148] sm:$0xff] (%p9377_p2) }
0x1b7b   : >> { %9809 = vmatprep.subr.bf16.mxu1 %v11628_v12  ;;  %v9889_v55 = vld [vmem:[%s17636_s6 + $0x168] sm:$0xff] (%p9377_p2) }
0x1b7e   : >> { %9810 = vmatpush1.bf16.msra.mxu1 %v11627_v2 }
0x1b7f   : >> { %9811 = vmatprep.subr.bf16.mxu1 %v11630_v6 }
0x1b82   : >> { %9812 = vmatpush1.bf16.msra.mxu1 %v11629_v35 }
0x1b83   : >> { %9813 = vmatprep.subr.bf16.mxu1 %v11632_v54  ;;  %v9848_v54 = vld [vmem:[%s17636_s6 + $0x20] sm:$0xff] (%p9377_p2) }
0x1b86   : >> { %9814 = vmatpush1.bf16.msra.mxu1 %v11631_v10 }
0x1b87   : >> { %9815 = vmatprep.subr.bf16.mxu1 %v11634_v5 }
0x1b8a   : >> { %9816 = vmatpush1.bf16.msra.mxu1 %v11633_v3 }
0x1b8b   : >> { %9817 = vmatprep.subr.bf16.mxu1 %v11636_v21  ;;  %v9849_v21 = vld [vmem:[%s17636_s6 + $0x28] sm:$0xff] (%p9377_p2) }
0x1b8e   : >> { %9818 = vmatpush1.bf16.msra.mxu1 %v11635_v49 }
0x1b8f   : >> { %9819 = vmatprep.subr.bf16.mxu1 %v11638_v57  ;;  %v11678_v57 = vcombine.low (%p9377_p2), %v9876_v9, %v9880_v13 }
0x1b92   : >> { %9820 = vmatpush1.bf16.msra.mxu1 %v11637_v43  ;;  %v11680_v43 = vcombine.low (%p9377_p2), %v9877_v28, %v9881_v50  ;;  %v9932_v50 = vld [vmem:[%s17636_s6 + $0x2c0] sm:$0xff] (%p9377_p2) }
0x1b93   : >> { %9821 = vmatprep.subr.bf16.mxu1 %v11640_v27  ;;  %v11687_v27 = vcombine.high (%p9377_p2), %v9884_v62, %v9888_v44 }
0x1b96   : >> { %9822 = vmatpush1.bf16.msra.mxu1 %v11639_v0  ;;  %v11689_v0 = vcombine.high (%p9377_p2), %v9885_v31, %v9889_v55 }
0x1b97   : >> { %9823 = vmatprep.subr.bf16.mxu1 %v11642_v39  ;;  %v9892_v39 = vld [vmem:[%s17636_s6 + $0x180] sm:$0xff] (%p9377_p2) }
0x1b9a   : >> { %9824 = vmatpush1.bf16.msra.mxu1 %v11641_v42  ;;  %v9896_v42 = vld [vmem:[%s17636_s6 + $0x1a0] sm:$0xff] (%p9377_p2) }
0x1b9b   : >> { %9825 = vmatprep.subr.bf16.mxu1 %v11644_v61  ;;  %v9893_v61 = vld [vmem:[%s17636_s6 + $0x188] sm:$0xff] (%p9377_p2) }
0x1b9e   : >> { %9826 = vmatpush1.bf16.msra.mxu1 %v11643_v26  ;;  %v9897_v26 = vld [vmem:[%s17636_s6 + $0x1a8] sm:$0xff] (%p9377_p2) }
0x1b9f   : > { %v11696_v4 = vcombine.low (%p9377_p2), %v9893_v61, %v9897_v26 }
0x1ba1   : >> { %9836 = vmatmul.mubr.bf16.vlgmr.msra.gmra.mrb[0].mxu1 %v17191_v14  ;;  %v9844_v14 = vld [vmem:[%s17636_s6] sm:$0xff] (%p9377_p2) }
0x1ba2   : > { %v11647_v3 = vcombine.high (%p9377_p2), %v9844_v14, %v9848_v54  ;;  %v11646_v49 = vcombine.low (%p9377_p2), %v9844_v14, %v9848_v54  ;;  %v11697_v14 = vcombine.high (%p9377_p2), %v9893_v61, %v9897_v26  ;;  %v9900_v54 = vld [vmem:[%s17636_s6 + $0x1c0] sm:$0xff] (%p9377_p2)  ;;  %v9854_v26 = vld [vmem:[%s17636_s6 + $0x50] sm:$0xff] (%p9377_p2) }
0x1ba4   : > { %10467 = vmatprep.subr.bf16.mxu0 (%p9377_p2), %v11647_v3  ;;  %v9901_v3 = vld [vmem:[%s17636_s6 + $0x1c8] sm:$0xff] (%p9377_p2) }
0x1ba5   : > { %10468 = vmatpush1.bf16.msra.mxu0 (%p9377_p2), %v11646_v49  ;;  %v11694_v49 = vcombine.low (%p9377_p2), %v9892_v39, %v9896_v42 }
0x1ba6   : > { %10469 = vmatprep.subr.bf16.mxu0 (%p9377_p2), %v11655_v52  ;;  %v9912_v52 = vld [vmem:[%s17636_s6 + $0x220] sm:$0xff] (%p9377_p2) }
0x1ba9   : > { %10470 = vmatpush1.bf16.msra.mxu0 (%p9377_p2), %v11654_v56  ;;  %v9920_v56 = vld [vmem:[%s17636_s6 + $0x260] sm:$0xff] (%p9377_p2) }
0x1baa   : > { %10471 = vmatprep.subr.bf16.mxu0 (%p9377_p2), %v11663_v38  ;;  %v9921_v38 = vld [vmem:[%s17636_s6 + $0x268] sm:$0xff] (%p9377_p2)  ;;  %v11719_v34 = vcombine.high (%p9377_p2), %v9916_v25, %v9920_v56 }
0x1bad   : > { %10472 = vmatpush1.bf16.msra.mxu0 (%p9377_p2), %v11662_v48  ;;  %v9928_v48 = vld [vmem:[%s17636_s6 + $0x2a0] sm:$0xff] (%p9377_p2) }
0x1bae   : > { %10473 = vmatprep.subr.bf16.mxu0 (%p9377_p2), %v11671_v29  ;;  %v9929_v29 = vld [vmem:[%s17636_s6 + $0x2a8] sm:$0xff] (%p9377_p2)  ;;  %v11727_v13 = vcombine.high (%p9377_p2), %v9924_v8, %v9928_v48 }
0x1bb1   : > { %10474 = vmatpush1.bf16.msra.mxu0 (%p9377_p2), %v11670_v20  ;;  %v9936_v20 = vld [vmem:[%s17636_s6 + $0x2e0] sm:$0xff] (%p9377_p2) }
0x1bb2   : > { %10475 = vmatprep.subr.bf16.mxu0 (%p9377_p2), %v11679_v30  ;;  %v9937_v30 = vld [vmem:[%s17636_s6 + $0x2e8] sm:$0xff] (%p9377_p2) }
0x1bb5   : > { %10476 = vmatpush1.bf16.msra.mxu0 (%p9377_p2), %v11678_v57  ;;  %v9850_v57 = vld [vmem:[%s17636_s6 + $0x30] sm:$0xff] (%p9377_p2) }
0x1bb6   : > { %10477 = vmatprep.subr.bf16.mxu0 (%p9377_p2), %v11687_v27  ;;  %v9851_v27 = vld [vmem:[%s17636_s6 + $0x38] sm:$0xff] (%p9377_p2) }
0x1c71   : > { %9379 = sbr.rel (!%p9377_p2) target bundleno = 6530 (0x1982), region = 592 }
0x1c74   : >> { %v17258_v10 = vpop.f32.mrb[0].mxu1  }
0x1c75   : >> { %v17633_v2 = vmov %v17258_v10  ;;  %v9839_v6 = vpop.f32.mrb[1].mxu1  }
0x1c76   : >> { %v9841_v12 = vpop.f32.mrb[2].mxu1  ;;  %v17635_v10 = vmov %v17633_v2  ;;  %v17271_v5 = vpack.c.bf16 (%p9377_p2), %v9839_v6, %v9839_v6 }
0x1c77   : >> { %v9842_v35 = vpop.f32.mrb[3].mxu1  ;;  %v17634_v12 = vmov %v9839_v6  ;;  %v9845_v10 = vld [vmem:[%s17636_s6 + $0x8] sm:$0xff] (%p9377_p2)  ;;  %v11686_v6 = vcombine.low (%p9377_p2), %v9884_v62, %v9888_v44  ;;  %v11735_v44 = vcombine.high (%p9377_p2), %v9932_v50, %v9936_v20 }
0x1c78   : > { %v11649_v36 = vcombine.high %v9845_v10, %v9849_v21  ;;  %v11648_v7 = vcombine.low %v9845_v10, %v9849_v21  ;;  %11742 = vmatprep.mubr.msk.bf16.mxu0 %vm3738_vm4, %v17271_v5  ;;  %11743 = vmatprep.mubr.msk.bf16.mxu1 %vm3738_vm4, %v17271_v5  ;;  %v11688_v12 = vcombine.low %v9885_v31, %v9889_v55  ;;  %v9904_v10 = vld [vmem:[%s17636_s6 + $0x1e0] sm:$0xff]  ;;  %v9905_v21 = vld [vmem:[%s17636_s6 + $0x1e8] sm:$0xff]  ;;  %v9846_v55 = vld [vmem:[%s17636_s6 + $0x10] sm:$0xff] }
0x1c79   : > { %v11695_v35 = vcombine.high %v9892_v39, %v9896_v42  ;;  %10478 = vmatpush1.bf16.msra.mxu0 %v11686_v6  ;;  %v11703_v33 = vcombine.high %v9900_v54, %v9904_v10  ;;  %v11702_v19 = vcombine.low %v9900_v54, %v9904_v10  ;;  %v11651_v42 = vcombine.high %v9846_v55, %v9850_v57  ;;  %v9858_v6 = vld [vmem:[%s17636_s6 + $0x70] sm:$0xff] }
0x1c7a   : > { %10508 = vmatprep.subr.bf16.mxu1 %v11649_v36  ;;  %v11705_v36 = vcombine.high %v9901_v3, %v9905_v21  ;;  %v11650_v54 = vcombine.low %v9846_v55, %v9850_v57 }
0x1c7b   : > { %10509 = vmatpush1.bf16.msra.mxu1 %v11648_v7  ;;  %10479 = vmatprep.subr.bf16.mxu0 %v11695_v35  ;;  %v9908_v7 = vld [vmem:[%s17636_s6 + $0x200] sm:$0xff]  ;;  %v9855_v35 = vld [vmem:[%s17636_s6 + $0x58] sm:$0xff] }
0x1c7c   : > { %10510 = vmatprep.subr.bf16.mxu1 %v11657_v40  ;;  %v11704_v40 = vcombine.low %v9901_v3, %v9905_v21  ;;  %v11711_v17 = vcombine.high %v9908_v7, %v9912_v52  ;;  %v11659_v3 = vcombine.high %v9854_v26, %v9858_v6 }
0x1c7d   : > { %10480 = vmatpush1.bf16.msra.mxu0 %v11694_v49  ;;  %v9862_v49 = vld [vmem:[%s17636_s6 + $0x90] sm:$0xff] }
0x1c7e   : > { %10481 = vmatprep.subr.bf16.mxu0 %v11703_v33  ;;  %v9867_v33 = vld [vmem:[%s17636_s6 + $0xb8] sm:$0xff] }
0x1c7f   : > { %10511 = vmatpush1.bf16.msra.mxu1 %v11656_v47  ;;  %v9917_v47 = vld [vmem:[%s17636_s6 + $0x248] sm:$0xff] }
0x1c80   : > { %10512 = vmatprep.subr.bf16.mxu1 %v11665_v45  ;;  %v11710_v45 = vcombine.low %v9908_v7, %v9912_v52  ;;  %v11721_v63 = vcombine.high %v9917_v47, %v9921_v38  ;;  %v11720_v9 = vcombine.low %v9917_v47, %v9921_v38  ;;  %v9878_v38 = vld [vmem:[%s17636_s6 + $0x110] sm:$0xff] }
0x1c81   : > { %10482 = vmatpush1.bf16.msra.mxu0 %v11702_v19  ;;  %v9874_v19 = vld [vmem:[%s17636_s6 + $0xf0] sm:$0xff] }
0x1c82   : > { %10483 = vmatprep.subr.bf16.mxu0 %v11711_v17  ;;  %v9875_v17 = vld [vmem:[%s17636_s6 + $0xf8] sm:$0xff] }
0x1c83   : > { %10513 = vmatpush1.bf16.msra.mxu1 %v11664_v41  ;;  %v9925_v41 = vld [vmem:[%s17636_s6 + $0x288] sm:$0xff] }
0x1c84   : > { %10514 = vmatprep.subr.bf16.mxu1 %v11673_v11  ;;  %v11718_v11 = vcombine.low %v9916_v25, %v9920_v56  ;;  %v11729_v28 = vcombine.high %v9925_v41, %v9929_v29  ;;  %v11728_v62 = vcombine.low %v9925_v41, %v9929_v29  ;;  %v11675_v56 = vcombine.high %v9870_v16, %v9874_v19  ;;  %v9886_v41 = vld [vmem:[%s17636_s6 + $0x150] sm:$0xff] }
0x1c85   : > { %10484 = vmatpush1.bf16.msra.mxu0 %v11710_v45  ;;  %v9882_v45 = vld [vmem:[%s17636_s6 + $0x130] sm:$0xff] }
0x1c86   : > { %10485 = vmatprep.subr.bf16.mxu0 %v11719_v34  ;;  %v9883_v34 = vld [vmem:[%s17636_s6 + $0x138] sm:$0xff]  ;;  %v9890_v29 = vld [vmem:[%s17636_s6 + $0x170] sm:$0xff] }
0x1c87   : > { %10515 = vmatpush1.bf16.msra.mxu1 %v11672_v1  ;;  %v9933_v1 = vld [vmem:[%s17636_s6 + $0x2c8] sm:$0xff] }
0x1c88   : > { %10516 = vmatprep.subr.bf16.mxu1 %v11681_v59  ;;  %v11726_v59 = vcombine.low %v9924_v8, %v9928_v48  ;;  %v11737_v31 = vcombine.high %v9933_v1, %v9937_v30  ;;  %v11736_v39 = vcombine.low %v9933_v1, %v9937_v30  ;;  %v11683_v8 = vcombine.high %v9878_v38, %v9882_v45  ;;  %v9894_v1 = vld [vmem:[%s17636_s6 + $0x190] sm:$0xff] }
0x1c89   : > { %10486 = vmatpush1.bf16.msra.mxu0 %v11718_v11  ;;  %v9887_v11 = vld [vmem:[%s17636_s6 + $0x158] sm:$0xff]  ;;  %v9898_v30 = vld [vmem:[%s17636_s6 + $0x1b0] sm:$0xff] }
0x1c8a   : > { %10487 = vmatprep.subr.bf16.mxu0 %v11727_v13  ;;  %v11682_v13 = vcombine.low %v9878_v38, %v9882_v45  ;;  %v11699_v55 = vcombine.high %v9894_v1, %v9898_v30 }
0x1c8b   : > { %10517 = vmatpush1.bf16.msra.mxu1 %v11680_v43  ;;  %v9847_v43 = vld [vmem:[%s17636_s6 + $0x18] sm:$0xff] }
0x1c8c   : > { %10518 = vmatprep.subr.bf16.mxu1 %v11689_v0  ;;  %v11734_v0 = vcombine.low %v9932_v50, %v9936_v20  ;;  %v11653_v61 = vcombine.high %v9847_v43, %v9851_v27  ;;  %v11652_v10 = vcombine.low %v9847_v43, %v9851_v27  ;;  %v11691_v50 = vcombine.high %v9886_v41, %v9890_v29  ;;  %v9902_v43 = vld [vmem:[%s17636_s6 + $0x1d0] sm:$0xff] }
0x1c8d   : > { %10488 = vmatpush1.bf16.msra.mxu0 %v11726_v59  ;;  %v9895_v59 = vld [vmem:[%s17636_s6 + $0x198] sm:$0xff]  ;;  %v9906_v27 = vld [vmem:[%s17636_s6 + $0x1f0] sm:$0xff] }
0x1c8e   : > { %10489 = vmatprep.subr.bf16.mxu0 %v11735_v44  ;;  %v11690_v44 = vcombine.low %v9886_v41, %v9890_v29 }
0x1c8f   : > { %10519 = vmatpush1.bf16.msra.mxu1 %v11688_v12  ;;  %v17330_v12 = vpack.c.bf16 %v17633_v2, %v17633_v2  ;;  %v9863_v2 = vld [vmem:[%s17636_s6 + $0x98] sm:$0xff] }
0x1c90   : > { %10520 = vmatprep.subr.bf16.mxu1 %v11697_v14  ;;  %v9859_v14 = vld [vmem:[%s17636_s6 + $0x78] sm:$0xff]  ;;  %v11669_v37 = vcombine.high %v9863_v2, %v9867_v33  ;;  %v11668_v25 = vcombine.low %v9863_v2, %v9867_v33  ;;  %v9918_v2 = vld [vmem:[%s17636_s6 + $0x250] sm:$0xff] }
0x1c91   : > { %10490 = vmatpush1.bf16.msra.mxu0 %v11734_v0  ;;  %v11661_v21 = vcombine.high %v9855_v35, %v9859_v14  ;;  %v11660_v7 = vcombine.low %v9855_v35, %v9859_v14  ;;  %v9903_v0 = vld [vmem:[%s17636_s6 + $0x1d8] sm:$0xff]  ;;  %v9910_v35 = vld [vmem:[%s17636_s6 + $0x210] sm:$0xff] }
0x1c92   : > { %10549 = vmatprep.subr.bf16.mxu0 %v11651_v42  ;;  %v11698_v42 = vcombine.low %v9894_v1, %v9898_v30  ;;  %v9914_v14 = vld [vmem:[%s17636_s6 + $0x230] sm:$0xff] }
0x1c93   : > { %10521 = vmatpush1.bf16.msra.mxu1 %v11696_v4  ;;  %v9866_v4 = vld [vmem:[%s17636_s6 + $0xb0] sm:$0xff] }
0x1c94   : > { %10522 = vmatprep.subr.bf16.mxu1 %v11705_v36  ;;  %10500 = vmatmul.mubr.bf16.vlgmr.msra.gmra.mrb[0].mxu0 %v17330_v12  ;;  %v11658_v36 = vcombine.low %v9854_v26, %v9858_v6  ;;  %v11667_v52 = vcombine.high %v9862_v49, %v9866_v4  ;;  %v11707_v26 = vcombine.high %v9902_v43, %v9906_v27  ;;  %v9922_v33 = vld [vmem:[%s17636_s6 + $0x270] sm:$0xff] }
0x1c95   : > { %10550 = vmatpush1.bf16.msra.mxu0 %v11650_v54  ;;  %11744 = vmatprep.mubr.msk.bf16.mxu0 %vm3738_vm4, %v17271_v5  ;;  %v9911_v54 = vld [vmem:[%s17636_s6 + $0x218] sm:$0xff] }
0x1c96   : > { %10551 = vmatprep.subr.bf16.mxu0 %v11659_v3  ;;  %v11706_v3 = vcombine.low %v9902_v43, %v9906_v27 }
0x1c97   : > { %10523 = vmatpush1.bf16.msra.mxu1 %v11704_v40  ;;  %v9871_v40 = vld [vmem:[%s17636_s6 + $0xd8] sm:$0xff] }
0x1c98   : > { %10524 = vmatprep.subr.bf16.mxu1 %v11713_v24  ;;  %v11666_v24 = vcombine.low %v9862_v49, %v9866_v4  ;;  %v11677_v47 = vcombine.high %v9871_v40, %v9875_v17  ;;  %v11715_v49 = vcombine.high %v9910_v35, %v9914_v14 }
0x1c99   : > { %10552 = vmatpush1.bf16.msra.mxu0 %v11658_v36  ;;  %v9919_v36 = vld [vmem:[%s17636_s6 + $0x258] sm:$0xff] }
0x1c9a   : > { %10553 = vmatprep.subr.bf16.mxu0 %v11667_v52  ;;  %v11714_v52 = vcombine.low %v9910_v35, %v9914_v14 }
0x1c9b   : > { %10525 = vmatpush1.bf16.msra.mxu1 %v11712_v15  ;;  %v9879_v15 = vld [vmem:[%s17636_s6 + $0x118] sm:$0xff] }
0x1c9c   : > { %10526 = vmatprep.subr.bf16.mxu1 %v11721_v63  ;;  %v11674_v63 = vcombine.low %v9870_v16, %v9874_v19  ;;  %v11685_v48 = vcombine.high %v9879_v15, %v9883_v34  ;;  %v11723_v16 = vcombine.high %v9918_v2, %v9922_v33 }
0x1c9d   : > { %10554 = vmatpush1.bf16.msra.mxu0 %v11666_v24  ;;  %v9927_v24 = vld [vmem:[%s17636_s6 + $0x298] sm:$0xff] }
0x1c9e   : > { %10555 = vmatprep.subr.bf16.mxu0 %v11675_v56  ;;  %v11722_v56 = vcombine.low %v9918_v2, %v9922_v33 }
0x1c9f   : > { %10527 = vmatpush1.bf16.msra.mxu1 %v11720_v9  ;;  %v9891_v9 = vld [vmem:[%s17636_s6 + $0x178] sm:$0xff] }
0x1ca0   : > { %10528 = vmatprep.subr.bf16.mxu1 %v11729_v28  ;;  %v11684_v28 = vcombine.low %v9879_v15, %v9883_v34  ;;  %v11693_v20 = vcombine.high %v9887_v11, %v9891_v9  ;;  %v9934_v15 = vld [vmem:[%s17636_s6 + $0x2d0] sm:$0xff] }
0x1ca1   : > { %10556 = vmatpush1.bf16.msra.mxu0 %v11674_v63  ;;  %v9938_v34 = vld [vmem:[%s17636_s6 + $0x2f0] sm:$0xff]  ;;  %v9935_v63 = vld [vmem:[%s17636_s6 + $0x2d8] sm:$0xff] }
0x1ca2   : > { %10557 = vmatprep.subr.bf16.mxu0 %v11683_v8  ;;  %v11739_v41 = vcombine.high %v9934_v15, %v9938_v34 }
0x1ca3   : > { %10529 = vmatpush1.bf16.msra.mxu1 %v11728_v62  ;;  %v9899_v62 = vld [vmem:[%s17636_s6 + $0x1b8] sm:$0xff] }
0x1ca4   : > { %10530 = vmatprep.subr.bf16.mxu1 %v11737_v31  ;;  %v11692_v31 = vcombine.low %v9887_v11, %v9891_v9  ;;  %v11701_v57 = vcombine.high %v9895_v59, %v9899_v62  ;;  %v11738_v11 = vcombine.low %v9934_v15, %v9938_v34 }
0x1ca5   : > { %10558 = vmatpush1.bf16.msra.mxu0 %v11682_v13  ;;  %v9940_v13 = vld [vmem:[%s17637_s28] sm:$0xff] }
0x1ca6   : > { %10559 = vmatprep.subr.bf16.mxu0 %v11691_v50  ;;  %v10435_v1 = vrot.slane %v9940_v13, %v16150_v32  ;;  %v10431_v30 = vrot.slane %v9940_v13, %v16147_v58  ;;  %v10455_v2 = vrot.slane %v9940_v13, %v16182_v22 }
0x1ca7   : > { %10531 = vmatpush1.bf16.msra.mxu1 %v11736_v39  ;;  %v9907_v39 = vld [vmem:[%s17636_s6 + $0x1f8] sm:$0xff] }
0x1ca8   : > { %10590 = vmatprep.subr.bf16.mxu1 %v11653_v61  ;;  %v11700_v61 = vcombine.low %v9895_v59, %v9899_v62  ;;  %v11709_v6 = vcombine.high %v9903_v0, %v9907_v39  ;;  %v10439_v59 = vrot.slane %v9940_v13, %v16162_v18 }
0x1ca9   : > { %10560 = vmatpush1.bf16.msra.mxu0 %v11690_v44 }
0x1caa   : > { %10541 = vmatmul.mubr.bf16.vlgmr.msra.gmra.mrb[0].mxu1 %v17330_v12  ;;  %10561 = vmatprep.subr.bf16.mxu0 %v11699_v55 }
0x1cab   : > { %10591 = vmatpush1.bf16.msra.mxu1 %v11652_v10  ;;  %11745 = vmatprep.mubr.msk.bf16.mxu1 %vm3738_vm4, %v17271_v5  ;;  %v11676_v5 = vcombine.low %v9871_v40, %v9875_v17  ;;  %v9915_v10 = vld [vmem:[%s17636_s6 + $0x238] sm:$0xff]  ;;  %v9926_v40 = vld [vmem:[%s17636_s6 + $0x290] sm:$0xff] }
0x1cac   : > { %10592 = vmatprep.subr.bf16.mxu1 %v11661_v21  ;;  %v11708_v21 = vcombine.low %v9903_v0, %v9907_v39  ;;  %v11717_v4 = vcombine.high %v9911_v54, %v9915_v10  ;;  %v9930_v17 = vld [vmem:[%s17636_s6 + $0x2b0] sm:$0xff] }
0x1cad   : > { %10562 = vmatpush1.bf16.msra.mxu0 %v11698_v42  ;;  %v11731_v38 = vcombine.high %v9926_v40, %v9930_v17  ;;  %v11730_v8 = vcombine.low %v9926_v40, %v9930_v17 }
0x1cae   : > { %10563 = vmatprep.subr.bf16.mxu0 %v11707_v26 }
0x1caf   : > { %10593 = vmatpush1.bf16.msra.mxu1 %v11660_v7  ;;  %v9923_v7 = vld [vmem:[%s17636_s6 + $0x278] sm:$0xff] }
0x1cb0   : > { %10594 = vmatprep.subr.bf16.mxu1 %v11669_v37  ;;  %v11716_v37 = vcombine.low %v9911_v54, %v9915_v10  ;;  %v11725_v19 = vcombine.high %v9919_v36, %v9923_v7 }
0x1cb1   : > { %10564 = vmatpush1.bf16.msra.mxu0 %v11706_v3 }
0x1cb2   : > { %10565 = vmatprep.subr.bf16.mxu0 %v11715_v49  ;;  %v10451_v49 = vrot.slane %v9940_v13, %v16175_v46 }
0x1cb3   : > { %10595 = vmatpush1.bf16.msra.mxu1 %v11668_v25  ;;  %v9931_v25 = vld [vmem:[%s17636_s6 + $0x2b8] sm:$0xff] }
0x1cb4   : > { %10596 = vmatprep.subr.bf16.mxu1 %v11677_v47  ;;  %v11724_v47 = vcombine.low %v9919_v36, %v9923_v7  ;;  %v11733_v45 = vcombine.high %v9927_v24, %v9931_v25 }
0x1cb5   : > { %10566 = vmatpush1.bf16.msra.mxu0 %v11714_v52 }
0x1cb6   : > { %10567 = vmatprep.subr.bf16.mxu0 %v11723_v16 }
0x1cb7   : > { %10597 = vmatpush1.bf16.msra.mxu1 %v11676_v5  ;;  %v9939_v5 = vld [vmem:[%s17636_s6 + $0x2f8] sm:$0xff] }
0x1cb8   : > { %10598 = vmatprep.subr.bf16.mxu1 %v11685_v48  ;;  %v11732_v48 = vcombine.low %v9927_v24, %v9931_v25  ;;  %v11741_v29 = vcombine.high %v9935_v63, %v9939_v5  ;;  %v11740_v9 = vcombine.low %v9935_v63, %v9939_v5 }
0x1cb9   : > { %10568 = vmatpush1.bf16.msra.mxu0 %v11722_v56 }
0x1cba   : > { %10569 = vmatprep.subr.bf16.mxu0 %v11731_v38 }
0x1cbb   : > { %10599 = vmatpush1.bf16.msra.mxu1 %v11684_v28  ;;  %v14773_v28 = vmov 1966171168  }
0x1cbc   : > { %10600 = vmatprep.subr.bf16.mxu1 %v11693_v20  ;;  %v10652_v50 = vunpack.c.l.s4 %v14773_v28  ;;  %v10427_v20 = vrot.slane %v9940_v13, %v16144_v53 }
0x1cbd   : > { %10570 = vmatpush1.bf16.msra.mxu0 %v11730_v8 }
0x1cbe   : > { %10571 = vmatprep.subr.bf16.mxu0 %v11739_v41  ;;  %v10653_v44 = vunpack.c.0.s8 %v10652_v50 }
0x1cbf   : > { %10601 = vmatpush1.bf16.msra.mxu1 %v11692_v31 }
0x1cc0   : > { %10602 = vmatprep.subr.bf16.mxu1 %v11701_v57  ;;  %v10656_v32 = vsub.s32 %v10653_v44, %v16141_v23 }
0x1cc1   : > { %10572 = vmatpush1.bf16.msra.mxu0 %v11738_v11 }
0x1cc3   : > { %10603 = vmatpush1.bf16.msra.mxu1 %v11700_v61 }
0x1cc4   : > { %10604 = vmatprep.subr.bf16.mxu1 %v11709_v6  ;;  %10582 = vmatmul.mubr.bf16.vlgmr.msra.gmra.mrb[4].mxu0 %v17330_v12 }
0x1cc7   : > { %10605 = vmatpush1.bf16.msra.mxu1 %v11708_v21  ;;  %v10443_v21 = vrot.slane %v9940_v13, %v16165_v60 }
0x1cc8   : > { %10606 = vmatprep.subr.bf16.mxu1 %v11717_v4  ;;  %v10447_v4 = vrot.slane %v9940_v13, %v16172_v51 }
0x1ccb   : > { %10607 = vmatpush1.bf16.msra.mxu1 %v11716_v37 }
0x1ccc   : > { %10608 = vmatprep.subr.bf16.mxu1 %v11725_v19 }
0x1ccf   : > { %10609 = vmatpush1.bf16.msra.mxu1 %v11724_v47 }
0x1cd0   : > { %10610 = vmatprep.subr.bf16.mxu1 %v11733_v45 }
0x1cd3   : > { %10611 = vmatpush1.bf16.msra.mxu1 %v11732_v48 }
0x1cd4   : > { %10612 = vmatprep.subr.bf16.mxu1 %v11741_v29 }
0x1cd7   : > { %10613 = vmatpush1.bf16.msra.mxu1 %v11740_v9 }
0x1cda   : > { %10623 = vmatmul.mubr.bf16.vlgmr.msra.gmra.mrb[4].mxu1 %v17330_v12 }
0x1d67   : > { %v10501_v62 = vpop.f32.mrb[0].mxu0 }
0x1d68   : > { %v10502_v31 = vadd.f32 %v10501_v62, %v10427_v20  ;;  %v10503_v57 = vpop.f32.mrb[1].mxu0 }
0x1d69   : > { %v10504_v27 = vadd.f32 %v10503_v57, %v10431_v30  ;;  %v10505_v12 = vpop.f32.mrb[2].mxu0 }
0x1d6a   : > { %v10631_v39 = vmax.f32 %v10502_v31, 0.0  ;;  %v10506_v26 = vpop.f32.mrb[3].mxu0 }
0x1d6b   : > { %v10632_v6 = vmax.f32 %v10504_v27, 0.0 }
0x1d6d   : > { %v10647_v18 = vcombine.low %v10631_v39, %v10632_v6 }
0x1d6f   : > { %v10657_v54 = vrot.slane %v10647_v18, %v10656_v32 }
0x1d7d   : > { %v10542_v55 = vpop.f32.mrb[0].mxu1 }
0x1d7e   : > { %v10543_v43 = vadd.f32 %v10542_v55, %v10435_v1  ;;  %v10544_v0 = vpop.f32.mrb[1].mxu1 }
0x1d7f   : > { %v10545_v42 = vadd.f32 %v10544_v0, %v10439_v59  ;;  %v10546_v61 = vpop.f32.mrb[2].mxu1 }
0x1d80   : > { %v10633_v53 = vmax.f32 %v10543_v43, 0.0  ;;  %v10547_v58 = vpop.f32.mrb[3].mxu1 }
0x1d81   : > { %v10634_v35 = vmax.f32 %v10545_v42, 0.0 }
0x1d83   : > { %v10648_v14 = vcombine.low %v10633_v53, %v10634_v35 }
0x1d85   : > { %v10664_v10 = vrot.slane %v10648_v14, %v10656_v32 }
0x1d87   : > { %v10679_v3 = vcombine.low %v10657_v54, %v10664_v10 }
0x1d89   : > { %v10687_v34 = vrot.slane %v10679_v3, %v10656_v32 }
0x1d97   : > { %v10583_v33 = vpop.f32.mrb[4].mxu0 }
0x1d98   : > { %v10584_v36 = vadd.f32 %v10583_v33, %v10443_v21  ;;  %v10585_v52 = vpop.f32.mrb[5].mxu0 }
0x1d99   : > { %v10586_v37 = vadd.f32 %v10585_v52, %v10447_v4  ;;  %v10587_v19 = vpop.f32.mrb[6].mxu0 }
0x1d9a   : > { %v10635_v40 = vmax.f32 %v10584_v36, 0.0  ;;  %v10588_v25 = vpop.f32.mrb[7].mxu0 }
0x1d9b   : > { %v10636_v56 = vmax.f32 %v10586_v37, 0.0 }
0x1d9d   : > { %v10649_v51 = vcombine.low %v10635_v40, %v10636_v56 }
0x1d9f   : > { %v10671_v22 = vrot.slane %v10649_v51, %v10656_v32 }
0x1dad   : > { %v10624_v7 = vpop.f32.mrb[4].mxu1 }
0x1dae   : > { %v10625_v23 = vadd.f32 %v10624_v7, %v10451_v49  ;;  %v10626_v16 = vpop.f32.mrb[5].mxu1 }
0x1daf   : > { %v10627_v17 = vadd.f32 %v10626_v16, %v10455_v2  ;;  %v10628_v24 = vpop.f32.mrb[6].mxu1 }
0x1db0   : > { %v10637_v60 = vmax.f32 %v10625_v23, 0.0  ;;  %v10629_v46 = vpop.f32.mrb[7].mxu1 }
0x1db1   : > { %v10638_v47 = vmax.f32 %v10627_v17, 0.0 }
0x1db3   : > { %v10650_v38 = vcombine.low %v10637_v60, %v10638_v47 }
0x1db5   : > { %v10678_v45 = vrot.slane %v10650_v38, %v10656_v32 }
0x1db7   : > { %v10680_v15 = vcombine.low %v10671_v22, %v10678_v45 }
0x1db9   : > { %v10694_v63 = vrot.slane %v10680_v15, %v10656_v32 }
0x1dbb   : > { %v10695_v5 = vcombine.low %v10687_v34, %v10694_v63 }
0x1dbd   : > { %10697 = vst [vmem:[%s15490_s4] sm:$0xff] %v10695_v5 }
0x1dbe PF: > { %s17638_s0 = sld [smem:[#allocation109_spill]] }
0x1dc4   : > { %s159_s28 = sadd.s32 1, %s17638_s0  }
0x1dc5   : > { %p156_p3 = scmp.ge.s32.totalorder %s159_s28, 4  }
0x1dc7   :  { %158 = sbr.rel (!%p156_p3) target bundleno = 144 (0x90), region = 603 }
0x1dce   :  { %10717 = vsyncpa [#allocation3], 1 }
0x1dcf   :  { %10719 = vsyncpa [#allocation3 + $0x1], 1 }
0x1dd0   :  { %10720 = vsyncpa [#allocation5], 1 }
0x1dd1   :  { %10721 = vsyncpa [#allocation8], 1 }
0x1dd2   :  { %10722 = vsyncpa [#allocation11], 1 }
0x1dd3   :  { %10723 = vsyncpa [#allocation14], 1 }
0x1dd4   :  { %10724 = vsyncpa [#allocation17], 1 }
0x1dd5   :  { %10725 = vsyncpa [#allocation20], 1 }
0x1dd6   :  { %10726 = vsyncpa [#allocation23], 1 }
0x1dd7   :  { %10727 = vsyncpa [#allocation26], 1 }
0x1dd8   :  { %10728 = vsyncpa [#allocation29], 1 }
0x1dd9   :  { %10729 = vsyncpa [#allocation32], 1 }
0x1dda   :  { %10730 = vsyncpa [#allocation35], 1 }

</bundles_post_ra>
